<compile_context>
chip_gen: v5e
topology: v5e:2x2
jax: 0.10.0
libtpu: 0.0.40
codegen_flags: <defaults>
</compile_context>

<pallas_src>
import functools

import jax
import jax.numpy as jnp
from jax.experimental import pallas as pl
from jax.experimental.pallas import tpu as pltpu


# ----------------------------- in-kernel helpers ----------------------------

def _act(y, act):
    if act == "relu":
        return jnp.maximum(y, 0.0)
    if act == "lrelu":                       # nn.LeakyReLU(0.01)
        return jnp.where(y >= 0.0, y, 0.01 * y)
    return y


def _conv_same(x, w_ref, masks, ksize, width, act, const_input=False):
    """'Same' KxK conv in CHW-flat layout: x [Cin, H*W] -> [Cout, H*W].

    The K*K tap images (non-negative lane-roll + precomputed boundary mask, or
    mask-only when the input is spatially constant) are stacked along sublanes
    into [K*K*Cin, HW] and contracted with the host-stacked weight
    [Cout, K*K*Cin] in ONE MXU matmul (bf16 operands, f32 accumulate)."""
    pad = (ksize - 1) // 2
    hw = x.shape[1]
    taps = []
    for t in range(ksize * ksize):
        dy, dx = t // ksize - pad, t % ksize - pad
        if dy == 0 and dx == 0:
            taps.append(x)
        else:
            if const_input:
                xs = x                       # roll of a constant image is a no-op
            else:
                xs = pltpu.roll(x, shift=(-(dy * width + dx)) % hw, axis=1)
            taps.append(xs * masks[t:t + 1, :])
    stacked = jnp.concatenate(taps, axis=0).astype(jnp.bfloat16)
    y = jnp.dot(w_ref[...], stacked, preferred_element_type=jnp.float32)
    return _act(y, act)


def _conv_small(x, w_ref, shift_ref, ksize, act):
    """'Same' KxK conv at the small (LR) resolution.  Tap shift + zero-pad are
    precomputed [HWl,HWl] matrices (avoids <128-lane rolls); the shifted copies
    are stacked so the conv weight is applied as ONE deep matmul."""
    pad = (ksize - 1) // 2
    xb = x.astype(jnp.bfloat16)
    taps = []
    for t in range(ksize * ksize):
        dy, dx = t // ksize - pad, t % ksize - pad
        if dy == 0 and dx == 0:
            taps.append(x)
        else:
            taps.append(jnp.dot(xb, shift_ref[t],
                                preferred_element_type=jnp.float32))
    stacked = jnp.concatenate(taps, axis=0).astype(jnp.bfloat16)
    y = jnp.dot(w_ref[...], stacked, preferred_element_type=jnp.float32)
    return _act(y, act)


def _depthwise_blur(x, vec, masks, ksize, width):
    """Depthwise KxK blur applying the same per-sample kernel to every channel.
    Pure VPU multiply/accumulate in f32; the [K2,1] kernel is broadcast to the
    lane axis ONCE (hoisted) and sliced per tap."""
    pad = (ksize - 1) // 2
    hw = x.shape[1]
    vec_b = jnp.broadcast_to(vec, (vec.shape[0], hw))
    acc = jnp.zeros_like(x)
    for t in range(ksize * ksize):
        dy, dx = t // ksize - pad, t % ksize - pad
        if dy == 0 and dx == 0:
            xs = x
        else:
            xs = pltpu.roll(x, shift=(-(dy * width + dx)) % hw, axis=1)
            xs = xs * masks[t:t + 1, :]
        acc = acc + xs * vec_b[t:t + 1, :]
    return acc


def _kblock_kernel(ch_ref, dk_ref, lr_ref,
                   m3h_ref, m5h_ref, sds_ref, shl_ref,
                   w_srr_ref, w_fs1_ref, w_fs2_ref, w_fs3_ref, w_fs4_ref,
                   w_fs5_ref, w_fk1_ref, w_fk2_ref, w_c1_ref, w_c2_ref,
                   w_c3_ref, w_out_ref,
                   ef_ref, vec_ref,
                   *, width_hr, ksize, run_predictor):
    f32, bf16 = jnp.float32, jnp.bfloat16
    x = ch_ref[0].astype(f32)                               # [C0, H*W]
    m3 = m3h_ref[...]                                       # [9,  H*W]  (loaded once)
    m5 = m5h_ref[...]                                       # [K2, H*W]

    # sr_reconst: 3x3, no act, bias=False
    sr = _conv_same(x, w_srr_ref, m3, 3, width_hr, None)    # [3, H*W]

    pre = dk_ref[0].astype(f32)                             # [K2, HL*WL]
    gap_pre = jnp.mean(pre, axis=1, keepdims=True)          # [K2, 1]

    if run_predictor:
        # ---- fe_SR chain ----
        fsr = _conv_same(sr, w_fs1_ref, m3, 3, width_hr, "relu")
        fsr = _act(jnp.dot(w_fs2_ref[...], fsr.astype(bf16),
                           preferred_element_type=f32), "lrelu")   # 1x1
        fsr = _conv_same(fsr, w_fs3_ref, m3, 3, width_hr, "lrelu")
        fsr = _conv_same(fsr, w_fs4_ref, m3, 3, width_hr, "lrelu")
        fsr = _conv_same(fsr, w_fs5_ref, m3, 3, width_hr, "lrelu")

        # ---- fe_kernel chain on GAP(pre_kernel) expanded over the HR grid ----
        # fh is spatially constant -> first conv needs no rolls at all.
        fh = jnp.broadcast_to(gap_pre, (gap_pre.shape[0], sr.shape[1]))
        fh = _conv_same(fh, w_fk1_ref, m3, 3, width_hr, "lrelu",
                        const_input=True)
        fh = _conv_same(fh, w_fk2_ref, m3, 3, width_hr, "lrelu")

        # ---- fe_cat ----  channel concat feeds ONE deep 1x1 matmul
        cat = jnp.concatenate([fsr, fh], axis=0).astype(bf16)      # [2*K2, HW]
        d = _act(jnp.dot(w_c1_ref[...], cat, preferred_element_type=f32),
                 "lrelu")
        d = _conv_same(d, w_c2_ref, m3, 3, width_hr, "lrelu")
        d = _conv_same(d, w_c3_ref, m3, 3, width_hr, None)
        delta = jnp.mean(d, axis=1, keepdims=True)                 # [K2, 1]
        # GAP(pre_kernel + delta.expand(...)) == GAP(pre_kernel) + delta
        vec_ = gap_pre + delta
    else:
        vec_ = gap_pre

    s = jnp.sum(vec_, axis=0, keepdims=True)                # [1, 1]
    vec = vec_ / s                                          # exact normalization
    vec_ref[0] = vec.astype(vec_ref.dtype)

    # Per-sample depthwise 5x5 blur at full res, then stride-sf subsample via a
    # selection matmul -> pseudo_lr; error = pseudo_lr - input_lr.
    blur = _depthwise_blur(sr, vec, m5, ksize, width_hr)    # [3, H*W]
    pseudo = jnp.dot(blur.astype(bf16), sds_ref[...],
                     preferred_element_type=f32)            # [3, HL*WL]
    err = pseudo - lr_ref[0].astype(f32)

    # self.conv (LR branch): 3x3, no act, at LR resolution
    ef = _conv_small(err, w_out_ref, shl_ref, 3, None)      # [NF, HL*WL]
    ef_ref[0] = ef.astype(ef_ref.dtype)


# ------------------------------ host-side glue -------------------------------

def _prep_w(w_oihw):
    """OIHW conv weight -> tap-stacked matrix [Cout, KH*KW*Cin] (bf16), tap-major
    along the contraction so it matches the in-kernel sublane tap stack."""
    cout, cin, kh, kw = w_oihw.shape
    return jnp.transpose(w_oihw, (0, 2, 3, 1)).reshape(
        cout, kh * kw * cin).astype(jnp.bfloat16)


def _prep_w_1x1(w_oihw):
    return w_oihw[:, :, 0, 0].astype(jnp.bfloat16)


def _tap_masks(ksize, H, W):
    """[K*K, H*W] {0,1} masks: 1 iff tap (dy,dx) reads an in-bounds pixel."""
    pad = (ksize - 1) // 2
    m = jnp.arange(H * W)
    y, x = m // W, m % W
    rows = []
    for t in range(ksize * ksize):
        dy, dx = t // ksize - pad, t % ksize - pad
        rows.append((y + dy >= 0) & (y + dy < H) & (x + dx >= 0) & (x + dx < W))
    return jnp.stack(rows, 0).astype(jnp.float32)


def _downsample_matrix(H, W, sf):
    """[H*W, HL*WL] 0/1 selection matrix picking pixels (sf*oy, sf*ox)."""
    HL, WL = H // sf, W // sf
    m = jnp.arange(H * W)
    o = jnp.arange(HL * WL)
    src = (o // WL) * sf * W + (o % WL) * sf
    return (m[:, None] == src[None, :]).astype(jnp.bfloat16)


def _shift_matrices(ksize, H, W):
    """[K*K, H*W, H*W] shift+zero-pad matrices for a 'same' KxK conv (LR res)."""
    pad = (ksize - 1) // 2
    hw = H * W
    m = jnp.arange(hw)
    o = jnp.arange(hw)
    oy, ox = o // W, o % W
    mats = []
    for t in range(ksize * ksize):
        dy, dx = t // ksize - pad, t % ksize - pad
        sy, sx = oy + dy, ox + dx
        valid = (sy >= 0) & (sy < H) & (sx >= 0) & (sx < W)
        mats.append((m[:, None] == (sy * W + sx)[None, :]) & valid[None, :])
    return jnp.stack(mats, 0).astype(jnp.bfloat16)


def kblock_forward(params, concat_h, h, input_lr, lr_f0, d_kernel, *, cfg, it):
    """KBlock.forward with SUM_LR_ERROR_POS == 'LR'.  All tensors NCHW."""
    del lr_f0  # unused by the PyTorch forward as well
    ksize = cfg["ksize_output"]
    sf = cfg["scale_factor"]
    B, C0, H, W = concat_h.shape
    _, K2, HL, WL = d_kernel.shape
    C_lr = input_lr.shape[1]
    NF = params["conv"].shape[0]
    assert K2 == ksize * ksize
    pad = (ksize - 1) // 2
    assert (H + 2 * pad - ksize) // sf + 1 == HL and input_lr.shape[2:] == (HL, WL)
    a, b = cfg["sr_pretrain_iter"]
    run_predictor = not (a <= it < b)

    # NCHW -> channels-on-sublanes / flat-spatial-on-lanes: free reshapes.
    ch_f = concat_h.reshape(B, C0, H * W)
    dk_f = d_kernel.reshape(B, K2, HL * WL)
    lr_f = input_lr.reshape(B, C_lr, HL * WL)

    shared = (
        _tap_masks(3, H, W),                 # m3h: [9,  HW]      f32
        _tap_masks(ksize, H, W),             # m5h: [K2, HW]      f32
        _downsample_matrix(H, W, sf),        # sds: [HW, HWl]     bf16
        _shift_matrices(3, HL, WL),          # shl: [9, HWl, HWl] bf16
        _prep_w(params["sr_reconst"]),
        _prep_w(params["fe_sr1"]), _prep_w_1x1(params["fe_sr2"]),
        _prep_w(params["fe_sr3"]), _prep_w(params["fe_sr4"]),
        _prep_w(params["fe_sr5"]),
        _prep_w(params["fe_k1"]), _prep_w(params["fe_k2"]),
        _prep_w_1x1(params["fe_c1"]),
        _prep_w(params["fe_c2"]), _prep_w(params["fe_c3"]),
        _prep_w(params["conv"]),
    )

    def batch_spec(c, m):
        return pl.BlockSpec((1, c, m), lambda bi: (bi, 0, 0))

    def const_spec(arr):
        zeros = (0,) * arr.ndim
        return pl.BlockSpec(arr.shape, lambda bi, _z=zeros: _z)

    kernel = functools.partial(_kblock_kernel, width_hr=W, ksize=ksize,
                               run_predictor=run_predictor)

    error_feat_f, vec = pl.pallas_call(
        kernel,
        out_shape=(jax.ShapeDtypeStruct((B, NF, HL * WL), concat_h.dtype),
                   jax.ShapeDtypeStruct((B, K2, 1), concat_h.dtype)),
        grid=(B,),
        in_specs=[batch_spec(C0, H * W),
                  batch_spec(K2, HL * WL),
                  batch_spec(C_lr, HL * WL)]
                 + [const_spec(arr) for arr in shared],
        out_specs=(pl.BlockSpec((1, NF, HL * WL), lambda bi: (bi, 0, 0)),
                   pl.BlockSpec((1, K2, 1), lambda bi: (bi, 0, 0))),
        compiler_params=pltpu.CompilerParams(
            dimension_semantics=("parallel",)),
    )(ch_f, dk_f, lr_f, *shared)

    error_feat = error_feat_f.reshape(B, NF, HL, WL)
    # d_kernel = vec.expand(...): pure layout broadcast, done wrapper-side.
    d_kernel_out = jnp.broadcast_to(vec.reshape(B, K2, 1, 1), (B, K2, HL, WL))
    return h, error_feat, d_kernel_out


# ------------------------------- parameters ----------------------------------

def _conv_w(key, cout, cin, kh, kw):
    fan_in = cin * kh * kw
    std = (2.0 / fan_in) ** 0.5   # kaiming-normal-ish, deterministic
    return std * jax.random.normal(key, (cout, cin, kh, kw), jnp.float32)


if __name__ == "__main__":
    B = 2
    num_filter = 8
    num_stages = 1
    ksize = 5                       # cfg.BLUR.KERNEL_SIZE == KERNEL_SIZE_OUTPUT
    K2 = ksize * ksize
    sf = 2                          # cfg.MODEL.SCALE_FACTOR
    H = W = 16
    Hl, Wl = H // sf, W // sf

    cfg = dict(ksize_output=ksize, scale_factor=sf,
               sr_pretrain_iter=(0, 0), kernel_pretrain_iter=(0, 0),
               sum_lr_error_pos="LR")

    key = jax.random.PRNGKey(0)
    keys = jax.random.split(key, 13)
    params = {
        "sr_reconst": _conv_w(keys[0], 3, num_stages * num_filter, 3, 3),
        "fe_sr1": _conv_w(keys[1], K2, 3, 3, 3),
        "fe_sr2": _conv_w(keys[2], 32, K2, 1, 1),
        "fe_sr3": _conv_w(keys[3], 32, 32, 3, 3),
        "fe_sr4": _conv_w(keys[4], 32, 32, 3, 3),
        "fe_sr5": _conv_w(keys[5], K2, 32, 3, 3),
        "fe_k1": _conv_w(keys[6], K2, K2, 3, 3),
        "fe_k2": _conv_w(keys[7], K2, K2, 3, 3),
        "fe_c1": _conv_w(keys[8], 32, 2 * K2, 1, 1),
        "fe_c2": _conv_w(keys[9], 32, 32, 3, 3),
        "fe_c3": _conv_w(keys[10], K2, 32, 3, 3),
        "conv": _conv_w(keys[11], num_filter, 3, 3, 3),
    }

    kin = jax.random.split(keys[12], 5)
    concat_h = jax.random.normal(kin[0], (B, num_stages * num_filter, H, W), jnp.float32)
    h = jax.random.normal(kin[1], (B, num_filter, H, W), jnp.float32)
    input_lr = jax.random.normal(kin[2], (B, 3, Hl, Wl), jnp.float32)
    lr_f0 = jax.random.normal(kin[3], (B, num_filter, Hl, Wl), jnp.float32)
    d_kernel = jax.nn.softmax(
        jax.random.normal(kin[4], (B, K2, Hl, Wl), jnp.float32), axis=1)

    fwd = jax.jit(functools.partial(kblock_forward, cfg=cfg, it=100))
    h_out, error_feat, d_kernel_out = fwd(
        params, concat_h, h, input_lr, lr_f0, d_kernel)
    jax.block_until_ready((h_out, error_feat, d_kernel_out))

    assert h_out.shape == (B, num_filter, H, W)
    assert error_feat.shape == (B, num_filter, Hl, Wl)
    assert d_kernel_out.shape == (B, K2, Hl, Wl)
    print("KERNEL_OK")
</pallas_src>

<mosaic_0001>
module attributes {stable_mosaic.version = 11 : i64} {
  func.func @_kblock_kernel(%arg0: i32, %arg1: memref<1x8x256xf32, #tpu.memory_space<vmem>>, %arg2: memref<1x25x64xf32, #tpu.memory_space<vmem>>, %arg3: memref<1x3x64xf32, #tpu.memory_space<vmem>>, %arg4: memref<9x256xf32, #tpu.memory_space<vmem>>, %arg5: memref<25x256xf32, #tpu.memory_space<vmem>>, %arg6: memref<256x64xbf16, #tpu.memory_space<vmem>>, %arg7: memref<9x64x64xbf16, #tpu.memory_space<vmem>>, %arg8: memref<3x72xbf16, #tpu.memory_space<vmem>>, %arg9: memref<25x27xbf16, #tpu.memory_space<vmem>>, %arg10: memref<32x25xbf16, #tpu.memory_space<vmem>>, %arg11: memref<32x288xbf16, #tpu.memory_space<vmem>>, %arg12: memref<32x288xbf16, #tpu.memory_space<vmem>>, %arg13: memref<25x288xbf16, #tpu.memory_space<vmem>>, %arg14: memref<25x225xbf16, #tpu.memory_space<vmem>>, %arg15: memref<25x225xbf16, #tpu.memory_space<vmem>>, %arg16: memref<32x50xbf16, #tpu.memory_space<vmem>>, %arg17: memref<32x288xbf16, #tpu.memory_space<vmem>>, %arg18: memref<25x288xbf16, #tpu.memory_space<vmem>>, %arg19: memref<8x27xbf16, #tpu.memory_space<vmem>>, %arg20: memref<1x8x64xf32, #tpu.memory_space<vmem>>, %arg21: memref<1x25x1xf32, #tpu.memory_space<vmem>>) attributes {dimension_semantics = [#tpu.dimension_semantics<parallel>], iteration_bounds = array<i64: 2>, scalar_prefetch = 0 : i64, scratch_operands = 0 : i64, tpu.core_type = #tpu.core_type<tc>, window_params = [{transform_indices = @transform_0, window_bounds = array<i64: 1, 8, 256>}, {transform_indices = @transform_1, window_bounds = array<i64: 1, 25, 64>}, {transform_indices = @transform_2, window_bounds = array<i64: 1, 3, 64>}, {pipeline_mode = #tpu.pipeline_mode<synchronous>, transform_indices = @transform_3, window_bounds = array<i64: 9, 256>}, {pipeline_mode = #tpu.pipeline_mode<synchronous>, transform_indices = @transform_4, window_bounds = array<i64: 25, 256>}, {pipeline_mode = #tpu.pipeline_mode<synchronous>, transform_indices = @transform_5, window_bounds = array<i64: 256, 64>}, {pipeline_mode = #tpu.pipeline_mode<synchronous>, transform_indices = @transform_6, window_bounds = array<i64: 9, 64, 64>}, {pipeline_mode = #tpu.pipeline_mode<synchronous>, transform_indices = @transform_7, window_bounds = array<i64: 3, 72>}, {pipeline_mode = #tpu.pipeline_mode<synchronous>, transform_indices = @transform_8, window_bounds = array<i64: 25, 27>}, {pipeline_mode = #tpu.pipeline_mode<synchronous>, transform_indices = @transform_9, window_bounds = array<i64: 32, 25>}, {pipeline_mode = #tpu.pipeline_mode<synchronous>, transform_indices = @transform_10, window_bounds = array<i64: 32, 288>}, {pipeline_mode = #tpu.pipeline_mode<synchronous>, transform_indices = @transform_11, window_bounds = array<i64: 32, 288>}, {pipeline_mode = #tpu.pipeline_mode<synchronous>, transform_indices = @transform_12, window_bounds = array<i64: 25, 288>}, {pipeline_mode = #tpu.pipeline_mode<synchronous>, transform_indices = @transform_13, window_bounds = array<i64: 25, 225>}, {pipeline_mode = #tpu.pipeline_mode<synchronous>, transform_indices = @transform_14, window_bounds = array<i64: 25, 225>}, {pipeline_mode = #tpu.pipeline_mode<synchronous>, transform_indices = @transform_15, window_bounds = array<i64: 32, 50>}, {pipeline_mode = #tpu.pipeline_mode<synchronous>, transform_indices = @transform_16, window_bounds = array<i64: 32, 288>}, {pipeline_mode = #tpu.pipeline_mode<synchronous>, transform_indices = @transform_17, window_bounds = array<i64: 25, 288>}, {pipeline_mode = #tpu.pipeline_mode<synchronous>, transform_indices = @transform_18, window_bounds = array<i64: 8, 27>}, {transform_indices = @transform_19, window_bounds = array<i64: 1, 8, 64>}, {transform_indices = @transform_20, window_bounds = array<i64: 1, 25, 1>}]} {
    %c0 = arith.constant 0 : index
    %c0_0 = arith.constant 0 : index
    %c0_1 = arith.constant 0 : index
    %0 = vector.load %arg1[%c0, %c0_0, %c0_1] : memref<1x8x256xf32, #tpu.memory_space<vmem>>, vector<1x8x256xf32>
    %1 = vector.shape_cast %0 : vector<1x8x256xf32> to vector<8x256xf32>
    %c0_2 = arith.constant 0 : index
    %c0_3 = arith.constant 0 : index
    %2 = vector.load %arg4[%c0_2, %c0_3] : memref<9x256xf32, #tpu.memory_space<vmem>>, vector<9x256xf32>
    %c0_4 = arith.constant 0 : index
    %c0_5 = arith.constant 0 : index
    %3 = vector.load %arg5[%c0_4, %c0_5] : memref<25x256xf32, #tpu.memory_space<vmem>>, vector<25x256xf32>
    %c17_i32 = arith.constant 17 : i32
    %4 = tpu.dynamic_rotate %1 by %c17_i32 dim 1 : vector<8x256xf32>, i32 -> vector<8x256xf32>
    %5 = vector.extract_strided_slice %2 {offsets = [0, 0], sizes = [1, 256], strides = [1, 1]} : vector<9x256xf32> to vector<1x256xf32>
    %6 = vector.broadcast %5 : vector<1x256xf32> to vector<8x256xf32>
    %7 = arith.mulf %4, %6 : vector<8x256xf32>
    %c16_i32 = arith.constant 16 : i32
    %8 = tpu.dynamic_rotate %1 by %c16_i32 dim 1 : vector<8x256xf32>, i32 -> vector<8x256xf32>
    %9 = vector.extract_strided_slice %2 {offsets = [1, 0], sizes = [1, 256], strides = [1, 1]} : vector<9x256xf32> to vector<1x256xf32>
    %10 = vector.broadcast %9 : vector<1x256xf32> to vector<8x256xf32>
    %11 = arith.mulf %8, %10 : vector<8x256xf32>
    %c15_i32 = arith.constant 15 : i32
    %12 = tpu.dynamic_rotate %1 by %c15_i32 dim 1 : vector<8x256xf32>, i32 -> vector<8x256xf32>
    %13 = vector.extract_strided_slice %2 {offsets = [2, 0], sizes = [1, 256], strides = [1, 1]} : vector<9x256xf32> to vector<1x256xf32>
    %14 = vector.broadcast %13 : vector<1x256xf32> to vector<8x256xf32>
    %15 = arith.mulf %12, %14 : vector<8x256xf32>
    %c1_i32 = arith.constant 1 : i32
    %16 = tpu.dynamic_rotate %1 by %c1_i32 dim 1 : vector<8x256xf32>, i32 -> vector<8x256xf32>
    %17 = vector.extract_strided_slice %2 {offsets = [3, 0], sizes = [1, 256], strides = [1, 1]} : vector<9x256xf32> to vector<1x256xf32>
    %18 = vector.broadcast %17 : vector<1x256xf32> to vector<8x256xf32>
    %19 = arith.mulf %16, %18 : vector<8x256xf32>
    %c255_i32 = arith.constant 255 : i32
    %20 = tpu.dynamic_rotate %1 by %c255_i32 dim 1 : vector<8x256xf32>, i32 -> vector<8x256xf32>
    %21 = vector.extract_strided_slice %2 {offsets = [5, 0], sizes = [1, 256], strides = [1, 1]} : vector<9x256xf32> to vector<1x256xf32>
    %22 = vector.broadcast %21 : vector<1x256xf32> to vector<8x256xf32>
    %23 = arith.mulf %20, %22 : vector<8x256xf32>
    %c241_i32 = arith.constant 241 : i32
    %24 = tpu.dynamic_rotate %1 by %c241_i32 dim 1 : vector<8x256xf32>, i32 -> vector<8x256xf32>
    %25 = vector.extract_strided_slice %2 {offsets = [6, 0], sizes = [1, 256], strides = [1, 1]} : vector<9x256xf32> to vector<1x256xf32>
    %26 = vector.broadcast %25 : vector<1x256xf32> to vector<8x256xf32>
    %27 = arith.mulf %24, %26 : vector<8x256xf32>
    %c240_i32 = arith.constant 240 : i32
    %28 = tpu.dynamic_rotate %1 by %c240_i32 dim 1 : vector<8x256xf32>, i32 -> vector<8x256xf32>
    %29 = vector.extract_strided_slice %2 {offsets = [7, 0], sizes = [1, 256], strides = [1, 1]} : vector<9x256xf32> to vector<1x256xf32>
    %30 = vector.broadcast %29 : vector<1x256xf32> to vector<8x256xf32>
    %31 = arith.mulf %28, %30 : vector<8x256xf32>
    %c239_i32 = arith.constant 239 : i32
    %32 = tpu.dynamic_rotate %1 by %c239_i32 dim 1 : vector<8x256xf32>, i32 -> vector<8x256xf32>
    %33 = vector.extract_strided_slice %2 {offsets = [8, 0], sizes = [1, 256], strides = [1, 1]} : vector<9x256xf32> to vector<1x256xf32>
    %34 = vector.broadcast %33 : vector<1x256xf32> to vector<8x256xf32>
    %35 = arith.mulf %32, %34 : vector<8x256xf32>
    %36 = tpu.concatenate %7, %11, %15, %19, %1, %23, %27, %31, %35 in 0 : vector<8x256xf32>, vector<8x256xf32>, vector<8x256xf32>, vector<8x256xf32>, vector<8x256xf32>, vector<8x256xf32>, vector<8x256xf32>, vector<8x256xf32>, vector<8x256xf32> -> vector<72x256xf32>
    %37 = arith.truncf %36 : vector<72x256xf32> to vector<72x256xbf16>
    %c0_6 = arith.constant 0 : index
    %c0_7 = arith.constant 0 : index
    %38 = vector.load %arg8[%c0_6, %c0_7] : memref<3x72xbf16, #tpu.memory_space<vmem>>, vector<3x72xbf16>
    %cst = arith.constant dense<0.000000e+00> : vector<3x256xf32>
    %39 = tpu.matmul %38, %37, %cst {dimension_numbers = #tpu.dot_dimension_numbers<[1], [0], [0], [1], [0, 0, 1, 1], [], []>} : vector<3x72xbf16>, vector<72x256xbf16>, vector<3x256xf32> -> vector<3x256xf32>
    %c0_8 = arith.constant 0 : index
    %c0_9 = arith.constant 0 : index
    %c0_10 = arith.constant 0 : index
    %40 = vector.load %arg2[%c0_8, %c0_9, %c0_10] : memref<1x25x64xf32, #tpu.memory_space<vmem>>, vector<1x25x64xf32>
    %41 = vector.shape_cast %40 : vector<1x25x64xf32> to vector<25x64xf32>
    %cst_11 = arith.constant dense<0.000000e+00> : vector<25xf32>
    %42 = vector.multi_reduction <add>, %41, %cst_11 [1] : vector<25x64xf32> to vector<25xf32>
    %43 = vector.shape_cast %42 : vector<25xf32> to vector<25x1xf32>
    %cst_12 = arith.constant 6.400000e+01 : f32
    %44 = vector.broadcast %cst_12 : f32 to vector<25x1xf32>
    %45 = arith.divf %43, %44 : vector<25x1xf32>
    %c17_i32_13 = arith.constant 17 : i32
    %46 = tpu.dynamic_rotate %39 by %c17_i32_13 dim 1 : vector<3x256xf32>, i32 -> vector<3x256xf32>
    %47 = vector.extract_strided_slice %2 {offsets = [0, 0], sizes = [1, 256], strides = [1, 1]} : vector<9x256xf32> to vector<1x256xf32>
    %48 = vector.broadcast %47 : vector<1x256xf32> to vector<3x256xf32>
    %49 = arith.mulf %46, %48 : vector<3x256xf32>
    %c16_i32_14 = arith.constant 16 : i32
    %50 = tpu.dynamic_rotate %39 by %c16_i32_14 dim 1 : vector<3x256xf32>, i32 -> vector<3x256xf32>
    %51 = vector.extract_strided_slice %2 {offsets = [1, 0], sizes = [1, 256], strides = [1, 1]} : vector<9x256xf32> to vector<1x256xf32>
    %52 = vector.broadcast %51 : vector<1x256xf32> to vector<3x256xf32>
    %53 = arith.mulf %50, %52 : vector<3x256xf32>
    %c15_i32_15 = arith.constant 15 : i32
    %54 = tpu.dynamic_rotate %39 by %c15_i32_15 dim 1 : vector<3x256xf32>, i32 -> vector<3x256xf32>
    %55 = vector.extract_strided_slice %2 {offsets = [2, 0], sizes = [1, 256], strides = [1, 1]} : vector<9x256xf32> to vector<1x256xf32>
    %56 = vector.broadcast %55 : vector<1x256xf32> to vector<3x256xf32>
    %57 = arith.mulf %54, %56 : vector<3x256xf32>
    %c1_i32_16 = arith.constant 1 : i32
    %58 = tpu.dynamic_rotate %39 by %c1_i32_16 dim 1 : vector<3x256xf32>, i32 -> vector<3x256xf32>
    %59 = vector.extract_strided_slice %2 {offsets = [3, 0], sizes = [1, 256], strides = [1, 1]} : vector<9x256xf32> to vector<1x256xf32>
    %60 = vector.broadcast %59 : vector<1x256xf32> to vector<3x256xf32>
    %61 = arith.mulf %58, %60 : vector<3x256xf32>
    %c255_i32_17 = arith.constant 255 : i32
    %62 = tpu.dynamic_rotate %39 by %c255_i32_17 dim 1 : vector<3x256xf32>, i32 -> vector<3x256xf32>
    %63 = vector.extract_strided_slice %2 {offsets = [5, 0], sizes = [1, 256], strides = [1, 1]} : vector<9x256xf32> to vector<1x256xf32>
    %64 = vector.broadcast %63 : vector<1x256xf32> to vector<3x256xf32>
    %65 = arith.mulf %62, %64 : vector<3x256xf32>
    %c241_i32_18 = arith.constant 241 : i32
    %66 = tpu.dynamic_rotate %39 by %c241_i32_18 dim 1 : vector<3x256xf32>, i32 -> vector<3x256xf32>
    %67 = vector.extract_strided_slice %2 {offsets = [6, 0], sizes = [1, 256], strides = [1, 1]} : vector<9x256xf32> to vector<1x256xf32>
    %68 = vector.broadcast %67 : vector<1x256xf32> to vector<3x256xf32>
    %69 = arith.mulf %66, %68 : vector<3x256xf32>
    %c240_i32_19 = arith.constant 240 : i32
    %70 = tpu.dynamic_rotate %39 by %c240_i32_19 dim 1 : vector<3x256xf32>, i32 -> vector<3x256xf32>
    %71 = vector.extract_strided_slice %2 {offsets = [7, 0], sizes = [1, 256], strides = [1, 1]} : vector<9x256xf32> to vector<1x256xf32>
    %72 = vector.broadcast %71 : vector<1x256xf32> to vector<3x256xf32>
    %73 = arith.mulf %70, %72 : vector<3x256xf32>
    %c239_i32_20 = arith.constant 239 : i32
    %74 = tpu.dynamic_rotate %39 by %c239_i32_20 dim 1 : vector<3x256xf32>, i32 -> vector<3x256xf32>
    %75 = vector.extract_strided_slice %2 {offsets = [8, 0], sizes = [1, 256], strides = [1, 1]} : vector<9x256xf32> to vector<1x256xf32>
    %76 = vector.broadcast %75 : vector<1x256xf32> to vector<3x256xf32>
    %77 = arith.mulf %74, %76 : vector<3x256xf32>
    %78 = tpu.concatenate %49, %53, %57, %61, %39, %65, %69, %73, %77 in 0 : vector<3x256xf32>, vector<3x256xf32>, vector<3x256xf32>, vector<3x256xf32>, vector<3x256xf32>, vector<3x256xf32>, vector<3x256xf32>, vector<3x256xf32>, vector<3x256xf32> -> vector<27x256xf32>
    %79 = arith.truncf %78 : vector<27x256xf32> to vector<27x256xbf16>
    %c0_21 = arith.constant 0 : index
    %c0_22 = arith.constant 0 : index
    %80 = vector.load %arg9[%c0_21, %c0_22] : memref<25x27xbf16, #tpu.memory_space<vmem>>, vector<25x27xbf16>
    %cst_23 = arith.constant dense<0.000000e+00> : vector<25x256xf32>
    %81 = tpu.matmul %80, %79, %cst_23 {dimension_numbers = #tpu.dot_dimension_numbers<[1], [0], [0], [1], [0, 0, 1, 1], [], []>} : vector<25x27xbf16>, vector<27x256xbf16>, vector<25x256xf32> -> vector<25x256xf32>
    %cst_24 = arith.constant 0.000000e+00 : f32
    %82 = vector.broadcast %cst_24 : f32 to vector<25x256xf32>
    %83 = arith.maximumf %81, %82 : vector<25x256xf32>
    %c0_25 = arith.constant 0 : index
    %c0_26 = arith.constant 0 : index
    %84 = vector.load %arg10[%c0_25, %c0_26] : memref<32x25xbf16, #tpu.memory_space<vmem>>, vector<32x25xbf16>
    %85 = arith.truncf %83 : vector<25x256xf32> to vector<25x256xbf16>
    %cst_27 = arith.constant dense<0.000000e+00> : vector<32x256xf32>
    %86 = tpu.matmul %84, %85, %cst_27 {dimension_numbers = #tpu.dot_dimension_numbers<[1], [0], [0], [1], [0, 0, 1, 1], [], []>} : vector<32x25xbf16>, vector<25x256xbf16>, vector<32x256xf32> -> vector<32x256xf32>
    %cst_28 = arith.constant 0.000000e+00 : f32
    %87 = vector.broadcast %cst_28 : f32 to vector<32x256xf32>
    %88 = arith.cmpf oge, %86, %87 : vector<32x256xf32>
    %cst_29 = arith.constant 0.00999999977 : f32
    %89 = vector.broadcast %cst_29 : f32 to vector<32x256xf32>
    %90 = arith.mulf %89, %86 : vector<32x256xf32>
    %91 = arith.select %88, %86, %90 : vector<32x256xi1>, vector<32x256xf32>
    %c17_i32_30 = arith.constant 17 : i32
    %92 = tpu.dynamic_rotate %91 by %c17_i32_30 dim 1 : vector<32x256xf32>, i32 -> vector<32x256xf32>
    %93 = vector.extract_strided_slice %2 {offsets = [0, 0], sizes = [1, 256], strides = [1, 1]} : vector<9x256xf32> to vector<1x256xf32>
    %94 = vector.broadcast %93 : vector<1x256xf32> to vector<32x256xf32>
    %95 = arith.mulf %92, %94 : vector<32x256xf32>
    %c16_i32_31 = arith.constant 16 : i32
    %96 = tpu.dynamic_rotate %91 by %c16_i32_31 dim 1 : vector<32x256xf32>, i32 -> vector<32x256xf32>
    %97 = vector.extract_strided_slice %2 {offsets = [1, 0], sizes = [1, 256], strides = [1, 1]} : vector<9x256xf32> to vector<1x256xf32>
    %98 = vector.broadcast %97 : vector<1x256xf32> to vector<32x256xf32>
    %99 = arith.mulf %96, %98 : vector<32x256xf32>
    %c15_i32_32 = arith.constant 15 : i32
    %100 = tpu.dynamic_rotate %91 by %c15_i32_32 dim 1 : vector<32x256xf32>, i32 -> vector<32x256xf32>
    %101 = vector.extract_strided_slice %2 {offsets = [2, 0], sizes = [1, 256], strides = [1, 1]} : vector<9x256xf32> to vector<1x256xf32>
    %102 = vector.broadcast %101 : vector<1x256xf32> to vector<32x256xf32>
    %103 = arith.mulf %100, %102 : vector<32x256xf32>
    %c1_i32_33 = arith.constant 1 : i32
    %104 = tpu.dynamic_rotate %91 by %c1_i32_33 dim 1 : vector<32x256xf32>, i32 -> vector<32x256xf32>
    %105 = vector.extract_strided_slice %2 {offsets = [3, 0], sizes = [1, 256], strides = [1, 1]} : vector<9x256xf32> to vector<1x256xf32>
    %106 = vector.broadcast %105 : vector<1x256xf32> to vector<32x256xf32>
    %107 = arith.mulf %104, %106 : vector<32x256xf32>
    %c255_i32_34 = arith.constant 255 : i32
    %108 = tpu.dynamic_rotate %91 by %c255_i32_34 dim 1 : vector<32x256xf32>, i32 -> vector<32x256xf32>
    %109 = vector.extract_strided_slice %2 {offsets = [5, 0], sizes = [1, 256], strides = [1, 1]} : vector<9x256xf32> to vector<1x256xf32>
    %110 = vector.broadcast %109 : vector<1x256xf32> to vector<32x256xf32>
    %111 = arith.mulf %108, %110 : vector<32x256xf32>
    %c241_i32_35 = arith.constant 241 : i32
    %112 = tpu.dynamic_rotate %91 by %c241_i32_35 dim 1 : vector<32x256xf32>, i32 -> vector<32x256xf32>
    %113 = vector.extract_strided_slice %2 {offsets = [6, 0], sizes = [1, 256], strides = [1, 1]} : vector<9x256xf32> to vector<1x256xf32>
    %114 = vector.broadcast %113 : vector<1x256xf32> to vector<32x256xf32>
    %115 = arith.mulf %112, %114 : vector<32x256xf32>
    %c240_i32_36 = arith.constant 240 : i32
    %116 = tpu.dynamic_rotate %91 by %c240_i32_36 dim 1 : vector<32x256xf32>, i32 -> vector<32x256xf32>
    %117 = vector.extract_strided_slice %2 {offsets = [7, 0], sizes = [1, 256], strides = [1, 1]} : vector<9x256xf32> to vector<1x256xf32>
    %118 = vector.broadcast %117 : vector<1x256xf32> to vector<32x256xf32>
    %119 = arith.mulf %116, %118 : vector<32x256xf32>
    %c239_i32_37 = arith.constant 239 : i32
    %120 = tpu.dynamic_rotate %91 by %c239_i32_37 dim 1 : vector<32x256xf32>, i32 -> vector<32x256xf32>
    %121 = vector.extract_strided_slice %2 {offsets = [8, 0], sizes = [1, 256], strides = [1, 1]} : vector<9x256xf32> to vector<1x256xf32>
    %122 = vector.broadcast %121 : vector<1x256xf32> to vector<32x256xf32>
    %123 = arith.mulf %120, %122 : vector<32x256xf32>
    %124 = tpu.concatenate %95, %99, %103, %107, %91, %111, %115, %119, %123 in 0 : vector<32x256xf32>, vector<32x256xf32>, vector<32x256xf32>, vector<32x256xf32>, vector<32x256xf32>, vector<32x256xf32>, vector<32x256xf32>, vector<32x256xf32>, vector<32x256xf32> -> vector<288x256xf32>
    %125 = arith.truncf %124 : vector<288x256xf32> to vector<288x256xbf16>
    %c0_38 = arith.constant 0 : index
    %c0_39 = arith.constant 0 : index
    %126 = vector.load %arg11[%c0_38, %c0_39] : memref<32x288xbf16, #tpu.memory_space<vmem>>, vector<32x288xbf16>
    %cst_40 = arith.constant dense<0.000000e+00> : vector<32x256xf32>
    %127 = tpu.matmul %126, %125, %cst_40 {dimension_numbers = #tpu.dot_dimension_numbers<[1], [0], [0], [1], [0, 0, 1, 1], [], []>} : vector<32x288xbf16>, vector<288x256xbf16>, vector<32x256xf32> -> vector<32x256xf32>
    %cst_41 = arith.constant 0.000000e+00 : f32
    %128 = vector.broadcast %cst_41 : f32 to vector<32x256xf32>
    %129 = arith.cmpf oge, %127, %128 : vector<32x256xf32>
    %cst_42 = arith.constant 0.00999999977 : f32
    %130 = vector.broadcast %cst_42 : f32 to vector<32x256xf32>
    %131 = arith.mulf %130, %127 : vector<32x256xf32>
    %132 = arith.select %129, %127, %131 : vector<32x256xi1>, vector<32x256xf32>
    %c17_i32_43 = arith.constant 17 : i32
    %133 = tpu.dynamic_rotate %132 by %c17_i32_43 dim 1 : vector<32x256xf32>, i32 -> vector<32x256xf32>
    %134 = vector.extract_strided_slice %2 {offsets = [0, 0], sizes = [1, 256], strides = [1, 1]} : vector<9x256xf32> to vector<1x256xf32>
    %135 = vector.broadcast %134 : vector<1x256xf32> to vector<32x256xf32>
    %136 = arith.mulf %133, %135 : vector<32x256xf32>
    %c16_i32_44 = arith.constant 16 : i32
    %137 = tpu.dynamic_rotate %132 by %c16_i32_44 dim 1 : vector<32x256xf32>, i32 -> vector<32x256xf32>
    %138 = vector.extract_strided_slice %2 {offsets = [1, 0], sizes = [1, 256], strides = [1, 1]} : vector<9x256xf32> to vector<1x256xf32>
    %139 = vector.broadcast %138 : vector<1x256xf32> to vector<32x256xf32>
    %140 = arith.mulf %137, %139 : vector<32x256xf32>
    %c15_i32_45 = arith.constant 15 : i32
    %141 = tpu.dynamic_rotate %132 by %c15_i32_45 dim 1 : vector<32x256xf32>, i32 -> vector<32x256xf32>
    %142 = vector.extract_strided_slice %2 {offsets = [2, 0], sizes = [1, 256], strides = [1, 1]} : vector<9x256xf32> to vector<1x256xf32>
    %143 = vector.broadcast %142 : vector<1x256xf32> to vector<32x256xf32>
    %144 = arith.mulf %141, %143 : vector<32x256xf32>
    %c1_i32_46 = arith.constant 1 : i32
    %145 = tpu.dynamic_rotate %132 by %c1_i32_46 dim 1 : vector<32x256xf32>, i32 -> vector<32x256xf32>
    %146 = vector.extract_strided_slice %2 {offsets = [3, 0], sizes = [1, 256], strides = [1, 1]} : vector<9x256xf32> to vector<1x256xf32>
    %147 = vector.broadcast %146 : vector<1x256xf32> to vector<32x256xf32>
    %148 = arith.mulf %145, %147 : vector<32x256xf32>
    %c255_i32_47 = arith.constant 255 : i32
    %149 = tpu.dynamic_rotate %132 by %c255_i32_47 dim 1 : vector<32x256xf32>, i32 -> vector<32x256xf32>
    %150 = vector.extract_strided_slice %2 {offsets = [5, 0], sizes = [1, 256], strides = [1, 1]} : vector<9x256xf32> to vector<1x256xf32>
    %151 = vector.broadcast %150 : vector<1x256xf32> to vector<32x256xf32>
    %152 = arith.mulf %149, %151 : vector<32x256xf32>
    %c241_i32_48 = arith.constant 241 : i32
    %153 = tpu.dynamic_rotate %132 by %c241_i32_48 dim 1 : vector<32x256xf32>, i32 -> vector<32x256xf32>
    %154 = vector.extract_strided_slice %2 {offsets = [6, 0], sizes = [1, 256], strides = [1, 1]} : vector<9x256xf32> to vector<1x256xf32>
    %155 = vector.broadcast %154 : vector<1x256xf32> to vector<32x256xf32>
    %156 = arith.mulf %153, %155 : vector<32x256xf32>
    %c240_i32_49 = arith.constant 240 : i32
    %157 = tpu.dynamic_rotate %132 by %c240_i32_49 dim 1 : vector<32x256xf32>, i32 -> vector<32x256xf32>
    %158 = vector.extract_strided_slice %2 {offsets = [7, 0], sizes = [1, 256], strides = [1, 1]} : vector<9x256xf32> to vector<1x256xf32>
    %159 = vector.broadcast %158 : vector<1x256xf32> to vector<32x256xf32>
    %160 = arith.mulf %157, %159 : vector<32x256xf32>
    %c239_i32_50 = arith.constant 239 : i32
    %161 = tpu.dynamic_rotate %132 by %c239_i32_50 dim 1 : vector<32x256xf32>, i32 -> vector<32x256xf32>
    %162 = vector.extract_strided_slice %2 {offsets = [8, 0], sizes = [1, 256], strides = [1, 1]} : vector<9x256xf32> to vector<1x256xf32>
    %163 = vector.broadcast %162 : vector<1x256xf32> to vector<32x256xf32>
    %164 = arith.mulf %161, %163 : vector<32x256xf32>
    %165 = tpu.concatenate %136, %140, %144, %148, %132, %152, %156, %160, %164 in 0 : vector<32x256xf32>, vector<32x256xf32>, vector<32x256xf32>, vector<32x256xf32>, vector<32x256xf32>, vector<32x256xf32>, vector<32x256xf32>, vector<32x256xf32>, vector<32x256xf32> -> vector<288x256xf32>
    %166 = arith.truncf %165 : vector<288x256xf32> to vector<288x256xbf16>
    %c0_51 = arith.constant 0 : index
    %c0_52 = arith.constant 0 : index
    %167 = vector.load %arg12[%c0_51, %c0_52] : memref<32x288xbf16, #tpu.memory_space<vmem>>, vector<32x288xbf16>
    %cst_53 = arith.constant dense<0.000000e+00> : vector<32x256xf32>
    %168 = tpu.matmul %167, %166, %cst_53 {dimension_numbers = #tpu.dot_dimension_numbers<[1], [0], [0], [1], [0, 0, 1, 1], [], []>} : vector<32x288xbf16>, vector<288x256xbf16>, vector<32x256xf32> -> vector<32x256xf32>
    %cst_54 = arith.constant 0.000000e+00 : f32
    %169 = vector.broadcast %cst_54 : f32 to vector<32x256xf32>
    %170 = arith.cmpf oge, %168, %169 : vector<32x256xf32>
    %cst_55 = arith.constant 0.00999999977 : f32
    %171 = vector.broadcast %cst_55 : f32 to vector<32x256xf32>
    %172 = arith.mulf %171, %168 : vector<32x256xf32>
    %173 = arith.select %170, %168, %172 : vector<32x256xi1>, vector<32x256xf32>
    %c17_i32_56 = arith.constant 17 : i32
    %174 = tpu.dynamic_rotate %173 by %c17_i32_56 dim 1 : vector<32x256xf32>, i32 -> vector<32x256xf32>
    %175 = vector.extract_strided_slice %2 {offsets = [0, 0], sizes = [1, 256], strides = [1, 1]} : vector<9x256xf32> to vector<1x256xf32>
    %176 = vector.broadcast %175 : vector<1x256xf32> to vector<32x256xf32>
    %177 = arith.mulf %174, %176 : vector<32x256xf32>
    %c16_i32_57 = arith.constant 16 : i32
    %178 = tpu.dynamic_rotate %173 by %c16_i32_57 dim 1 : vector<32x256xf32>, i32 -> vector<32x256xf32>
    %179 = vector.extract_strided_slice %2 {offsets = [1, 0], sizes = [1, 256], strides = [1, 1]} : vector<9x256xf32> to vector<1x256xf32>
    %180 = vector.broadcast %179 : vector<1x256xf32> to vector<32x256xf32>
    %181 = arith.mulf %178, %180 : vector<32x256xf32>
    %c15_i32_58 = arith.constant 15 : i32
    %182 = tpu.dynamic_rotate %173 by %c15_i32_58 dim 1 : vector<32x256xf32>, i32 -> vector<32x256xf32>
    %183 = vector.extract_strided_slice %2 {offsets = [2, 0], sizes = [1, 256], strides = [1, 1]} : vector<9x256xf32> to vector<1x256xf32>
    %184 = vector.broadcast %183 : vector<1x256xf32> to vector<32x256xf32>
    %185 = arith.mulf %182, %184 : vector<32x256xf32>
    %c1_i32_59 = arith.constant 1 : i32
    %186 = tpu.dynamic_rotate %173 by %c1_i32_59 dim 1 : vector<32x256xf32>, i32 -> vector<32x256xf32>
    %187 = vector.extract_strided_slice %2 {offsets = [3, 0], sizes = [1, 256], strides = [1, 1]} : vector<9x256xf32> to vector<1x256xf32>
    %188 = vector.broadcast %187 : vector<1x256xf32> to vector<32x256xf32>
    %189 = arith.mulf %186, %188 : vector<32x256xf32>
    %c255_i32_60 = arith.constant 255 : i32
    %190 = tpu.dynamic_rotate %173 by %c255_i32_60 dim 1 : vector<32x256xf32>, i32 -> vector<32x256xf32>
    %191 = vector.extract_strided_slice %2 {offsets = [5, 0], sizes = [1, 256], strides = [1, 1]} : vector<9x256xf32> to vector<1x256xf32>
    %192 = vector.broadcast %191 : vector<1x256xf32> to vector<32x256xf32>
    %193 = arith.mulf %190, %192 : vector<32x256xf32>
    %c241_i32_61 = arith.constant 241 : i32
    %194 = tpu.dynamic_rotate %173 by %c241_i32_61 dim 1 : vector<32x256xf32>, i32 -> vector<32x256xf32>
    %195 = vector.extract_strided_slice %2 {offsets = [6, 0], sizes = [1, 256], strides = [1, 1]} : vector<9x256xf32> to vector<1x256xf32>
    %196 = vector.broadcast %195 : vector<1x256xf32> to vector<32x256xf32>
    %197 = arith.mulf %194, %196 : vector<32x256xf32>
    %c240_i32_62 = arith.constant 240 : i32
    %198 = tpu.dynamic_rotate %173 by %c240_i32_62 dim 1 : vector<32x256xf32>, i32 -> vector<32x256xf32>
    %199 = vector.extract_strided_slice %2 {offsets = [7, 0], sizes = [1, 256], strides = [1, 1]} : vector<9x256xf32> to vector<1x256xf32>
    %200 = vector.broadcast %199 : vector<1x256xf32> to vector<32x256xf32>
    %201 = arith.mulf %198, %200 : vector<32x256xf32>
    %c239_i32_63 = arith.constant 239 : i32
    %202 = tpu.dynamic_rotate %173 by %c239_i32_63 dim 1 : vector<32x256xf32>, i32 -> vector<32x256xf32>
    %203 = vector.extract_strided_slice %2 {offsets = [8, 0], sizes = [1, 256], strides = [1, 1]} : vector<9x256xf32> to vector<1x256xf32>
    %204 = vector.broadcast %203 : vector<1x256xf32> to vector<32x256xf32>
    %205 = arith.mulf %202, %204 : vector<32x256xf32>
    %206 = tpu.concatenate %177, %181, %185, %189, %173, %193, %197, %201, %205 in 0 : vector<32x256xf32>, vector<32x256xf32>, vector<32x256xf32>, vector<32x256xf32>, vector<32x256xf32>, vector<32x256xf32>, vector<32x256xf32>, vector<32x256xf32>, vector<32x256xf32> -> vector<288x256xf32>
    %207 = arith.truncf %206 : vector<288x256xf32> to vector<288x256xbf16>
    %c0_64 = arith.constant 0 : index
    %c0_65 = arith.constant 0 : index
    %208 = vector.load %arg13[%c0_64, %c0_65] : memref<25x288xbf16, #tpu.memory_space<vmem>>, vector<25x288xbf16>
    %cst_66 = arith.constant dense<0.000000e+00> : vector<25x256xf32>
    %209 = tpu.matmul %208, %207, %cst_66 {dimension_numbers = #tpu.dot_dimension_numbers<[1], [0], [0], [1], [0, 0, 1, 1], [], []>} : vector<25x288xbf16>, vector<288x256xbf16>, vector<25x256xf32> -> vector<25x256xf32>
    %cst_67 = arith.constant 0.000000e+00 : f32
    %210 = vector.broadcast %cst_67 : f32 to vector<25x256xf32>
    %211 = arith.cmpf oge, %209, %210 : vector<25x256xf32>
    %cst_68 = arith.constant 0.00999999977 : f32
    %212 = vector.broadcast %cst_68 : f32 to vector<25x256xf32>
    %213 = arith.mulf %212, %209 : vector<25x256xf32>
    %214 = arith.select %211, %209, %213 : vector<25x256xi1>, vector<25x256xf32>
    %215 = vector.shape_cast %45 : vector<25x1xf32> to vector<25x1xf32>
    %216 = vector.broadcast %215 : vector<25x1xf32> to vector<25x256xf32>
    %217 = vector.extract_strided_slice %2 {offsets = [0, 0], sizes = [1, 256], strides = [1, 1]} : vector<9x256xf32> to vector<1x256xf32>
    %218 = vector.broadcast %217 : vector<1x256xf32> to vector<25x256xf32>
    %219 = arith.mulf %216, %218 : vector<25x256xf32>
    %220 = vector.extract_strided_slice %2 {offsets = [1, 0], sizes = [1, 256], strides = [1, 1]} : vector<9x256xf32> to vector<1x256xf32>
    %221 = vector.broadcast %220 : vector<1x256xf32> to vector<25x256xf32>
    %222 = arith.mulf %216, %221 : vector<25x256xf32>
    %223 = vector.extract_strided_slice %2 {offsets = [2, 0], sizes = [1, 256], strides = [1, 1]} : vector<9x256xf32> to vector<1x256xf32>
    %224 = vector.broadcast %223 : vector<1x256xf32> to vector<25x256xf32>
    %225 = arith.mulf %216, %224 : vector<25x256xf32>
    %226 = vector.extract_strided_slice %2 {offsets = [3, 0], sizes = [1, 256], strides = [1, 1]} : vector<9x256xf32> to vector<1x256xf32>
    %227 = vector.broadcast %226 : vector<1x256xf32> to vector<25x256xf32>
    %228 = arith.mulf %216, %227 : vector<25x256xf32>
    %229 = vector.extract_strided_slice %2 {offsets = [5, 0], sizes = [1, 256], strides = [1, 1]} : vector<9x256xf32> to vector<1x256xf32>
    %230 = vector.broadcast %229 : vector<1x256xf32> to vector<25x256xf32>
    %231 = arith.mulf %216, %230 : vector<25x256xf32>
    %232 = vector.extract_strided_slice %2 {offsets = [6, 0], sizes = [1, 256], strides = [1, 1]} : vector<9x256xf32> to vector<1x256xf32>
    %233 = vector.broadcast %232 : vector<1x256xf32> to vector<25x256xf32>
    %234 = arith.mulf %216, %233 : vector<25x256xf32>
    %235 = vector.extract_strided_slice %2 {offsets = [7, 0], sizes = [1, 256], strides = [1, 1]} : vector<9x256xf32> to vector<1x256xf32>
    %236 = vector.broadcast %235 : vector<1x256xf32> to vector<25x256xf32>
    %237 = arith.mulf %216, %236 : vector<25x256xf32>
    %238 = vector.extract_strided_slice %2 {offsets = [8, 0], sizes = [1, 256], strides = [1, 1]} : vector<9x256xf32> to vector<1x256xf32>
    %239 = vector.broadcast %238 : vector<1x256xf32> to vector<25x256xf32>
    %240 = arith.mulf %216, %239 : vector<25x256xf32>
    %241 = tpu.concatenate %219, %222, %225, %228, %216, %231, %234, %237, %240 in 0 : vector<25x256xf32>, vector<25x256xf32>, vector<25x256xf32>, vector<25x256xf32>, vector<25x256xf32>, vector<25x256xf32>, vector<25x256xf32>, vector<25x256xf32>, vector<25x256xf32> -> vector<225x256xf32>
    %242 = arith.truncf %241 : vector<225x256xf32> to vector<225x256xbf16>
    %c0_69 = arith.constant 0 : index
    %c0_70 = arith.constant 0 : index
    %243 = vector.load %arg14[%c0_69, %c0_70] : memref<25x225xbf16, #tpu.memory_space<vmem>>, vector<25x225xbf16>
    %cst_71 = arith.constant dense<0.000000e+00> : vector<25x256xf32>
    %244 = tpu.matmul %243, %242, %cst_71 {dimension_numbers = #tpu.dot_dimension_numbers<[1], [0], [0], [1], [0, 0, 1, 1], [], []>} : vector<25x225xbf16>, vector<225x256xbf16>, vector<25x256xf32> -> vector<25x256xf32>
    %cst_72 = arith.constant 0.000000e+00 : f32
    %245 = vector.broadcast %cst_72 : f32 to vector<25x256xf32>
    %246 = arith.cmpf oge, %244, %245 : vector<25x256xf32>
    %cst_73 = arith.constant 0.00999999977 : f32
    %247 = vector.broadcast %cst_73 : f32 to vector<25x256xf32>
    %248 = arith.mulf %247, %244 : vector<25x256xf32>
    %249 = arith.select %246, %244, %248 : vector<25x256xi1>, vector<25x256xf32>
    %c17_i32_74 = arith.constant 17 : i32
    %250 = tpu.dynamic_rotate %249 by %c17_i32_74 dim 1 : vector<25x256xf32>, i32 -> vector<25x256xf32>
    %251 = vector.extract_strided_slice %2 {offsets = [0, 0], sizes = [1, 256], strides = [1, 1]} : vector<9x256xf32> to vector<1x256xf32>
    %252 = vector.broadcast %251 : vector<1x256xf32> to vector<25x256xf32>
    %253 = arith.mulf %250, %252 : vector<25x256xf32>
    %c16_i32_75 = arith.constant 16 : i32
    %254 = tpu.dynamic_rotate %249 by %c16_i32_75 dim 1 : vector<25x256xf32>, i32 -> vector<25x256xf32>
    %255 = vector.extract_strided_slice %2 {offsets = [1, 0], sizes = [1, 256], strides = [1, 1]} : vector<9x256xf32> to vector<1x256xf32>
    %256 = vector.broadcast %255 : vector<1x256xf32> to vector<25x256xf32>
    %257 = arith.mulf %254, %256 : vector<25x256xf32>
    %c15_i32_76 = arith.constant 15 : i32
    %258 = tpu.dynamic_rotate %249 by %c15_i32_76 dim 1 : vector<25x256xf32>, i32 -> vector<25x256xf32>
    %259 = vector.extract_strided_slice %2 {offsets = [2, 0], sizes = [1, 256], strides = [1, 1]} : vector<9x256xf32> to vector<1x256xf32>
    %260 = vector.broadcast %259 : vector<1x256xf32> to vector<25x256xf32>
    %261 = arith.mulf %258, %260 : vector<25x256xf32>
    %c1_i32_77 = arith.constant 1 : i32
    %262 = tpu.dynamic_rotate %249 by %c1_i32_77 dim 1 : vector<25x256xf32>, i32 -> vector<25x256xf32>
    %263 = vector.extract_strided_slice %2 {offsets = [3, 0], sizes = [1, 256], strides = [1, 1]} : vector<9x256xf32> to vector<1x256xf32>
    %264 = vector.broadcast %263 : vector<1x256xf32> to vector<25x256xf32>
    %265 = arith.mulf %262, %264 : vector<25x256xf32>
    %c255_i32_78 = arith.constant 255 : i32
    %266 = tpu.dynamic_rotate %249 by %c255_i32_78 dim 1 : vector<25x256xf32>, i32 -> vector<25x256xf32>
    %267 = vector.extract_strided_slice %2 {offsets = [5, 0], sizes = [1, 256], strides = [1, 1]} : vector<9x256xf32> to vector<1x256xf32>
    %268 = vector.broadcast %267 : vector<1x256xf32> to vector<25x256xf32>
    %269 = arith.mulf %266, %268 : vector<25x256xf32>
    %c241_i32_79 = arith.constant 241 : i32
    %270 = tpu.dynamic_rotate %249 by %c241_i32_79 dim 1 : vector<25x256xf32>, i32 -> vector<25x256xf32>
    %271 = vector.extract_strided_slice %2 {offsets = [6, 0], sizes = [1, 256], strides = [1, 1]} : vector<9x256xf32> to vector<1x256xf32>
    %272 = vector.broadcast %271 : vector<1x256xf32> to vector<25x256xf32>
    %273 = arith.mulf %270, %272 : vector<25x256xf32>
    %c240_i32_80 = arith.constant 240 : i32
    %274 = tpu.dynamic_rotate %249 by %c240_i32_80 dim 1 : vector<25x256xf32>, i32 -> vector<25x256xf32>
    %275 = vector.extract_strided_slice %2 {offsets = [7, 0], sizes = [1, 256], strides = [1, 1]} : vector<9x256xf32> to vector<1x256xf32>
    %276 = vector.broadcast %275 : vector<1x256xf32> to vector<25x256xf32>
    %277 = arith.mulf %274, %276 : vector<25x256xf32>
    %c239_i32_81 = arith.constant 239 : i32
    %278 = tpu.dynamic_rotate %249 by %c239_i32_81 dim 1 : vector<25x256xf32>, i32 -> vector<25x256xf32>
    %279 = vector.extract_strided_slice %2 {offsets = [8, 0], sizes = [1, 256], strides = [1, 1]} : vector<9x256xf32> to vector<1x256xf32>
    %280 = vector.broadcast %279 : vector<1x256xf32> to vector<25x256xf32>
    %281 = arith.mulf %278, %280 : vector<25x256xf32>
    %282 = tpu.concatenate %253, %257, %261, %265, %249, %269, %273, %277, %281 in 0 : vector<25x256xf32>, vector<25x256xf32>, vector<25x256xf32>, vector<25x256xf32>, vector<25x256xf32>, vector<25x256xf32>, vector<25x256xf32>, vector<25x256xf32>, vector<25x256xf32> -> vector<225x256xf32>
    %283 = arith.truncf %282 : vector<225x256xf32> to vector<225x256xbf16>
    %c0_82 = arith.constant 0 : index
    %c0_83 = arith.constant 0 : index
    %284 = vector.load %arg15[%c0_82, %c0_83] : memref<25x225xbf16, #tpu.memory_space<vmem>>, vector<25x225xbf16>
    %cst_84 = arith.constant dense<0.000000e+00> : vector<25x256xf32>
    %285 = tpu.matmul %284, %283, %cst_84 {dimension_numbers = #tpu.dot_dimension_numbers<[1], [0], [0], [1], [0, 0, 1, 1], [], []>} : vector<25x225xbf16>, vector<225x256xbf16>, vector<25x256xf32> -> vector<25x256xf32>
    %cst_85 = arith.constant 0.000000e+00 : f32
    %286 = vector.broadcast %cst_85 : f32 to vector<25x256xf32>
    %287 = arith.cmpf oge, %285, %286 : vector<25x256xf32>
    %cst_86 = arith.constant 0.00999999977 : f32
    %288 = vector.broadcast %cst_86 : f32 to vector<25x256xf32>
    %289 = arith.mulf %288, %285 : vector<25x256xf32>
    %290 = arith.select %287, %285, %289 : vector<25x256xi1>, vector<25x256xf32>
    %291 = tpu.concatenate %214, %290 in 0 : vector<25x256xf32>, vector<25x256xf32> -> vector<50x256xf32>
    %292 = arith.truncf %291 : vector<50x256xf32> to vector<50x256xbf16>
    %c0_87 = arith.constant 0 : index
    %c0_88 = arith.constant 0 : index
    %293 = vector.load %arg16[%c0_87, %c0_88] : memref<32x50xbf16, #tpu.memory_space<vmem>>, vector<32x50xbf16>
    %cst_89 = arith.constant dense<0.000000e+00> : vector<32x256xf32>
    %294 = tpu.matmul %293, %292, %cst_89 {dimension_numbers = #tpu.dot_dimension_numbers<[1], [0], [0], [1], [0, 0, 1, 1], [], []>} : vector<32x50xbf16>, vector<50x256xbf16>, vector<32x256xf32> -> vector<32x256xf32>
    %cst_90 = arith.constant 0.000000e+00 : f32
    %295 = vector.broadcast %cst_90 : f32 to vector<32x256xf32>
    %296 = arith.cmpf oge, %294, %295 : vector<32x256xf32>
    %cst_91 = arith.constant 0.00999999977 : f32
    %297 = vector.broadcast %cst_91 : f32 to vector<32x256xf32>
    %298 = arith.mulf %297, %294 : vector<32x256xf32>
    %299 = arith.select %296, %294, %298 : vector<32x256xi1>, vector<32x256xf32>
    %c17_i32_92 = arith.constant 17 : i32
    %300 = tpu.dynamic_rotate %299 by %c17_i32_92 dim 1 : vector<32x256xf32>, i32 -> vector<32x256xf32>
    %301 = vector.extract_strided_slice %2 {offsets = [0, 0], sizes = [1, 256], strides = [1, 1]} : vector<9x256xf32> to vector<1x256xf32>
    %302 = vector.broadcast %301 : vector<1x256xf32> to vector<32x256xf32>
    %303 = arith.mulf %300, %302 : vector<32x256xf32>
    %c16_i32_93 = arith.constant 16 : i32
    %304 = tpu.dynamic_rotate %299 by %c16_i32_93 dim 1 : vector<32x256xf32>, i32 -> vector<32x256xf32>
    %305 = vector.extract_strided_slice %2 {offsets = [1, 0], sizes = [1, 256], strides = [1, 1]} : vector<9x256xf32> to vector<1x256xf32>
    %306 = vector.broadcast %305 : vector<1x256xf32> to vector<32x256xf32>
    %307 = arith.mulf %304, %306 : vector<32x256xf32>
    %c15_i32_94 = arith.constant 15 : i32
    %308 = tpu.dynamic_rotate %299 by %c15_i32_94 dim 1 : vector<32x256xf32>, i32 -> vector<32x256xf32>
    %309 = vector.extract_strided_slice %2 {offsets = [2, 0], sizes = [1, 256], strides = [1, 1]} : vector<9x256xf32> to vector<1x256xf32>
    %310 = vector.broadcast %309 : vector<1x256xf32> to vector<32x256xf32>
    %311 = arith.mulf %308, %310 : vector<32x256xf32>
    %c1_i32_95 = arith.constant 1 : i32
    %312 = tpu.dynamic_rotate %299 by %c1_i32_95 dim 1 : vector<32x256xf32>, i32 -> vector<32x256xf32>
    %313 = vector.extract_strided_slice %2 {offsets = [3, 0], sizes = [1, 256], strides = [1, 1]} : vector<9x256xf32> to vector<1x256xf32>
    %314 = vector.broadcast %313 : vector<1x256xf32> to vector<32x256xf32>
    %315 = arith.mulf %312, %314 : vector<32x256xf32>
    %c255_i32_96 = arith.constant 255 : i32
    %316 = tpu.dynamic_rotate %299 by %c255_i32_96 dim 1 : vector<32x256xf32>, i32 -> vector<32x256xf32>
    %317 = vector.extract_strided_slice %2 {offsets = [5, 0], sizes = [1, 256], strides = [1, 1]} : vector<9x256xf32> to vector<1x256xf32>
    %318 = vector.broadcast %317 : vector<1x256xf32> to vector<32x256xf32>
    %319 = arith.mulf %316, %318 : vector<32x256xf32>
    %c241_i32_97 = arith.constant 241 : i32
    %320 = tpu.dynamic_rotate %299 by %c241_i32_97 dim 1 : vector<32x256xf32>, i32 -> vector<32x256xf32>
    %321 = vector.extract_strided_slice %2 {offsets = [6, 0], sizes = [1, 256], strides = [1, 1]} : vector<9x256xf32> to vector<1x256xf32>
    %322 = vector.broadcast %321 : vector<1x256xf32> to vector<32x256xf32>
    %323 = arith.mulf %320, %322 : vector<32x256xf32>
    %c240_i32_98 = arith.constant 240 : i32
    %324 = tpu.dynamic_rotate %299 by %c240_i32_98 dim 1 : vector<32x256xf32>, i32 -> vector<32x256xf32>
    %325 = vector.extract_strided_slice %2 {offsets = [7, 0], sizes = [1, 256], strides = [1, 1]} : vector<9x256xf32> to vector<1x256xf32>
    %326 = vector.broadcast %325 : vector<1x256xf32> to vector<32x256xf32>
    %327 = arith.mulf %324, %326 : vector<32x256xf32>
    %c239_i32_99 = arith.constant 239 : i32
    %328 = tpu.dynamic_rotate %299 by %c239_i32_99 dim 1 : vector<32x256xf32>, i32 -> vector<32x256xf32>
    %329 = vector.extract_strided_slice %2 {offsets = [8, 0], sizes = [1, 256], strides = [1, 1]} : vector<9x256xf32> to vector<1x256xf32>
    %330 = vector.broadcast %329 : vector<1x256xf32> to vector<32x256xf32>
    %331 = arith.mulf %328, %330 : vector<32x256xf32>
    %332 = tpu.concatenate %303, %307, %311, %315, %299, %319, %323, %327, %331 in 0 : vector<32x256xf32>, vector<32x256xf32>, vector<32x256xf32>, vector<32x256xf32>, vector<32x256xf32>, vector<32x256xf32>, vector<32x256xf32>, vector<32x256xf32>, vector<32x256xf32> -> vector<288x256xf32>
    %333 = arith.truncf %332 : vector<288x256xf32> to vector<288x256xbf16>
    %c0_100 = arith.constant 0 : index
    %c0_101 = arith.constant 0 : index
    %334 = vector.load %arg17[%c0_100, %c0_101] : memref<32x288xbf16, #tpu.memory_space<vmem>>, vector<32x288xbf16>
    %cst_102 = arith.constant dense<0.000000e+00> : vector<32x256xf32>
    %335 = tpu.matmul %334, %333, %cst_102 {dimension_numbers = #tpu.dot_dimension_numbers<[1], [0], [0], [1], [0, 0, 1, 1], [], []>} : vector<32x288xbf16>, vector<288x256xbf16>, vector<32x256xf32> -> vector<32x256xf32>
    %cst_103 = arith.constant 0.000000e+00 : f32
    %336 = vector.broadcast %cst_103 : f32 to vector<32x256xf32>
    %337 = arith.cmpf oge, %335, %336 : vector<32x256xf32>
    %cst_104 = arith.constant 0.00999999977 : f32
    %338 = vector.broadcast %cst_104 : f32 to vector<32x256xf32>
    %339 = arith.mulf %338, %335 : vector<32x256xf32>
    %340 = arith.select %337, %335, %339 : vector<32x256xi1>, vector<32x256xf32>
    %c17_i32_105 = arith.constant 17 : i32
    %341 = tpu.dynamic_rotate %340 by %c17_i32_105 dim 1 : vector<32x256xf32>, i32 -> vector<32x256xf32>
    %342 = vector.extract_strided_slice %2 {offsets = [0, 0], sizes = [1, 256], strides = [1, 1]} : vector<9x256xf32> to vector<1x256xf32>
    %343 = vector.broadcast %342 : vector<1x256xf32> to vector<32x256xf32>
    %344 = arith.mulf %341, %343 : vector<32x256xf32>
    %c16_i32_106 = arith.constant 16 : i32
    %345 = tpu.dynamic_rotate %340 by %c16_i32_106 dim 1 : vector<32x256xf32>, i32 -> vector<32x256xf32>
    %346 = vector.extract_strided_slice %2 {offsets = [1, 0], sizes = [1, 256], strides = [1, 1]} : vector<9x256xf32> to vector<1x256xf32>
    %347 = vector.broadcast %346 : vector<1x256xf32> to vector<32x256xf32>
    %348 = arith.mulf %345, %347 : vector<32x256xf32>
    %c15_i32_107 = arith.constant 15 : i32
    %349 = tpu.dynamic_rotate %340 by %c15_i32_107 dim 1 : vector<32x256xf32>, i32 -> vector<32x256xf32>
    %350 = vector.extract_strided_slice %2 {offsets = [2, 0], sizes = [1, 256], strides = [1, 1]} : vector<9x256xf32> to vector<1x256xf32>
    %351 = vector.broadcast %350 : vector<1x256xf32> to vector<32x256xf32>
    %352 = arith.mulf %349, %351 : vector<32x256xf32>
    %c1_i32_108 = arith.constant 1 : i32
    %353 = tpu.dynamic_rotate %340 by %c1_i32_108 dim 1 : vector<32x256xf32>, i32 -> vector<32x256xf32>
    %354 = vector.extract_strided_slice %2 {offsets = [3, 0], sizes = [1, 256], strides = [1, 1]} : vector<9x256xf32> to vector<1x256xf32>
    %355 = vector.broadcast %354 : vector<1x256xf32> to vector<32x256xf32>
    %356 = arith.mulf %353, %355 : vector<32x256xf32>
    %c255_i32_109 = arith.constant 255 : i32
    %357 = tpu.dynamic_rotate %340 by %c255_i32_109 dim 1 : vector<32x256xf32>, i32 -> vector<32x256xf32>
    %358 = vector.extract_strided_slice %2 {offsets = [5, 0], sizes = [1, 256], strides = [1, 1]} : vector<9x256xf32> to vector<1x256xf32>
    %359 = vector.broadcast %358 : vector<1x256xf32> to vector<32x256xf32>
    %360 = arith.mulf %357, %359 : vector<32x256xf32>
    %c241_i32_110 = arith.constant 241 : i32
    %361 = tpu.dynamic_rotate %340 by %c241_i32_110 dim 1 : vector<32x256xf32>, i32 -> vector<32x256xf32>
    %362 = vector.extract_strided_slice %2 {offsets = [6, 0], sizes = [1, 256], strides = [1, 1]} : vector<9x256xf32> to vector<1x256xf32>
    %363 = vector.broadcast %362 : vector<1x256xf32> to vector<32x256xf32>
    %364 = arith.mulf %361, %363 : vector<32x256xf32>
    %c240_i32_111 = arith.constant 240 : i32
    %365 = tpu.dynamic_rotate %340 by %c240_i32_111 dim 1 : vector<32x256xf32>, i32 -> vector<32x256xf32>
    %366 = vector.extract_strided_slice %2 {offsets = [7, 0], sizes = [1, 256], strides = [1, 1]} : vector<9x256xf32> to vector<1x256xf32>
    %367 = vector.broadcast %366 : vector<1x256xf32> to vector<32x256xf32>
    %368 = arith.mulf %365, %367 : vector<32x256xf32>
    %c239_i32_112 = arith.constant 239 : i32
    %369 = tpu.dynamic_rotate %340 by %c239_i32_112 dim 1 : vector<32x256xf32>, i32 -> vector<32x256xf32>
    %370 = vector.extract_strided_slice %2 {offsets = [8, 0], sizes = [1, 256], strides = [1, 1]} : vector<9x256xf32> to vector<1x256xf32>
    %371 = vector.broadcast %370 : vector<1x256xf32> to vector<32x256xf32>
    %372 = arith.mulf %369, %371 : vector<32x256xf32>
    %373 = tpu.concatenate %344, %348, %352, %356, %340, %360, %364, %368, %372 in 0 : vector<32x256xf32>, vector<32x256xf32>, vector<32x256xf32>, vector<32x256xf32>, vector<32x256xf32>, vector<32x256xf32>, vector<32x256xf32>, vector<32x256xf32>, vector<32x256xf32> -> vector<288x256xf32>
    %374 = arith.truncf %373 : vector<288x256xf32> to vector<288x256xbf16>
    %c0_113 = arith.constant 0 : index
    %c0_114 = arith.constant 0 : index
    %375 = vector.load %arg18[%c0_113, %c0_114] : memref<25x288xbf16, #tpu.memory_space<vmem>>, vector<25x288xbf16>
    %cst_115 = arith.constant dense<0.000000e+00> : vector<25x256xf32>
    %376 = tpu.matmul %375, %374, %cst_115 {dimension_numbers = #tpu.dot_dimension_numbers<[1], [0], [0], [1], [0, 0, 1, 1], [], []>} : vector<25x288xbf16>, vector<288x256xbf16>, vector<25x256xf32> -> vector<25x256xf32>
    %cst_116 = arith.constant dense<0.000000e+00> : vector<25xf32>
    %377 = vector.multi_reduction <add>, %376, %cst_116 [1] : vector<25x256xf32> to vector<25xf32>
    %378 = vector.shape_cast %377 : vector<25xf32> to vector<25x1xf32>
    %cst_117 = arith.constant 2.560000e+02 : f32
    %379 = vector.broadcast %cst_117 : f32 to vector<25x1xf32>
    %380 = arith.divf %378, %379 : vector<25x1xf32>
    %381 = arith.addf %45, %380 : vector<25x1xf32>
    %cst_118 = arith.constant dense<0.000000e+00> : vector<1xf32>
    %382 = vector.multi_reduction <add>, %381, %cst_118 [0] : vector<25x1xf32> to vector<1xf32>
    %383 = vector.shape_cast %382 : vector<1xf32> to vector<1x1xf32>
    %384 = vector.broadcast %383 : vector<1x1xf32> to vector<25x1xf32>
    %385 = arith.divf %381, %384 : vector<25x1xf32>
    %c0_119 = arith.constant 0 : index
    %c0_120 = arith.constant 0 : index
    %c0_121 = arith.constant 0 : index
    %386 = vector.load %arg21[%c0_119, %c0_120, %c0_121] : memref<1x25x1xf32, #tpu.memory_space<vmem>>, vector<1x25x1xf32>
    %387 = vector.shape_cast %386 : vector<1x25x1xf32> to vector<25x1xf32>
    %388 = vector.shape_cast %385 : vector<25x1xf32> to vector<1x25x1xf32>
    tpu.vector_store %arg21[%c0_119, %c0_120, %c0_121], %388 {strides = array<i32>} : memref<1x25x1xf32, #tpu.memory_space<vmem>>, vector<1x25x1xf32>,
    %389 = vector.shape_cast %385 : vector<25x1xf32> to vector<25x1xf32>
    %390 = vector.broadcast %389 : vector<25x1xf32> to vector<25x256xf32>
    %cst_122 = arith.constant 0.000000e+00 : f32
    %391 = vector.broadcast %cst_122 : f32 to vector<3x256xf32>
    %c34_i32 = arith.constant 34 : i32
    %392 = tpu.dynamic_rotate %39 by %c34_i32 dim 1 : vector<3x256xf32>, i32 -> vector<3x256xf32>
    %393 = vector.extract_strided_slice %3 {offsets = [0, 0], sizes = [1, 256], strides = [1, 1]} : vector<25x256xf32> to vector<1x256xf32>
    %394 = vector.broadcast %393 : vector<1x256xf32> to vector<3x256xf32>
    %395 = arith.mulf %392, %394 : vector<3x256xf32>
    %396 = vector.extract_strided_slice %390 {offsets = [0, 0], sizes = [1, 256], strides = [1, 1]} : vector<25x256xf32> to vector<1x256xf32>
    %397 = vector.broadcast %396 : vector<1x256xf32> to vector<3x256xf32>
    %398 = arith.mulf %395, %397 : vector<3x256xf32>
    %399 = arith.addf %391, %398 : vector<3x256xf32>
    %c33_i32 = arith.constant 33 : i32
    %400 = tpu.dynamic_rotate %39 by %c33_i32 dim 1 : vector<3x256xf32>, i32 -> vector<3x256xf32>
    %401 = vector.extract_strided_slice %3 {offsets = [1, 0], sizes = [1, 256], strides = [1, 1]} : vector<25x256xf32> to vector<1x256xf32>
    %402 = vector.broadcast %401 : vector<1x256xf32> to vector<3x256xf32>
    %403 = arith.mulf %400, %402 : vector<3x256xf32>
    %404 = vector.extract_strided_slice %390 {offsets = [1, 0], sizes = [1, 256], strides = [1, 1]} : vector<25x256xf32> to vector<1x256xf32>
    %405 = vector.broadcast %404 : vector<1x256xf32> to vector<3x256xf32>
    %406 = arith.mulf %403, %405 : vector<3x256xf32>
    %407 = arith.addf %399, %406 : vector<3x256xf32>
    %c32_i32 = arith.constant 32 : i32
    %408 = tpu.dynamic_rotate %39 by %c32_i32 dim 1 : vector<3x256xf32>, i32 -> vector<3x256xf32>
    %409 = vector.extract_strided_slice %3 {offsets = [2, 0], sizes = [1, 256], strides = [1, 1]} : vector<25x256xf32> to vector<1x256xf32>
    %410 = vector.broadcast %409 : vector<1x256xf32> to vector<3x256xf32>
    %411 = arith.mulf %408, %410 : vector<3x256xf32>
    %412 = vector.extract_strided_slice %390 {offsets = [2, 0], sizes = [1, 256], strides = [1, 1]} : vector<25x256xf32> to vector<1x256xf32>
    %413 = vector.broadcast %412 : vector<1x256xf32> to vector<3x256xf32>
    %414 = arith.mulf %411, %413 : vector<3x256xf32>
    %415 = arith.addf %407, %414 : vector<3x256xf32>
    %c31_i32 = arith.constant 31 : i32
    %416 = tpu.dynamic_rotate %39 by %c31_i32 dim 1 : vector<3x256xf32>, i32 -> vector<3x256xf32>
    %417 = vector.extract_strided_slice %3 {offsets = [3, 0], sizes = [1, 256], strides = [1, 1]} : vector<25x256xf32> to vector<1x256xf32>
    %418 = vector.broadcast %417 : vector<1x256xf32> to vector<3x256xf32>
    %419 = arith.mulf %416, %418 : vector<3x256xf32>
    %420 = vector.extract_strided_slice %390 {offsets = [3, 0], sizes = [1, 256], strides = [1, 1]} : vector<25x256xf32> to vector<1x256xf32>
    %421 = vector.broadcast %420 : vector<1x256xf32> to vector<3x256xf32>
    %422 = arith.mulf %419, %421 : vector<3x256xf32>
    %423 = arith.addf %415, %422 : vector<3x256xf32>
    %c30_i32 = arith.constant 30 : i32
    %424 = tpu.dynamic_rotate %39 by %c30_i32 dim 1 : vector<3x256xf32>, i32 -> vector<3x256xf32>
    %425 = vector.extract_strided_slice %3 {offsets = [4, 0], sizes = [1, 256], strides = [1, 1]} : vector<25x256xf32> to vector<1x256xf32>
    %426 = vector.broadcast %425 : vector<1x256xf32> to vector<3x256xf32>
    %427 = arith.mulf %424, %426 : vector<3x256xf32>
    %428 = vector.extract_strided_slice %390 {offsets = [4, 0], sizes = [1, 256], strides = [1, 1]} : vector<25x256xf32> to vector<1x256xf32>
    %429 = vector.broadcast %428 : vector<1x256xf32> to vector<3x256xf32>
    %430 = arith.mulf %427, %429 : vector<3x256xf32>
    %431 = arith.addf %423, %430 : vector<3x256xf32>
    %c18_i32 = arith.constant 18 : i32
    %432 = tpu.dynamic_rotate %39 by %c18_i32 dim 1 : vector<3x256xf32>, i32 -> vector<3x256xf32>
    %433 = vector.extract_strided_slice %3 {offsets = [5, 0], sizes = [1, 256], strides = [1, 1]} : vector<25x256xf32> to vector<1x256xf32>
    %434 = vector.broadcast %433 : vector<1x256xf32> to vector<3x256xf32>
    %435 = arith.mulf %432, %434 : vector<3x256xf32>
    %436 = vector.extract_strided_slice %390 {offsets = [5, 0], sizes = [1, 256], strides = [1, 1]} : vector<25x256xf32> to vector<1x256xf32>
    %437 = vector.broadcast %436 : vector<1x256xf32> to vector<3x256xf32>
    %438 = arith.mulf %435, %437 : vector<3x256xf32>
    %439 = arith.addf %431, %438 : vector<3x256xf32>
    %c17_i32_123 = arith.constant 17 : i32
    %440 = tpu.dynamic_rotate %39 by %c17_i32_123 dim 1 : vector<3x256xf32>, i32 -> vector<3x256xf32>
    %441 = vector.extract_strided_slice %3 {offsets = [6, 0], sizes = [1, 256], strides = [1, 1]} : vector<25x256xf32> to vector<1x256xf32>
    %442 = vector.broadcast %441 : vector<1x256xf32> to vector<3x256xf32>
    %443 = arith.mulf %440, %442 : vector<3x256xf32>
    %444 = vector.extract_strided_slice %390 {offsets = [6, 0], sizes = [1, 256], strides = [1, 1]} : vector<25x256xf32> to vector<1x256xf32>
    %445 = vector.broadcast %444 : vector<1x256xf32> to vector<3x256xf32>
    %446 = arith.mulf %443, %445 : vector<3x256xf32>
    %447 = arith.addf %439, %446 : vector<3x256xf32>
    %c16_i32_124 = arith.constant 16 : i32
    %448 = tpu.dynamic_rotate %39 by %c16_i32_124 dim 1 : vector<3x256xf32>, i32 -> vector<3x256xf32>
    %449 = vector.extract_strided_slice %3 {offsets = [7, 0], sizes = [1, 256], strides = [1, 1]} : vector<25x256xf32> to vector<1x256xf32>
    %450 = vector.broadcast %449 : vector<1x256xf32> to vector<3x256xf32>
    %451 = arith.mulf %448, %450 : vector<3x256xf32>
    %452 = vector.extract_strided_slice %390 {offsets = [7, 0], sizes = [1, 256], strides = [1, 1]} : vector<25x256xf32> to vector<1x256xf32>
    %453 = vector.broadcast %452 : vector<1x256xf32> to vector<3x256xf32>
    %454 = arith.mulf %451, %453 : vector<3x256xf32>
    %455 = arith.addf %447, %454 : vector<3x256xf32>
    %c15_i32_125 = arith.constant 15 : i32
    %456 = tpu.dynamic_rotate %39 by %c15_i32_125 dim 1 : vector<3x256xf32>, i32 -> vector<3x256xf32>
    %457 = vector.extract_strided_slice %3 {offsets = [8, 0], sizes = [1, 256], strides = [1, 1]} : vector<25x256xf32> to vector<1x256xf32>
    %458 = vector.broadcast %457 : vector<1x256xf32> to vector<3x256xf32>
    %459 = arith.mulf %456, %458 : vector<3x256xf32>
    %460 = vector.extract_strided_slice %390 {offsets = [8, 0], sizes = [1, 256], strides = [1, 1]} : vector<25x256xf32> to vector<1x256xf32>
    %461 = vector.broadcast %460 : vector<1x256xf32> to vector<3x256xf32>
    %462 = arith.mulf %459, %461 : vector<3x256xf32>
    %463 = arith.addf %455, %462 : vector<3x256xf32>
    %c14_i32 = arith.constant 14 : i32
    %464 = tpu.dynamic_rotate %39 by %c14_i32 dim 1 : vector<3x256xf32>, i32 -> vector<3x256xf32>
    %465 = vector.extract_strided_slice %3 {offsets = [9, 0], sizes = [1, 256], strides = [1, 1]} : vector<25x256xf32> to vector<1x256xf32>
    %466 = vector.broadcast %465 : vector<1x256xf32> to vector<3x256xf32>
    %467 = arith.mulf %464, %466 : vector<3x256xf32>
    %468 = vector.extract_strided_slice %390 {offsets = [9, 0], sizes = [1, 256], strides = [1, 1]} : vector<25x256xf32> to vector<1x256xf32>
    %469 = vector.broadcast %468 : vector<1x256xf32> to vector<3x256xf32>
    %470 = arith.mulf %467, %469 : vector<3x256xf32>
    %471 = arith.addf %463, %470 : vector<3x256xf32>
    %c2_i32 = arith.constant 2 : i32
    %472 = tpu.dynamic_rotate %39 by %c2_i32 dim 1 : vector<3x256xf32>, i32 -> vector<3x256xf32>
    %473 = vector.extract_strided_slice %3 {offsets = [10, 0], sizes = [1, 256], strides = [1, 1]} : vector<25x256xf32> to vector<1x256xf32>
    %474 = vector.broadcast %473 : vector<1x256xf32> to vector<3x256xf32>
    %475 = arith.mulf %472, %474 : vector<3x256xf32>
    %476 = vector.extract_strided_slice %390 {offsets = [10, 0], sizes = [1, 256], strides = [1, 1]} : vector<25x256xf32> to vector<1x256xf32>
    %477 = vector.broadcast %476 : vector<1x256xf32> to vector<3x256xf32>
    %478 = arith.mulf %475, %477 : vector<3x256xf32>
    %479 = arith.addf %471, %478 : vector<3x256xf32>
    %c1_i32_126 = arith.constant 1 : i32
    %480 = tpu.dynamic_rotate %39 by %c1_i32_126 dim 1 : vector<3x256xf32>, i32 -> vector<3x256xf32>
    %481 = vector.extract_strided_slice %3 {offsets = [11, 0], sizes = [1, 256], strides = [1, 1]} : vector<25x256xf32> to vector<1x256xf32>
    %482 = vector.broadcast %481 : vector<1x256xf32> to vector<3x256xf32>
    %483 = arith.mulf %480, %482 : vector<3x256xf32>
    %484 = vector.extract_strided_slice %390 {offsets = [11, 0], sizes = [1, 256], strides = [1, 1]} : vector<25x256xf32> to vector<1x256xf32>
    %485 = vector.broadcast %484 : vector<1x256xf32> to vector<3x256xf32>
    %486 = arith.mulf %483, %485 : vector<3x256xf32>
    %487 = arith.addf %479, %486 : vector<3x256xf32>
    %488 = vector.extract_strided_slice %390 {offsets = [12, 0], sizes = [1, 256], strides = [1, 1]} : vector<25x256xf32> to vector<1x256xf32>
    %489 = vector.broadcast %488 : vector<1x256xf32> to vector<3x256xf32>
    %490 = arith.mulf %39, %489 : vector<3x256xf32>
    %491 = arith.addf %487, %490 : vector<3x256xf32>
    %c255_i32_127 = arith.constant 255 : i32
    %492 = tpu.dynamic_rotate %39 by %c255_i32_127 dim 1 : vector<3x256xf32>, i32 -> vector<3x256xf32>
    %493 = vector.extract_strided_slice %3 {offsets = [13, 0], sizes = [1, 256], strides = [1, 1]} : vector<25x256xf32> to vector<1x256xf32>
    %494 = vector.broadcast %493 : vector<1x256xf32> to vector<3x256xf32>
    %495 = arith.mulf %492, %494 : vector<3x256xf32>
    %496 = vector.extract_strided_slice %390 {offsets = [13, 0], sizes = [1, 256], strides = [1, 1]} : vector<25x256xf32> to vector<1x256xf32>
    %497 = vector.broadcast %496 : vector<1x256xf32> to vector<3x256xf32>
    %498 = arith.mulf %495, %497 : vector<3x256xf32>
    %499 = arith.addf %491, %498 : vector<3x256xf32>
    %c254_i32 = arith.constant 254 : i32
    %500 = tpu.dynamic_rotate %39 by %c254_i32 dim 1 : vector<3x256xf32>, i32 -> vector<3x256xf32>
    %501 = vector.extract_strided_slice %3 {offsets = [14, 0], sizes = [1, 256], strides = [1, 1]} : vector<25x256xf32> to vector<1x256xf32>
    %502 = vector.broadcast %501 : vector<1x256xf32> to vector<3x256xf32>
    %503 = arith.mulf %500, %502 : vector<3x256xf32>
    %504 = vector.extract_strided_slice %390 {offsets = [14, 0], sizes = [1, 256], strides = [1, 1]} : vector<25x256xf32> to vector<1x256xf32>
    %505 = vector.broadcast %504 : vector<1x256xf32> to vector<3x256xf32>
    %506 = arith.mulf %503, %505 : vector<3x256xf32>
    %507 = arith.addf %499, %506 : vector<3x256xf32>
    %c242_i32 = arith.constant 242 : i32
    %508 = tpu.dynamic_rotate %39 by %c242_i32 dim 1 : vector<3x256xf32>, i32 -> vector<3x256xf32>
    %509 = vector.extract_strided_slice %3 {offsets = [15, 0], sizes = [1, 256], strides = [1, 1]} : vector<25x256xf32> to vector<1x256xf32>
    %510 = vector.broadcast %509 : vector<1x256xf32> to vector<3x256xf32>
    %511 = arith.mulf %508, %510 : vector<3x256xf32>
    %512 = vector.extract_strided_slice %390 {offsets = [15, 0], sizes = [1, 256], strides = [1, 1]} : vector<25x256xf32> to vector<1x256xf32>
    %513 = vector.broadcast %512 : vector<1x256xf32> to vector<3x256xf32>
    %514 = arith.mulf %511, %513 : vector<3x256xf32>
    %515 = arith.addf %507, %514 : vector<3x256xf32>
    %c241_i32_128 = arith.constant 241 : i32
    %516 = tpu.dynamic_rotate %39 by %c241_i32_128 dim 1 : vector<3x256xf32>, i32 -> vector<3x256xf32>
    %517 = vector.extract_strided_slice %3 {offsets = [16, 0], sizes = [1, 256], strides = [1, 1]} : vector<25x256xf32> to vector<1x256xf32>
    %518 = vector.broadcast %517 : vector<1x256xf32> to vector<3x256xf32>
    %519 = arith.mulf %516, %518 : vector<3x256xf32>
    %520 = vector.extract_strided_slice %390 {offsets = [16, 0], sizes = [1, 256], strides = [1, 1]} : vector<25x256xf32> to vector<1x256xf32>
    %521 = vector.broadcast %520 : vector<1x256xf32> to vector<3x256xf32>
    %522 = arith.mulf %519, %521 : vector<3x256xf32>
    %523 = arith.addf %515, %522 : vector<3x256xf32>
    %c240_i32_129 = arith.constant 240 : i32
    %524 = tpu.dynamic_rotate %39 by %c240_i32_129 dim 1 : vector<3x256xf32>, i32 -> vector<3x256xf32>
    %525 = vector.extract_strided_slice %3 {offsets = [17, 0], sizes = [1, 256], strides = [1, 1]} : vector<25x256xf32> to vector<1x256xf32>
    %526 = vector.broadcast %525 : vector<1x256xf32> to vector<3x256xf32>
    %527 = arith.mulf %524, %526 : vector<3x256xf32>
    %528 = vector.extract_strided_slice %390 {offsets = [17, 0], sizes = [1, 256], strides = [1, 1]} : vector<25x256xf32> to vector<1x256xf32>
    %529 = vector.broadcast %528 : vector<1x256xf32> to vector<3x256xf32>
    %530 = arith.mulf %527, %529 : vector<3x256xf32>
    %531 = arith.addf %523, %530 : vector<3x256xf32>
    %c239_i32_130 = arith.constant 239 : i32
    %532 = tpu.dynamic_rotate %39 by %c239_i32_130 dim 1 : vector<3x256xf32>, i32 -> vector<3x256xf32>
    %533 = vector.extract_strided_slice %3 {offsets = [18, 0], sizes = [1, 256], strides = [1, 1]} : vector<25x256xf32> to vector<1x256xf32>
    %534 = vector.broadcast %533 : vector<1x256xf32> to vector<3x256xf32>
    %535 = arith.mulf %532, %534 : vector<3x256xf32>
    %536 = vector.extract_strided_slice %390 {offsets = [18, 0], sizes = [1, 256], strides = [1, 1]} : vector<25x256xf32> to vector<1x256xf32>
    %537 = vector.broadcast %536 : vector<1x256xf32> to vector<3x256xf32>
    %538 = arith.mulf %535, %537 : vector<3x256xf32>
    %539 = arith.addf %531, %538 : vector<3x256xf32>
    %c238_i32 = arith.constant 238 : i32
    %540 = tpu.dynamic_rotate %39 by %c238_i32 dim 1 : vector<3x256xf32>, i32 -> vector<3x256xf32>
    %541 = vector.extract_strided_slice %3 {offsets = [19, 0], sizes = [1, 256], strides = [1, 1]} : vector<25x256xf32> to vector<1x256xf32>
    %542 = vector.broadcast %541 : vector<1x256xf32> to vector<3x256xf32>
    %543 = arith.mulf %540, %542 : vector<3x256xf32>
    %544 = vector.extract_strided_slice %390 {offsets = [19, 0], sizes = [1, 256], strides = [1, 1]} : vector<25x256xf32> to vector<1x256xf32>
    %545 = vector.broadcast %544 : vector<1x256xf32> to vector<3x256xf32>
    %546 = arith.mulf %543, %545 : vector<3x256xf32>
    %547 = arith.addf %539, %546 : vector<3x256xf32>
    %c226_i32 = arith.constant 226 : i32
    %548 = tpu.dynamic_rotate %39 by %c226_i32 dim 1 : vector<3x256xf32>, i32 -> vector<3x256xf32>
    %549 = vector.extract_strided_slice %3 {offsets = [20, 0], sizes = [1, 256], strides = [1, 1]} : vector<25x256xf32> to vector<1x256xf32>
    %550 = vector.broadcast %549 : vector<1x256xf32> to vector<3x256xf32>
    %551 = arith.mulf %548, %550 : vector<3x256xf32>
    %552 = vector.extract_strided_slice %390 {offsets = [20, 0], sizes = [1, 256], strides = [1, 1]} : vector<25x256xf32> to vector<1x256xf32>
    %553 = vector.broadcast %552 : vector<1x256xf32> to vector<3x256xf32>
    %554 = arith.mulf %551, %553 : vector<3x256xf32>
    %555 = arith.addf %547, %554 : vector<3x256xf32>
    %c225_i32 = arith.constant 225 : i32
    %556 = tpu.dynamic_rotate %39 by %c225_i32 dim 1 : vector<3x256xf32>, i32 -> vector<3x256xf32>
    %557 = vector.extract_strided_slice %3 {offsets = [21, 0], sizes = [1, 256], strides = [1, 1]} : vector<25x256xf32> to vector<1x256xf32>
    %558 = vector.broadcast %557 : vector<1x256xf32> to vector<3x256xf32>
    %559 = arith.mulf %556, %558 : vector<3x256xf32>
    %560 = vector.extract_strided_slice %390 {offsets = [21, 0], sizes = [1, 256], strides = [1, 1]} : vector<25x256xf32> to vector<1x256xf32>
    %561 = vector.broadcast %560 : vector<1x256xf32> to vector<3x256xf32>
    %562 = arith.mulf %559, %561 : vector<3x256xf32>
    %563 = arith.addf %555, %562 : vector<3x256xf32>
    %c224_i32 = arith.constant 224 : i32
    %564 = tpu.dynamic_rotate %39 by %c224_i32 dim 1 : vector<3x256xf32>, i32 -> vector<3x256xf32>
    %565 = vector.extract_strided_slice %3 {offsets = [22, 0], sizes = [1, 256], strides = [1, 1]} : vector<25x256xf32> to vector<1x256xf32>
    %566 = vector.broadcast %565 : vector<1x256xf32> to vector<3x256xf32>
    %567 = arith.mulf %564, %566 : vector<3x256xf32>
    %568 = vector.extract_strided_slice %390 {offsets = [22, 0], sizes = [1, 256], strides = [1, 1]} : vector<25x256xf32> to vector<1x256xf32>
    %569 = vector.broadcast %568 : vector<1x256xf32> to vector<3x256xf32>
    %570 = arith.mulf %567, %569 : vector<3x256xf32>
    %571 = arith.addf %563, %570 : vector<3x256xf32>
    %c223_i32 = arith.constant 223 : i32
    %572 = tpu.dynamic_rotate %39 by %c223_i32 dim 1 : vector<3x256xf32>, i32 -> vector<3x256xf32>
    %573 = vector.extract_strided_slice %3 {offsets = [23, 0], sizes = [1, 256], strides = [1, 1]} : vector<25x256xf32> to vector<1x256xf32>
    %574 = vector.broadcast %573 : vector<1x256xf32> to vector<3x256xf32>
    %575 = arith.mulf %572, %574 : vector<3x256xf32>
    %576 = vector.extract_strided_slice %390 {offsets = [23, 0], sizes = [1, 256], strides = [1, 1]} : vector<25x256xf32> to vector<1x256xf32>
    %577 = vector.broadcast %576 : vector<1x256xf32> to vector<3x256xf32>
    %578 = arith.mulf %575, %577 : vector<3x256xf32>
    %579 = arith.addf %571, %578 : vector<3x256xf32>
    %c222_i32 = arith.constant 222 : i32
    %580 = tpu.dynamic_rotate %39 by %c222_i32 dim 1 : vector<3x256xf32>, i32 -> vector<3x256xf32>
    %581 = vector.extract_strided_slice %3 {offsets = [24, 0], sizes = [1, 256], strides = [1, 1]} : vector<25x256xf32> to vector<1x256xf32>
    %582 = vector.broadcast %581 : vector<1x256xf32> to vector<3x256xf32>
    %583 = arith.mulf %580, %582 : vector<3x256xf32>
    %584 = vector.extract_strided_slice %390 {offsets = [24, 0], sizes = [1, 256], strides = [1, 1]} : vector<25x256xf32> to vector<1x256xf32>
    %585 = vector.broadcast %584 : vector<1x256xf32> to vector<3x256xf32>
    %586 = arith.mulf %583, %585 : vector<3x256xf32>
    %587 = arith.addf %579, %586 : vector<3x256xf32>
    %588 = arith.truncf %587 : vector<3x256xf32> to vector<3x256xbf16>
    %c0_131 = arith.constant 0 : index
    %c0_132 = arith.constant 0 : index
    %589 = vector.load %arg6[%c0_131, %c0_132] : memref<256x64xbf16, #tpu.memory_space<vmem>>, vector<256x64xbf16>
    %cst_133 = arith.constant dense<0.000000e+00> : vector<3x64xf32>
    %590 = tpu.matmul %588, %589, %cst_133 {dimension_numbers = #tpu.dot_dimension_numbers<[1], [0], [0], [1], [0, 0, 1, 1], [], []>} : vector<3x256xbf16>, vector<256x64xbf16>, vector<3x64xf32> -> vector<3x64xf32>
    %c0_134 = arith.constant 0 : index
    %c0_135 = arith.constant 0 : index
    %c0_136 = arith.constant 0 : index
    %591 = vector.load %arg3[%c0_134, %c0_135, %c0_136] : memref<1x3x64xf32, #tpu.memory_space<vmem>>, vector<1x3x64xf32>
    %592 = vector.shape_cast %591 : vector<1x3x64xf32> to vector<3x64xf32>
    %593 = arith.subf %590, %592 : vector<3x64xf32>
    %594 = arith.truncf %593 : vector<3x64xf32> to vector<3x64xbf16>
    %c0_137 = arith.constant 0 : index
    %c0_138 = arith.constant 0 : index
    %c0_139 = arith.constant 0 : index
    %595 = vector.load %arg7[%c0_137, %c0_138, %c0_139] : memref<9x64x64xbf16, #tpu.memory_space<vmem>>, vector<1x64x64xbf16>
    %596 = vector.shape_cast %595 : vector<1x64x64xbf16> to vector<64x64xbf16>
    %cst_140 = arith.constant dense<0.000000e+00> : vector<3x64xf32>
    %597 = tpu.matmul %594, %596, %cst_140 {dimension_numbers = #tpu.dot_dimension_numbers<[1], [0], [0], [1], [0, 0, 1, 1], [], []>} : vector<3x64xbf16>, vector<64x64xbf16>, vector<3x64xf32> -> vector<3x64xf32>
    %c1 = arith.constant 1 : index
    %c0_141 = arith.constant 0 : index
    %c0_142 = arith.constant 0 : index
    %598 = vector.load %arg7[%c1, %c0_141, %c0_142] : memref<9x64x64xbf16, #tpu.memory_space<vmem>>, vector<1x64x64xbf16>
    %599 = vector.shape_cast %598 : vector<1x64x64xbf16> to vector<64x64xbf16>
    %cst_143 = arith.constant dense<0.000000e+00> : vector<3x64xf32>
    %600 = tpu.matmul %594, %599, %cst_143 {dimension_numbers = #tpu.dot_dimension_numbers<[1], [0], [0], [1], [0, 0, 1, 1], [], []>} : vector<3x64xbf16>, vector<64x64xbf16>, vector<3x64xf32> -> vector<3x64xf32>
    %c2 = arith.constant 2 : index
    %c0_144 = arith.constant 0 : index
    %c0_145 = arith.constant 0 : index
    %601 = vector.load %arg7[%c2, %c0_144, %c0_145] : memref<9x64x64xbf16, #tpu.memory_space<vmem>>, vector<1x64x64xbf16>
    %602 = vector.shape_cast %601 : vector<1x64x64xbf16> to vector<64x64xbf16>
    %cst_146 = arith.constant dense<0.000000e+00> : vector<3x64xf32>
    %603 = tpu.matmul %594, %602, %cst_146 {dimension_numbers = #tpu.dot_dimension_numbers<[1], [0], [0], [1], [0, 0, 1, 1], [], []>} : vector<3x64xbf16>, vector<64x64xbf16>, vector<3x64xf32> -> vector<3x64xf32>
    %c3 = arith.constant 3 : index
    %c0_147 = arith.constant 0 : index
    %c0_148 = arith.constant 0 : index
    %604 = vector.load %arg7[%c3, %c0_147, %c0_148] : memref<9x64x64xbf16, #tpu.memory_space<vmem>>, vector<1x64x64xbf16>
    %605 = vector.shape_cast %604 : vector<1x64x64xbf16> to vector<64x64xbf16>
    %cst_149 = arith.constant dense<0.000000e+00> : vector<3x64xf32>
    %606 = tpu.matmul %594, %605, %cst_149 {dimension_numbers = #tpu.dot_dimension_numbers<[1], [0], [0], [1], [0, 0, 1, 1], [], []>} : vector<3x64xbf16>, vector<64x64xbf16>, vector<3x64xf32> -> vector<3x64xf32>
    %c5 = arith.constant 5 : index
    %c0_150 = arith.constant 0 : index
    %c0_151 = arith.constant 0 : index
    %607 = vector.load %arg7[%c5, %c0_150, %c0_151] : memref<9x64x64xbf16, #tpu.memory_space<vmem>>, vector<1x64x64xbf16>
    %608 = vector.shape_cast %607 : vector<1x64x64xbf16> to vector<64x64xbf16>
    %cst_152 = arith.constant dense<0.000000e+00> : vector<3x64xf32>
    %609 = tpu.matmul %594, %608, %cst_152 {dimension_numbers = #tpu.dot_dimension_numbers<[1], [0], [0], [1], [0, 0, 1, 1], [], []>} : vector<3x64xbf16>, vector<64x64xbf16>, vector<3x64xf32> -> vector<3x64xf32>
    %c6 = arith.constant 6 : index
    %c0_153 = arith.constant 0 : index
    %c0_154 = arith.constant 0 : index
    %610 = vector.load %arg7[%c6, %c0_153, %c0_154] : memref<9x64x64xbf16, #tpu.memory_space<vmem>>, vector<1x64x64xbf16>
    %611 = vector.shape_cast %610 : vector<1x64x64xbf16> to vector<64x64xbf16>
    %cst_155 = arith.constant dense<0.000000e+00> : vector<3x64xf32>
    %612 = tpu.matmul %594, %611, %cst_155 {dimension_numbers = #tpu.dot_dimension_numbers<[1], [0], [0], [1], [0, 0, 1, 1], [], []>} : vector<3x64xbf16>, vector<64x64xbf16>, vector<3x64xf32> -> vector<3x64xf32>
    %c7 = arith.constant 7 : index
    %c0_156 = arith.constant 0 : index
    %c0_157 = arith.constant 0 : index
    %613 = vector.load %arg7[%c7, %c0_156, %c0_157] : memref<9x64x64xbf16, #tpu.memory_space<vmem>>, vector<1x64x64xbf16>
    %614 = vector.shape_cast %613 : vector<1x64x64xbf16> to vector<64x64xbf16>
    %cst_158 = arith.constant dense<0.000000e+00> : vector<3x64xf32>
    %615 = tpu.matmul %594, %614, %cst_158 {dimension_numbers = #tpu.dot_dimension_numbers<[1], [0], [0], [1], [0, 0, 1, 1], [], []>} : vector<3x64xbf16>, vector<64x64xbf16>, vector<3x64xf32> -> vector<3x64xf32>
    %c8 = arith.constant 8 : index
    %c0_159 = arith.constant 0 : index
    %c0_160 = arith.constant 0 : index
    %616 = vector.load %arg7[%c8, %c0_159, %c0_160] : memref<9x64x64xbf16, #tpu.memory_space<vmem>>, vector<1x64x64xbf16>
    %617 = vector.shape_cast %616 : vector<1x64x64xbf16> to vector<64x64xbf16>
    %cst_161 = arith.constant dense<0.000000e+00> : vector<3x64xf32>
    %618 = tpu.matmul %594, %617, %cst_161 {dimension_numbers = #tpu.dot_dimension_numbers<[1], [0], [0], [1], [0, 0, 1, 1], [], []>} : vector<3x64xbf16>, vector<64x64xbf16>, vector<3x64xf32> -> vector<3x64xf32>
    %619 = tpu.concatenate %597, %600, %603, %606, %593, %609, %612, %615, %618 in 0 : vector<3x64xf32>, vector<3x64xf32>, vector<3x64xf32>, vector<3x64xf32>, vector<3x64xf32>, vector<3x64xf32>, vector<3x64xf32>, vector<3x64xf32>, vector<3x64xf32> -> vector<27x64xf32>
    %620 = arith.truncf %619 : vector<27x64xf32> to vector<27x64xbf16>
    %c0_162 = arith.constant 0 : index
    %c0_163 = arith.constant 0 : index
    %621 = vector.load %arg19[%c0_162, %c0_163] : memref<8x27xbf16, #tpu.memory_space<vmem>>, vector<8x27xbf16>
    %cst_164 = arith.constant dense<0.000000e+00> : vector<8x64xf32>
    %622 = tpu.matmul %621, %620, %cst_164 {dimension_numbers = #tpu.dot_dimension_numbers<[1], [0], [0], [1], [0, 0, 1, 1], [], []>} : vector<8x27xbf16>, vector<27x64xbf16>, vector<8x64xf32> -> vector<8x64xf32>
    %c0_165 = arith.constant 0 : index
    %c0_166 = arith.constant 0 : index
    %c0_167 = arith.constant 0 : index
    %623 = vector.load %arg20[%c0_165, %c0_166, %c0_167] : memref<1x8x64xf32, #tpu.memory_space<vmem>>, vector<1x8x64xf32>
    %624 = vector.shape_cast %623 : vector<1x8x64xf32> to vector<8x64xf32>
    %625 = vector.shape_cast %622 : vector<8x64xf32> to vector<1x8x64xf32>
    tpu.vector_store %arg20[%c0_165, %c0_166, %c0_167], %625 {strides = array<i32>} : memref<1x8x64xf32, #tpu.memory_space<vmem>>, vector<1x8x64xf32>,
    return
  }
  func.func @transform_0(%arg0: i32) -> (i32, i32, i32) {
    %c0_i32 = arith.constant 0 : i32
    %c0_i32_0 = arith.constant 0 : i32
    %c0_i32_1 = arith.constant 0 : i32
    return %arg0, %c0_i32, %c0_i32_0 : i32, i32, i32
  }
  func.func @transform_1(%arg0: i32) -> (i32, i32, i32) {
    %c0_i32 = arith.constant 0 : i32
    %c0_i32_0 = arith.constant 0 : i32
    %c0_i32_1 = arith.constant 0 : i32
    return %arg0, %c0_i32, %c0_i32_0 : i32, i32, i32
  }
  func.func @transform_2(%arg0: i32) -> (i32, i32, i32) {
    %c0_i32 = arith.constant 0 : i32
    %c0_i32_0 = arith.constant 0 : i32
    %c0_i32_1 = arith.constant 0 : i32
    return %arg0, %c0_i32, %c0_i32_0 : i32, i32, i32
  }
  func.func @transform_3(%arg0: i32) -> (i32, i32) {
    %c0_i32 = arith.constant 0 : i32
    %c0_i32_0 = arith.constant 0 : i32
    %c0_i32_1 = arith.constant 0 : i32
    return %c0_i32, %c0_i32_0 : i32, i32
  }
  func.func @transform_4(%arg0: i32) -> (i32, i32) {
    %c0_i32 = arith.constant 0 : i32
    %c0_i32_0 = arith.constant 0 : i32
    %c0_i32_1 = arith.constant 0 : i32
    return %c0_i32, %c0_i32_0 : i32, i32
  }
  func.func @transform_5(%arg0: i32) -> (i32, i32) {
    %c0_i32 = arith.constant 0 : i32
    %c0_i32_0 = arith.constant 0 : i32
    %c0_i32_1 = arith.constant 0 : i32
    return %c0_i32, %c0_i32_0 : i32, i32
  }
  func.func @transform_6(%arg0: i32) -> (i32, i32, i32) {
    %c0_i32 = arith.constant 0 : i32
    %c0_i32_0 = arith.constant 0 : i32
    %c0_i32_1 = arith.constant 0 : i32
    %c0_i32_2 = arith.constant 0 : i32
    return %c0_i32, %c0_i32_0, %c0_i32_1 : i32, i32, i32
  }
  func.func @transform_7(%arg0: i32) -> (i32, i32) {
    %c0_i32 = arith.constant 0 : i32
    %c0_i32_0 = arith.constant 0 : i32
    %c0_i32_1 = arith.constant 0 : i32
    return %c0_i32, %c0_i32_0 : i32, i32
  }
  func.func @transform_8(%arg0: i32) -> (i32, i32) {
    %c0_i32 = arith.constant 0 : i32
    %c0_i32_0 = arith.constant 0 : i32
    %c0_i32_1 = arith.constant 0 : i32
    return %c0_i32, %c0_i32_0 : i32, i32
  }
  func.func @transform_9(%arg0: i32) -> (i32, i32) {
    %c0_i32 = arith.constant 0 : i32
    %c0_i32_0 = arith.constant 0 : i32
    %c0_i32_1 = arith.constant 0 : i32
    return %c0_i32, %c0_i32_0 : i32, i32
  }
  func.func @transform_10(%arg0: i32) -> (i32, i32) {
    %c0_i32 = arith.constant 0 : i32
    %c0_i32_0 = arith.constant 0 : i32
    %c0_i32_1 = arith.constant 0 : i32
    return %c0_i32, %c0_i32_0 : i32, i32
  }
  func.func @transform_11(%arg0: i32) -> (i32, i32) {
    %c0_i32 = arith.constant 0 : i32
    %c0_i32_0 = arith.constant 0 : i32
    %c0_i32_1 = arith.constant 0 : i32
    return %c0_i32, %c0_i32_0 : i32, i32
  }
  func.func @transform_12(%arg0: i32) -> (i32, i32) {
    %c0_i32 = arith.constant 0 : i32
    %c0_i32_0 = arith.constant 0 : i32
    %c0_i32_1 = arith.constant 0 : i32
    return %c0_i32, %c0_i32_0 : i32, i32
  }
  func.func @transform_13(%arg0: i32) -> (i32, i32) {
    %c0_i32 = arith.constant 0 : i32
    %c0_i32_0 = arith.constant 0 : i32
    %c0_i32_1 = arith.constant 0 : i32
    return %c0_i32, %c0_i32_0 : i32, i32
  }
  func.func @transform_14(%arg0: i32) -> (i32, i32) {
    %c0_i32 = arith.constant 0 : i32
    %c0_i32_0 = arith.constant 0 : i32
    %c0_i32_1 = arith.constant 0 : i32
    return %c0_i32, %c0_i32_0 : i32, i32
  }
  func.func @transform_15(%arg0: i32) -> (i32, i32) {
    %c0_i32 = arith.constant 0 : i32
    %c0_i32_0 = arith.constant 0 : i32
    %c0_i32_1 = arith.constant 0 : i32
    return %c0_i32, %c0_i32_0 : i32, i32
  }
  func.func @transform_16(%arg0: i32) -> (i32, i32) {
    %c0_i32 = arith.constant 0 : i32
    %c0_i32_0 = arith.constant 0 : i32
    %c0_i32_1 = arith.constant 0 : i32
    return %c0_i32, %c0_i32_0 : i32, i32
  }
  func.func @transform_17(%arg0: i32) -> (i32, i32) {
    %c0_i32 = arith.constant 0 : i32
    %c0_i32_0 = arith.constant 0 : i32
    %c0_i32_1 = arith.constant 0 : i32
    return %c0_i32, %c0_i32_0 : i32, i32
  }
  func.func @transform_18(%arg0: i32) -> (i32, i32) {
    %c0_i32 = arith.constant 0 : i32
    %c0_i32_0 = arith.constant 0 : i32
    %c0_i32_1 = arith.constant 0 : i32
    return %c0_i32, %c0_i32_0 : i32, i32
  }
  func.func @transform_19(%arg0: i32) -> (i32, i32, i32) {
    %c0_i32 = arith.constant 0 : i32
    %c0_i32_0 = arith.constant 0 : i32
    %c0_i32_1 = arith.constant 0 : i32
    return %arg0, %c0_i32, %c0_i32_0 : i32, i32, i32
  }
  func.func @transform_20(%arg0: i32) -> (i32, i32, i32) {
    %c0_i32 = arith.constant 0 : i32
    %c0_i32_0 = arith.constant 0 : i32
    %c0_i32_1 = arith.constant 0 : i32
    return %arg0, %c0_i32, %c0_i32_0 : i32, i32, i32
  }
}

</mosaic_0001>

<bundles_post_ra>
// kernel: kblock_forward.1
= control target key start
LH: loop header
LB: loop body
LE: loop exit
PB: predicated region body
PF: predicated region fallthrough
CT: control target
= control target key end

     0   :  { %s11680_s0 = inlined_call_operand.vmem [shape: f32[2,8,256], index: 0, kind: input, shape index: {}]   ;;  %s11681_s1 = inlined_call_operand.vmem [shape: f32[2,25,64], index: 1, kind: input, shape index: {}]   ;;  %s11682_s2 = inlined_call_operand.vmem [shape: f32[2,3,64], index: 2, kind: input, shape index: {}]   ;;  %s11683_s3 = inlined_call_operand.vmem [shape: f32[9,256], index: 3, kind: input, shape index: {}]   ;;  %s11684_s4 = inlined_call_operand.vmem [shape: f32[25,256], index: 4, kind: input, shape index: {}]   ;;  %s11685_s5 = inlined_call_operand.vmem [shape: bf16[256,64], index: 5, kind: input, shape index: {}]   ;;  %s11686_s6 = inlined_call_operand.vmem [shape: bf16[9,64,64], index: 6, kind: input, shape index: {}]   ;;  %s11687_s7 = inlined_call_operand.vmem [shape: bf16[3,72], index: 7, kind: input, shape index: {}]   ;;  %s11688_s8 = inlined_call_operand.vmem [shape: bf16[25,27], index: 8, kind: input, shape index: {}]   ;;  %s11689_s9 = inlined_call_operand.vmem [shape: bf16[32,25], index: 9, kind: input, shape index: {}]   ;;  %s11690_s10 = inlined_call_operand.vmem [shape: bf16[32,288], index: 10, kind: input, shape index: {}]   ;;  %s11691_s11 = inlined_call_operand.vmem [shape: bf16[32,288], index: 11, kind: input, shape index: {}]   ;;  %s11692_s12 = inlined_call_operand.vmem [shape: bf16[25,288], index: 12, kind: input, shape index: {}]   ;;  %s11693_s13 = inlined_call_operand.vmem [shape: bf16[25,225], index: 13, kind: input, shape index: {}]   ;;  %s11694_s14 = inlined_call_operand.vmem [shape: bf16[25,225], index: 14, kind: input, shape index: {}]   ;;  %s11695_s15 = inlined_call_operand.vmem [shape: bf16[32,50], index: 15, kind: input, shape index: {}]   ;;  %s11696_s16 = inlined_call_operand.vmem [shape: bf16[32,288], index: 16, kind: input, shape index: {}]   ;;  %s11697_s17 = inlined_call_operand.vmem [shape: bf16[25,288], index: 17, kind: input, shape index: {}]   ;;  %s11698_s18 = inlined_call_operand.vmem [shape: bf16[8,27], index: 18, kind: input, shape index: {}]   ;;  %s11699_s19 = inlined_call_operand.vmem [shape: f32[2,8,64], index: 19, kind: output, shape index: {0}]   ;;  %s11700_s20 = inlined_call_operand.vmem [shape: f32[2,25,1], index: 20, kind: output, shape index: {1}]  }
   0x1   :  { %11920 = sst [smem:[#allocation65_spill]] %s11680_s0 }
   0x2   :  { %11921 = sst [smem:[#allocation66_spill]] %s11681_s1  ;;  %s6586_s1 = smov 0  }
   0x3   :  { %11922 = sst [smem:[#allocation67_spill]] %s11682_s2 }
   0x4   :  { %11923 = sst [smem:[#allocation68_spill]] %s11683_s3 }
   0x5   :  { %11924 = sst [smem:[#allocation69_spill]] %s11684_s4 }
   0x6   :  { %11925 = sst [smem:[#allocation70_spill]] %s11687_s7 }
   0x7   :  { %11926 = sst [smem:[#allocation71_spill]] %s11688_s8 }
   0x8   :  { %11927 = sst [smem:[#allocation72_spill]] %s11689_s9 }
   0x9   :  { %11928 = sst [smem:[#allocation73_spill]] %s11690_s10 }
   0xa LB: > { %s5806_s22 = sadd.s32 4294967295, %s6451_s1   ;;  %p5810_p0 = scmp.ge.s32.totalorder %s6451_s1, 1  ;;  %s6451_s1 = sphi %s6586_s1, %s31_s1  }
   0xb   : > { %p584_p1 = scmp.lt.s32.totalorder %s6451_s1, 3 }
   0xd   : > { %p585_p2 = pnand %p5810_p0, %p584_p1 }
   0xf   : > { %588 = sbr.rel (%p585_p2) target bundleno = 4307 (0x10d3), region = 96 }
  0x14   : > { %p655_p3 = scmp.lt.s32.totalorder %s5806_s22, 1  ;;  %s11929_s25 = sld [smem:[#allocation65_spill]]  ;;  %v697_v3 = vlaneseq  ;;  %vm11876_vm3 = vcmask 1043456   ;;  %vm794_vm9 = vcmask 588800   ;;  %vm11716_vm10 = vcmask 1041408  }
  0x15   : > { %s11713_s26 = smov 113   ;;  %s11709_s27 = smov 111   ;;  %vm11879_vm11 = vcmask 1044480   ;;  %vm11717_vm12 = vcmask 1045504   ;;  %vm972_vm13 = vcmask 1040384   ;;  %vm11784_vm14 = vcmask 1042432  }
  0x16   : > { %s12394_s22 = smov (!%p655_p3, %s5806_s22), 1  ;;  %s11758_s28 = smov 112   ;;  %v6636_v6 = vand.u32 127, %v697_v3  ;;  %vm11878_vm15 = vcmask 1046528  }
  0x17   : > { %s6296_s23 = sshll.u32 %s12394_s22, 4  ;;  %s11711_s4 = smov 127  }
  0x18   : > { %s11756_s29 = smov 15   ;;  %s11707_s30 = smov 1   ;;  %11930 = vst [vmem:[#allocation2_spill] sm:$0xff] %v6636_v6  ;;  %vm765_vm0 = vcmp.lt.s32.totalorder %v6636_v6, 112  ;;  %vm776_vm1 = vcmp.lt.s32.totalorder %v6636_v6, 111  ;;  %vm754_vm2 = vcmp.lt.s32.totalorder %v6636_v6, 113 }
  0x19   : > { %s11705_s0 = smov 17   ;;  %s11703_s21 = smov 16   ;;  %vm743_vm4 = vcmp.lt.s32.totalorder %v6636_v6, 127  ;;  %vm732_vm5 = vcmp.lt.s32.totalorder %v6636_v6, 1  ;;  %vm721_vm6 = vcmp.lt.s32.totalorder %v6636_v6, 15  ;;  %vm699_vm7 = vcmp.lt.s32.totalorder %v6636_v6, 17 }
  0x1a   : > { %s659_s3 = scalar_lea.vmem %s11929_s25, %s6296_s23  ;;  %s11931_s2 = sld [smem:[#allocation68_spill]]  ;;  %vm710_vm8 = vcmp.lt.s32.totalorder %v6636_v6, 16 }
  0x1b   : > { %v6600_v0 = vld [vmem:[%s659_s3] sm:$0xff]  ;;  %v6608_v1 = vld [vmem:[%s659_s3 + $0x8] sm:$0xff]  ;;  %s11942_s7 = sld [smem:[#allocation70_spill]]  ;;  %s11947_s23 = smov 17  }
  0x1c   : > { %750 = vrot.lane.b32.xlu1 %v6600_v0, %s11713_s26  ;;  %772 = vrot.lane.b32.xlu0 %v6600_v0, %s11709_s27  ;;  %s11948_s24 = smov 16   ;;  %s11966_s8 = sld [smem:[#allocation71_spill]] }
  0x1d   : > { %761 = vrot.lane.b32.xlu2 %v6600_v0, %s11758_s28  ;;  %s11967_s9 = sld [smem:[#allocation72_spill]]  ;;  %s11991_s25 = smov 112  }
  0x1e   : > { %s11978_s10 = sld [smem:[#allocation73_spill]]  ;;  %s11992_s3 = smov 15  }
  0x20   : > { %v6641_v8 = vld [vmem:[%s11931_s2] sm:$0xff]  ;;  %v6646_v9 = vld [vmem:[%s11931_s2 + $0x8] sm:$0xff]  ;;  %v6653_v10 = vld [vmem:[%s11931_s2 + $0x10] ss:$0 sm:$0xff] }
  0x21   : > { %v6658_v11 = vld [vmem:[%s11931_s2 + $0x18] ss:$0 sm:$0xff]  ;;  %v6662_v14 = vperm.slane %v6641_v8, 6  ;;  %v6665_v15 = vperm.slane %v6641_v8, 7  ;;  %v6668_v16 = vperm.slane %v6646_v9, 6  ;;  %v6671_v17 = vperm.slane %v6646_v9, 7 }
  0x22   : > { %v6695_v35 = vperm.slane %v6641_v8, 5  ;;  %v6698_v36 = vperm.slane %v6646_v9, 5  ;;  %v6711_v48 = vperm.slane %v6641_v8, 2  ;;  %v6714_v49 = vperm.slane %v6641_v8, 3 }
  0x23   : > { %11932 = vst [vmem:[#allocation3_spill] sm:$0xff] %v6662_v14  ;;  %v6717_v50 = vperm.slane %v6646_v9, 2  ;;  %v6720_v51 = vperm.slane %v6646_v9, 3 }
  0x24   : > { %752 = vrot.lane.b32.xlu1 %v6608_v1, %s11713_s26  ;;  %774 = vrot.lane.b32.xlu0 %v6608_v1, %s11709_s27  ;;  %11933 = vst [vmem:[#allocation4_spill] sm:$0xff] %v6665_v15  ;;  %s11970_s27 = smov 113  }
  0x25   : > { %763 = vrot.lane.b32.xlu2 %v6608_v1, %s11758_s28  ;;  %11934 = vst [vmem:[#allocation5_spill] sm:$0xff] %v6668_v16 }
  0x26   : > { %11935 = vst [vmem:[#allocation6_spill] sm:$0xff] %v6671_v17 }
  0x27   : > { %11936 = vst [vmem:[#allocation7_spill] sm:$0xff] %v6695_v35 }
  0x28   : > { %11937 = vst [vmem:[#allocation8_spill] sm:$0xff] %v6698_v36 }
  0x29   : > { %11938 = vst [vmem:[#allocation9_spill] sm:$0xff] %v6714_v49 }
  0x2a   : > { %11939 = vst [vmem:[#allocation10_spill] sm:$0xff] %v6720_v51 }
  0x2c   : > { %741 = vrot.lane.b32.xlu1 %v6608_v1, %s11711_s4  ;;  %739 = vrot.lane.b32.xlu0 %v6600_v0, %s11711_s4 }
  0x2d   : > { %717 = vrot.lane.b32.xlu2 %v6600_v0, %s11756_s29 }
  0x34   : > { %728 = vrot.lane.b32.xlu1 %v6600_v0, %s11707_s30  ;;  %719 = vrot.lane.b32.xlu0 %v6608_v1, %s11756_s29 }
  0x35   : > { %730 = vrot.lane.b32.xlu2 %v6608_v1, %s11707_s30  ;;  %s11971_s30 = smov 127  }
  0x3c   : > { %695 = vrot.lane.b32.xlu1 %v6608_v1, %s11705_s0  ;;  %693 = vrot.lane.b32.xlu0 %v6600_v0, %s11705_s0  ;;  %s11945_s0 = smov 111  }
  0x3d   : > { %706 = vrot.lane.b32.xlu2 %v6600_v0, %s11703_s21 }
  0x44   : > { %708 = vrot.lane.b32.xlu0 %v6608_v1, %s11703_s21  ;;  %s11946_s21 = smov 1  }
  0x77   : > { %v762_v2 = vpop.permute.xlu2 %761 }
  0x7f   : > { %v764_v7 = vpop.permute.xlu2 %763 }
  0x80   : > { %v766_v18 = vsel %vm765_vm0, %v762_v2, %v764_v7  ;;  %v767_v19 = vsel %vm765_vm0, %v764_v7, %v762_v2  ;;  %v6736_v2 = vperm.slane %v6641_v8, 0  ;;  %v6746_v7 = vperm.slane %v6646_v9, 1 }
  0x81   : > { %v770_v30 = vmul.f32 %v6665_v15, %v766_v18  ;;  %v771_v32 = vmul.f32 %v6671_v17, %v767_v19 }
  0x82   : > { %11940 = vst [vmem:[#allocation11_spill] sm:$0xff] %v6736_v2 }
  0x87   : > { %v718_v28 = vpop.permute.xlu2 %717 }
  0x8e   : > { %v751_v4 = vpop.permute.xlu1 %750  ;;  %v773_v5 = vpop.permute.xlu0 %772 }
  0x8f   : > { %v731_v47 = vpop.permute.xlu2 %730 }
  0x96   : > { %v753_v12 = vpop.permute.xlu1 %752  ;;  %v775_v13 = vpop.permute.xlu0 %774 }
  0x97   : > { %v777_v20 = vsel %vm776_vm1, %v773_v5, %v775_v13  ;;  %v778_v21 = vsel %vm776_vm1, %v775_v13, %v773_v5  ;;  %v755_v22 = vsel %vm754_vm2, %v751_v4, %v753_v12  ;;  %v756_v23 = vsel %vm754_vm2, %v753_v12, %v751_v4  ;;  %v707_v3 = vpop.permute.xlu2 %706 }
  0x98   : > { %v781_v24 = vmul.f32 %v6653_v10, %v777_v20  ;;  %v782_v25 = vmul.f32 %v6658_v11, %v778_v21  ;;  %v759_v29 = vmul.f32 %v6662_v14, %v755_v22  ;;  %v760_v31 = vmul.f32 %v6668_v16, %v756_v23 }
  0x99   : > { %v6740_v4 = vperm.slane %v6641_v8, 1  ;;  %v6743_v5 = vperm.slane %v6646_v9, 0 }
  0x9a   : > { %v791_v26 = vpack.c.bf16 %v781_v24, %v781_v24  ;;  %v792_v27 = vpack.c.bf16 %v782_v25, %v782_v25  ;;  %v789_v41 = vpack.c.bf16 %v770_v30, %v759_v29  ;;  %v790_v42 = vpack.c.bf16 %v771_v32, %v760_v31  ;;  %v793_v25 = vld [vmem:[%s11942_s7] sm:$0x3] }
  0x9b   : > { %11941 = vst [vmem:[#allocation12_spill] sm:$0xff] %v6743_v5 }
  0x9c   : > { %v800_v33 = vsel %vm11876_vm3, %v791_v26, 0  ;;  %v803_v34 = vsel %vm11876_vm3, %v792_v27, 0 }
  0x9d   : > { %808 = vmatpush.bf16.msra.mxu0 %v800_v33  ;;  %821 = vmatpush.bf16.msra.mxu1 %v803_v34 }
  0x9e   : > { %v742_v37 = vpop.permute.xlu1 %741  ;;  %v740_v38 = vpop.permute.xlu0 %739 }
  0x9f   : > { %v744_v39 = vsel %vm743_vm4, %v740_v38, %v742_v37  ;;  %v745_v40 = vsel %vm743_vm4, %v742_v37, %v740_v38 }
  0xa0   : > { %v748_v43 = vmul.f32 %v6695_v35, %v744_v39  ;;  %v749_v44 = vmul.f32 %v6698_v36, %v745_v40 }
  0xa1   : > { %809 = vmatpush.bf16.msra.mxu0 %v789_v41  ;;  %822 = vmatpush.bf16.msra.mxu1 %v790_v42 }
  0xa2   : > { %v787_v45 = vpack.c.bf16 %v748_v43, %v6600_v0  ;;  %v788_v46 = vpack.c.bf16 %v749_v44, %v6608_v1 }
  0xa5   : > { %810 = vmatpush.bf16.msra.mxu0 %v787_v45  ;;  %823 = vmatpush.bf16.msra.mxu1 %v788_v46 }
  0xa6   : > { %v729_v52 = vpop.permute.xlu1 %728  ;;  %v720_v53 = vpop.permute.xlu0 %719 }
  0xa7   : > { %v733_v54 = vsel %vm732_vm5, %v729_v52, %v731_v47  ;;  %v734_v55 = vsel %vm732_vm5, %v731_v47, %v729_v52  ;;  %v722_v56 = vsel %vm721_vm6, %v718_v28, %v720_v53  ;;  %v723_v57 = vsel %vm721_vm6, %v720_v53, %v718_v28 }
  0xa8   : > { %v726_v58 = vmul.f32 %v6711_v48, %v723_v57  ;;  %v737_v59 = vmul.f32 %v6714_v49, %v734_v55  ;;  %v727_v60 = vmul.f32 %v6717_v50, %v722_v56  ;;  %v738_v61 = vmul.f32 %v6720_v51, %v733_v54 }
  0xaa   : > { %v785_v62 = vpack.c.bf16 %v737_v59, %v726_v58  ;;  %v786_v63 = vpack.c.bf16 %v738_v61, %v727_v60 }
  0xac   : > { %811 = vmatpush.bf16.msra.mxu0 %v785_v62  ;;  %824 = vmatpush.bf16.msra.mxu1 %v786_v63 }
  0xae   : > { %v694_v0 = vpop.permute.xlu0 %693  ;;  %v696_v1 = vpop.permute.xlu1 %695 }
  0xaf   : > { %v700_v12 = vsel %vm699_vm7, %v694_v0, %v696_v1  ;;  %v701_v13 = vsel %vm699_vm7, %v696_v1, %v694_v0  ;;  %v6461_v0 = vmov 65535  }
  0xb0   : > { %v704_v20 = vmul.f32 %v6736_v2, %v701_v13  ;;  %v705_v9 = vmul.f32 %v6743_v5, %v700_v12  ;;  %v1011_v1 = vsel %vm11879_vm11, 4294967295, %v6461_v0 }
  0xb6   : > { %v709_v18 = vpop.permute.xlu0 %708 }
  0xb7   : > { %v711_v19 = vsel %vm710_vm8, %v707_v3, %v709_v18  ;;  %v712_v8 = vsel %vm710_vm8, %v709_v18, %v707_v3 }
  0xb8   : > { %v715_v21 = vmul.f32 %v6740_v4, %v712_v8  ;;  %v716_v22 = vmul.f32 %v6746_v7, %v711_v19 }
  0xba   : > { %v783_v23 = vpack.c.bf16 %v715_v21, %v704_v20  ;;  %v784_v24 = vpack.c.bf16 %v716_v22, %v705_v9  ;;  %v6863_v20 = vsel %vm11717_vm12, %v1011_v1, 0 }
  0xbb   : > { %11957 = vst [vmem:[#allocation23_spill] sm:$0xff] %v6863_v20 }
  0xbc   : > { %812 = vmatpush.bf16.msra.mxu0 %v783_v23  ;;  %825 = vmatpush.bf16.msra.mxu1 %v784_v24 }
  0xbf   : > { %5819 = vmatmul.msk.bf16.vlgmr.msra.gmra.mxu0 %vm794_vm9, %v793_v25  ;;  %5820 = vmatmul.msk.bf16.vlgmr.msra.gmra.mxu1 %vm794_vm9, %v793_v25  ;;  %vm11715_vm9 = vcmask 220160  }
 0x13c   : > { %v6763_v26 = vpop.f32.mrf.mxu0  ;;  %v6765_v27 = vpop.f32.mrf.mxu1 }
 0x13d   : > { %11943 = vst [vmem:[#allocation13_spill] sm:$0xff] %v6763_v26  ;;  %900 = vrot.lane.b32.xlu0 %v6763_v26, %s11713_s26  ;;  %892 = vrot.lane.b32.xlu1 %v6763_v26, %s11711_s4  ;;  %v944_v1 = vrot.slane %v6763_v26, 4 }
 0x13e   : > { %11944 = vst [vmem:[#allocation14_spill] sm:$0xff] %v6765_v27  ;;  %894 = vrot.lane.b32.xlu2 %v6765_v27, %s11711_s4 }
 0x144   : > { %v816_v28 = vpop.f32.mrf.mxu0  ;;  %v829_v29 = vpop.f32.mrf.mxu1 }
 0x145   : > { %910 = vrot.lane.b32.xlu0 %v6765_v27, %s11758_s28  ;;  %902 = vrot.lane.b32.xlu1 %v6765_v27, %s11713_s26 }
 0x146   : > { %908 = vrot.lane.b32.xlu2 %v6763_v26, %s11758_s28 }
 0x14d   : > { %876 = vrot.lane.b32.xlu0 %v6763_v26, %s11756_s29  ;;  %916 = vrot.lane.b32.xlu1 %v6763_v26, %s11945_s0 }
 0x14e   : > { %918 = vrot.lane.b32.xlu2 %v6765_v27, %s11945_s0 }
 0x155   : > { %886 = vrot.lane.b32.xlu0 %v6765_v27, %s11946_s21  ;;  %878 = vrot.lane.b32.xlu1 %v6765_v27, %s11756_s29 }
 0x156   : > { %884 = vrot.lane.b32.xlu2 %v6763_v26, %s11946_s21 }
 0x15d   : > { %860 = vrot.lane.b32.xlu0 %v6763_v26, %s11947_s23  ;;  %868 = vrot.lane.b32.xlu1 %v6763_v26, %s11948_s24 }
 0x15e   : > { %870 = vrot.lane.b32.xlu2 %v6765_v27, %s11948_s24 }
 0x165   : > { %862 = vrot.lane.b32.xlu1 %v6765_v27, %s11947_s23 }
 0x198   : > { %v895_v30 = vpop.permute.xlu2 %894 }
 0x1a0   : > { %v909_v33 = vpop.permute.xlu2 %908 }
 0x1a8   : > { %v919_v54 = vpop.permute.xlu2 %918 }
 0x1af   : > { %v901_v31 = vpop.permute.xlu0 %900  ;;  %v893_v32 = vpop.permute.xlu1 %892 }
 0x1b0   : > { %v6801_v34 = vsel %vm743_vm4, %v893_v32, %v895_v30  ;;  %v6805_v37 = vsel %vm743_vm4, %v895_v30, %v893_v32  ;;  %v885_v25 = vpop.permute.xlu2 %884 }
 0x1b1   : > { %11949 = vst [vmem:[#allocation15_spill] sm:$0xff] %v6801_v34  ;;  %v6825_v44 = vmul.f32 %v6801_v34, %v6695_v35  ;;  %v6829_v45 = vmul.f32 %v6805_v37, %v6698_v36 }
 0x1b2   : > { %11950 = vst [vmem:[#allocation16_spill] sm:$0xff] %v6805_v37 }
 0x1b3   : > { %v950_v57 = vrot.slane %v6825_v44, 1  ;;  %v951_v58 = vrot.slane %v6829_v45, 1  ;;  %v5827_v44 = vld [vmem:[%s11966_s8 + $0x8] sm:$0xf]  ;;  %v6300_v45 = vld [vmem:[%s11966_s8 + $0x8] sm:$0x10] }
 0x1b7   : > { %v911_v38 = vpop.permute.xlu0 %910  ;;  %v903_v39 = vpop.permute.xlu1 %902 }
 0x1b8   : > { %v6809_v40 = vsel %vm765_vm0, %v909_v33, %v911_v38  ;;  %v6813_v41 = vsel %vm765_vm0, %v911_v38, %v909_v33  ;;  %v6817_v42 = vsel %vm754_vm2, %v901_v31, %v903_v39  ;;  %v6821_v43 = vsel %vm754_vm2, %v903_v39, %v901_v31 }
 0x1b9   : > { %11951 = vst [vmem:[#allocation17_spill] sm:$0xff] %v6809_v40  ;;  %v914_v46 = vmul.f32 %v6809_v40, %v6665_v15  ;;  %v915_v47 = vmul.f32 %v6813_v41, %v6671_v17  ;;  %v906_v52 = vmul.f32 %v6817_v42, %v6662_v14  ;;  %v907_v53 = vmul.f32 %v6821_v43, %v6668_v16 }
 0x1ba   : > { %11952 = vst [vmem:[#allocation18_spill] sm:$0xff] %v6813_v41 }
 0x1bb   : > { %11953 = vst [vmem:[#allocation19_spill] sm:$0xff] %v6817_v42  ;;  %v956_v55 = vrot.slane %v906_v52, 6  ;;  %v957_v56 = vrot.slane %v907_v53, 6  ;;  %v962_v59 = vrot.slane %v914_v46, 3  ;;  %v963_v60 = vrot.slane %v915_v47, 3  ;;  %v871_v47 = vpop.permute.xlu2 %870 }
 0x1bc   : > { %11954 = vst [vmem:[#allocation20_spill] sm:$0xff] %v6821_v43 }
 0x1bd   : > { %v981_v63 = vsel %vm11716_vm10, %v950_v57, %v956_v55  ;;  %v982_v3 = vsel %vm11716_vm10, %v951_v58, %v957_v56 }
 0x1be   : > { %v984_v8 = vsel %vm11879_vm11, %v981_v63, %v962_v59  ;;  %v985_v21 = vsel %vm11879_vm11, %v982_v3, %v963_v60  ;;  %v945_v3 = vrot.slane %v6765_v27, 4 }
 0x1bf   : > { %v877_v61 = vpop.permute.xlu0 %876  ;;  %v917_v62 = vpop.permute.xlu1 %916 }
 0x1c0   : > { %v6851_v12 = vsel %vm776_vm1, %v917_v62, %v919_v54  ;;  %v6855_v13 = vsel %vm776_vm1, %v919_v54, %v917_v62 }
 0x1c1   : > { %11955 = vst [vmem:[#allocation21_spill] sm:$0xff] %v6851_v12  ;;  %v922_v18 = vmul.f32 %v6653_v10, %v6851_v12  ;;  %v923_v19 = vmul.f32 %v6658_v11, %v6855_v13 }
 0x1c2   : > { %11956 = vst [vmem:[#allocation22_spill] sm:$0xff] %v6855_v13 }
 0x1c3   : > { %v988_v9 = vpack.c.bf16 %v922_v18, %v984_v8  ;;  %v989_v22 = vpack.c.bf16 %v923_v19, %v985_v21 }
 0x1c5   : > { %v1014_v23 = vand.u32 %v6863_v20, %v988_v9  ;;  %v1017_v24 = vand.u32 %v6863_v20, %v989_v22 }
 0x1c7   : > { %v887_v28 = vpop.permute.xlu0 %886  ;;  %v879_v29 = vpop.permute.xlu1 %878  ;;  %1025 = vmatpush.bf16.msra.mxu2 %v1014_v23  ;;  %1044 = vmatpush.bf16.msra.mxu3 %v1017_v24 }
 0x1c8   : > { %v6870_v10 = vsel %vm732_vm5, %v885_v25, %v887_v28  ;;  %v6874_v11 = vsel %vm732_vm5, %v887_v28, %v885_v25  ;;  %v6878_v30 = vsel %vm721_vm6, %v877_v61, %v879_v29  ;;  %v6882_v31 = vsel %vm721_vm6, %v879_v29, %v877_v61 }
 0x1c9   : > { %11958 = vst [vmem:[#allocation24_spill] sm:$0xff] %v6870_v10  ;;  %v890_v32 = vmul.f32 %v6874_v11, %v6714_v49  ;;  %v891_v33 = vmul.f32 %v6870_v10, %v6720_v51  ;;  %v882_v38 = vmul.f32 %v6882_v31, %v6711_v48  ;;  %v883_v39 = vmul.f32 %v6878_v30, %v6717_v50 }
 0x1ca   : > { %11959 = vst [vmem:[#allocation25_spill] sm:$0xff] %v6874_v11 }
 0x1cb   : > { %11960 = vst [vmem:[#allocation26_spill] sm:$0xff] %v6878_v30  ;;  %v938_v52 = vrot.slane %v890_v32, 7  ;;  %v939_v53 = vrot.slane %v891_v33, 7  ;;  %v932_v54 = vrot.slane %v882_v38, 2  ;;  %v933_v55 = vrot.slane %v883_v39, 2 }
 0x1cc   : > { %11961 = vst [vmem:[#allocation27_spill] sm:$0xff] %v6882_v31 }
 0x1cd   : > { %v973_v62 = vsel %vm972_vm13, %v932_v54, %v938_v52  ;;  %v974_v63 = vsel %vm972_vm13, %v933_v55, %v939_v53  ;;  %v6299_v53 = vld [vmem:[%s11966_s8] sm:$0xff]  ;;  %s11815_s8 = sshll.u32 %s12394_s22, 5 }
 0x1ce   : > { %v975_v9 = vsel %vm11876_vm3, %v973_v62, %v944_v1  ;;  %v976_v22 = vsel %vm11876_vm3, %v974_v63, %v945_v3  ;;  %v1090_v63 = vsel %vm11876_vm3, 4294967295, %v6461_v0 }
 0x1cf   : > { %v869_v46 = vpop.permute.xlu1 %868  ;;  %v861_v18 = vpop.permute.xlu0 %860  ;;  %v978_v38 = vsel %vm11878_vm15, %v975_v9, %v950_v57  ;;  %v5828_v57 = vor.u32 %v6300_v45, %v5827_v44 }
 0x1d0   : > { %v6894_v56 = vsel %vm710_vm8, %v869_v46, %v871_v47  ;;  %v6898_v59 = vsel %vm710_vm8, %v871_v47, %v869_v46  ;;  %v979_v46 = vsel %vm11878_vm15, %v976_v22, %v951_v58 }
 0x1d1   : > { %11962 = vst [vmem:[#allocation28_spill] sm:$0xff] %v6894_v56  ;;  %v874_v60 = vmul.f32 %v6898_v59, %v6740_v4  ;;  %v875_v61 = vmul.f32 %v6894_v56, %v6746_v7 }
 0x1d2   : > { %11963 = vst [vmem:[#allocation29_spill] sm:$0xff] %v6898_v59 }
 0x1d3   : > { %v926_v23 = vrot.slane %v874_v60, 5  ;;  %v927_v24 = vrot.slane %v875_v61, 5 }
 0x1d7   : > { %v863_v19 = vpop.permute.xlu1 %862 }
 0x1d8   : > { %v6910_v8 = vsel %vm699_vm7, %v861_v18, %v863_v19  ;;  %v6914_v21 = vsel %vm699_vm7, %v863_v19, %v861_v18 }
 0x1d9   : > { %11964 = vst [vmem:[#allocation30_spill] sm:$0xff] %v6910_v8  ;;  %v866_v25 = vmul.f32 %v6914_v21, %v6736_v2  ;;  %v867_v28 = vmul.f32 %v6910_v8, %v6743_v5 }
 0x1da   : > { %11965 = vst [vmem:[#allocation31_spill] sm:$0xff] %v6914_v21 }
 0x1db   : > { %v967_v29 = vsel %vm11784_vm14, %v866_v25, %v926_v23  ;;  %v968_v32 = vsel %vm11784_vm14, %v867_v28, %v927_v24  ;;  %v1091_v23 = vsel %vm11879_vm11, %v1090_v63, 0 }
 0x1dc   : > { %v970_v33 = vsel %vm11717_vm12, %v967_v29, %v932_v54  ;;  %v971_v39 = vsel %vm11717_vm12, %v968_v32, %v933_v55 }
 0x1dd   : > { %v986_v47 = vpack.c.bf16 %v978_v38, %v970_v33  ;;  %v987_v52 = vpack.c.bf16 %v979_v46, %v971_v39 }
 0x1df   : > { %1026 = vmatpush.bf16.msra.mxu2 %v986_v47  ;;  %1045 = vmatpush.bf16.msra.mxu3 %v987_v52  ;;  %v6301_v47 = vld [vmem:[%s11967_s9] sm:$0xff]  ;;  %v6302_v52 = vld [vmem:[%s11967_s9 + $0x8] sm:$0xff]  ;;  %s5816_s9 = sshll.u32 %s12394_s22, 3 }
 0x1e2   : > { %5829 = vmatmul.msk.bf16.vlgmr.msra.gmra.mxu2 %vm11715_vm9, %v6299_v53  ;;  %5831 = vmatmul.msk.bf16.vlgmr.msra.gmra.mxu3 %vm11715_vm9, %v6299_v53 }
 0x1f2   : > { %5830 = vmatmul.msk.bf16.gmra.mxu2 %vm11715_vm9, %v5828_v57  ;;  %5832 = vmatmul.msk.bf16.gmra.mxu3 %vm11715_vm9, %v5828_v57  ;;  %vm1083_vm9 = vcmask 203776  }
 0x265   : > { %v1028_v58 = vpop.f32.mrf.mxu2  ;;  %v1047_v54 = vpop.f32.mrf.mxu3 }
 0x266   : > { %v1057_v38 = vmax.f32 %v1028_v58, 0.0  ;;  %v1058_v39 = vmax.f32 %v1047_v54, 0.0 }
 0x26d   : > { %v1030_v55 = vpop.f32.mrf.mxu2  ;;  %v1049_v60 = vpop.f32.mrf.mxu3 }
 0x26e   : > { %v1059_v28 = vmax.f32 %v1030_v55, 0.0  ;;  %v1060_v29 = vmax.f32 %v1049_v60, 0.0 }
 0x270   : > { %v1069_v46 = vpack.c.bf16 %v1059_v28, %v1057_v38  ;;  %v1070_v0 = vpack.c.bf16 %v1060_v29, %v1058_v39 }
 0x275   : > { %v1033_v61 = vpop.f32.mrf.mxu2  ;;  %v1052_v62 = vpop.f32.mrf.mxu3 }
 0x276   : > { %v1061_v18 = vmax.f32 %v1033_v61, 0.0  ;;  %v1062_v19 = vmax.f32 %v1052_v62, 0.0 }
 0x27d   : > { %v1035_v1 = vpop.f32.mrf.mxu2  ;;  %v1054_v3 = vpop.f32.mrf.mxu3 }
 0x27e   : > { %v1063_v9 = vmax.f32 %v1035_v1, 0.0  ;;  %v1064_v22 = vmax.f32 %v1054_v3, 0.0 }
 0x280   : > { %v1071_v24 = vpack.c.bf16 %v1063_v9, %v1061_v18  ;;  %v1072_v25 = vpack.c.bf16 %v1064_v22, %v1062_v19 }
 0x282   : > { %v1093_v32 = vand.u32 %v1091_v23, %v1071_v24  ;;  %v1096_v33 = vand.u32 %v1091_v23, %v1072_v25 }
 0x284   : > { %1104 = vmatpush.bf16.msrb.mxu0 %v1093_v32  ;;  %1123 = vmatpush.bf16.msrb.mxu1 %v1096_v33 }
 0x288   : > { %1105 = vmatpush.bf16.msrb.mxu0 %v1069_v46  ;;  %1124 = vmatpush.bf16.msrb.mxu1 %v1070_v0 }
 0x28b   : > { %5841 = vmatmul.msk.bf16.vlgmr.msrb.gmra.mxu0 %vm1083_vm9, %v6301_v47  ;;  %5843 = vmatmul.msk.bf16.vlgmr.msrb.gmra.mxu1 %vm1083_vm9, %v6301_v47 }
 0x29b   : > { %5842 = vmatmul.msk.bf16.gmra.mxu0 %vm1083_vm9, %v6302_v52  ;;  %5844 = vmatmul.msk.bf16.gmra.mxu1 %vm1083_vm9, %v6302_v52 }
 0x308   : > { %v1107_v53 = vpop.f32.mrf.mxu0  ;;  %v1126_v44 = vpop.f32.mrf.mxu1 }
 0x309   : > { %vm1136_vm10 = vcmp.ge.f32.partialorder %v1107_v53, 0.0  ;;  %v1144_v45 = vmul.f32 0.01, %v1107_v53  ;;  %vm1137_vm12 = vcmp.ge.f32.partialorder %v1126_v44, 0.0  ;;  %v1145_v57 = vmul.f32 0.01, %v1126_v44 }
 0x30b   : > { %v6954_v58 = vsel %vm1136_vm10, %v1107_v53, %v1144_v45  ;;  %v6956_v54 = vsel %vm1137_vm12, %v1126_v44, %v1145_v57 }
 0x30c   : > { %11968 = vst [vmem:[#allocation32_spill] sm:$0xff] %v6954_v58  ;;  %1352 = vrot.lane.b32.xlu2 %v6954_v58, %s11758_s28  ;;  %1256 = vrot.lane.b32.xlu1 %v6954_v58, %s11946_s21 }
 0x30d   : > { %11969 = vst [vmem:[#allocation33_spill] sm:$0xff] %v6956_v54  ;;  %1264 = vrot.lane.b32.xlu0 %v6956_v54, %s11946_s21 }
 0x310   : > { %v1109_v55 = vpop.f32.mrf.mxu0  ;;  %v1128_v60 = vpop.f32.mrf.mxu1 }
 0x311   : > { %v1146_v61 = vmul.f32 0.01, %v1109_v55  ;;  %v1147_v62 = vmul.f32 0.01, %v1128_v60  ;;  %vm1138_vm10 = vcmp.ge.f32.partialorder %v1109_v55, 0.0  ;;  %vm1139_vm12 = vcmp.ge.f32.partialorder %v1128_v60, 0.0 }
 0x313   : > { %v6982_v63 = vsel %vm1138_vm10, %v1109_v55, %v1146_v61  ;;  %v6984_v1 = vsel %vm1139_vm12, %v1128_v60, %v1147_v62 }
 0x314   : > { %1224 = vrot.lane.b32.xlu2 %v6954_v58, %s11756_s29  ;;  %1360 = vrot.lane.b32.xlu1 %v6956_v54, %s11758_s28  ;;  %11972 = vst [vmem:[#allocation34_spill] sm:$0xff] %v6982_v63 }
 0x315   : > { %1320 = vrot.lane.b32.xlu0 %v6954_v58, %s11970_s27  ;;  %11973 = vst [vmem:[#allocation35_spill] sm:$0xff] %v6984_v1 }
 0x318   : > { %v1112_v3 = vpop.f32.mrf.mxu0  ;;  %v1131_v18 = vpop.f32.mrf.mxu1 }
 0x319   : > { %v1148_v19 = vmul.f32 0.01, %v1112_v3  ;;  %v1149_v9 = vmul.f32 0.01, %v1131_v18  ;;  %vm1140_vm9 = vcmp.ge.f32.partialorder %v1112_v3, 0.0  ;;  %vm1141_vm10 = vcmp.ge.f32.partialorder %v1131_v18, 0.0 }
 0x31b   : > { %v7010_v22 = vsel %vm1140_vm9, %v1112_v3, %v1148_v19  ;;  %v7012_v23 = vsel %vm1141_vm10, %v1131_v18, %v1149_v9  ;;  %vm11826_vm10 = vcmask 261120  }
 0x31c   : > { %1328 = vrot.lane.b32.xlu2 %v6956_v54, %s11970_s27  ;;  %1232 = vrot.lane.b32.xlu1 %v6956_v54, %s11756_s29  ;;  %11974 = vst [vmem:[#allocation36_spill] sm:$0xff] %v7012_v23 }
 0x31d   : > { %1192 = vrot.lane.b32.xlu0 %v6954_v58, %s11948_s24 }
 0x320   : > { %v1114_v24 = vpop.f32.mrf.mxu0  ;;  %v1133_v32 = vpop.f32.mrf.mxu1 }
 0x321   : > { %v1150_v28 = vmul.f32 0.01, %v1114_v24  ;;  %vm1142_vm12 = vcmp.ge.f32.partialorder %v1114_v24, 0.0  ;;  %v1151_v38 = vmul.f32 0.01, %v1133_v32  ;;  %vm1143_vm9 = vcmp.ge.f32.partialorder %v1133_v32, 0.0 }
 0x323   : > { %v7040_v29 = vsel %vm1142_vm12, %v1114_v24, %v1150_v28  ;;  %v7050_v39 = vsel %vm1143_vm9, %v1133_v32, %v1151_v38 }
 0x324   : > { %1200 = vrot.lane.b32.xlu2 %v6956_v54, %s11948_s24  ;;  %1288 = vrot.lane.b32.xlu1 %v6954_v58, %s11971_s30  ;;  %11975 = vst [vmem:[#allocation37_spill] sm:$0xff] %v7040_v29 }
 0x325   : > { %1296 = vrot.lane.b32.xlu0 %v6956_v54, %s11971_s30  ;;  %11976 = vst [vmem:[#allocation38_spill] sm:$0xff] %v7050_v39 }
 0x32c   : > { %1258 = vrot.lane.b32.xlu2 %v6982_v63, %s11946_s21  ;;  %1266 = vrot.lane.b32.xlu1 %v6984_v1, %s11946_s21 }
 0x32d   : > { %1354 = vrot.lane.b32.xlu0 %v6982_v63, %s11758_s28 }
 0x334   : > { %1362 = vrot.lane.b32.xlu2 %v6984_v1, %s11758_s28  ;;  %1322 = vrot.lane.b32.xlu1 %v6982_v63, %s11970_s27 }
 0x335   : > { %1226 = vrot.lane.b32.xlu0 %v6982_v63, %s11756_s29 }
 0x33c   : > { %1234 = vrot.lane.b32.xlu2 %v6984_v1, %s11756_s29  ;;  %1194 = vrot.lane.b32.xlu1 %v6982_v63, %s11948_s24 }
 0x33d   : > { %1330 = vrot.lane.b32.xlu0 %v6984_v1, %s11970_s27 }
 0x344   : > { %1290 = vrot.lane.b32.xlu2 %v6982_v63, %s11971_s30  ;;  %1298 = vrot.lane.b32.xlu1 %v6984_v1, %s11971_s30 }
 0x345   : > { %1202 = vrot.lane.b32.xlu0 %v6984_v1, %s11948_s24 }
 0x34c   : > { %1260 = vrot.lane.b32.xlu2 %v7010_v22, %s11946_s21  ;;  %1268 = vrot.lane.b32.xlu1 %v7012_v23, %s11946_s21 }
 0x34d   : > { %1356 = vrot.lane.b32.xlu0 %v7010_v22, %s11758_s28 }
 0x354   : > { %1364 = vrot.lane.b32.xlu2 %v7012_v23, %s11758_s28  ;;  %1324 = vrot.lane.b32.xlu1 %v7010_v22, %s11970_s27 }
 0x355   : > { %1228 = vrot.lane.b32.xlu0 %v7010_v22, %s11756_s29 }
 0x35c   : > { %1236 = vrot.lane.b32.xlu2 %v7012_v23, %s11756_s29  ;;  %1196 = vrot.lane.b32.xlu1 %v7010_v22, %s11948_s24 }
 0x35d   : > { %1332 = vrot.lane.b32.xlu0 %v7012_v23, %s11970_s27 }
 0x364   : > { %1292 = vrot.lane.b32.xlu2 %v7010_v22, %s11971_s30  ;;  %1300 = vrot.lane.b32.xlu1 %v7012_v23, %s11971_s30 }
 0x365   : > { %1204 = vrot.lane.b32.xlu0 %v7012_v23, %s11948_s24 }
 0x366   : > { %v7038_v25 = vpop.permute.xlu2 %1352 }
 0x36c   : > { %1164 = vrot.lane.b32.xlu2 %v7010_v22, %s11947_s23  ;;  %1358 = vrot.lane.b32.xlu1 %v7040_v29, %s11758_s28 }
 0x36d   : > { %1262 = vrot.lane.b32.xlu0 %v7040_v29, %s11946_s21 }
 0x36e   : > { %v7048_v33 = vpop.permute.xlu2 %1224 }
 0x374   : > { %1230 = vrot.lane.b32.xlu1 %v7040_v29, %s11756_s29  ;;  %1270 = vrot.lane.b32.xlu2 %v7050_v39, %s11946_s21 }
 0x375   : > { %1366 = vrot.lane.b32.xlu0 %v7050_v39, %s11758_s28 }
 0x376   : > { %v7058_v46 = vpop.permute.xlu2 %1328 }
 0x37c   : > { %1334 = vrot.lane.b32.xlu1 %v7050_v39, %s11970_s27  ;;  %1326 = vrot.lane.b32.xlu2 %v7040_v29, %s11970_s27 }
 0x37d   : > { %1238 = vrot.lane.b32.xlu0 %v7050_v39, %s11756_s29  ;;  %s12043_s29 = sld [smem:[#allocation66_spill]] }
 0x37e   : > { %v7066_v0 = vpop.permute.xlu1 %1256  ;;  %v7068_v47 = vpop.permute.xlu2 %1200 }
 0x37f   : > { %v7070_v52 = vpop.permute.xlu0 %1264 }
 0x383   : > { %s8254_s4 = scalar_lea.vmem %s12043_s29, %s11815_s8  ;;  %s6470_s29 = smov 14  }
 0x384   : > { %1206 = vrot.lane.b32.xlu1 %v7050_v39, %s11948_s24  ;;  %1198 = vrot.lane.b32.xlu2 %v7040_v29, %s11948_s24  ;;  %s12349_s8 = sld [smem:[#allocation69_spill]] }
 0x385   : > { %1160 = vrot.lane.b32.xlu0 %v6954_v58, %s11947_s23 }
 0x386   : > { %v1259_v53 = vpop.permute.xlu2 %1258  ;;  %v7078_v44 = vpop.permute.xlu1 %1360 }
 0x387   : > { %v7080_v45 = vpop.permute.xlu0 %1320 }
 0x38c   : > { %1172 = vrot.lane.b32.xlu1 %v7012_v23, %s11947_s23  ;;  %1302 = vrot.lane.b32.xlu2 %v7050_v39, %s11971_s30 }
 0x38d   : > { %1294 = vrot.lane.b32.xlu0 %v7040_v29, %s11971_s30 }
 0x38e   : > { %v7088_v57 = vpop.permute.xlu1 %1232  ;;  %v7090_v55 = vpop.permute.xlu2 %1362 }
 0x38f   : > { %v7092_v60 = vpop.permute.xlu0 %1192 }
 0x394   : > { %1162 = vrot.lane.b32.xlu1 %v6982_v63, %s11947_s23  ;;  %1174 = vrot.lane.b32.xlu2 %v7050_v39, %s11947_s23 }
 0x395   : > { %1166 = vrot.lane.b32.xlu0 %v7040_v29, %s11947_s23 }
 0x396   : > { %v7100_v61 = vpop.permute.xlu1 %1288  ;;  %v7102_v62 = vpop.permute.xlu2 %1234 }
 0x397   : > { %v7104_v3 = vpop.permute.xlu0 %1296 }
 0x39c   : > { %1388 = vrot.lane.b32.xlu1 %v7010_v22, %s11945_s0  ;;  %1168 = vrot.lane.b32.xlu2 %v6956_v54, %s11947_s23 }
 0x39d   : > { %1170 = vrot.lane.b32.xlu0 %v6984_v1, %s11947_s23 }
 0x39e   : > { %v7112_v18 = vpop.permute.xlu2 %1290  ;;  %v1267_v19 = vpop.permute.xlu1 %1266 }
 0x39f   : > { %v7114_v9 = vpop.permute.xlu0 %1354 }
 0x3a4   : > { %1398 = vrot.lane.b32.xlu1 %v7050_v39, %s11945_s0  ;;  %1384 = vrot.lane.b32.xlu2 %v6954_v58, %s11945_s0  ;;  %v1273_v39 = vsel %vm732_vm5, %v1259_v53, %v1267_v19  ;;  %v1272_v58 = vsel %vm732_vm5, %v7066_v0, %v7070_v52 }
 0x3a5   : > { %1396 = vrot.lane.b32.xlu0 %v7012_v23, %s11945_s0  ;;  %v1277_v23 = vsel %vm732_vm5, %v1267_v19, %v1259_v53  ;;  %v1276_v53 = vsel %vm732_vm5, %v7070_v52, %v7066_v0  ;;  %v1368_v52 = vsel %vm765_vm0, %v7038_v25, %v7078_v44 }
 0x3a6   : > { %v1261_v24 = vpop.permute.xlu2 %1260  ;;  %v7122_v28 = vpop.permute.xlu1 %1322  ;;  %v1280_v19 = vmul.f32 %v1276_v53, %v6714_v49 }
 0x3a7   : > { %v7124_v32 = vpop.permute.xlu0 %1226 }
 0x3ac   : > { %1392 = vrot.lane.b32.xlu1 %v6956_v54, %s11945_s0  ;;  %1390 = vrot.lane.b32.xlu2 %v7040_v29, %s11945_s0 }
 0x3ad   : > { %1386 = vrot.lane.b32.xlu0 %v6982_v63, %s11945_s0 }
 0x3ae   : > { %v7132_v38 = vpop.permute.xlu1 %1194  ;;  %v7134_v20 = vpop.permute.xlu2 %1364 }
 0x3af   : > { %v7136_v8 = vpop.permute.xlu0 %1330 }
 0x3b4   : > { %1394 = vrot.lane.b32.xlu2 %v6984_v1, %s11945_s0 }
 0x3b6   : > { %v7140_v21 = vpop.permute.xlu1 %1298  ;;  %v1237_v56 = vpop.permute.xlu2 %1236 }
 0x3b7   : > { %v7142_v59 = vpop.permute.xlu0 %1202 }
 0x3be   : > { %v7144_v30 = vpop.permute.xlu2 %1292  ;;  %v1269_v31 = vpop.permute.xlu1 %1268 }
 0x3bf   : > { %v7146_v10 = vpop.permute.xlu0 %1356  ;;  %v1274_v27 = vsel %vm732_vm5, %v1261_v24, %v1269_v31  ;;  %v1278_v26 = vsel %vm732_vm5, %v1269_v31, %v1261_v24 }
 0x3c0   : > { %v1285_v17 = vmul.f32 %v1274_v27, %v6720_v51  ;;  %v1284_v31 = vmul.f32 %v1278_v26, %v6714_v49  ;;  %v1282_v26 = vmul.f32 %v1277_v23, %v6714_v49  ;;  %v1370_v29 = vsel %vm765_vm0, %v7146_v10, %v7134_v20 }
 0x3c2   : > { %v1428_v23 = vpack.c.bf16 %v1282_v26, %v1280_v19 }
 0x3c6   : > { %v7148_v11 = vpop.permute.xlu2 %1164  ;;  %v7150_v13 = vpop.permute.xlu1 %1324 }
 0x3c7   : > { %v1229_v12 = vpop.permute.xlu0 %1228 }
 0x3c8   : > { %v1242_v19 = vsel %vm721_vm6, %v1229_v12, %v1237_v56 }
 0x3ce   : > { %v7152_v43 = vpop.permute.xlu1 %1196  ;;  %v1271_v41 = vpop.permute.xlu2 %1270 }
 0x3cf   : > { %v7154_v42 = vpop.permute.xlu0 %1332 }
 0x3d0   : > { %v1338_v26 = vsel %vm754_vm2, %v7150_v13, %v7154_v42 }
 0x3d6   : > { %v7156_v40 = vpop.permute.xlu1 %1300  ;;  %v7160_v34 = vpop.permute.xlu2 %1326 }
 0x3d7   : > { %v7158_v37 = vpop.permute.xlu0 %1204 }
 0x3de   : > { %v7166_v1 = vpop.permute.xlu1 %1358  ;;  %v7189_v27 = vpop.permute.xlu2 %1198 }
 0x3df   : > { %v1263_v54 = vpop.permute.xlu0 %1262 }
 0x3e0   : > { %v1275_v36 = vsel %vm732_vm5, %v1263_v54, %v1271_v41  ;;  %v1279_v16 = vsel %vm732_vm5, %v1271_v41, %v1263_v54  ;;  %v1283_v41 = vmul.f32 %v1273_v39, %v6720_v51 }
 0x3e1   : > { %v1287_v63 = vmul.f32 %v1275_v36, %v6720_v51  ;;  %v1286_v24 = vmul.f32 %v1279_v16, %v6714_v49  ;;  %v1281_v16 = vmul.f32 %v1272_v58, %v6720_v51 }
 0x3e3   : > { %v1431_v54 = vpack.c.bf16 %v1287_v63, %v1285_v17  ;;  %v1430_v36 = vpack.c.bf16 %v1286_v24, %v1284_v31  ;;  %v1369_v17 = vsel %vm765_vm0, %v7114_v9, %v7090_v55  ;;  %v1429_v39 = vpack.c.bf16 %v1283_v41, %v1281_v16 }
 0x3e4   : > { %v1380_v31 = vmul.f32 %v1370_v29, %v6665_v15  ;;  %v1378_v53 = vmul.f32 %v1369_v17, %v6665_v15  ;;  %v1376_v41 = vmul.f32 %v1368_v52, %v6665_v15  ;;  %v1244_v29 = vsel %vm721_vm6, %v7088_v57, %v7048_v33 }
 0x3e5   : > { %1497 = vmatpush.bf16.msrb.mxu2 %v1430_v36  ;;  %1554 = vmatpush.bf16.msra.mxu1 %v1431_v54  ;;  %v1240_v36 = vsel %vm721_vm6, %v7048_v33, %v7088_v57  ;;  %v1246_v17 = vsel %vm721_vm6, %v1237_v56, %v1229_v12  ;;  %v1245_v52 = vsel %vm721_vm6, %v7102_v62, %v7124_v32 }
 0x3e6   : > { %v1231_v0 = vpop.permute.xlu1 %1230  ;;  %v7224_v16 = vpop.permute.xlu2 %1302  ;;  %v1337_v33 = vsel %vm754_vm2, %v7122_v28, %v7136_v8 }
 0x3e7   : > { %v7202_v63 = vpop.permute.xlu0 %1366 }
 0x3e8   : > { %v1371_v58 = vsel %vm765_vm0, %v7166_v1, %v7202_v63 }
 0x3e9   : > { %1498 = vmatpush.bf16.msrb.mxu2 %v1428_v23  ;;  %1555 = vmatpush.bf16.msra.mxu1 %v1429_v39  ;;  %v1382_v24 = vmul.f32 %v1371_v58, %v6665_v15  ;;  %v1444_v39 = vpack.c.bf16 %v1378_v53, %v1376_v41  ;;  %v1241_v58 = vsel %vm721_vm6, %v7124_v32, %v7102_v62 }
 0x3ea   : > { %v1253_v32 = vmul.f32 %v1242_v19, %v6717_v50  ;;  %v1336_v15 = vsel %vm754_vm2, %v7080_v45, %v7058_v46  ;;  %v1346_v19 = vmul.f32 %v1337_v33, %v6662_v14 }
 0x3eb   : > { %v1446_v54 = vpack.c.bf16 %v1382_v24, %v1380_v31  ;;  %v1348_v24 = vmul.f32 %v1338_v26, %v6662_v14  ;;  %v1250_v26 = vmul.f32 %v1245_v52, %v6711_v48  ;;  %v1344_v52 = vmul.f32 %v1336_v15, %v6662_v14 }
 0x3ed   : > { %1516 = vmatpush.bf16.msrb.mxu3 %v1446_v54  ;;  %v1252_v54 = vmul.f32 %v1246_v17, %v6711_v48  ;;  %v1248_v17 = vmul.f32 %v1244_v29, %v6711_v48  ;;  %v1213_v29 = vsel %vm710_vm8, %v7142_v59, %v7132_v38  ;;  %v1440_v15 = vpack.c.bf16 %v1346_v19, %v1344_v52 }
 0x3ee   : > { %v7234_v23 = vpop.permute.xlu1 %1334 }
 0x3ef   : > { %v1339_v12 = vsel %vm754_vm2, %v7160_v34, %v7234_v23  ;;  %v1239_v56 = vpop.permute.xlu0 %1238 }
 0x3f0   : > { %v1243_v57 = vsel %vm721_vm6, %v1231_v0, %v1239_v56  ;;  %v1247_v31 = vsel %vm721_vm6, %v1239_v56, %v1231_v0  ;;  %v1350_v62 = vmul.f32 %v1339_v12, %v6662_v14  ;;  %v1251_v0 = vmul.f32 %v1241_v58, %v6717_v50 }
 0x3f1   : > { %v1255_v53 = vmul.f32 %v1243_v57, %v6717_v50  ;;  %1517 = vmatpush.bf16.msrb.mxu3 %v1444_v39  ;;  %v1254_v41 = vmul.f32 %v1247_v31, %v6711_v48  ;;  %v1249_v39 = vmul.f32 %v1240_v36, %v6717_v50  ;;  %v1210_v57 = vsel %vm710_vm8, %v7152_v43, %v7158_v37 }
 0x3f2   : > { %v1442_v56 = vpack.c.bf16 %v1350_v62, %v1348_v24  ;;  %v1214_v58 = vsel %vm710_vm8, %v7158_v37, %v7152_v43  ;;  %v1424_v31 = vpack.c.bf16 %v1250_v26, %v1248_v17  ;;  %v1175_v24 = vpop.permute.xlu2 %1174  ;;  %v1208_v26 = vsel %vm710_vm8, %v7092_v60, %v7068_v47 }
 0x3f3   : > { %v1426_v12 = vpack.c.bf16 %v1254_v41, %v1252_v54  ;;  %v1427_v51 = vpack.c.bf16 %v1255_v53, %v1253_v32  ;;  %v1425_v36 = vpack.c.bf16 %v1251_v0, %v1249_v39  ;;  %v1220_v53 = vmul.f32 %v1214_v58, %v6740_v4 }
 0x3f4   : > { %v1209_v41 = vsel %vm710_vm8, %v7132_v38, %v7142_v59  ;;  %v1217_v38 = vmul.f32 %v1208_v26, %v6746_v7  ;;  %v1306_v39 = vsel %vm743_vm4, %v7144_v30, %v7156_v40 }
 0x3f5   : > { %1499 = vmatpush.bf16.msrb.mxu2 %v1426_v12  ;;  %1518 = vmatpush.bf16.msrb.mxu3 %v1442_v56  ;;  %v1218_v12 = vmul.f32 %v1213_v29, %v6740_v4  ;;  %v1219_v19 = vmul.f32 %v1209_v41, %v6746_v7  ;;  %v1304_v29 = vsel %vm743_vm4, %v7100_v61, %v7104_v3 }
 0x3f6   : > { %1556 = vmatpush.bf16.msra.mxu1 %v1427_v51  ;;  %v1207_v33 = vpop.permute.xlu1 %1206  ;;  %v1221_v51 = vmul.f32 %v1210_v57, %v6746_v7 }
 0x3f7   : > { %v1211_v62 = vsel %vm710_vm8, %v7189_v27, %v1207_v33  ;;  %v1215_v37 = vsel %vm710_vm8, %v1207_v33, %v7189_v27  ;;  %v1161_v43 = vpop.permute.xlu0 %1160  ;;  %v1212_v27 = vsel %vm710_vm8, %v7068_v47, %v7092_v60  ;;  %v1305_v47 = vsel %vm743_vm4, %v7112_v18, %v7140_v21 }
 0x3f8   : > { %v1223_v32 = vmul.f32 %v1211_v62, %v6746_v7  ;;  %v1222_v54 = vmul.f32 %v1215_v37, %v6740_v4  ;;  %v1216_v59 = vmul.f32 %v1212_v27, %v6740_v4  ;;  %v1421_v52 = vpack.c.bf16 %v1219_v19, %v1217_v38  ;;  %v11977_v38 = vld [vmem:[#allocation37_spill] sm:$0xff] }
 0x3f9   : > { %1500 = vmatpush.bf16.msrb.mxu2 %v1424_v31  ;;  %1519 = vmatpush.bf16.msrb.mxu3 %v1440_v15  ;;  %v1316_v31 = vmul.f32 %v1306_v39, %v6695_v35  ;;  %v1314_v37 = vmul.f32 %v1305_v47, %v6695_v35  ;;  %v1312_v15 = vmul.f32 %v1304_v29, %v6695_v35  ;;  %v5849_v47 = vld [vmem:[%s11978_s10 + $0xc] sm:$0xf0] }
 0x3fa   : > { %1557 = vmatpush.bf16.msra.mxu1 %v1425_v36  ;;  %v1422_v0 = vpack.c.bf16 %v1222_v54, %v1220_v53  ;;  %v1423_v56 = vpack.c.bf16 %v1223_v32, %v1221_v51  ;;  %v1420_v58 = vpack.c.bf16 %v1218_v12, %v1216_v59  ;;  %v1169_v33 = vpop.permute.xlu2 %1168  ;;  %v1434_v39 = vpack.c.bf16 %v11977_v38, %v7010_v22  ;;  %v11979_v29 = vld [vmem:[#allocation32_spill] sm:$0xff] }
 0x3fb   : > { %v1436_v41 = vpack.c.bf16 %v1314_v37, %v1312_v15  ;;  %v1180_v22 = vsel %vm699_vm7, %v1169_v33, %v1161_v43 }
 0x3fd   : > { %1501 = vmatpush.bf16.msrb.mxu2 %v1422_v0 }
 0x3fe   : > { %1558 = vmatpush.bf16.msra.mxu1 %v1423_v56  ;;  %v1173_v17 = vpop.permute.xlu1 %1172 }
 0x3ff   : > { %v7314_v57 = vpop.permute.xlu0 %1294  ;;  %v1178_v51 = vsel %vm699_vm7, %v7148_v11, %v1173_v17  ;;  %v1182_v32 = vsel %vm699_vm7, %v1173_v17, %v7148_v11 }
 0x400   : > { %v1307_v60 = vsel %vm743_vm4, %v7314_v57, %v7224_v16  ;;  %v1189_v56 = vmul.f32 %v1178_v51, %v6743_v5  ;;  %v1188_v12 = vmul.f32 %v1182_v32, %v6736_v2  ;;  %v5847_v51 = vld [vmem:[%s11978_s10] sm:$0xf]  ;;  %v6304_v32 = vld [vmem:[%s11978_s10 + $0x8] sm:$0xf0] }
 0x401   : > { %1502 = vmatpush.bf16.msrb.mxu2 %v1420_v58  ;;  %v1318_v36 = vmul.f32 %v1307_v60, %v6695_v35  ;;  %v6303_v58 = vld [vmem:[%s11978_s10 + $0x4] sm:$0xf]  ;;  %v1176_v60 = vsel %vm699_vm7, %v1161_v43, %v1169_v33 }
 0x402   : > { %1559 = vmatpush.bf16.msra.mxu1 %v1421_v52  ;;  %v7346_v59 = vpop.permute.xlu2 %1384  ;;  %v11980_v43 = vld [vmem:[#allocation34_spill] sm:$0xff] }
 0x403   : > { %v1438_v62 = vpack.c.bf16 %v1318_v36, %v1316_v31  ;;  %v1374_v31 = vsel %vm765_vm0, %v7134_v20, %v7146_v10  ;;  %v1432_v33 = vpack.c.bf16 %v11980_v43, %v11979_v29  ;;  %v1184_v20 = vmul.f32 %v1180_v22, %v6736_v2 }
 0x405   : > { %1520 = vmatpush.bf16.msrb.mxu3 %v1438_v62  ;;  %v11981_v62 = vld [vmem:[#allocation6_spill] sm:$0xff] }
 0x406   : > { %v1163_v53 = vpop.permute.xlu1 %1162 }
 0x407   : > { %v1167_v54 = vpop.permute.xlu0 %1166 }
 0x408   : > { %v1179_v27 = vsel %vm699_vm7, %v1167_v54, %v1175_v24  ;;  %v1183_v0 = vsel %vm699_vm7, %v1175_v24, %v1167_v54  ;;  %v1375_v24 = vsel %vm765_vm0, %v7202_v63, %v7166_v1  ;;  %v1372_v1 = vsel %vm765_vm0, %v7078_v44, %v7038_v25 }
 0x409   : > { %v1191_v26 = vmul.f32 %v1179_v27, %v6743_v5  ;;  %1521 = vmatpush.bf16.msrb.mxu3 %v1436_v41  ;;  %v1190_v19 = vmul.f32 %v1183_v0, %v6736_v2  ;;  %v1373_v63 = vsel %vm765_vm0, %v7090_v55, %v7114_v9  ;;  %v1383_v37 = vmul.f32 %v1375_v24, %v11981_v62 }
 0x40a   : > { %v7383_v44 = vor.u32 %v6303_v58, %v5849_v47  ;;  %v1185_v55 = vmul.f32 %v1176_v60, %v6743_v5  ;;  %v1381_v54 = vmul.f32 %v1374_v31, %v11981_v62  ;;  %v1377_v0 = vmul.f32 %v1372_v1, %v11981_v62 }
 0x40b   : > { %v1418_v11 = vpack.c.bf16 %v1190_v19, %v1188_v12  ;;  %v1419_v17 = vpack.c.bf16 %v1191_v26, %v1189_v56  ;;  %v1343_v26 = vsel %vm754_vm2, %v7234_v23, %v7160_v34  ;;  %v5848_v12 = vor.u32 %v6304_v32, %v5847_v51  ;;  %v1391_v19 = vpop.permute.xlu2 %1390  ;;  %v11982_v34 = vld [vmem:[#allocation5_spill] sm:$0xff] }
 0x40c   : > { %v1447_v56 = vpack.c.bf16 %v1383_v37, %v1381_v54  ;;  %v1351_v23 = vmul.f32 %v1343_v26, %v11982_v34  ;;  %v1340_v1 = vsel %vm754_vm2, %v7058_v46, %v7080_v45  ;;  %v1311_v37 = vsel %vm743_vm4, %v7224_v16, %v7314_v57  ;;  %v6306_v45 = vld [vmem:[%s11978_s10 + $0x1c] sm:$0xf]  ;;  %v11985_v16 = vld [vmem:[#allocation8_spill] sm:$0xff] }
 0x40d   : > { %1503 = vmatpush.bf16.msrb.mxu2 %v1418_v11  ;;  %1522 = vmatpush.bf16.msrb.mxu3 %v1434_v39  ;;  %v1341_v11 = vsel %vm754_vm2, %v7136_v8, %v7122_v28  ;;  %v7419_v8 = vld [vmem:[%s11931_s2 + $0x10] ss:$0 sm:$0xff]  ;;  %v1319_v57 = vmul.f32 %v1311_v37, %v11985_v16  ;;  %v6305_v26 = vld [vmem:[%s11978_s10 + $0x10] sm:$0xf0] }
 0x40e   : > { %1560 = vmatpush.bf16.msra.mxu1 %v1419_v17  ;;  %v1389_v52 = vpop.permute.xlu1 %1388  ;;  %v1342_v17 = vsel %vm754_vm2, %v7154_v42, %v7150_v13  ;;  %11983 = vst [vmem:[#allocation37_spill] sm:$0xff] %v7419_v8  ;;  %v7425_v42 = vld [vmem:[%s11931_s2 + $0x18] ss:$0 sm:$0xff] }
 0x40f   : > { %v1171_v36 = vpop.permute.xlu0 %1170  ;;  %11984 = vst [vmem:[#allocation32_spill] sm:$0xff] %v7425_v42  ;;  %v1349_v29 = vmul.f32 %v1342_v17, %v11982_v34 }
 0x410   : > { %v1177_v15 = vsel %vm699_vm7, %v1163_v53, %v1171_v36  ;;  %v1181_v25 = vsel %vm699_vm7, %v1171_v36, %v1163_v53  ;;  %v1379_v53 = vmul.f32 %v1373_v63, %v11981_v62  ;;  %v1347_v36 = vmul.f32 %v1341_v11, %v11982_v34 }
 0x411   : > { %v1187_v9 = vmul.f32 %v1177_v15, %v6743_v5  ;;  %1523 = vmatpush.bf16.msrb.mxu3 %v1432_v33  ;;  %v1186_v10 = vmul.f32 %v1181_v25, %v6736_v2  ;;  %v1443_v46 = vpack.c.bf16 %v1351_v23, %v1349_v29  ;;  %v5861_v15 = vld [vmem:[%s11978_s10 + $0x24] sm:$0xf0]  ;;  %v1310_v25 = vsel %vm743_vm4, %v7156_v40, %v7144_v30 }
 0x412   : > { %v1445_v39 = vpack.c.bf16 %v1379_v53, %v1377_v0  ;;  %v5864_v53 = vor.u32 %v6306_v45, %v5861_v15  ;;  %v1317_v11 = vmul.f32 %v1310_v25, %v11985_v16 }
 0x413   : > { %v1416_v41 = vpack.c.bf16 %v1186_v10, %v1184_v20  ;;  %v1417_v27 = vpack.c.bf16 %v1187_v9, %v1185_v55  ;;  %v1395_v20 = vpop.permute.xlu2 %1394 }
 0x414   : > { %1524 = vmatmul.bf16.vlgmr.msrb.gmra.mxu3 %v7383_v44  ;;  %v1439_v17 = vpack.c.bf16 %v1319_v57, %v1317_v11 }
 0x415   : > { %1504 = vmatpush.bf16.msrb.mxu2 %v1416_v41  ;;  %1561 = vmatpush.bf16.msra.mxu1 %v1417_v27  ;;  %v5855_v27 = vld [vmem:[%s11978_s10 + $0x8] sm:$0xf] }
 0x416   : > { %v1399_v38 = vpop.permute.xlu1 %1398  ;;  %v5856_v23 = vor.u32 %v6305_v26, %v5855_v27 }
 0x417   : > { %v1403_v24 = vsel %vm776_vm1, %v1391_v19, %v1399_v38  ;;  %v1407_v58 = vsel %vm776_vm1, %v1399_v38, %v1391_v19  ;;  %v1397_v47 = vpop.permute.xlu0 %1396  ;;  %v6307_v19 = vld [vmem:[%s11978_s10 + $0x20] sm:$0xf0] }
 0x418   : > { %v1414_v28 = vmul.f32 %v7419_v8, %v1403_v24  ;;  %v1415_v13 = vmul.f32 %v7425_v42, %v1407_v58  ;;  %v1402_v60 = vsel %vm776_vm1, %v1389_v52, %v1397_v47  ;;  %v1406_v22 = vsel %vm776_vm1, %v1397_v47, %v1389_v52  ;;  %1505 = vmatmul.bf16.vlgmr.msrb.gmra.mxu2 %v5848_v12 }
 0x419   : > { %1573 = vmatpush.bf16.msra.mxu2 %v1447_v56  ;;  %v1412_v63 = vmul.f32 %v7419_v8, %v1402_v60  ;;  %v1413_v31 = vmul.f32 %v7425_v42, %v1406_v22  ;;  %1562 = vmatmul.bf16.vlgmr.msra.gmra.mxu1 %v5848_v12  ;;  %v1345_v52 = vmul.f32 %v1340_v1, %v11982_v34  ;;  %v5859_v12 = vld [vmem:[%s11978_s10 + $0x18] sm:$0xf]  ;;  %v11989_v60 = vld [vmem:[#allocation35_spill] sm:$0xff]  ;;  %v5867_v1 = vld [vmem:[%s11978_s10 + $0x20] sm:$0xf] }
 0x41a   : > { %v5860_v24 = vor.u32 %v6307_v19, %v5859_v12 }
 0x41b   : > { %v1450_v43 = vpack.c.bf16 %v1414_v28, %v1412_v63  ;;  %v1451_v33 = vpack.c.bf16 %v1415_v13, %v1413_v31  ;;  %v1441_v9 = vpack.c.bf16 %v1347_v36, %v1345_v52  ;;  %v11988_v13 = vld [vmem:[#allocation33_spill] sm:$0xff]  ;;  %v6308_v63 = vld [vmem:[%s11978_s10 + $0x28] sm:$0xf0] }
 0x41c   : > { %v1433_v22 = vpack.c.bf16 %v11989_v60, %v11988_v13  ;;  %v5868_v31 = vor.u32 %v6308_v63, %v5867_v1 }
 0x41d   : > { %1574 = vmatpush.bf16.msra.mxu2 %v1445_v39  ;;  %1541 = vmatpush.bf16.msra.mxu0 %v1450_v43 }
 0x41e   : > { %1598 = vmatpush.bf16.msra.mxu3 %v1451_v33  ;;  %v1393_v55 = vpop.permute.xlu1 %1392 }
 0x41f   : > { %v1400_v10 = vsel %vm776_vm1, %v7346_v59, %v1393_v55  ;;  %v1404_v51 = vsel %vm776_vm1, %v1393_v55, %v7346_v59  ;;  %v1387_v32 = vpop.permute.xlu0 %1386  ;;  %v1309_v59 = vsel %vm743_vm4, %v7140_v21, %v7112_v18  ;;  %v1308_v21 = vsel %vm743_vm4, %v7104_v3, %v7100_v61  ;;  %v11986_v61 = vld [vmem:[#allocation36_spill] sm:$0xff]  ;;  %v11987_v3 = vld [vmem:[#allocation38_spill] sm:$0xff] }
 0x420   : > { %v1408_v54 = vmul.f32 %v7419_v8, %v1400_v10  ;;  %v1409_v40 = vmul.f32 %v7425_v42, %v1404_v51  ;;  %v1401_v30 = vsel %vm776_vm1, %v1387_v32, %v1395_v20  ;;  %v1405_v41 = vsel %vm776_vm1, %v1395_v20, %v1387_v32 }
 0x421   : > { %1575 = vmatpush.bf16.msra.mxu2 %v1443_v46  ;;  %v1410_v0 = vmul.f32 %v7419_v8, %v1401_v30  ;;  %v1411_v56 = vmul.f32 %v7425_v42, %v1405_v41  ;;  %v1315_v39 = vmul.f32 %v1309_v59, %v11985_v16  ;;  %v1313_v58 = vmul.f32 %v1308_v21, %v11985_v16 }
 0x422   : > { %v1435_v28 = vpack.c.bf16 %v11987_v3, %v11986_v61 }
 0x423   : > { %v1448_v18 = vpack.c.bf16 %v1410_v0, %v1408_v54  ;;  %v1449_v38 = vpack.c.bf16 %v1411_v56, %v1409_v40  ;;  %v1437_v47 = vpack.c.bf16 %v1315_v39, %v1313_v58 }
 0x424   : > { %1529 = vmatmul.bf16.gmra.mxu3 %v5864_v53 }
 0x425   : > { %1576 = vmatpush.bf16.msra.mxu2 %v1441_v9  ;;  %1542 = vmatpush.bf16.msra.mxu0 %v1448_v18 }
 0x426   : > { %1599 = vmatpush.bf16.msra.mxu3 %v1449_v38 }
 0x428   : > { %5869 = vmatmul.msk.bf16.vlgmr.msra.gmra.mxu0 %vm11826_vm10, %v5856_v23  ;;  %1510 = vmatmul.bf16.gmra.mxu2 %v5860_v24 }
 0x429   : > { %1577 = vmatpush.bf16.msra.mxu2 %v1439_v17  ;;  %1567 = vmatmul.bf16.gmra.mxu1 %v5860_v24 }
 0x42d   : > { %1578 = vmatpush.bf16.msra.mxu2 %v1437_v47 }
 0x431   : > { %1579 = vmatpush.bf16.msra.mxu2 %v1435_v28 }
 0x434   : > { %5871 = vmatmul.msk.bf16.vlgmr.msra.gmra.mxu3 %vm11826_vm10, %v5856_v23 }
 0x435   : > { %1580 = vmatpush.bf16.msra.mxu2 %v1433_v22 }
 0x438   : > { %5870 = vmatmul.msk.bf16.gmra.mxu0 %vm11826_vm10, %v5868_v31  ;;  %1581 = vmatmul.bf16.vlgmr.msra.gmra.mxu2 %v7383_v44 }
 0x444   : > { %5872 = vmatmul.msk.bf16.gmra.mxu3 %vm11826_vm10, %v5868_v31 }
 0x448   : > { %1586 = vmatmul.bf16.gmra.mxu2 %v5864_v53 }
 0x496   : > { %v1563_v12 = vpop.f32.mrf.mxu1 }
 0x497   : > { %v1525_v29 = vpop.f32.mrf.mxu3 }
 0x49b   : > { %v1506_v36 = vpop.f32.mrf.mxu2 }
 0x49c   : > { %v1526_v43 = vadd.f32 %v1525_v29, %v1506_v36 }
 0x49e   : > { %v1565_v17 = vpop.f32.mrf.mxu1 }
 0x49f   : > { %v1527_v45 = vpop.f32.mrf.mxu3 }
 0x4a3   : > { %v1508_v44 = vpop.f32.mrf.mxu2 }
 0x4a4   : > { %v1528_v25 = vadd.f32 %v1527_v45, %v1508_v44 }
 0x4a5   : > { %v1544_v33 = vpop.f32.mrf.mxu0 }
 0x4a6   : > { %v1545_v52 = vadd.f32 %v1544_v33, %v1526_v43  ;;  %v1568_v28 = vpop.f32.mrf.mxu1 }
 0x4a7   : > { %v1530_v10 = vpop.f32.mrf.mxu3 }
 0x4a8   : > { %vm1611_vm12 = vcmp.ge.f32.partialorder %v1545_v52, 0.0  ;;  %v1619_v37 = vmul.f32 0.01, %v1545_v52 }
 0x4aa   : > { %v7508_v46 = vsel %vm1611_vm12, %v1545_v52, %v1619_v37 }
 0x4ab   : > { %11990 = vst [vmem:[#allocation34_spill] sm:$0xff] %v7508_v46  ;;  %1795 = vrot.lane.b32.xlu1 %v7508_v46, %s11970_s27  ;;  %1827 = vrot.lane.b32.xlu0 %v7508_v46, %s11991_s25  ;;  %v1511_v20 = vpop.f32.mrf.mxu2 }
 0x4ac   : > { %1731 = vrot.lane.b32.xlu2 %v7508_v46, %s11946_s21  ;;  %v1531_v51 = vadd.f32 %v1530_v10, %v1511_v20 }
 0x4ad   : > { %v1546_v15 = vpop.f32.mrf.mxu0 }
 0x4ae   : > { %v1547_v55 = vadd.f32 %v1546_v15, %v1528_v25  ;;  %v1570_v29 = vpop.f32.mrf.mxu1 }
 0x4af   : > { %v1532_v41 = vpop.f32.mrf.mxu3 }
 0x4b0   : > { %v1621_v9 = vmul.f32 0.01, %v1547_v55  ;;  %vm1613_vm9 = vcmp.ge.f32.partialorder %v1547_v55, 0.0 }
 0x4b2   : > { %v7522_v57 = vsel %vm1613_vm9, %v1547_v55, %v1621_v9 }
 0x4b3   : > { %1667 = vrot.lane.b32.xlu1 %v7508_v46, %s11948_s24  ;;  %1699 = vrot.lane.b32.xlu0 %v7508_v46, %s11992_s3  ;;  %11993 = vst [vmem:[#allocation36_spill] sm:$0xff] %v7522_v57  ;;  %v1513_v30 = vpop.f32.mrf.mxu2 }
 0x4b4   : > { %1763 = vrot.lane.b32.xlu2 %v7508_v46, %s11971_s30  ;;  %v1533_v27 = vadd.f32 %v1532_v41, %v1513_v30 }
 0x4b5   : > { %v1549_v32 = vpop.f32.mrf.mxu0 }
 0x4b6   : > { %v1550_v53 = vadd.f32 %v1549_v32, %v1531_v51 }
 0x4b7   : > { %v1601_v21 = vpop.f32.mrf.mxu3 }
 0x4b8   : > { %v1623_v54 = vmul.f32 0.01, %v1550_v53  ;;  %vm1615_vm12 = vcmp.ge.f32.partialorder %v1550_v53, 0.0 }
 0x4ba   : > { %v7536_v40 = vsel %vm1615_vm12, %v1550_v53, %v1623_v54 }
 0x4bb   : > { %1829 = vrot.lane.b32.xlu1 %v7522_v57, %s11991_s25  ;;  %1733 = vrot.lane.b32.xlu0 %v7522_v57, %s11946_s21  ;;  %11994 = vst [vmem:[#allocation38_spill] sm:$0xff] %v7536_v40  ;;  %v1582_v19 = vpop.f32.mrf.mxu2 }
 0x4bc   : > { %1797 = vrot.lane.b32.xlu2 %v7522_v57, %s11970_s27  ;;  %v1583_v11 = vadd.f32 %v1582_v19, %v1563_v12 }
 0x4bd   : > { %v1551_v59 = vpop.f32.mrf.mxu0 }
 0x4be   : > { %v1552_v0 = vadd.f32 %v1551_v59, %v1533_v27  ;;  %v1602_v18 = vadd.f32 %v1601_v21, %v1583_v11 }
 0x4bf   : > { %v1603_v58 = vpop.f32.mrf.mxu3 }
 0x4c0   : > { %v1625_v56 = vmul.f32 0.01, %v1552_v0  ;;  %vm1617_vm9 = vcmp.ge.f32.partialorder %v1552_v0, 0.0  ;;  %v1620_v38 = vmul.f32 0.01, %v1602_v18  ;;  %vm1612_vm12 = vcmp.ge.f32.partialorder %v1602_v18, 0.0 }
 0x4c2   : > { %v7550_v26 = vsel %vm1617_vm9, %v1552_v0, %v1625_v56  ;;  %v7564_v39 = vsel %vm1612_vm12, %v1602_v18, %v1620_v38 }
 0x4c3   : > { %1701 = vrot.lane.b32.xlu1 %v7522_v57, %s11992_s3  ;;  %1765 = vrot.lane.b32.xlu0 %v7522_v57, %s11971_s30  ;;  %11995 = vst [vmem:[#allocation33_spill] sm:$0xff] %v7550_v26  ;;  %v1584_v23 = vpop.f32.mrf.mxu2 }
 0x4c4   : > { %1669 = vrot.lane.b32.xlu2 %v7522_v57, %s11948_s24  ;;  %11996 = vst [vmem:[#allocation35_spill] sm:$0xff] %v7564_v39  ;;  %v1585_v24 = vadd.f32 %v1584_v23, %v1565_v17 }
 0x4c6   : > { %v1604_v47 = vadd.f32 %v1603_v58, %v1585_v24 }
 0x4c7   : > { %v1606_v22 = vpop.f32.mrf.mxu3 }
 0x4c8   : > { %v1622_v61 = vmul.f32 0.01, %v1604_v47  ;;  %vm1614_vm9 = vcmp.ge.f32.partialorder %v1604_v47, 0.0 }
 0x4ca   : > { %v7578_v3 = vsel %vm1614_vm9, %v1604_v47, %v1622_v61 }
 0x4cb   : > { %1831 = vrot.lane.b32.xlu1 %v7536_v40, %s11991_s25  ;;  %1735 = vrot.lane.b32.xlu0 %v7536_v40, %s11946_s21  ;;  %11997 = vst [vmem:[#allocation39_spill] sm:$0xff] %v7578_v3  ;;  %v1587_v13 = vpop.f32.mrf.mxu2 }
 0x4cc   : > { %1799 = vrot.lane.b32.xlu2 %v7536_v40, %s11970_s27  ;;  %v1588_v60 = vadd.f32 %v1587_v13, %v1568_v28 }
 0x4ce   : > { %v1607_v1 = vadd.f32 %v1606_v22, %v1588_v60 }
 0x4cf   : > { %v1608_v37 = vpop.f32.mrf.mxu3 }
 0x4d0   : > { %v1624_v63 = vmul.f32 0.01, %v1607_v1  ;;  %vm1616_vm12 = vcmp.ge.f32.partialorder %v1607_v1, 0.0 }
 0x4d2   : > { %v7594_v36 = vsel %vm1616_vm12, %v1607_v1, %v1624_v63 }
 0x4d3   : > { %1703 = vrot.lane.b32.xlu1 %v7536_v40, %s11992_s3  ;;  %1767 = vrot.lane.b32.xlu0 %v7536_v40, %s11971_s30  ;;  %11998 = vst [vmem:[#allocation40_spill] sm:$0xff] %v7594_v36  ;;  %v1589_v43 = vpop.f32.mrf.mxu2 }
 0x4d4   : > { %1671 = vrot.lane.b32.xlu2 %v7536_v40, %s11948_s24  ;;  %v1590_v33 = vadd.f32 %v1589_v43, %v1570_v29 }
 0x4d6   : > { %v1609_v44 = vadd.f32 %v1608_v37, %v1590_v33 }
 0x4d8   : > { %v1626_v45 = vmul.f32 0.01, %v1609_v44  ;;  %vm1618_vm9 = vcmp.ge.f32.partialorder %v1609_v44, 0.0 }
 0x4da   : > { %v7612_v25 = vsel %vm1618_vm9, %v1609_v44, %v1626_v45 }
 0x4db   : > { %1737 = vrot.lane.b32.xlu1 %v7550_v26, %s11946_s21  ;;  %1801 = vrot.lane.b32.xlu0 %v7550_v26, %s11970_s27  ;;  %11999 = vst [vmem:[#allocation41_spill] sm:$0xff] %v7612_v25 }
 0x4dc   : > { %1833 = vrot.lane.b32.xlu2 %v7550_v26, %s11991_s25 }
 0x4e3   : > { %1769 = vrot.lane.b32.xlu1 %v7550_v26, %s11971_s30  ;;  %1673 = vrot.lane.b32.xlu0 %v7550_v26, %s11948_s24 }
 0x4e4   : > { %1705 = vrot.lane.b32.xlu2 %v7550_v26, %s11992_s3 }
 0x4eb   : > { %1803 = vrot.lane.b32.xlu0 %v7564_v39, %s11970_s27  ;;  %1739 = vrot.lane.b32.xlu1 %v7564_v39, %s11946_s21 }
 0x4ec   : > { %1835 = vrot.lane.b32.xlu2 %v7564_v39, %s11991_s25 }
 0x4f3   : > { %1675 = vrot.lane.b32.xlu0 %v7564_v39, %s11948_s24  ;;  %1771 = vrot.lane.b32.xlu1 %v7564_v39, %s11971_s30 }
 0x4f4   : > { %1707 = vrot.lane.b32.xlu2 %v7564_v39, %s11992_s3 }
 0x4fb   : > { %1837 = vrot.lane.b32.xlu0 %v7578_v3, %s11991_s25  ;;  %1805 = vrot.lane.b32.xlu1 %v7578_v3, %s11970_s27 }
 0x4fc   : > { %1741 = vrot.lane.b32.xlu2 %v7578_v3, %s11946_s21 }
 0x503   : > { %1709 = vrot.lane.b32.xlu0 %v7578_v3, %s11992_s3  ;;  %1677 = vrot.lane.b32.xlu1 %v7578_v3, %s11948_s24 }
 0x504   : > { %1773 = vrot.lane.b32.xlu2 %v7578_v3, %s11971_s30 }
 0x506   : > { %v7592_v31 = vpop.permute.xlu2 %1731 }
 0x50b   : > { %1839 = vrot.lane.b32.xlu0 %v7594_v36, %s11991_s25  ;;  %1807 = vrot.lane.b32.xlu1 %v7594_v36, %s11970_s27 }
 0x50c   : > { %1743 = vrot.lane.b32.xlu2 %v7594_v36, %s11946_s21 }
 0x50e   : > { %v7602_v52 = vpop.permute.xlu2 %1763 }
 0x513   : > { %1711 = vrot.lane.b32.xlu0 %v7594_v36, %s11992_s3  ;;  %1679 = vrot.lane.b32.xlu1 %v7594_v36, %s11948_s24 }
 0x514   : > { %1775 = vrot.lane.b32.xlu2 %v7594_v36, %s11971_s30 }
 0x516   : > { %v7610_v15 = vpop.permute.xlu2 %1797 }
 0x51b   : > { %1745 = vrot.lane.b32.xlu0 %v7612_v25, %s11946_s21  ;;  %1841 = vrot.lane.b32.xlu1 %v7612_v25, %s11991_s25 }
 0x51c   : > { %1809 = vrot.lane.b32.xlu2 %v7612_v25, %s11970_s27 }
 0x51d   : > { %v7620_v55 = vpop.permute.xlu1 %1795  ;;  %v7622_v9 = vpop.permute.xlu0 %1827 }
 0x51e   : > { %v7624_v20 = vpop.permute.xlu2 %1669 }
 0x523   : > { %1639 = vrot.lane.b32.xlu0 %v7536_v40, %s11947_s23  ;;  %1713 = vrot.lane.b32.xlu1 %v7612_v25, %s11992_s3 }
 0x524   : > { %1681 = vrot.lane.b32.xlu2 %v7612_v25, %s11948_s24 }
 0x525   : > { %v7632_v10 = vpop.permute.xlu1 %1667  ;;  %v7634_v51 = vpop.permute.xlu0 %1699 }
 0x526   : > { %v7636_v32 = vpop.permute.xlu2 %1799 }
 0x52b   : > { %1777 = vrot.lane.b32.xlu0 %v7612_v25, %s11971_s30  ;;  %1641 = vrot.lane.b32.xlu1 %v7550_v26, %s11947_s23 }
 0x52c   : > { %1647 = vrot.lane.b32.xlu2 %v7594_v36, %s11947_s23 }
 0x52d   : > { %v7644_v53 = vpop.permute.xlu1 %1829  ;;  %v1734_v54 = vpop.permute.xlu0 %1733 }
 0x52e   : > { %12000 = vst [vmem:[#allocation42_spill] sm:$0xff] %v7644_v53  ;;  %v7646_v30 = vpop.permute.xlu2 %1671 }
 0x533   : > { %1649 = vrot.lane.b32.xlu0 %v7612_v25, %s11947_s23  ;;  %1635 = vrot.lane.b32.xlu1 %v7508_v46, %s11947_s23 }
 0x534   : > { %1637 = vrot.lane.b32.xlu2 %v7522_v57, %s11947_s23 }
 0x535   : > { %v7654_v41 = vpop.permute.xlu1 %1701  ;;  %v7656_v27 = vpop.permute.xlu0 %1765 }
 0x536   : > { %v7658_v59 = vpop.permute.xlu2 %1833 }
 0x537   : > { %12001 = vst [vmem:[#allocation43_spill] sm:$0xff] %v7658_v59 }
 0x53b   : > { %1643 = vrot.lane.b32.xlu0 %v7564_v39, %s11947_s23  ;;  %1645 = vrot.lane.b32.xlu1 %v7578_v3, %s11947_s23 }
 0x53c   : > { %1863 = vrot.lane.b32.xlu2 %v7536_v40, %s11945_s0 }
 0x53d   : > { %v7666_v0 = vpop.permute.xlu1 %1831  ;;  %v1736_v56 = vpop.permute.xlu0 %1735 }
 0x53e   : > { %12002 = vst [vmem:[#allocation44_spill] sm:$0xff] %v7666_v0  ;;  %v7668_v12 = vpop.permute.xlu2 %1705 }
 0x543   : > { %1865 = vrot.lane.b32.xlu0 %v7550_v26, %s11945_s0  ;;  %1871 = vrot.lane.b32.xlu1 %v7594_v36, %s11945_s0 }
 0x544   : > { %1873 = vrot.lane.b32.xlu2 %v7612_v25, %s11945_s0 }
 0x545   : > { %v7676_v19 = vpop.permute.xlu1 %1703  ;;  %v7678_v11 = vpop.permute.xlu0 %1767 }
 0x546   : > { %v7680_v21 = vpop.permute.xlu2 %1835 }
 0x547   : > { %12003 = vst [vmem:[#allocation45_spill] sm:$0xff] %v7680_v21 }
 0x54b   : > { %1859 = vrot.lane.b32.xlu0 %v7508_v46, %s11945_s0  ;;  %1861 = vrot.lane.b32.xlu1 %v7522_v57, %s11945_s0  ;;  %v12006_v46 = vld [vmem:[#allocation10_spill] sm:$0xff] }
 0x54c   : > { %1867 = vrot.lane.b32.xlu2 %v7564_v39, %s11945_s0 }
 0x54d   : > { %v1738_v18 = vpop.permute.xlu1 %1737  ;;  %v7688_v38 = vpop.permute.xlu0 %1801 }
 0x54e   : > { %v7690_v17 = vpop.permute.xlu2 %1707 }
 0x553   : > { %1869 = vrot.lane.b32.xlu0 %v7578_v3, %s11945_s0 }
 0x555   : > { %v7694_v23 = vpop.permute.xlu1 %1769  ;;  %v7696_v24 = vpop.permute.xlu0 %1673 }
 0x556   : > { %v1742_v58 = vpop.permute.xlu2 %1741 }
 0x557   : > { %v1748_v16 = vsel %vm732_vm5, %v1734_v54, %v1742_v58  ;;  %v1752_v42 = vsel %vm732_vm5, %v1742_v58, %v1734_v54 }
 0x55d   : > { %v7698_v47 = vpop.permute.xlu0 %1803  ;;  %v1740_v61 = vpop.permute.xlu1 %1739 }
 0x55e   : > { %v7700_v28 = vpop.permute.xlu2 %1773  ;;  %v1747_v57 = vsel %vm732_vm5, %v7592_v31, %v1740_v61 }
 0x565   : > { %v7702_v13 = vpop.permute.xlu0 %1675  ;;  %v7704_v60 = vpop.permute.xlu1 %1771 }
 0x566   : > { %v1744_v63 = vpop.permute.xlu2 %1743 }
 0x567   : > { %v1749_v25 = vsel %vm732_vm5, %v1736_v56, %v1744_v63  ;;  %v1753_v36 = vsel %vm732_vm5, %v1744_v63, %v1736_v56  ;;  %v1751_v56 = vsel %vm732_vm5, %v1740_v61, %v7592_v31 }
 0x568   : > { %v1759_v63 = vmul.f32 %v1753_v36, %v6714_v49  ;;  %v1760_v62 = vmul.f32 %v1749_v25, %v12006_v46  ;;  %v12008_v36 = vld [vmem:[#allocation4_spill] sm:$0xff] }
 0x56d   : > { %v7706_v22 = vpop.permute.xlu0 %1837  ;;  %v7708_v1 = vpop.permute.xlu1 %1805 }
 0x56e   : > { %12004 = vst [vmem:[#allocation46_spill] sm:$0xff] %v7706_v22  ;;  %v7712_v33 = vpop.permute.xlu2 %1775 }
 0x575   : > { %v1710_v29 = vpop.permute.xlu0 %1709  ;;  %v7710_v43 = vpop.permute.xlu1 %1677 }
 0x576   : > { %v7718_v45 = vpop.permute.xlu2 %1809 }
 0x57d   : > { %v7714_v37 = vpop.permute.xlu0 %1839  ;;  %v7716_v44 = vpop.permute.xlu1 %1807 }
 0x57e   : > { %12005 = vst [vmem:[#allocation47_spill] sm:$0xff] %v7714_v37  ;;  %v1845_v8 = vsel %vm765_vm0, %v7666_v0, %v7714_v37  ;;  %v7734_v34 = vpop.permute.xlu2 %1681  ;;  %v1844_v37 = vsel %vm765_vm0, %v7644_v53, %v7706_v22  ;;  %v1843_v22 = vsel %vm765_vm0, %v7622_v9, %v7680_v21  ;;  %v1715_v21 = vsel %vm721_vm6, %v7634_v51, %v7690_v17 }
 0x57f   : > { %v1855_v25 = vmul.f32 %v1845_v8, %v12008_v36  ;;  %v1853_v53 = vmul.f32 %v1844_v37, %v12008_v36  ;;  %v1814_v37 = vsel %vm754_vm2, %v7688_v38, %v7718_v45 }
 0x585   : > { %v1712_v3 = vpop.permute.xlu0 %1711  ;;  %v7720_v39 = vpop.permute.xlu1 %1679 }
 0x58d   : > { %v1746_v54 = vpop.permute.xlu0 %1745  ;;  %v7744_v58 = vpop.permute.xlu1 %1841 }
 0x58e   : > { %12007 = vst [vmem:[#allocation48_spill] sm:$0xff] %v7744_v58  ;;  %v1750_v0 = vsel %vm732_vm5, %v1738_v18, %v1746_v54  ;;  %v1754_v26 = vsel %vm732_vm5, %v1746_v54, %v1738_v18  ;;  %v1846_v31 = vsel %vm765_vm0, %v7658_v59, %v7744_v58  ;;  %v1755_v18 = vmul.f32 %v1751_v56, %v6714_v49 }
 0x58f   : > { %v1761_v61 = vmul.f32 %v1754_v26, %v6714_v49  ;;  %v1762_v40 = vmul.f32 %v1750_v0, %v12006_v46  ;;  %v1857_v5 = vmul.f32 %v1846_v31, %v12008_v36  ;;  %v1756_v54 = vmul.f32 %v1747_v57, %v12006_v46 }
 0x590   : > { %v1757_v26 = vmul.f32 %v1752_v42, %v6714_v49  ;;  %v1758_v0 = vmul.f32 %v1748_v16, %v12006_v46  ;;  %v1851_v31 = vmul.f32 %v1843_v22, %v12008_v36  ;;  %v1813_v57 = vsel %vm754_vm2, %v7636_v32, %v7716_v44 }
 0x591   : > { %v1905_v58 = vpack.c.bf16 %v1761_v61, %v1759_v63  ;;  %v1906_v59 = vpack.c.bf16 %v1762_v40, %v1760_v62  ;;  %v1921_v8 = vpack.c.bf16 %v1857_v5, %v1855_v25  ;;  %v1717_v5 = vsel %vm721_vm6, %v7676_v19, %v1712_v3 }
 0x592   : > { %v1721_v62 = vsel %vm721_vm6, %v1712_v3, %v7676_v19  ;;  %v1903_v42 = vpack.c.bf16 %v1757_v26, %v1755_v18  ;;  %v1904_v16 = vpack.c.bf16 %v1758_v0, %v1756_v54  ;;  %v1812_v40 = vsel %vm754_vm2, %v7610_v15, %v7708_v1 }
 0x593   : > { %1971 = vmatpush.bf16.msrb.mxu0 %v1905_v58  ;;  %1990 = vmatpush.bf16.msrb.mxu1 %v1921_v8  ;;  %v1716_v22 = vsel %vm721_vm6, %v7654_v41, %v1710_v29  ;;  %v1720_v19 = vsel %vm721_vm6, %v1710_v29, %v7654_v41  ;;  %v1823_v63 = vmul.f32 %v1813_v57, %v6662_v14  ;;  %v7803_v58 = vpop.permute.xlu2 %1647 }
 0x594   : > { %2028 = vmatpush.bf16.msrb.mxu3 %v1906_v59  ;;  %v1919_v59 = vpack.c.bf16 %v1853_v53, %v1851_v31  ;;  %v1727_v18 = vmul.f32 %v1721_v62, %v6711_v48  ;;  %v1728_v53 = vmul.f32 %v1717_v5, %v6717_v50  ;;  %v1719_v29 = vsel %vm721_vm6, %v7690_v17, %v7634_v51 }
 0x595   : > { %v7797_v56 = vpop.permute.xlu0 %1639  ;;  %v1714_v3 = vpop.permute.xlu1 %1713  ;;  %v1811_v8 = vsel %vm754_vm2, %v7620_v55, %v7698_v47  ;;  %v1821_v26 = vmul.f32 %v1812_v40, %v6662_v14  ;;  %v1725_v0 = vmul.f32 %v1720_v19, %v6711_v48  ;;  %v1726_v5 = vmul.f32 %v1716_v22, %v6717_v50 }
 0x596   : > { %v1718_v25 = vsel %vm721_vm6, %v7668_v12, %v1714_v3  ;;  %v1722_v61 = vsel %vm721_vm6, %v1714_v3, %v7668_v12  ;;  %v1825_v12 = vmul.f32 %v1814_v37, %v6662_v14  ;;  %v1689_v51 = vsel %vm710_vm8, %v7720_v39, %v7646_v30 }
 0x597   : > { %v1729_v54 = vmul.f32 %v1722_v61, %v6711_v48  ;;  %v1730_v41 = vmul.f32 %v1718_v25, %v6717_v50  ;;  %1972 = vmatpush.bf16.msrb.mxu0 %v1903_v42  ;;  %1991 = vmatpush.bf16.msrb.mxu1 %v1919_v59  ;;  %v1723_v62 = vmul.f32 %v1719_v29, %v6711_v48 }
 0x598   : > { %2029 = vmatpush.bf16.msrb.mxu3 %v1904_v16  ;;  %v1917_v17 = vpack.c.bf16 %v1825_v12, %v1823_v63  ;;  %v1724_v42 = vmul.f32 %v1715_v21, %v6717_v50  ;;  %v1819_v16 = vmul.f32 %v1811_v8, %v6662_v14  ;;  %v1685_v40 = vsel %vm710_vm8, %v7646_v30, %v7720_v39 }
 0x599   : > { %v1901_v31 = vpack.c.bf16 %v1729_v54, %v1727_v18  ;;  %v1902_v57 = vpack.c.bf16 %v1730_v41, %v1728_v53  ;;  %v1779_v22 = vsel %vm743_vm4, %v7602_v52, %v7704_v60  ;;  %v1781_v37 = vsel %vm743_vm4, %v7678_v11, %v7712_v33 }
 0x59a   : > { %v1690_v21 = vsel %vm710_vm8, %v7734_v34, %v7696_v24  ;;  %v1686_v39 = vsel %vm710_vm8, %v7696_v24, %v7734_v34  ;;  %v1695_v30 = vmul.f32 %v1689_v51, %v6740_v4  ;;  %v1899_v19 = vpack.c.bf16 %v1725_v0, %v1723_v62 }
 0x59b   : > { %1973 = vmatpush.bf16.msrb.mxu0 %v1901_v31  ;;  %1992 = vmatpush.bf16.msrb.mxu1 %v1917_v17  ;;  %v1915_v63 = vpack.c.bf16 %v1821_v26, %v1819_v16  ;;  %v1688_v25 = vsel %vm710_vm8, %v7710_v43, %v7624_v20  ;;  %v1696_v61 = vmul.f32 %v1685_v40, %v6746_v7  ;;  %v1638_v26 = vpop.permute.xlu2 %1637 }
 0x59c   : > { %2030 = vmatpush.bf16.msrb.mxu3 %v1902_v57  ;;  %v1900_v34 = vpack.c.bf16 %v1726_v5, %v1724_v42  ;;  %v1791_v24 = vmul.f32 %v1781_v37, %v6695_v35  ;;  %v1684_v53 = vsel %vm710_vm8, %v7624_v20, %v7710_v43  ;;  %v1697_v54 = vmul.f32 %v1690_v21, %v6740_v4 }
 0x59d   : > { %v7855_v3 = vpop.permute.xlu0 %1777  ;;  %v1642_v59 = vpop.permute.xlu1 %1641  ;;  %v1780_v29 = vsel %vm743_vm4, %v7656_v27, %v7700_v28  ;;  %v1687_v8 = vsel %vm710_vm8, %v7702_v13, %v7632_v10  ;;  %v1698_v12 = vmul.f32 %v1686_v39, %v6746_v7  ;;  %v1683_v20 = vsel %vm710_vm8, %v7632_v10, %v7702_v13 }
 0x59e   : > { %v1782_v18 = vsel %vm743_vm4, %v7694_v23, %v7855_v3  ;;  %v1693_v43 = vmul.f32 %v1688_v25, %v6740_v4  ;;  %v1897_v0 = vpack.c.bf16 %v1697_v54, %v1695_v30  ;;  %v1787_v57 = vmul.f32 %v1779_v22, %v6695_v35  ;;  %v12012_v54 = vld [vmem:[#allocation38_spill] sm:$0xff] }
 0x59f   : > { %v1793_v41 = vmul.f32 %v1782_v18, %v6695_v35  ;;  %1974 = vmatpush.bf16.msrb.mxu0 %v1899_v19  ;;  %1993 = vmatpush.bf16.msrb.mxu1 %v1915_v63  ;;  %v1694_v5 = vmul.f32 %v1684_v53, %v6746_v7  ;;  %v1898_v51 = vpack.c.bf16 %v1698_v12, %v1696_v61  ;;  %v12009_v63 = vld [vmem:[#allocation12_spill] sm:$0xff]  ;;  %v12015_v12 = vld [vmem:[#allocation46_spill] sm:$0xff] }
 0x5a0   : > { %2031 = vmatpush.bf16.msrb.mxu3 %v1900_v34  ;;  %v1789_v17 = vmul.f32 %v1780_v29, %v6695_v35  ;;  %v1691_v62 = vmul.f32 %v1687_v8, %v6740_v4  ;;  %v1692_v42 = vmul.f32 %v1683_v20, %v6746_v7  ;;  %v1653_v10 = vsel %vm699_vm7, %v7797_v56, %v7803_v58  ;;  %v12010_v34 = vld [vmem:[#allocation43_spill] sm:$0xff]  ;;  %v12014_v8 = vld [vmem:[#allocation42_spill] sm:$0xff] }
 0x5a1   : > { %v1913_v31 = vpack.c.bf16 %v1793_v41, %v1791_v24  ;;  %v1657_v13 = vsel %vm699_vm7, %v7803_v58, %v7797_v56  ;;  %v1664_v25 = vmul.f32 %v1653_v10, %v12009_v63  ;;  %v12011_v24 = vld [vmem:[#allocation48_spill] sm:$0xff]  ;;  %v12013_v41 = vld [vmem:[#allocation33_spill] sm:$0xff]  ;;  %v1848_v20 = vsel %vm765_vm0, %v12015_v12, %v12014_v8 }
 0x5a2   : > { %v1895_v22 = vpack.c.bf16 %v1693_v43, %v1691_v62  ;;  %v1911_v39 = vpack.c.bf16 %v1789_v17, %v1787_v57  ;;  %v1896_v30 = vpack.c.bf16 %v1694_v5, %v1692_v42  ;;  %v1663_v19 = vmul.f32 %v1657_v13, %v6736_v2  ;;  %v12016_v43 = vld [vmem:[#allocation44_spill] sm:$0xff]  ;;  %v12018_v57 = vld [vmem:[#allocation6_spill] sm:$0xff] }
 0x5a3   : > { %1975 = vmatpush.bf16.msrb.mxu0 %v1897_v0  ;;  %1994 = vmatpush.bf16.msrb.mxu1 %v1913_v31  ;;  %v1864_v53 = vpop.permute.xlu2 %1863  ;;  %v1909_v29 = vpack.c.bf16 %v12013_v41, %v12012_v54  ;;  %v12017_v0 = vld [vmem:[#allocation47_spill] sm:$0xff]  ;;  %v12019_v62 = vld [vmem:[#allocation34_spill] sm:$0xff]  ;;  %v12020_v42 = vld [vmem:[#allocation36_spill] sm:$0xff]  ;;  %v1817_v41 = vsel %vm754_vm2, %v7716_v44, %v7636_v32  ;;  %v1818_v32 = vsel %vm754_vm2, %v7718_v45, %v7688_v38 }
 0x5a4   : > { %2032 = vmatpush.bf16.msrb.mxu3 %v1898_v51  ;;  %v1849_v31 = vsel %vm765_vm0, %v12017_v0, %v12016_v43  ;;  %v1907_v10 = vpack.c.bf16 %v12020_v42, %v12019_v62  ;;  %v6309_v13 = vld [vmem:[%s11691_s11 + $0x4] sm:$0xf]  ;;  %v12022_v44 = vld [vmem:[#allocation5_spill] sm:$0xff]  ;;  %v12024_v45 = vld [vmem:[#allocation32_spill] sm:$0xff] }
 0x5a5   : > { %v1650_v16 = vpop.permute.xlu0 %1649  ;;  %v1636_v40 = vpop.permute.xlu1 %1635  ;;  %v1824_v43 = vmul.f32 %v1817_v41, %v12022_v44 }
 0x5a6   : > { %v1654_v37 = vsel %vm699_vm7, %v1642_v59, %v1650_v16  ;;  %v1658_v21 = vsel %vm699_vm7, %v1650_v16, %v1642_v59  ;;  %v1850_v59 = vsel %vm765_vm0, %v12011_v24, %v12010_v34  ;;  %v5877_v16 = vld [vmem:[%s11691_s11 + $0xc] sm:$0xf0]  ;;  %v1854_v24 = vmul.f32 %v1848_v20, %v12018_v57 }
 0x5a7   : > { %v1665_v61 = vmul.f32 %v1658_v21, %v6736_v2  ;;  %v1666_v56 = vmul.f32 %v1654_v37, %v12009_v63  ;;  %1976 = vmatpush.bf16.msrb.mxu0 %v1895_v22  ;;  %1995 = vmatpush.bf16.msrb.mxu1 %v1911_v39  ;;  %v1858_v5 = vmul.f32 %v1850_v59, %v12018_v57 }
 0x5a8   : > { %2033 = vmatpush.bf16.msrb.mxu3 %v1896_v30  ;;  %v7954_v34 = vor.u32 %v6309_v13, %v5877_v16  ;;  %v1816_v20 = vsel %vm754_vm2, %v7708_v1, %v7610_v15  ;;  %v12023_v1 = vld [vmem:[#allocation37_spill] sm:$0xff]  ;;  %v1826_v16 = vmul.f32 %v1818_v32, %v12022_v44 }
 0x5a9   : > { %v1893_v58 = vpack.c.bf16 %v1665_v61, %v1663_v19  ;;  %v1894_v18 = vpack.c.bf16 %v1666_v56, %v1664_v25  ;;  %v5875_v56 = vld [vmem:[%s11691_s11] sm:$0xf] }
 0x5ab   : > { %1977 = vmatpush.bf16.msrb.mxu0 %v1893_v58  ;;  %1996 = vmatpush.bf16.msrb.mxu1 %v1909_v29  ;;  %v12021_v58 = vld [vmem:[#allocation45_spill] sm:$0xff] }
 0x5ac   : > { %2034 = vmatpush.bf16.msrb.mxu3 %v1894_v18  ;;  %v1856_v18 = vmul.f32 %v1849_v31, %v12018_v57 }
 0x5ad   : > { %v1644_v51 = vpop.permute.xlu0 %1643  ;;  %v1646_v17 = vpop.permute.xlu1 %1645 }
 0x5ae   : > { %v1651_v22 = vsel %vm699_vm7, %v1636_v40, %v1644_v51  ;;  %v1655_v37 = vsel %vm699_vm7, %v1644_v51, %v1636_v40  ;;  %v1652_v21 = vsel %vm699_vm7, %v1638_v26, %v1646_v17  ;;  %v1656_v39 = vsel %vm699_vm7, %v1646_v17, %v1638_v26  ;;  %v6310_v40 = vld [vmem:[%s11691_s11 + $0x8] sm:$0xf0] }
 0x5af   : > { %v1659_v30 = vmul.f32 %v1655_v37, %v6736_v2  ;;  %v1660_v19 = vmul.f32 %v1651_v22, %v12009_v63  ;;  %v1661_v25 = vmul.f32 %v1656_v39, %v6736_v2  ;;  %v1662_v61 = vmul.f32 %v1652_v21, %v12009_v63  ;;  %1997 = vmatpush.bf16.msrb.mxu1 %v1907_v10 }
 0x5b0   : > { %v1847_v26 = vsel %vm765_vm0, %v12021_v58, %v7622_v9  ;;  %v1922_v29 = vpack.c.bf16 %v1858_v5, %v1856_v18  ;;  %v5876_v8 = vor.u32 %v6310_v40, %v5875_v56  ;;  %v1874_v9 = vpop.permute.xlu2 %1873  ;;  %v1815_v22 = vsel %vm754_vm2, %v7698_v47, %v7620_v55  ;;  %v6312_v40 = vld [vmem:[%s11691_s11 + $0x1c] sm:$0xf] }
 0x5b1   : > { %v1891_v59 = vpack.c.bf16 %v1661_v25, %v1659_v30  ;;  %v1892_v54 = vpack.c.bf16 %v1662_v61, %v1660_v19  ;;  %v1852_v12 = vmul.f32 %v1847_v26, %v12018_v57  ;;  %v1822_v21 = vmul.f32 %v1816_v20, %v12022_v44  ;;  %v12025_v25 = vld [vmem:[#allocation8_spill] sm:$0xff] }
 0x5b2   : > { %1998 = vmatmul.bf16.vlgmr.msrb.gmra.mxu1 %v7954_v34  ;;  %v1918_v39 = vpack.c.bf16 %v1826_v16, %v1824_v43  ;;  %v1786_v30 = vsel %vm743_vm4, %v7855_v3, %v7694_v23  ;;  %v1820_v19 = vmul.f32 %v1815_v22, %v12022_v44  ;;  %v1785_v55 = vsel %vm743_vm4, %v7712_v33, %v7678_v11  ;;  %v5887_v3 = vld [vmem:[%s11691_s11 + $0x18] sm:$0xf]  ;;  %v6313_v11 = vld [vmem:[%s11691_s11 + $0x20] sm:$0xf0]  ;;  %v5889_v33 = vld [vmem:[%s11691_s11 + $0x24] sm:$0xf0] }
 0x5b3   : > { %1978 = vmatpush.bf16.msrb.mxu0 %v1891_v59  ;;  %2035 = vmatpush.bf16.msrb.mxu3 %v1892_v54  ;;  %v1920_v5 = vpack.c.bf16 %v1854_v24, %v1852_v12  ;;  %v1794_v61 = vmul.f32 %v1786_v30, %v12025_v25  ;;  %v1783_v23 = vsel %vm743_vm4, %v7704_v60, %v7602_v52  ;;  %v6314_v16 = vld [vmem:[%s11691_s11 + $0x28] sm:$0xf0] }
 0x5b4   : > { %v1916_v56 = vpack.c.bf16 %v1822_v21, %v1820_v19  ;;  %v1792_v58 = vmul.f32 %v1785_v55, %v12025_v25  ;;  %v5892_v26 = vor.u32 %v6312_v40, %v5889_v33  ;;  %v1784_v52 = vsel %vm743_vm4, %v7700_v28, %v7656_v27 }
 0x5b5   : > { %v1866_v0 = vpop.permute.xlu0 %1865  ;;  %v1872_v31 = vpop.permute.xlu1 %1871  ;;  %v1788_v60 = vmul.f32 %v1783_v23, %v12025_v25  ;;  %v5888_v24 = vor.u32 %v6313_v11, %v5887_v3  ;;  %v1790_v54 = vmul.f32 %v1784_v52, %v12025_v25 }
 0x5b6   : > { %v1878_v51 = vsel %vm776_vm1, %v1866_v0, %v1874_v9  ;;  %v1882_v17 = vsel %vm776_vm1, %v1874_v9, %v1866_v0  ;;  %v1877_v62 = vsel %vm776_vm1, %v1864_v53, %v1872_v31  ;;  %v1881_v15 = vsel %vm776_vm1, %v1872_v31, %v1864_v53  ;;  %1979 = vmatmul.bf16.vlgmr.msrb.gmra.mxu0 %v5876_v8  ;;  %v5883_v31 = vld [vmem:[%s11691_s11 + $0x8] sm:$0xf] }
 0x5b7   : > { %2047 = vmatpush.bf16.msra.mxu0 %v1922_v29  ;;  %v1889_v38 = vmul.f32 %v12023_v1, %v1878_v51  ;;  %v1890_v42 = vmul.f32 %v12024_v45, %v1882_v17  ;;  %v1887_v10 = vmul.f32 %v12023_v1, %v1877_v62  ;;  %v1888_v13 = vmul.f32 %v12024_v45, %v1881_v15  ;;  %v12026_v62 = vld [vmem:[#allocation40_spill] sm:$0xff]  ;;  %v12027_v15 = vld [vmem:[#allocation41_spill] sm:$0xff] }
 0x5b8   : > { %2036 = vmatmul.bf16.vlgmr.msrb.gmra.mxu3 %v5876_v8  ;;  %v1914_v18 = vpack.c.bf16 %v1794_v61, %v1792_v58  ;;  %v1868_v59 = vpop.permute.xlu2 %1867  ;;  %v1912_v9 = vpack.c.bf16 %v1790_v54, %v1788_v60 }
 0x5b9   : > { %v1925_v37 = vpack.c.bf16 %v1889_v38, %v1887_v10  ;;  %v1926_v53 = vpack.c.bf16 %v1890_v42, %v1888_v13  ;;  %v1910_v38 = vpack.c.bf16 %v12027_v15, %v12026_v62  ;;  %v5895_v13 = vld [vmem:[%s11691_s11 + $0x20] sm:$0xf] }
 0x5ba   : > { %v5896_v22 = vor.u32 %v6314_v16, %v5895_v13 }
 0x5bb   : > { %2048 = vmatpush.bf16.msra.mxu0 %v1920_v5  ;;  %2015 = vmatpush.bf16.msrb.mxu2 %v1925_v37  ;;  %v6311_v5 = vld [vmem:[%s11691_s11 + $0x10] sm:$0xf0] }
 0x5bc   : > { %2072 = vmatpush.bf16.msra.mxu1 %v1926_v53  ;;  %v5884_v42 = vor.u32 %v6311_v5, %v5883_v31 }
 0x5bd   : > { %v1860_v47 = vpop.permute.xlu0 %1859  ;;  %v1862_v8 = vpop.permute.xlu1 %1861 }
 0x5be   : > { %v1875_v41 = vsel %vm776_vm1, %v1860_v47, %v1868_v59  ;;  %v1879_v29 = vsel %vm776_vm1, %v1868_v59, %v1860_v47 }
 0x5bf   : > { %2049 = vmatpush.bf16.msra.mxu0 %v1918_v39  ;;  %v1883_v20 = vmul.f32 %v12023_v1, %v1875_v41  ;;  %v1884_v32 = vmul.f32 %v12024_v45, %v1879_v29 }
 0x5c2   : > { %2003 = vmatmul.bf16.gmra.mxu1 %v5892_v26 }
 0x5c3   : > { %2050 = vmatpush.bf16.msra.mxu0 %v1916_v56 }
 0x5c5   : > { %v1870_v12 = vpop.permute.xlu0 %1869 }
 0x5c6   : > { %v1876_v27 = vsel %vm776_vm1, %v1862_v8, %v1870_v12  ;;  %v1880_v28 = vsel %vm776_vm1, %v1870_v12, %v1862_v8  ;;  %1984 = vmatmul.bf16.gmra.mxu0 %v5888_v24 }
 0x5c7   : > { %2051 = vmatpush.bf16.msra.mxu0 %v1914_v18  ;;  %v1885_v43 = vmul.f32 %v12023_v1, %v1876_v27  ;;  %v1886_v0 = vmul.f32 %v12024_v45, %v1880_v28  ;;  %v12028_v1 = vld [vmem:[#allocation35_spill] sm:$0xff] }
 0x5c8   : > { %2041 = vmatmul.bf16.gmra.mxu3 %v5888_v24  ;;  %v12029_v45 = vld [vmem:[#allocation39_spill] sm:$0xff] }
 0x5c9   : > { %v1923_v51 = vpack.c.bf16 %v1885_v43, %v1883_v20  ;;  %v1924_v17 = vpack.c.bf16 %v1886_v0, %v1884_v32  ;;  %v1908_v10 = vpack.c.bf16 %v12029_v45, %v12028_v1 }
 0x5cb   : > { %2052 = vmatpush.bf16.msra.mxu0 %v1912_v9  ;;  %2016 = vmatpush.bf16.msrb.mxu2 %v1923_v51 }
 0x5cc   : > { %2073 = vmatpush.bf16.msra.mxu1 %v1924_v17 }
 0x5ce   : > { %5897 = vmatmul.msk.bf16.vlgmr.msrb.gmra.mxu2 %vm11826_vm10, %v5884_v42 }
 0x5cf   : > { %2053 = vmatpush.bf16.msra.mxu0 %v1910_v38 }
 0x5d2   : > { %5899 = vmatmul.msk.bf16.vlgmr.msra.gmra.mxu1 %vm11826_vm10, %v5884_v42 }
 0x5d3   : > { %2054 = vmatpush.bf16.msra.mxu0 %v1908_v10 }
 0x5d6   : > { %2055 = vmatmul.bf16.vlgmr.msra.gmra.mxu0 %v7954_v34 }
 0x5de   : > { %5898 = vmatmul.msk.bf16.gmra.mxu2 %vm11826_vm10, %v5896_v22 }
 0x5e2   : > { %5900 = vmatmul.msk.bf16.gmra.mxu1 %vm11826_vm10, %v5896_v22 }
 0x5e6   : > { %2060 = vmatmul.bf16.gmra.mxu0 %v5892_v26 }
 0x62f   : > { %v1999_v37 = vpop.f32.mrf.mxu1 }
 0x633   : > { %v1980_v53 = vpop.f32.mrf.mxu0 }
 0x634   : > { %v2000_v21 = vadd.f32 %v1999_v37, %v1980_v53 }
 0x637   : > { %v2001_v39 = vpop.f32.mrf.mxu1 }
 0x63b   : > { %v1982_v30 = vpop.f32.mrf.mxu0  ;;  %v2037_v28 = vpop.f32.mrf.mxu3 }
 0x63c   : > { %v2002_v23 = vadd.f32 %v2001_v39, %v1982_v30 }
 0x63f   : > { %v2004_v61 = vpop.f32.mrf.mxu1 }
 0x643   : > { %v1985_v40 = vpop.f32.mrf.mxu0  ;;  %v2039_v5 = vpop.f32.mrf.mxu3 }
 0x644   : > { %v2005_v11 = vadd.f32 %v2004_v61, %v1985_v40 }
 0x647   : > { %v2006_v52 = vpop.f32.mrf.mxu1 }
 0x64b   : > { %v1987_v26 = vpop.f32.mrf.mxu0  ;;  %v2042_v45 = vpop.f32.mrf.mxu3 }
 0x64c   : > { %v2007_v24 = vadd.f32 %v2006_v52, %v1987_v26 }
 0x64f   : > { %v2075_v32 = vpop.f32.mrf.mxu1 }
 0x651   : > { %v2018_v34 = vpop.f32.mrf.mxu2 }
 0x652   : > { %v2019_v19 = vadd.f32 %v2018_v34, %v2000_v21 }
 0x653   : > { %v2056_v9 = vpop.f32.mrf.mxu0 }
 0x654   : > { %vm2085_vm12 = vcmp.ge.f32.partialorder %v2019_v19, 0.0  ;;  %v2093_v55 = vmul.f32 0.01, %v2019_v19  ;;  %v2057_v20 = vadd.f32 %v2056_v9, %v2037_v28 }
 0x656   : > { %v8056_v47 = vsel %vm2085_vm12, %v2019_v19, %v2093_v55  ;;  %v2076_v43 = vadd.f32 %v2075_v32, %v2057_v20  ;;  %v2044_v55 = vpop.f32.mrf.mxu3 }
 0x657   : > { %12030 = vst [vmem:[#allocation43_spill] sm:$0xff] %v8056_v47  ;;  %2269 = vrot.lane.b32.xlu2 %v8056_v47, %s11970_s27  ;;  %2301 = vrot.lane.b32.xlu1 %v8056_v47, %s11991_s25  ;;  %v2077_v62 = vpop.f32.mrf.mxu1 }
 0x658   : > { %2205 = vrot.lane.b32.xlu0 %v8056_v47, %s11946_s21  ;;  %v2094_v0 = vmul.f32 0.01, %v2076_v43 }
 0x659   : > { %v2020_v56 = vpop.f32.mrf.mxu2 }
 0x65a   : > { %v2021_v3 = vadd.f32 %v2020_v56, %v2002_v23 }
 0x65b   : > { %v2058_v51 = vpop.f32.mrf.mxu0 }
 0x65c   : > { %v2095_v58 = vmul.f32 0.01, %v2021_v3  ;;  %vm2087_vm9 = vcmp.ge.f32.partialorder %v2021_v3, 0.0  ;;  %v2059_v17 = vadd.f32 %v2058_v51, %v2039_v5 }
 0x65e   : > { %v8070_v18 = vsel %vm2087_vm9, %v2021_v3, %v2095_v58  ;;  %v2078_v15 = vadd.f32 %v2077_v62, %v2059_v17 }
 0x65f   : > { %2141 = vrot.lane.b32.xlu2 %v8056_v47, %s11948_s24  ;;  %2173 = vrot.lane.b32.xlu1 %v8056_v47, %s11992_s3  ;;  %12031 = vst [vmem:[#allocation48_spill] sm:$0xff] %v8070_v18  ;;  %v2080_v22 = vpop.f32.mrf.mxu1 }
 0x660   : > { %2237 = vrot.lane.b32.xlu0 %v8056_v47, %s11971_s30  ;;  %v2096_v42 = vmul.f32 0.01, %v2078_v15  ;;  %vm2088_vm9 = vcmp.ge.f32.partialorder %v2078_v15, 0.0 }
 0x661   : > { %v2023_v33 = vpop.f32.mrf.mxu2 }
 0x662   : > { %v2024_v60 = vadd.f32 %v2023_v33, %v2005_v11  ;;  %v8142_v1 = vsel %vm2088_vm9, %v2078_v15, %v2096_v42  ;;  %vm845_vm9 = vcmask 516096  }
 0x663   : > { %12034 = vst [vmem:[#allocation42_spill] sm:$0xff] %v8142_v1  ;;  %v2061_v10 = vpop.f32.mrf.mxu0 }
 0x664   : > { %v2097_v59 = vmul.f32 0.01, %v2024_v60  ;;  %vm2089_vm12 = vcmp.ge.f32.partialorder %v2024_v60, 0.0  ;;  %v2062_v16 = vadd.f32 %v2061_v10, %v2042_v45 }
 0x666   : > { %v8078_v29 = vsel %vm2089_vm12, %v2024_v60, %v2097_v59  ;;  %v2081_v37 = vadd.f32 %v2080_v22, %v2062_v16  ;;  %v834_v16 = vld [vmem:[%s8254_s4 + $0x18] sm:$0x1] }
 0x667   : > { %2109 = vrot.lane.b32.xlu2 %v8056_v47, %s11947_s23  ;;  %2207 = vrot.lane.b32.xlu1 %v8070_v18, %s11946_s21  ;;  %v2082_v11 = vpop.f32.mrf.mxu1  ;;  %v846_v22 = vsel %vm845_vm9, %v834_v16, 0.0  ;;  %vm12091_vm9 = vcmask 1042432  }
 0x668   : > { %2271 = vrot.lane.b32.xlu0 %v8070_v18, %s11970_s27  ;;  %v2098_v53 = vmul.f32 0.01, %v2081_v37  ;;  %vm2090_vm12 = vcmp.ge.f32.partialorder %v2081_v37, 0.0 }
 0x669   : > { %v2025_v54 = vpop.f32.mrf.mxu2 }
 0x66a   : > { %v2026_v41 = vadd.f32 %v2025_v54, %v2007_v24  ;;  %v8160_v39 = vsel %vm2090_vm12, %v2081_v37, %v2098_v53  ;;  %vm11825_vm12 = vcmask 523264  }
 0x66b   : > { %12036 = vst [vmem:[#allocation44_spill] sm:$0xff] %v8160_v39  ;;  %v2063_v61 = vpop.f32.mrf.mxu0 }
 0x66c   : > { %vm2091_vm14 = vcmp.ge.f32.partialorder %v2026_v41, 0.0  ;;  %v2099_v8 = vmul.f32 0.01, %v2026_v41  ;;  %v2064_v23 = vadd.f32 %v2063_v61, %v2044_v55  ;;  %v833_v61 = vld [vmem:[%s8254_s4 + $0x10] sm:$0xff] }
 0x66e   : > { %v8080_v12 = vsel %vm2091_vm14, %v2026_v41, %v2099_v8  ;;  %vm2086_vm14 = vcmp.ge.f32.partialorder %v2076_v43, 0.0  ;;  %v2083_v33 = vadd.f32 %v2082_v11, %v2064_v23  ;;  %v831_v23 = vld [vmem:[%s8254_s4] sm:$0xff]  ;;  %v842_v11 = vsel %vm11825_vm12, %v833_v61, 0.0 }
 0x66f   : > { %2303 = vrot.lane.b32.xlu2 %v8070_v18, %s11991_s25  ;;  %2239 = vrot.lane.b32.xlu1 %v8070_v18, %s11971_s30  ;;  %v8126_v31 = vsel %vm2086_vm14, %v2076_v43, %v2094_v0 }
 0x670   : > { %2143 = vrot.lane.b32.xlu0 %v8070_v18, %s11948_s24  ;;  %12032 = vst [vmem:[#allocation38_spill] sm:$0xff] %v8126_v31  ;;  %v2100_v52 = vmul.f32 0.01, %v2083_v33  ;;  %vm2092_vm14 = vcmp.ge.f32.partialorder %v2083_v33, 0.0 }
 0x672   : > { %v8198_v24 = vsel %vm2092_vm14, %v2083_v33, %v2100_v52  ;;  %v836_v33 = vsel %vm11825_vm12, %v831_v23, 0.0 }
 0x673   : > { %12039 = vst [vmem:[#allocation36_spill] sm:$0xff] %v8198_v24 }
 0x677   : > { %2175 = vrot.lane.b32.xlu2 %v8070_v18, %s11992_s3  ;;  %2209 = vrot.lane.b32.xlu1 %v8078_v29, %s11946_s21 }
 0x678   : > { %2111 = vrot.lane.b32.xlu0 %v8070_v18, %s11947_s23 }
 0x67f   : > { %2305 = vrot.lane.b32.xlu2 %v8078_v29, %s11991_s25  ;;  %2241 = vrot.lane.b32.xlu1 %v8078_v29, %s11971_s30 }
 0x680   : > { %2273 = vrot.lane.b32.xlu0 %v8078_v29, %s11970_s27 }
 0x687   : > { %2177 = vrot.lane.b32.xlu2 %v8078_v29, %s11992_s3  ;;  %2113 = vrot.lane.b32.xlu1 %v8078_v29, %s11947_s23 }
 0x688   : > { %2145 = vrot.lane.b32.xlu0 %v8078_v29, %s11948_s24 }
 0x68f   : > { %2211 = vrot.lane.b32.xlu2 %v8080_v12, %s11946_s21  ;;  %2275 = vrot.lane.b32.xlu1 %v8080_v12, %s11970_s27 }
 0x690   : > { %2337 = vrot.lane.b32.xlu0 %v8078_v29, %s11945_s0 }
 0x697   : > { %2243 = vrot.lane.b32.xlu2 %v8080_v12, %s11971_s30  ;;  %2147 = vrot.lane.b32.xlu1 %v8080_v12, %s11948_s24 }
 0x698   : > { %2307 = vrot.lane.b32.xlu0 %v8080_v12, %s11991_s25 }
 0x69f   : > { %2115 = vrot.lane.b32.xlu2 %v8080_v12, %s11947_s23  ;;  %2339 = vrot.lane.b32.xlu1 %v8080_v12, %s11945_s0 }
 0x6a0   : > { %2179 = vrot.lane.b32.xlu0 %v8080_v12, %s11992_s3 }
 0x6a7   : > { %2277 = vrot.lane.b32.xlu1 %v8126_v31, %s11970_s27  ;;  %2213 = vrot.lane.b32.xlu2 %v8126_v31, %s11946_s21 }
 0x6a8   : > { %2309 = vrot.lane.b32.xlu0 %v8126_v31, %s11991_s25 }
 0x6af   : > { %2149 = vrot.lane.b32.xlu1 %v8126_v31, %s11948_s24  ;;  %2245 = vrot.lane.b32.xlu2 %v8126_v31, %s11971_s30 }
 0x6b0   : > { %2181 = vrot.lane.b32.xlu0 %v8126_v31, %s11992_s3 }
 0x6b1   : > { %v8140_v38 = vpop.permute.xlu2 %2269 }
 0x6b2   : > { %12033 = vst [vmem:[#allocation33_spill] sm:$0xff] %v8140_v38 }
 0x6b7   : > { %2117 = vrot.lane.b32.xlu1 %v8126_v31, %s11947_s23  ;;  %2279 = vrot.lane.b32.xlu2 %v8142_v1, %s11970_s27 }
 0x6b8   : > { %2215 = vrot.lane.b32.xlu0 %v8142_v1, %s11946_s21 }
 0x6b9   : > { %v8150_v13 = vpop.permute.xlu2 %2141 }
 0x6bf   : > { %2311 = vrot.lane.b32.xlu1 %v8142_v1, %s11991_s25  ;;  %2151 = vrot.lane.b32.xlu2 %v8142_v1, %s11948_s24 }
 0x6c0   : > { %2247 = vrot.lane.b32.xlu0 %v8142_v1, %s11971_s30 }
 0x6c1   : > { %v8158_v21 = vpop.permute.xlu2 %2109 }
 0x6c2   : > { %12035 = vst [vmem:[#allocation46_spill] sm:$0xff] %v8158_v21 }
 0x6c7   : > { %2183 = vrot.lane.b32.xlu1 %v8142_v1, %s11992_s3  ;;  %2119 = vrot.lane.b32.xlu2 %v8142_v1, %s11947_s23 }
 0x6c8   : > { %2217 = vrot.lane.b32.xlu0 %v8160_v39, %s11946_s21 }
 0x6c9   : > { %v8168_v30 = vpop.permute.xlu2 %2303  ;;  %v8170_v34 = vpop.permute.xlu1 %2301 }
 0x6ca   : > { %v8172_v19 = vpop.permute.xlu0 %2205 }
 0x6cf   : > { %2313 = vrot.lane.b32.xlu1 %v8160_v39, %s11991_s25  ;;  %2281 = vrot.lane.b32.xlu2 %v8160_v39, %s11970_s27 }
 0x6d0   : > { %2249 = vrot.lane.b32.xlu0 %v8160_v39, %s11971_s30 }
 0x6d1   : > { %v8180_v56 = vpop.permute.xlu2 %2175  ;;  %v8182_v40 = vpop.permute.xlu1 %2173 }
 0x6d2   : > { %v8184_v3 = vpop.permute.xlu0 %2237 }
 0x6d7   : > { %2185 = vrot.lane.b32.xlu1 %v8160_v39, %s11992_s3  ;;  %2153 = vrot.lane.b32.xlu2 %v8160_v39, %s11948_s24 }
 0x6d8   : > { %2121 = vrot.lane.b32.xlu0 %v8160_v39, %s11947_s23 }
 0x6d9   : > { %v8192_v58 = vpop.permute.xlu2 %2305  ;;  %v8194_v26 = vpop.permute.xlu1 %2207 }
 0x6da   : > { %12037 = vst [vmem:[#allocation47_spill] sm:$0xff] %v8192_v58  ;;  %v8196_v60 = vpop.permute.xlu0 %2271 }
 0x6db   : > { %12038 = vst [vmem:[#allocation34_spill] sm:$0xff] %v8196_v60 }
 0x6df   : > { %2219 = vrot.lane.b32.xlu1 %v8198_v24, %s11946_s21  ;;  %2345 = vrot.lane.b32.xlu2 %v8160_v39, %s11945_s0 }
 0x6e0   : > { %2283 = vrot.lane.b32.xlu0 %v8198_v24, %s11970_s27 }
 0x6e1   : > { %v8206_v59 = vpop.permute.xlu2 %2177  ;;  %v8208_v54 = vpop.permute.xlu1 %2239 }
 0x6e2   : > { %v8210_v41 = vpop.permute.xlu0 %2143 }
 0x6e7   : > { %2251 = vrot.lane.b32.xlu1 %v8198_v24, %s11971_s30  ;;  %2315 = vrot.lane.b32.xlu2 %v8198_v24, %s11991_s25 }
 0x6e8   : > { %2155 = vrot.lane.b32.xlu0 %v8198_v24, %s11948_s24 }
 0x6e9   : > { %v8218_v8 = vpop.permute.xlu2 %2211  ;;  %v8220_v28 = vpop.permute.xlu1 %2209 }
 0x6ea   : > { %v8222_v9 = vpop.permute.xlu0 %2111 }
 0x6eb   : > { %12040 = vst [vmem:[#allocation45_spill] sm:$0xff] %v8222_v9 }
 0x6ef   : > { %2123 = vrot.lane.b32.xlu1 %v8198_v24, %s11947_s23  ;;  %2187 = vrot.lane.b32.xlu2 %v8198_v24, %s11992_s3 }
 0x6f1   : > { %v8228_v20 = vpop.permute.xlu2 %2243  ;;  %v8230_v32 = vpop.permute.xlu1 %2241 }
 0x6f2   : > { %v8232_v43 = vpop.permute.xlu0 %2273 }
 0x6f3   : > { %12041 = vst [vmem:[#allocation37_spill] sm:$0xff] %v8232_v43 }
 0x6f9   : > { %v8234_v0 = vpop.permute.xlu2 %2115  ;;  %v8236_v5 = vpop.permute.xlu1 %2113 }
 0x6fa   : > { %v8238_v51 = vpop.permute.xlu0 %2145 }
 0x701   : > { %v8240_v17 = vpop.permute.xlu1 %2275  ;;  %v2214_v62 = vpop.permute.xlu2 %2213 }
 0x702   : > { %v8242_v15 = vpop.permute.xlu0 %2337 }
 0x703   : > { %12042 = vst [vmem:[#allocation32_spill] sm:$0xff] %v8242_v15 }
 0x709   : > { %v8245_v42 = vpop.permute.xlu1 %2147  ;;  %v8247_v45 = vpop.permute.xlu2 %2245 }
 0x70a   : > { %v8256_v10 = vpop.permute.xlu0 %2307 }
 0x70b   : > { %12044 = vst [vmem:[#allocation40_spill] sm:$0xff] %v8256_v10 }
 0x711   : > { %v8259_v37 = vpop.permute.xlu1 %2339  ;;  %v8261_v53 = vpop.permute.xlu2 %2279 }
 0x712   : > { %12045 = vst [vmem:[#allocation41_spill] sm:$0xff] %v8259_v37  ;;  %v8263_v55 = vpop.permute.xlu0 %2179  ;;  %847 = vadd.xlane.f32.xlu0 %v846_v22 }
 0x713   : > { %12046 = vst [vmem:[#allocation35_spill] sm:$0xff] %v8261_v53 }
 0x718   : > { %843 = vadd.xlane.f32.xlu2 %v842_v11 }
 0x719   : > { %837 = vadd.xlane.f32.xlu1 %v836_v33  ;;  %v8269_v52 = vpop.permute.xlu1 %2277  ;;  %v8271_v27 = vpop.permute.xlu2 %2151 }
 0x71a   : > { %12047 = vst [vmem:[#allocation39_spill] sm:$0xff] %v8269_v52  ;;  %v8273_v16 = vpop.permute.xlu0 %2309 }
 0x721   : > { %v8275_v37 = vpop.permute.xlu1 %2149  ;;  %v8277_v15 = vpop.permute.xlu2 %2119 }
 0x722   : > { %12048 = vst [vmem:[#allocation49_spill] sm:$0xff] %v8277_v15  ;;  %v8279_v22 = vpop.permute.xlu0 %2181 }
 0x726   : > { %2347 = vrot.lane.b32.xlu0 %v8198_v24, %s11945_s0 }
 0x729   : > { %v8283_v61 = vpop.permute.xlu1 %2117  ;;  %v8285_v23 = vpop.permute.xlu2 %2281 }
 0x72a   : > { %12049 = vst [vmem:[#allocation50_spill] sm:$0xff] %v8283_v61  ;;  %v2216_v11 = vpop.permute.xlu0 %2215 }
 0x72b   : > { %12050 = vst [vmem:[#allocation51_spill] sm:$0xff] %v8285_v23 }
 0x72e   : > { %2341 = vrot.lane.b32.xlu0 %v8126_v31, %s11945_s0 }
 0x730   : > { %2333 = vrot.lane.b32.xlu2 %v8056_v47, %s11945_s0 }
 0x731   : > { %v8291_v33 = vpop.permute.xlu1 %2311  ;;  %v8293_v39 = vpop.permute.xlu2 %2153 }
 0x732   : > { %v8295_v25 = vpop.permute.xlu0 %2247  ;;  %2335 = vrot.lane.b32.xlu1 %v8070_v18, %s11945_s0 }
 0x738   : > { %2343 = vrot.lane.b32.xlu2 %v8142_v1, %s11945_s0 }
 0x739   : > { %v8301_v24 = vpop.permute.xlu1 %2183  ;;  %v8303_v44 = vpop.permute.xlu2 %2345 }
 0x73a   : > { %12051 = vst [vmem:[#allocation52_spill] sm:$0xff] %v8303_v44  ;;  %v2218_v31 = vpop.permute.xlu0 %2217  ;;  %v2318_v44 = vsel %vm765_vm0, %v8168_v30, %v8291_v33 }
 0x741   : > { %v8305_v57 = vpop.permute.xlu1 %2313  ;;  %v8307_v15 = vpop.permute.xlu2 %2315 }
 0x742   : > { %12052 = vst [vmem:[#allocation53_spill] sm:$0xff] %v8305_v57  ;;  %v2319_v9 = vsel %vm765_vm0, %v8192_v58, %v8305_v57  ;;  %v8313_v47 = vpop.permute.xlu0 %2249  ;;  %v2320_v1 = vsel %vm765_vm0, %v8256_v10, %v8307_v15  ;;  %v2317_v57 = vsel %vm765_vm0, %v8170_v34, %v8273_v16  ;;  %v2327_v58 = vmul.f32 %v2318_v44, %v12008_v36 }
 0x743   : > { %12053 = vst [vmem:[#allocation54_spill] sm:$0xff] %v8307_v15  ;;  %v2329_v18 = vmul.f32 %v2319_v9, %v12008_v36  ;;  %v2331_v63 = vmul.f32 %v2320_v1, %v12008_v36  ;;  %v2325_v21 = vmul.f32 %v2317_v57, %v12008_v36  ;;  %v2227_v1 = vsel %vm732_vm5, %v2218_v31, %v8220_v28 }
 0x744   : > { %v2221_v9 = vsel %vm732_vm5, %v8172_v19, %v2214_v62  ;;  %v2223_v57 = vsel %vm732_vm5, %v8220_v28, %v2218_v31  ;;  %v2285_v44 = vsel %vm754_vm2, %v8140_v38, %v8269_v52 }
 0x745   : > { %v2395_v61 = vpack.c.bf16 %v2331_v63, %v2329_v18  ;;  %v2393_v2 = vpack.c.bf16 %v2327_v58, %v2325_v21  ;;  %v2225_v63 = vsel %vm732_vm5, %v2214_v62, %v8172_v19  ;;  %v2226_v18 = vsel %vm732_vm5, %v2216_v11, %v8194_v26 }
 0x746   : > { %v2287_v21 = vsel %vm754_vm2, %v8232_v43, %v8285_v23  ;;  %v2222_v19 = vsel %vm732_vm5, %v8194_v26, %v2216_v11  ;;  %v2233_v58 = vmul.f32 %v2227_v1, %v6714_v49  ;;  %v2234_v36 = vmul.f32 %v2223_v57, %v12006_v46 }
 0x747   : > { %2464 = vmatpush.bf16.msra.mxu3 %v2395_v61  ;;  %v2293_v11 = vmul.f32 %v2285_v44, %v6662_v14  ;;  %v2231_v1 = vmul.f32 %v2226_v18, %v6714_v49  ;;  %v2229_v57 = vmul.f32 %v2225_v63, %v6714_v49 }
 0x749   : > { %v2186_v15 = vpop.permute.xlu1 %2185 }
 0x74a   : > { %v8331_v10 = vpop.permute.xlu0 %2121  ;;  %v2195_v43 = vsel %vm721_vm6, %v2186_v15, %v8206_v59  ;;  %v2191_v63 = vsel %vm721_vm6, %v8206_v59, %v2186_v15  ;;  %v2194_v59 = vsel %vm721_vm6, %v8301_v24, %v8180_v56 }
 0x74b   : > { %2465 = vmatpush.bf16.msra.mxu3 %v2393_v2  ;;  %v2286_v2 = vsel %vm754_vm2, %v8196_v60, %v8261_v53  ;;  %v2188_v53 = vpop.permute.xlu2 %2187  ;;  %v2201_v15 = vmul.f32 %v2195_v43, %v6711_v48  ;;  %v2254_v43 = vsel %vm743_vm4, %v8208_v54, %v8295_v25 }
 0x74c   : > { %v2295_v23 = vmul.f32 %v2286_v2, %v6662_v14  ;;  %v2196_v44 = vsel %vm721_vm6, %v2188_v53, %v8263_v55  ;;  %v2377_v2 = vpack.c.bf16 %v2231_v1, %v2229_v57  ;;  %v2253_v57 = vsel %vm743_vm4, %v8184_v3, %v8247_v45 }
 0x751   : > { %v2220_v31 = vpop.permute.xlu1 %2219 }
 0x752   : > { %v2224_v28 = vsel %vm732_vm5, %v8218_v8, %v2220_v31  ;;  %v2228_v62 = vsel %vm732_vm5, %v2220_v31, %v8218_v8  ;;  %v8370_v61 = vpop.permute.xlu0 %2283  ;;  %v2297_v8 = vmul.f32 %v2287_v21, %v6662_v14  ;;  %v2230_v21 = vmul.f32 %v2221_v9, %v12006_v46 }
 0x753   : > { %v2235_v60 = vmul.f32 %v2228_v62, %v6714_v49  ;;  %v2236_v52 = vmul.f32 %v2224_v28, %v12006_v46  ;;  %v2288_v26 = vsel %vm754_vm2, %v8240_v17, %v8370_v61  ;;  %v2232_v62 = vmul.f32 %v2222_v19, %v12006_v46 }
 0x754   : > { %v2299_v31 = vmul.f32 %v2288_v26, %v6662_v14  ;;  %v2389_v19 = vpack.c.bf16 %v2295_v23, %v2293_v11  ;;  %v2202_v9 = vmul.f32 %v2191_v63, %v6717_v50  ;;  %v2190_v11 = vsel %vm721_vm6, %v8180_v56, %v8301_v24 }
 0x755   : > { %v2379_v38 = vpack.c.bf16 %v2235_v60, %v2233_v58  ;;  %v2380_v28 = vpack.c.bf16 %v2236_v52, %v2234_v36  ;;  %v2192_v36 = vsel %vm721_vm6, %v8263_v55, %v2188_v53  ;;  %v832_v60 = vld [vmem:[%s8254_s4 + $0x8] sm:$0xff]  ;;  %v2255_v52 = vsel %vm743_vm4, %v8230_v32, %v8313_v47  ;;  %s6471_s4 = smov 2  }
 0x756   : > { %v2391_v18 = vpack.c.bf16 %v2299_v31, %v2297_v8  ;;  %v2203_v53 = vmul.f32 %v2196_v44, %v6711_v48  ;;  %v2378_v55 = vpack.c.bf16 %v2232_v62, %v2230_v21  ;;  %v2204_v58 = vmul.f32 %v2192_v36, %v6717_v50 }
 0x757   : > { %2445 = vmatpush.bf16.msra.mxu2 %v2379_v38  ;;  %2502 = vmatpush.bf16.msrb.mxu1 %v2380_v28  ;;  %v839_v26 = vsel %vm11825_vm12, %v832_v60, 0.0  ;;  %v2265_v1 = vmul.f32 %v2255_v52, %v6695_v35  ;;  %v2193_v62 = vsel %vm721_vm6, %v8279_v22, %v8182_v40  ;;  %v2189_v56 = vsel %vm721_vm6, %v8182_v40, %v8279_v22 }
 0x758   : > { %2466 = vmatpush.bf16.msra.mxu3 %v2391_v18  ;;  %v2199_v24 = vmul.f32 %v2194_v59, %v6711_v48  ;;  %v2375_v28 = vpack.c.bf16 %v2203_v53, %v2201_v15  ;;  %v2263_v18 = vmul.f32 %v2254_v43, %v6695_v35  ;;  %v2200_v21 = vmul.f32 %v2190_v11, %v6717_v50 }
 0x759   : > { %v8410_v38 = vpop.permute.xlu1 %2251  ;;  %v2376_v36 = vpack.c.bf16 %v2204_v58, %v2202_v9  ;;  %v2197_v60 = vmul.f32 %v2193_v62, %v6711_v48  ;;  %v2261_v22 = vmul.f32 %v2253_v57, %v6695_v35  ;;  %v2198_v52 = vmul.f32 %v2189_v56, %v6717_v50 }
 0x75a   : > { %v2256_v23 = vsel %vm743_vm4, %v8228_v20, %v8410_v38  ;;  %v2156_v31 = vpop.permute.xlu0 %2155  ;;  %v2161_v15 = vsel %vm710_vm8, %v8275_v37, %v8150_v13  ;;  %v2157_v58 = vsel %vm710_vm8, %v8150_v13, %v8275_v37  ;;  %v2158_v43 = vsel %vm710_vm8, %v8210_v41, %v8271_v27 }
 0x75b   : > { %v2267_v8 = vmul.f32 %v2256_v23, %v6695_v35  ;;  %2446 = vmatpush.bf16.msra.mxu2 %v2377_v2  ;;  %2503 = vmatpush.bf16.msrb.mxu1 %v2378_v55  ;;  %v2164_v63 = vsel %vm710_vm8, %v2156_v31, %v8245_v42  ;;  %v2160_v40 = vsel %vm710_vm8, %v8245_v42, %v2156_v31  ;;  %vm12098_vm12 = vcmask 1041408  }
 0x75c   : > { %2467 = vmatpush.bf16.msra.mxu3 %v2389_v19  ;;  %840 = vadd.xlane.f32.xlu1 %v839_v26  ;;  %v2163_v2 = vsel %vm710_vm8, %v8293_v39, %v8238_v51  ;;  %v2159_v19 = vsel %vm710_vm8, %v8238_v51, %v8293_v39  ;;  %v2171_v59 = vmul.f32 %v2164_v63, %v6740_v4  ;;  %v12058_v63 = vld [vmem:[#allocation12_spill] sm:$0xff] }
 0x75d   : > { %v2387_v44 = vpack.c.bf16 %v2267_v8, %v2265_v1  ;;  %v2373_v42 = vpack.c.bf16 %v2199_v24, %v2197_v60  ;;  %v2172_v53 = vmul.f32 %v2160_v40, %v6746_v7  ;;  %v2385_v55 = vpack.c.bf16 %v2263_v18, %v2261_v22  ;;  %v12055_v24 = vld [vmem:[#allocation11_spill] sm:$0xff]  ;;  %v12057_v18 = vld [vmem:[#allocation50_spill] sm:$0xff]  ;;  %v12060_v40 = vld [vmem:[#allocation48_spill] sm:$0xff] }
 0x75e   : > { %v2374_v9 = vpack.c.bf16 %v2200_v21, %v2198_v52  ;;  %v2169_v23 = vmul.f32 %v2163_v2, %v6740_v4  ;;  %v2162_v51 = vsel %vm710_vm8, %v8271_v27, %v8210_v41  ;;  %v2170_v26 = vmul.f32 %v2159_v19, %v6746_v7  ;;  %v12059_v60 = vld [vmem:[#allocation43_spill] sm:$0xff]  ;;  %v12063_v2 = vld [vmem:[#allocation40_spill] sm:$0xff]  ;;  %v12064_v19 = vld [vmem:[#allocation54_spill] sm:$0xff] }
 0x75f   : > { %2447 = vmatpush.bf16.msra.mxu2 %v2375_v28  ;;  %2504 = vmatpush.bf16.msrb.mxu1 %v2376_v36  ;;  %v2165_v13 = vmul.f32 %v2161_v15, %v6740_v4  ;;  %v2166_v11 = vmul.f32 %v2157_v58, %v6746_v7  ;;  %v2167_v31 = vmul.f32 %v2162_v51, %v6740_v4  ;;  %v12065_v15 = vld [vmem:[#allocation45_spill] sm:$0xff]  ;;  %v6462_v58 = vmov 64.0  }
 0x760   : > { %2468 = vmatpush.bf16.msra.mxu3 %v2387_v44  ;;  %v2371_v37 = vpack.c.bf16 %v2171_v59, %v2169_v23  ;;  %v2372_v8 = vpack.c.bf16 %v2172_v53, %v2170_v26  ;;  %v2168_v62 = vmul.f32 %v2158_v43, %v6746_v7  ;;  %v2131_v27 = vsel %vm699_vm7, %v8331_v10, %v8236_v5  ;;  %v12056_v44 = vld [vmem:[#allocation46_spill] sm:$0xff]  ;;  %v12066_v53 = vld [vmem:[#allocation49_spill] sm:$0xff] }
 0x761   : > { %v2124_v39 = vpop.permute.xlu1 %2123  ;;  %v12054_v41 = vpack.c.bf16 %v8080_v12, %v8078_v29  ;;  %v2127_v56 = vsel %vm699_vm7, %v8236_v5, %v8331_v10  ;;  %v2369_v28 = vpack.c.bf16 %v2167_v31, %v2165_v13  ;;  %v2129_v21 = vsel %vm699_vm7, %v12057_v18, %v12056_v44  ;;  %v12061_v5 = vld [vmem:[#allocation47_spill] sm:$0xff]  ;;  %v12062_v10 = vld [vmem:[#allocation53_spill] sm:$0xff]  ;;  %v12067_v43 = vld [vmem:[#allocation6_spill] sm:$0xff] }
 0x762   : > { %v2132_v1 = vsel %vm699_vm7, %v2124_v39, %v8234_v0  ;;  %v2128_v57 = vsel %vm699_vm7, %v8234_v0, %v2124_v39  ;;  %v2381_v29 = vpack.c.bf16 %v12060_v40, %v12059_v60  ;;  %v2370_v12 = vpack.c.bf16 %v2168_v62, %v2166_v11  ;;  %v12071_v60 = vld [vmem:[#allocation33_spill] sm:$0xff]  ;;  %v12072_v40 = vld [vmem:[#allocation39_spill] sm:$0xff] }
 0x763   : > { %2448 = vmatpush.bf16.msra.mxu2 %v2373_v42  ;;  %2505 = vmatpush.bf16.msrb.mxu1 %v2374_v9  ;;  %v2139_v0 = vmul.f32 %v2132_v1, %v12055_v24  ;;  %v2140_v36 = vmul.f32 %v2128_v57, %v12058_v63  ;;  %v2125_v22 = vsel %vm699_vm7, %v12056_v44, %v12057_v18  ;;  %6431 = vrcp.f32 %v6462_v58  ;;  %v12069_v44 = vld [vmem:[#allocation51_spill] sm:$0xff]  ;;  %v12070_v18 = vld [vmem:[#allocation5_spill] sm:$0xff] }
 0x764   : > { %2469 = vmatpush.bf16.msra.mxu3 %v2385_v55  ;;  %v2323_v52 = vsel %vm765_vm0, %v12062_v10, %v12061_v5  ;;  %v2324_v59 = vsel %vm765_vm0, %v12064_v19, %v12063_v2  ;;  %v2137_v42 = vmul.f32 %v2131_v27, %v12055_v24  ;;  %v2130_v55 = vsel %vm699_vm7, %v12066_v53, %v12065_v15 }
 0x765   : > { %v2138_v9 = vmul.f32 %v2127_v56, %v12058_v63  ;;  %v2126_v23 = vsel %vm699_vm7, %v12065_v15, %v12066_v53  ;;  %v2133_v39 = vmul.f32 %v2129_v21, %v12055_v24  ;;  %v2134_v26 = vmul.f32 %v2125_v22, %v12058_v63  ;;  %v12075_v15 = vld [vmem:[#allocation8_spill] sm:$0xff] }
 0x766   : > { %v2367_v51 = vpack.c.bf16 %v2139_v0, %v2137_v42  ;;  %v2330_v13 = vmul.f32 %v2323_v52, %v12067_v43  ;;  %v2135_v1 = vmul.f32 %v2130_v55, %v12055_v24  ;;  %v2136_v31 = vmul.f32 %v2126_v23, %v12058_v63 }
 0x767   : > { %2449 = vmatpush.bf16.msra.mxu2 %v2371_v37  ;;  %2506 = vmatpush.bf16.msrb.mxu1 %v2372_v8  ;;  %v2332_v37 = vmul.f32 %v2324_v59, %v12067_v43  ;;  %v2368_v11 = vpack.c.bf16 %v2140_v36, %v2138_v9  ;;  %v2322_v8 = vsel %vm765_vm0, %v8291_v33, %v8168_v30 }
 0x768   : > { %2470 = vmatpush.bf16.msra.mxu3 %v12054_v41  ;;  %v2321_v57 = vsel %vm765_vm0, %v8273_v16, %v8170_v34  ;;  %v2365_v62 = vpack.c.bf16 %v2135_v1, %v2133_v39  ;;  %v2328_v41 = vmul.f32 %v2322_v8, %v12067_v43  ;;  %v2366_v0 = vpack.c.bf16 %v2136_v31, %v2134_v26  ;;  %v6315_v26 = vld [vmem:[%s11692_s12 + $0x4] sm:$0xf]  ;;  %v12077_v1 = vld [vmem:[#allocation44_spill] sm:$0xff] }
 0x769   : > { %v6432_v27 = vpop.eup %6431  ;;  %v2396_v56 = vpack.c.bf16 %v2332_v37, %v2330_v13  ;;  %v2292_v30 = vsel %vm754_vm2, %v8370_v61, %v8240_v17  ;;  %v2326_v33 = vmul.f32 %v2321_v57, %v12067_v43  ;;  %v12073_v61 = vld [vmem:[#allocation34_spill] sm:$0xff]  ;;  %v2260_v2 = vsel %vm743_vm4, %v8410_v38, %v8228_v20  ;;  %v5905_v13 = vld [vmem:[%s11692_s12 + $0xc] sm:$0xf0] }
 0x76a   : > { %v850_v16 = vmul.f32 64.0, %v6432_v27  ;;  %v2300_v21 = vmul.f32 %v2292_v30, %v12070_v18  ;;  %v2259_v59 = vsel %vm743_vm4, %v8313_v47, %v8230_v32  ;;  %v2268_v53 = vmul.f32 %v2260_v2, %v12075_v15  ;;  %v12078_v8 = vld [vmem:[#allocation36_spill] sm:$0xff]  ;;  %v12081_v30 = vld [vmem:[#allocation42_spill] sm:$0xff] }
 0x76b   : > { %2450 = vmatpush.bf16.msra.mxu2 %v2369_v28  ;;  %2507 = vmatpush.bf16.msrb.mxu1 %v2370_v12  ;;  %v12068_v28 = vld [vmem:[#allocation37_spill] sm:$0xff]  ;;  %v2394_v36 = vpack.c.bf16 %v2328_v41, %v2326_v33  ;;  %v12074_v12 = vld [vmem:[#allocation35_spill] sm:$0xff]  ;;  %v2258_v9 = vsel %vm743_vm4, %v8295_v25, %v8208_v54  ;;  %v2266_v58 = vmul.f32 %v2259_v59, %v12075_v15  ;;  %vm854_vm14 = vweird.f32 %v6432_v27  ;;  %v5903_v25 = vld [vmem:[%s11692_s12] sm:$0xf] }
 0x76c   : > { %2471 = vmatpush.bf16.msra.mxu3 %v2381_v29  ;;  %v2291_v34 = vsel %vm754_vm2, %v12069_v44, %v12068_v28  ;;  %v2289_v29 = vsel %vm754_vm2, %v12072_v40, %v12071_v60  ;;  %v2290_v22 = vsel %vm754_vm2, %v12074_v12, %v12073_v61  ;;  %v851_v5 = vsub.f32 1.0, %v850_v16  ;;  %v6316_v54 = vld [vmem:[%s11692_s12 + $0x8] sm:$0xf0]  ;;  %v8610_v57 = vld [vmem:[%s11931_s2 + $0x10] ss:$0 sm:$0xff] }
 0x76d   : > { %v2298_v17 = vmul.f32 %v2291_v34, %v12070_v18  ;;  %v2294_v10 = vmul.f32 %v2289_v29, %v12070_v18  ;;  %v2296_v19 = vmul.f32 %v2290_v22, %v12070_v18  ;;  %v2257_v20 = vsel %vm743_vm4, %v8247_v45, %v8184_v3  ;;  %v5915_v34 = vld [vmem:[%s11692_s12 + $0x18] sm:$0xf]  ;;  %v6319_v16 = vld [vmem:[%s11692_s12 + $0x20] sm:$0x10]  ;;  %v12082_v29 = vld [vmem:[#allocation52_spill] sm:$0xff] }
 0x76e   : > { %v852_v42 = vmul.f32 %v6432_v27, %v851_v5  ;;  %v2264_v47 = vmul.f32 %v2258_v9, %v12075_v15  ;;  %v2388_v32 = vpack.c.bf16 %v2268_v53, %v2266_v58  ;;  %v2262_v23 = vmul.f32 %v2257_v20, %v12075_v15  ;;  %v12084_v5 = vld [vmem:[#allocation41_spill] sm:$0xff] }
 0x76f   : > { %2451 = vmatpush.bf16.msra.mxu2 %v2367_v51  ;;  %2508 = vmatpush.bf16.msrb.mxu1 %v2368_v11  ;;  %v2392_v52 = vpack.c.bf16 %v2300_v21, %v2298_v17  ;;  %v2390_v55 = vpack.c.bf16 %v2296_v19, %v2294_v10  ;;  %v5904_v3 = vor.u32 %v6316_v54, %v5903_v25  ;;  %v6463_v41 = vmov 0   ;;  %v6318_v21 = vld [vmem:[%s11692_s12 + $0x1c] sm:$0xf]  ;;  %v12083_v17 = vld [vmem:[#allocation32_spill] sm:$0xff]  ;;  %v8650_v19 = vld [vmem:[%s11931_s2 + $0x18] ss:$0 sm:$0xff] }
 0x770   : > { %v853_v38 = vadd.f32 %v6432_v27, %v852_v42  ;;  %v2386_v45 = vpack.c.bf16 %v2264_v47, %v2262_v23  ;;  %v5908_v37 = vor.u32 %v6315_v26, %v5905_v13  ;;  %v2384_v31 = vpack.c.bf16 %v12078_v8, %v12077_v1 }
 0x771   : > { %v5916_v60 = vor.u32 %v6319_v16, %v5915_v34  ;;  %v2351_v61 = vsel %vm776_vm1, %v12083_v17, %v12082_v29  ;;  %v2355_v12 = vsel %vm776_vm1, %v12082_v29, %v12083_v17  ;;  %v12087_v16 = vld [vmem:[#allocation4_spill] sm:$0xff] }
 0x772   : > { %v8594_v39 = vsel %vm854_vm14, %v6432_v27, %v853_v38  ;;  %2472 = vmatmul.bf16.vlgmr.msra.gmra.mxu3 %v5908_v37  ;;  %v2361_v2 = vmul.f32 %v8610_v57, %v2351_v61  ;;  %v2362_v59 = vmul.f32 %v8650_v19, %v2355_v12  ;;  %vm12093_vm14 = vmmov %vm12091_vm9 }
 0x773   : > { %2452 = vmatpush.bf16.msra.mxu2 %v2365_v62  ;;  %2509 = vmatpush.bf16.msrb.mxu1 %v2366_v0  ;;  %v12080_v0 = vld [vmem:[#allocation38_spill] sm:$0xff] }
 0x774   : > { %v2382_v33 = vpack.c.bf16 %v12081_v30, %v12080_v0 }
 0x776   : > { %2453 = vmatmul.bf16.vlgmr.msra.gmra.mxu2 %v5904_v3  ;;  %2510 = vmatmul.bf16.vlgmr.msrb.gmra.mxu1 %v5904_v3 }
 0x777   : > { %2521 = vmatpush.bf16.msrb.mxu2 %v2396_v56  ;;  %v8615_v56 = vsel %vm972_vm13, 65535, %v6463_v41 }
 0x778   : > { %12079 = vst [vmem:[#allocation50_spill] sm:$0xff] %v8615_v56 }
 0x77b   : > { %2522 = vmatpush.bf16.msrb.mxu2 %v2394_v36  ;;  %v5917_v36 = vld [vmem:[%s11692_s12 + $0x24] sm:$0x10] }
 0x77c   : > { %v5920_v40 = vor.u32 %v6318_v21, %v5917_v36 }
 0x77f   : > { %2523 = vmatpush.bf16.msrb.mxu2 %v2392_v52 }
 0x782   : > { %2477 = vmatmul.bf16.gmra.mxu3 %v5920_v40 }
 0x783   : > { %2524 = vmatpush.bf16.msrb.mxu2 %v2390_v55 }
 0x785   : > { %v848_v51 = vpop.xlane.xlu0 %847 }
 0x786   : > { %v8603_v11 = vmul.f32 %v8594_v39, %v848_v51  ;;  %2458 = vmatmul.bf16.gmra.mxu2 %v5916_v60  ;;  %2515 = vmatmul.bf16.gmra.mxu1 %v5916_v60 }
 0x787   : > { %2525 = vmatpush.bf16.msrb.mxu2 %v2388_v32 }
 0x788   : > { %12076 = vst [vmem:[#allocation46_spill] sm:$0xff] %v8603_v11  ;;  %v2645_v62 = vmul.f32 %v8610_v57, %v8603_v11  ;;  %v2646_v38 = vmul.f32 %v8650_v19, %v8603_v11  ;;  %v2638_v29 = vmul.f32 %v8603_v11, %v12067_v43  ;;  %v2746_v12 = vrot.slane %v8603_v11, 4 }
 0x78a   : > { %v2884_v27 = vpack.c.bf16 %v2645_v62, %v2645_v62  ;;  %v2885_v25 = vpack.c.bf16 %v2646_v38, %v2646_v38  ;;  %v6317_v62 = vld [vmem:[%s11692_s12 + $0x10] sm:$0xf0]  ;;  %v2606_v38 = vmul.f32 %v8603_v11, %v6717_v50 }
 0x78b   : > { %2526 = vmatpush.bf16.msrb.mxu2 %v2386_v45  ;;  %v844_v44 = vpop.xlane.xlu2 %843 }
 0x78c   : > { %v2918_v28 = vand.u32 %v8615_v56, %v2884_v27  ;;  %v838_v9 = vpop.xlane.xlu1 %837  ;;  %v2921_v27 = vand.u32 %v8615_v56, %v2885_v25  ;;  %v2621_v25 = vmul.f32 %v8603_v11, %v6695_v35 }
 0x78d   : > { %v8688_v34 = vmul.f32 %v8594_v39, %v838_v9 }
 0x78e   : > { %2943 = vmatpush.bf16.msra.mxu1 %v2918_v28  ;;  %v5923_v28 = vld [vmem:[%s11692_s12 + $0x20] sm:$0xf] }
 0x78f   : > { %2527 = vmatpush.bf16.msrb.mxu2 %v2384_v31  ;;  %v5911_v31 = vld [vmem:[%s11692_s12 + $0x8] sm:$0xf]  ;;  %12086 = vst [vmem:[#allocation48_spill] sm:$0xff] %v8688_v34  ;;  %v8704_v17 = vmul.f32 %v8688_v34, %v6695_v35 }
 0x790   : > { %v5912_v30 = vor.u32 %v6317_v62, %v5911_v31 }
 0x791   : > { %12088 = vst [vmem:[#allocation47_spill] sm:$0xff] %v8704_v17  ;;  %v11817_v9 = vrot.slane %v8704_v17, 3 }
 0x793   : > { %2528 = vmatpush.bf16.msrb.mxu2 %v2382_v33  ;;  %v2334_v42 = vpop.permute.xlu2 %2333  ;;  %v8679_v33 = vmul.f32 %v8594_v39, %v844_v44  ;;  %v2637_v44 = vmul.f32 %v8603_v11, %v12087_v16 }
 0x795   : > { %12085 = vst [vmem:[#allocation43_spill] sm:$0xff] %v8679_v33  ;;  %v8692_v21 = vmul.f32 %v8679_v33, %v12087_v16  ;;  %v8698_v60 = vmul.f32 %v8679_v33, %v12067_v43  ;;  %v11821_v61 = vrot.slane %v8679_v33, 4 }
 0x796   : > { %2529 = vmatmul.bf16.vlgmr.msrb.gmra.mxu2 %v5908_v37  ;;  %v6320_v37 = vld [vmem:[%s11692_s12 + $0x28] sm:$0x10] }
 0x797   : > { %v5924_v36 = vor.u32 %v6320_v37, %v5923_v28  ;;  %v8790_v28 = vmul.f32 %v8679_v33, %v6711_v48  ;;  %v8794_v37 = vmul.f32 %v8679_v33, %v6717_v50 }
 0x798   : > { %v2348_v22 = vpop.permute.xlu0 %2347 }
 0x799   : > { %v2352_v10 = vsel %vm776_vm1, %v12084_v5, %v2348_v22  ;;  %v2356_v52 = vsel %vm776_vm1, %v2348_v22, %v12084_v5  ;;  %v11819_v22 = vrot.slane %v8692_v21, 1  ;;  %v2830_v5 = vrot.slane %v2637_v44, 1 }
 0x79a   : > { %v2363_v53 = vmul.f32 %v8610_v57, %v2352_v10  ;;  %v2364_v55 = vmul.f32 %v8650_v19, %v2356_v52  ;;  %v2613_v10 = vmul.f32 %v8603_v11, %v6714_v49  ;;  %v2614_v52 = vmul.f32 %v8603_v11, %v12006_v46 }
 0x79b   : > { %v2344_v54 = vpop.permute.xlu2 %2343  ;;  %v8798_v44 = vmul.f32 %v8688_v34, %v12087_v16 }
 0x79c   : > { %v2399_v58 = vpack.c.bf16 %v2363_v53, %v2361_v2  ;;  %v2400_v20 = vpack.c.bf16 %v2364_v55, %v2362_v59  ;;  %v2629_v2 = vmul.f32 %v8603_v11, %v6662_v14  ;;  %v11818_v59 = vrot.slane %v8698_v60, 1 }
 0x79d   : > { %v8724_v53 = vmul.f32 %v8679_v33, %v6714_v49  ;;  %v2630_v55 = vmul.f32 %v8603_v11, %v12070_v18 }
 0x79e   : > { %2489 = vmatpush.bf16.msrb.mxu0 %v2399_v58  ;;  %2546 = vmatpush.bf16.msrb.mxu3 %v2400_v20  ;;  %v2605_v20 = vmul.f32 %v8603_v11, %v6711_v48 }
 0x7a0   : > { %v2342_v47 = vpop.permute.xlu0 %2341 }
 0x7a1   : > { %v2349_v32 = vsel %vm776_vm1, %v2334_v42, %v2342_v47  ;;  %v2353_v23 = vsel %vm776_vm1, %v2342_v47, %v2334_v42  ;;  %v2832_v42 = vrot.slane %v2638_v29, 1  ;;  %v2747_v47 = vsel %vm11876_vm3, %v11821_v61, %v2746_v12 }
 0x7a2   : > { %v2357_v26 = vmul.f32 %v8610_v57, %v2349_v32  ;;  %v2358_v13 = vmul.f32 %v8650_v19, %v2353_v23  ;;  %v8740_v32 = vsel %vm11878_vm15, %v11819_v22, %v2830_v5  ;;  %v8744_v23 = vmul.f32 %v8679_v33, %v12006_v46 }
 0x7a3   : > { %v8774_v31 = vsel %vm11879_vm11, %v2747_v47, %v11817_v9  ;;  %v8806_v29 = vmul.f32 %v8688_v34, %v6714_v49  ;;  %v8810_v12 = vmul.f32 %v8679_v33, %v6695_v35  ;;  %v2695_v9 = vrot.slane %v2605_v20, 6 }
 0x7a4   : > { %v2336_v51 = vpop.permute.xlu1 %2335  ;;  %v2770_v61 = vrot.slane %v2621_v25, 3  ;;  %v12099_v22 = vrot.slane %v8794_v37, 6 }
 0x7a5   : > { %v2350_v3 = vsel %vm776_vm1, %v2336_v51, %v2344_v54  ;;  %v2354_v45 = vsel %vm776_vm1, %v2344_v54, %v2336_v51  ;;  %v8750_v54 = vmul.f32 %v8610_v57, %v8688_v34  ;;  %v8754_v51 = vmul.f32 %v8650_v19, %v8688_v34  ;;  %12090 = vst [vmem:[#allocation40_spill] sm:$0xff] %v8810_v12 }
 0x7a6   : > { %v2359_v1 = vmul.f32 %v8610_v57, %v2350_v3  ;;  %v2360_v8 = vmul.f32 %v8650_v19, %v2354_v45  ;;  %2534 = vmatmul.bf16.gmra.mxu2 %v5920_v40  ;;  %v8708_v40 = vmul.f32 %v8688_v34, %v12075_v15  ;;  %v2725_v3 = vrot.slane %v2613_v10, 5 }
 0x7a7   : > { %v2622_v45 = vmul.f32 %v8603_v11, %v12075_v15  ;;  %v8817_v10 = vmul.f32 %v8688_v34, %v12006_v46 }
 0x7a8   : > { %v2397_v41 = vpack.c.bf16 %v2359_v1, %v2357_v26  ;;  %v2398_v0 = vpack.c.bf16 %v2360_v8, %v2358_v13  ;;  %12089 = vst [vmem:[#allocation53_spill] sm:$0xff] %v8708_v40  ;;  %v11816_v58 = vrot.slane %v8708_v40, 3  ;;  %v8761_v26 = vsel %vm11878_vm15, %v11818_v59, %v2832_v42 }
 0x7a9   : > { %v11820_v13 = vrot.slane %v8724_v53, 5  ;;  %v8765_v1 = vrot.slane %v8688_v34, 4  ;;  %v8769_v8 = vmul.f32 %v8679_v33, %v6662_v14  ;;  %v2800_v42 = vrot.slane %v2629_v2, 2 }
 0x7aa   : > { %2490 = vmatpush.bf16.msrb.mxu0 %v2397_v41  ;;  %2547 = vmatpush.bf16.msrb.mxu3 %v2398_v0  ;;  %v8779_v62 = vsel %vm11879_vm11, %v2747_v47, %v11816_v58  ;;  %v8785_v41 = vmul.f32 %v8679_v33, %v12070_v18  ;;  %v11824_v0 = vrot.slane %v8744_v23, 5  ;;  %v2802_v58 = vrot.slane %v2630_v55, 2 }
 0x7ab   : > { %v2726_v5 = vsel %vm12091_vm9, %v11820_v13, %v2725_v3  ;;  %v2697_v3 = vrot.slane %v2606_v38, 6  ;;  %v8829_v13 = vmul.f32 %v8688_v34, %v6662_v14  ;;  %v8841_v38 = vmul.f32 %v8688_v34, %v12070_v18 }
 0x7ac   : > { %vm12094_vm9 = vcmask 1045504   ;;  %v2772_v55 = vrot.slane %v2622_v45, 3  ;;  %v12097_v47 = vrot.slane %v8790_v28, 6  ;;  %v8865_v45 = vsel %vm11876_vm3, %v2726_v5, %v8765_v1 }
 0x7ad   : > { %5927 = vmatmul.msk.bf16.vlgmr.msrb.gmra.mxu3 %vm11826_vm10, %v5912_v30  ;;  %5925 = vmatmul.msk.bf16.vlgmr.msrb.gmra.mxu0 %vm11826_vm10, %v5912_v30  ;;  %v2727_v30 = vrot.slane %v2614_v52, 5  ;;  %v11829_v52 = vrot.slane %v8769_v8, 2  ;;  %v2643_v40 = vmul.f32 %v8610_v57, %v8679_v33 }
 0x7ae   : > { %2981 = vmatpush.bf16.msra.mxu3 %v2921_v27  ;;  %v8823_v27 = vmul.f32 %v8679_v33, %v12075_v15  ;;  %v2696_v59 = vsel %vm12098_vm12, %v12097_v47, %v2695_v9  ;;  %v12101_v47 = vrot.slane %v8810_v12, 3 }
 0x7af   : > { %v2728_v2 = vsel %vm12093_vm14, %v11824_v0, %v2727_v30  ;;  %v2801_v56 = vsel %vm12094_vm9, %v11829_v52, %v2800_v42  ;;  %v12095_v30 = vrot.slane %v8785_v41, 2  ;;  %vm12096_vm14 = vmmov %vm12094_vm9  ;;  %v8859_v42 = vmul.f32 %v8679_v33, %v6740_v4 }
 0x7b0   : > { %12092 = vst [vmem:[#allocation54_spill] sm:$0xff] %v8823_v27  ;;  %v11831_v25 = vrot.slane %v8823_v27, 3  ;;  %v8869_v9 = vsel %vm11876_vm3, %v2728_v2, %v8765_v1 }
 0x7b1   : > { %v2803_v0 = vsel %vm12096_vm14, %v12095_v30, %v2802_v58  ;;  %v2881_v58 = vpack.c.bf16 %v8754_v51, %v8761_v26  ;;  %v2597_v51 = vmul.f32 %v8603_v11, %v6740_v4  ;;  %v8884_v26 = vmul.f32 %v8688_v34, %v6711_v48  ;;  %vm12112_vm14 = vmmov %vm12094_vm9 }
 0x7b2   : > { %v2773_v52 = vsel %vm11879_vm11, %v11831_v25, %v2772_v55  ;;  %v8919_v55 = vmul.f32 %v8679_v33, %v6746_v7  ;;  %v8927_v25 = vmul.f32 %v8688_v34, %v6717_v50 }
 0x7bd   : > { %5928 = vmatmul.msk.bf16.gmra.mxu3 %vm11826_vm10, %v5924_v36  ;;  %5926 = vmatmul.msk.bf16.gmra.mxu0 %vm11826_vm10, %v5924_v36  ;;  %v8802_v36 = vmul.f32 %v8688_v34, %v12067_v43  ;;  %vm12100_vm10 = vmmov %vm12098_vm12 }
 0x7be   : > { %v2698_v20 = vsel %vm12100_vm10, %v12099_v22, %v2697_v3  ;;  %v2771_v22 = vsel %vm11879_vm11, %v12101_v47, %v2770_v61  ;;  %v12102_v3 = vrot.slane %v8798_v44, 1  ;;  %v12104_v61 = vrot.slane %v8806_v29, 5 }
 0x7bf   : > { %v12103_v5 = vrot.slane %v8802_v36, 1  ;;  %vm12105_vm10 = vcmask 1042432  }
 0x7c0   : > { %v8877_v30 = vsel %vm11878_vm15, %v2801_v56, %v12102_v3  ;;  %v8894_v47 = vsel %vm12105_vm10, %v2696_v59, %v12104_v61  ;;  %v12106_v56 = vrot.slane %v8817_v10, 5  ;;  %vm12107_vm12 = vmmov %vm12105_vm10  ;;  %v2665_v61 = vrot.slane %v2597_v51, 7 }
 0x7c1   : > { %v8889_v2 = vsel %vm11878_vm15, %v2803_v0, %v12103_v5  ;;  %v2644_v0 = vmul.f32 %v8650_v19, %v8679_v33  ;;  %v12108_v5 = vrot.slane %v8829_v13, 2 }
 0x7c2   : > { %v8899_v3 = vsel %vm12107_vm12, %v2698_v20, %v12106_v56  ;;  %v8923_v56 = vmul.f32 %v8603_v11, %v6746_v7  ;;  %vm12123_vm12 = vmmov %vm12105_vm10 }
 0x7c3   : > { %v8911_v59 = vsel %vm12094_vm9, %v2771_v22, %v12108_v5  ;;  %v12111_v22 = vrot.slane %v8841_v38, 2  ;;  %vm12125_vm9 = vmmov %vm12105_vm10 }
 0x7c4   : > { %12109 = vst [vmem:[#allocation45_spill] sm:$0xff] %v8911_v59 }
 0x7c5   : > { %v8932_v5 = vsel %vm12112_vm14, %v2773_v52, %v12111_v22  ;;  %vm12127_vm14 = vmmov %vm12125_vm9 }
 0x7c6   : > { %12113 = vst [vmem:[#allocation37_spill] sm:$0xff] %v8932_v5 }
 0x7cf   : > { %v841_v6 = vpop.xlane.xlu1 %840 }
 0x7d0   : > { %v8915_v20 = vmul.f32 %v8594_v39, %v841_v6  ;;  %v8937_v39 = vmul.f32 %v8688_v34, %v6740_v4 }
 0x7d2   : > { %12110 = vst [vmem:[#allocation49_spill] sm:$0xff] %v8915_v20  ;;  %v2641_v27 = vmul.f32 %v8610_v57, %v8915_v20  ;;  %v2642_v12 = vmul.f32 %v8650_v19, %v8915_v20  ;;  %v2742_v17 = vrot.slane %v8915_v20, 4  ;;  %v2633_v63 = vmul.f32 %v8915_v20, %v12087_v16 }
 0x7d3   : > { %v2634_v52 = vmul.f32 %v8915_v20, %v12067_v43  ;;  %v2609_v51 = vmul.f32 %v8915_v20, %v6714_v49  ;;  %v2610_v22 = vmul.f32 %v8915_v20, %v12006_v46  ;;  %v2625_v57 = vmul.f32 %v8915_v20, %v6662_v14  ;;  %v12192_v14 = vld [vmem:[#allocation50_spill] sm:$0xff] }
 0x7d4   : > { %v2882_v6 = vpack.c.bf16 %v2643_v40, %v2641_v27  ;;  %v2883_v5 = vpack.c.bf16 %v2644_v0, %v2642_v12  ;;  %v12114_v19 = vrot.slane %v8679_v33, 4  ;;  %v2663_v16 = vrot.slane %v8919_v55, 7 }
 0x7d5   : > { %v2743_v49 = vsel %vm11876_vm3, %v8765_v1, %v2742_v17  ;;  %v12115_v46 = vrot.slane %v8859_v42, 7  ;;  %v2822_v40 = vrot.slane %v2633_v63, 1  ;;  %v2824_v27 = vrot.slane %v2634_v52, 1 }
 0x7d6   : > { %v2745_v59 = vsel %vm11876_vm3, %v2742_v17, %v12114_v19  ;;  %2944 = vmatpush.bf16.msra.mxu1 %v2882_v6  ;;  %2982 = vmatpush.bf16.msra.mxu3 %v2883_v5  ;;  %v2717_v12 = vrot.slane %v2609_v51, 5  ;;  %v2719_v0 = vrot.slane %v2610_v22, 5  ;;  %v2792_v19 = vrot.slane %v2625_v57, 2 }
 0x7d7   : > { %v2870_v11 = vpack.c.bf16 %v8774_v31, %v2745_v59  ;;  %v2871_v43 = vpack.c.bf16 %v8779_v62, %v2745_v59  ;;  %v2666_v24 = vsel %vm972_vm13, %v12115_v46, %v2665_v61  ;;  %v2626_v31 = vmul.f32 %v8915_v20, %v12070_v18 }
 0x7d8   : > { %v2601_v62 = vmul.f32 %v8915_v20, %v6711_v48  ;;  %v2602_v17 = vmul.f32 %v8915_v20, %v6717_v50  ;;  %v2868_v46 = vpack.c.bf16 %v2743_v49, %v8865_v45  ;;  %v2869_v1 = vpack.c.bf16 %v2743_v49, %v8869_v9 }
 0x7d9   : > { %2923 = vmatpush.bf16.msra.mxu0 %v2870_v11  ;;  %2961 = vmatpush.bf16.msra.mxu2 %v2871_v43  ;;  %v12116_v63 = vrot.slane %v8798_v44, 1  ;;  %v2667_v43 = vrot.slane %v8923_v56, 7  ;;  %v12117_v11 = vrot.slane %v8692_v21, 1  ;;  %v12118_v5 = vrot.slane %v8802_v36, 1 }
 0x7da   : > { %v12119_v52 = vrot.slane %v8698_v60, 1  ;;  %v12120_v49 = vrot.slane %v8806_v29, 5  ;;  %v12121_v9 = vpack.c.bf16 %v8750_v54, %v8740_v32  ;;  %2983 = vmatpush.bf16.msra.mxu3 %v2881_v58  ;;  %v12122_v21 = vrot.slane %v8724_v53, 5 }
 0x7db   : > { %v2823_v59 = vsel %vm11878_vm15, %v12116_v63, %v2822_v40  ;;  %v2827_v61 = vsel %vm11878_vm15, %v2822_v40, %v12117_v11  ;;  %v2825_v6 = vsel %vm11878_vm15, %v12118_v5, %v2824_v27  ;;  %v12124_v36 = vrot.slane %v8817_v10, 5 }
 0x7dc   : > { %v2829_v45 = vsel %vm11878_vm15, %v2824_v27, %v12119_v52  ;;  %v2718_v44 = vsel %vm12105_vm10, %v12120_v49, %v2717_v12  ;;  %2945 = vmatpush.bf16.msra.mxu1 %v12121_v9  ;;  %v2722_v56 = vsel %vm12123_vm12, %v2717_v12, %v12122_v21  ;;  %v12126_v60 = vrot.slane %v8744_v23, 5  ;;  %v12144_v49 = vld [vmem:[#allocation11_spill] sm:$0xff] }
 0x7dd   : > { %v2720_v51 = vsel %vm12125_vm9, %v12124_v36, %v2719_v0  ;;  %v2794_v29 = vrot.slane %v2626_v31, 2  ;;  %2924 = vmatpush.bf16.msra.mxu0 %v2868_v46  ;;  %2962 = vmatpush.bf16.msra.mxu2 %v2869_v1  ;;  %v12128_v57 = vrot.slane %v8769_v8, 2  ;;  %vm12129_vm10 = vcmask 1045504  }
 0x7de   : > { %v2724_v22 = vsel %vm12127_vm14, %v2719_v0, %v12126_v60  ;;  %v2687_v54 = vrot.slane %v2601_v62, 6  ;;  %v2689_v58 = vrot.slane %v2602_v17, 6  ;;  %v12130_v53 = vrot.slane %v8884_v26, 6  ;;  %vm12133_vm9 = vmmov %vm12129_vm10  ;;  %v12146_v26 = vld [vmem:[#allocation45_spill] sm:$0xff] }
 0x7df   : > { %v2797_v32 = vsel %vm12129_vm10, %v2792_v19, %v12128_v57  ;;  %vm12131_vm12 = vcmask 1041408   ;;  %v2878_v10 = vpack.c.bf16 %v2827_v61, %v2823_v59  ;;  %v2879_v27 = vpack.c.bf16 %v2829_v45, %v2825_v6 }
 0x7e0   : > { %v2844_v40 = vsel %vm12131_vm12, %v2666_v24, %v12130_v53  ;;  %v12132_v12 = vrot.slane %v8785_v41, 2  ;;  %v9012_v0 = vmul.f32 %v8688_v34, %v6746_v7  ;;  %v2866_v31 = vpack.c.bf16 %v2722_v56, %v2718_v44  ;;  %vm12135_vm14 = vmmov %vm12131_vm12  ;;  %v12145_v44 = vld [vmem:[#allocation46_spill] sm:$0xff] }
 0x7e1   : > { %v2867_v8 = vpack.c.bf16 %v2724_v22, %v2720_v51  ;;  %v12134_v46 = vrot.slane %v8790_v28, 6  ;;  %v12136_v17 = vrot.slane %v8794_v37, 6  ;;  %vm12137_vm10 = vmmov %vm12131_vm12  ;;  %2946 = vmatpush.bf16.msra.mxu1 %v2878_v10  ;;  %2984 = vmatpush.bf16.msra.mxu3 %v2879_v27  ;;  %v2876_v41 = vpack.c.bf16 %v8877_v30, %v2797_v32  ;;  %v12147_v51 = vld [vmem:[#allocation12_spill] sm:$0xff]  ;;  %v12148_v22 = vld [vmem:[#allocation37_spill] sm:$0xff] }
 0x7e2   : > { %v2799_v23 = vsel %vm12133_vm9, %v2794_v29, %v12132_v12  ;;  %v12138_v1 = vrot.slane %v8829_v13, 2  ;;  %vm12139_vm12 = vmmov %vm12133_vm9  ;;  %v2668_v59 = vsel %vm972_vm13, %v2663_v16, %v2667_v43  ;;  %v2686_v28 = vrot.slane %v8927_v25, 6  ;;  %2925 = vmatpush.bf16.msra.mxu0 %v2866_v31  ;;  %v12151_v10 = vld [vmem:[#allocation40_spill] sm:$0xff] }
 0x7e3   : > { %v2692_v62 = vsel %vm12135_vm14, %v2687_v54, %v12134_v46  ;;  %v2694_v24 = vsel %vm12137_vm10, %v2689_v58, %v12136_v17  ;;  %2963 = vmatpush.bf16.msra.mxu2 %v2867_v8  ;;  %v2877_v37 = vpack.c.bf16 %v8889_v2, %v2799_v23  ;;  %v12140_v11 = vrot.slane %v8841_v38, 2  ;;  %vm12142_vm14 = vmmov %vm12137_vm10  ;;  %v12153_v23 = vld [vmem:[#allocation53_spill] sm:$0xff]  ;;  %v12155_v8 = vld [vmem:[#allocation54_spill] sm:$0xff] }
 0x7e4   : > { %v2793_v63 = vsel %vm12139_vm12, %v12138_v1, %v2792_v19  ;;  %v2617_v30 = vmul.f32 %v8915_v20, %v6695_v35  ;;  %v2655_v13 = vrot.slane %v8937_v39, 7  ;;  %v2864_v19 = vpack.c.bf16 %v8894_v47, %v2692_v62  ;;  %vm12143_vm12 = vmmov %vm12137_vm10 }
 0x7e5   : > { %v2795_v61 = vsel %vm12133_vm9, %v12140_v11, %v2794_v29  ;;  %v2865_v5 = vpack.c.bf16 %v8899_v3, %v2694_v24  ;;  %v2618_v25 = vmul.f32 %v8915_v20, %v12075_v15  ;;  %v2593_v43 = vmul.f32 %v8915_v20, %v6740_v4  ;;  %2947 = vmatpush.bf16.msra.mxu1 %v2876_v41 }
 0x7e6   : > { %v12141_v2 = vmov %v12130_v53  ;;  %v2690_v6 = vsel %vm12137_vm10, %v2686_v28, %v2689_v58  ;;  %v2762_v52 = vrot.slane %v2617_v30, 3  ;;  %v2594_v39 = vmul.f32 %v8915_v20, %v6746_v7  ;;  %2985 = vmatpush.bf16.msra.mxu3 %v2877_v37  ;;  %2926 = vmatpush.bf16.msra.mxu0 %v2864_v19 }
 0x7e7   : > { %v2688_v38 = vsel %vm12142_vm14, %v12141_v2, %v2687_v54  ;;  %v2845_v47 = vsel %vm12143_vm12, %v2668_v59, %v2686_v28  ;;  %v2764_v3 = vrot.slane %v2618_v25, 3  ;;  %v2657_v45 = vrot.slane %v2593_v43, 7  ;;  %2964 = vmatpush.bf16.msra.mxu2 %v2865_v5  ;;  %v12149_v54 = vld [vmem:[#allocation47_spill] sm:$0xff] }
 0x7e8   : > { %v2589_v9 = vmul.f32 %v12145_v44, %v12144_v49  ;;  %v2874_v21 = vpack.c.bf16 %v2793_v63, %v12146_v26  ;;  %v2656_v56 = vrot.slane %v9012_v0, 7  ;;  %v2659_v36 = vrot.slane %v2594_v39, 7  ;;  %v6321_v63 = vld [vmem:[%s11693_s13 + $0x4] sm:$0xf]  ;;  %v5933_v59 = vld [vmem:[%s11693_s13 + $0x8] sm:$0xf0] }
 0x7e9   : > { %v2590_v60 = vmul.f32 %v12145_v44, %v12147_v51  ;;  %v2875_v29 = vpack.c.bf16 %v2795_v61, %v12148_v22  ;;  %v2862_v57 = vpack.c.bf16 %v2688_v38, %v2844_v40  ;;  %v2863_v32 = vpack.c.bf16 %v2690_v6, %v2845_v47  ;;  %v5931_v6 = vld [vmem:[%s11693_s13] sm:$0xf] }
 0x7ea   : > { %v12150_v58 = vrot.slane %v12149_v54, 3  ;;  %v12152_v27 = vrot.slane %v12151_v10, 3  ;;  %v12154_v31 = vrot.slane %v12153_v23, 3  ;;  %v12156_v46 = vrot.slane %v12155_v8, 3  ;;  %2948 = vmatpush.bf16.msra.mxu1 %v2874_v21  ;;  %v5939_v21 = vld [vmem:[%s11693_s13 + $0x10] sm:$0xf] }
 0x7eb   : > { %v2658_v17 = vsel %vm972_vm13, %v2655_v13, %v2657_v45  ;;  %2986 = vmatpush.bf16.msra.mxu3 %v2875_v29  ;;  %v12157_v40 = vrot.slane %v8859_v42, 7  ;;  %v2660_v41 = vsel %vm972_vm13, %v2656_v56, %v2659_v36  ;;  %v2664_v1 = vsel %vm972_vm13, %v2659_v36, %v2663_v16  ;;  %2927 = vmatpush.bf16.msra.mxu0 %v2862_v57  ;;  %v12181_v44 = vld [vmem:[#allocation2_spill] sm:$0xff] }
 0x7ec   : > { %v2763_v53 = vsel %vm11879_vm11, %v12150_v58, %v2762_v52  ;;  %v2767_v12 = vsel %vm11879_vm11, %v2762_v52, %v12152_v27  ;;  %v2765_v0 = vsel %vm11879_vm11, %v12154_v31, %v2764_v3  ;;  %v2769_v62 = vsel %vm11879_vm11, %v2764_v3, %v12156_v46  ;;  %2965 = vmatpush.bf16.msra.mxu2 %v2863_v32  ;;  %v6322_v52 = vld [vmem:[%s11693_s13 + $0x4] sm:$0xf0] }
 0x7ed   : > { %v2662_v24 = vsel %vm972_vm13, %v2657_v45, %v12157_v40  ;;  %v2872_v28 = vpack.c.bf16 %v2767_v12, %v2763_v53  ;;  %v2873_v42 = vpack.c.bf16 %v2769_v62, %v2765_v0  ;;  %v2587_v37 = vmul.f32 %v8679_v33, %v12144_v49  ;;  %v6323_v45 = vld [vmem:[%s11693_s13 + $0x14] sm:$0xf] }
 0x7ee   : > { %v2588_v55 = vmul.f32 %v8679_v33, %v12147_v51  ;;  %v2860_v11 = vpack.c.bf16 %v2662_v24, %v2658_v17  ;;  %v2861_v16 = vpack.c.bf16 %v2664_v1, %v2660_v41  ;;  %v5936_v61 = vor.u32 %v6321_v63, %v5933_v59 }
 0x7ef   : > { %v2842_v30 = vsel %vm972_vm13, %v2589_v9, %v2655_v13  ;;  %2949 = vmatpush.bf16.msra.mxu1 %v2872_v28  ;;  %2987 = vmatpush.bf16.msra.mxu3 %v2873_v42  ;;  %vm2908_vm9 = vcmask 793600   ;;  %v2843_v19 = vsel %vm972_vm13, %v2590_v60, %v2656_v56  ;;  %v2585_v43 = vmul.f32 %v8915_v20, %v12144_v49  ;;  %v5941_v9 = vld [vmem:[%s11693_s13 + $0x18] sm:$0x10]  ;;  %v6324_v56 = vld [vmem:[%s11693_s13 + $0x14] sm:$0x10] }
 0x7f0   : > { %2928 = vmatpush.bf16.msra.mxu0 %v2860_v11  ;;  %2966 = vmatpush.bf16.msra.mxu2 %v2861_v16  ;;  %v2858_v5 = vpack.c.bf16 %v2842_v30, %v2587_v37  ;;  %v2859_v25 = vpack.c.bf16 %v2843_v19, %v2588_v55  ;;  %v2586_v2 = vmul.f32 %v8915_v20, %v12147_v51 }
 0x7f1   : > { %v2583_v13 = vmul.f32 %v8688_v34, %v12144_v49  ;;  %v2584_v38 = vmul.f32 %v8688_v34, %v12147_v51  ;;  %v5932_v3 = vor.u32 %v6322_v52, %v5931_v6  ;;  %v5944_v26 = vor.u32 %v6323_v45, %v5941_v9  ;;  %v12191_v51 = vld [vmem:[#allocation6_spill] sm:$0xff] }
 0x7f2   : > { %5945 = vmatmul.msk.bf16.vlgmr.msra.gmra.mxu1 %vm2908_vm9, %v5936_v61  ;;  %5947 = vmatmul.msk.bf16.vlgmr.msra.gmra.mxu3 %vm2908_vm9, %v5936_v61  ;;  %v5940_v36 = vor.u32 %v6324_v56, %v5939_v21 }
 0x7f3   : > { %v2856_v39 = vpack.c.bf16 %v2585_v43, %v2583_v13  ;;  %v2857_v47 = vpack.c.bf16 %v2586_v2, %v2584_v38  ;;  %v2511_v27 = vpop.f32.mrf.mxu1 }
 0x7f4   : > { %2929 = vmatpush.bf16.msra.mxu0 %v2858_v5  ;;  %2967 = vmatpush.bf16.msra.mxu2 %v2859_v25 }
 0x7f5   : > { %v2473_v22 = vpop.f32.mrf.mxu3 }
 0x7f8   : > { %2930 = vmatpush.bf16.msra.mxu0 %v2856_v39  ;;  %2968 = vmatpush.bf16.msra.mxu2 %v2857_v47 }
 0x7f9   : > { %v2454_v60 = vpop.f32.mrf.mxu2 }
 0x7fa   : > { %v2474_v29 = vadd.f32 %v2473_v22, %v2454_v60 }
 0x7fb   : > { %2931 = vmatmul.bf16.vlgmr.msra.gmra.mxu0 %v5932_v3  ;;  %2969 = vmatmul.bf16.vlgmr.msra.gmra.mxu2 %v5932_v3  ;;  %v9127_v46 = vpop.f32.mrf.mxu1 }
 0x7fc   : > { %12163 = vst [vmem:[#allocation44_spill] sm:$0xff] %v9127_v46 }
 0x7fd   : > { %v9119_v32 = vpop.f32.mrf.mxu3 }
 0x7fe   : > { %12159 = vst [vmem:[#allocation33_spill] sm:$0xff] %v9119_v32 }
 0x801   : > { %v9117_v57 = vpop.f32.mrf.mxu2 }
 0x802   : > { %5946 = vmatmul.msk.bf16.gmra.mxu1 %vm2908_vm9, %v5944_v26  ;;  %5948 = vmatmul.msk.bf16.gmra.mxu3 %vm2908_vm9, %v5944_v26  ;;  %12158 = vst [vmem:[#allocation51_spill] sm:$0xff] %v9117_v57 }
 0x803   : > { %v2516_v1 = vpop.f32.mrf.mxu1 }
 0x805   : > { %v2478_v58 = vpop.f32.mrf.mxu3 }
 0x809   : > { %v2459_v54 = vpop.f32.mrf.mxu2 }
 0x80a   : > { %v2479_v53 = vadd.f32 %v2478_v58, %v2459_v54 }
 0x80b   : > { %2936 = vmatmul.bf16.gmra.mxu0 %v5940_v36  ;;  %2974 = vmatmul.bf16.gmra.mxu2 %v5940_v36  ;;  %v9141_v11 = vpop.f32.mrf.mxu1 }
 0x80c   : > { %12170 = vst [vmem:[#allocation45_spill] sm:$0xff] %v9141_v11 }
 0x80d   : > { %v9123_v12 = vpop.f32.mrf.mxu3 }
 0x80e   : > { %12161 = vst [vmem:[#allocation34_spill] sm:$0xff] %v9123_v12 }
 0x811   : > { %v9121_v10 = vpop.f32.mrf.mxu2 }
 0x812   : > { %12160 = vst [vmem:[#allocation39_spill] sm:$0xff] %v9121_v10 }
 0x819   : > { %v2530_v31 = vpop.f32.mrf.mxu2 }
 0x81a   : > { %v2531_v8 = vadd.f32 %v2530_v31, %v2511_v27 }
 0x821   : > { %v9133_v24 = vpop.f32.mrf.mxu2 }
 0x822   : > { %12166 = vst [vmem:[#allocation42_spill] sm:$0xff] %v9133_v24 }
 0x829   : > { %v2535_v59 = vpop.f32.mrf.mxu2 }
 0x82a   : > { %v2492_v23 = vpop.f32.mrf.mxu0  ;;  %v2536_v42 = vadd.f32 %v2535_v59, %v2516_v1 }
 0x82b   : > { %v9125_v0 = vadd.f32 %v2492_v23, %v2474_v29 }
 0x82d   : > { %12162 = vst [vmem:[#allocation35_spill] sm:$0xff] %v9125_v0 }
 0x830   : > { %v2549_v62 = vpop.f32.mrf.mxu3 }
 0x831   : > { %v9129_v17 = vadd.f32 %v2549_v62, %v2531_v8  ;;  %v9177_v60 = vpop.f32.mrf.mxu2 }
 0x832   : > { %v9131_v40 = vpop.f32.mrf.mxu0  ;;  %12172 = vst [vmem:[#allocation47_spill] sm:$0xff] %v9177_v60 }
 0x833   : > { %12164 = vst [vmem:[#allocation36_spill] sm:$0xff] %v9129_v17 }
 0x834   : > { %12165 = vst [vmem:[#allocation38_spill] sm:$0xff] %v9131_v40 }
 0x838   : > { %v9135_v41 = vpop.f32.mrf.mxu3 }
 0x839   : > { %12167 = vst [vmem:[#allocation52_spill] sm:$0xff] %v9135_v41 }
 0x83a   : > { %v2497_v63 = vpop.f32.mrf.mxu0 }
 0x83b   : > { %v9137_v28 = vadd.f32 %v2497_v63, %v2479_v53 }
 0x83d   : > { %12168 = vst [vmem:[#allocation32_spill] sm:$0xff] %v9137_v28 }
 0x840   : > { %v2554_v37 = vpop.f32.mrf.mxu3 }
 0x841   : > { %v9139_v55 = vadd.f32 %v2554_v37, %v2536_v42 }
 0x842   : > { %v9143_v16 = vpop.f32.mrf.mxu0 }
 0x843   : > { %12169 = vst [vmem:[#allocation41_spill] sm:$0xff] %v9139_v55 }
 0x844   : > { %12171 = vst [vmem:[#allocation37_spill] sm:$0xff] %v9143_v16 }
 0x848   : > { %v9179_v22 = vpop.f32.mrf.mxu3 }
 0x849   : > { %12173 = vst [vmem:[#allocation40_spill] sm:$0xff] %v9179_v22 }
 0x86f   : > { %v2951_v61 = vpop.f32.mrf.mxu1 }
 0x875   : > { %v2989_v54 = vpop.f32.mrf.mxu3 }
 0x877   : > { %v2953_v25 = vpop.f32.mrf.mxu1 }
 0x878   : > { %v2932_v30 = vpop.f32.mrf.mxu0 }
 0x879   : > { %v2952_v19 = vadd.f32 %v2951_v61, %v2932_v30 }
 0x87b   : > { %vm2999_vm14 = vcmp.ge.f32.partialorder %v2952_v19, 0.0  ;;  %v3007_v5 = vmul.f32 0.01, %v2952_v19 }
 0x87d   : > { %v9145_v43 = vsel %vm2999_vm14, %v2952_v19, %v3007_v5  ;;  %v2991_v31 = vpop.f32.mrf.mxu3 }
 0x87e   : > { %3215 = vrot.lane.b32.xlu2 %v9145_v43, %s11991_s25  ;;  %3247 = vrot.lane.b32.xlu1 %v9145_v43, %s11945_s0  ;;  %v2970_v29 = vpop.f32.mrf.mxu2  ;;  %v11864_v32 = vrot.slane %v9145_v43, 4 }
 0x87f   : > { %3151 = vrot.lane.b32.xlu0 %v9145_v43, %s11971_s30  ;;  %v2956_v13 = vpop.f32.mrf.mxu1  ;;  %v2990_v58 = vadd.f32 %v2989_v54, %v2970_v29 }
 0x880   : > { %v2934_v2 = vpop.f32.mrf.mxu0 }
 0x881   : > { %v2954_v38 = vadd.f32 %v2953_v25, %v2934_v2  ;;  %v3008_v53 = vmul.f32 0.01, %v2990_v58 }
 0x883   : > { %v3009_v52 = vmul.f32 0.01, %v2954_v38  ;;  %vm3001_vm10 = vcmp.ge.f32.partialorder %v2954_v38, 0.0 }
 0x885   : > { %v9159_v3 = vsel %vm3001_vm10, %v2954_v38, %v3009_v52  ;;  %vm3000_vm10 = vcmp.ge.f32.partialorder %v2990_v58, 0.0  ;;  %v2994_v63 = vpop.f32.mrf.mxu3 }
 0x886   : > { %3183 = vrot.lane.b32.xlu2 %v9145_v43, %s11970_s27  ;;  %3055 = vrot.lane.b32.xlu1 %v9145_v43, %s11948_s24  ;;  %v9193_v27 = vsel %vm3000_vm10, %v2990_v58, %v3008_v53  ;;  %v2972_v23 = vpop.f32.mrf.mxu2  ;;  %v3379_v60 = vrot.slane %v9159_v3, 4 }
 0x887   : > { %3119 = vrot.lane.b32.xlu0 %v9145_v43, %s11946_s21  ;;  %v2958_v9 = vpop.f32.mrf.mxu1  ;;  %v2992_v8 = vadd.f32 %v2991_v31, %v2972_v23 }
 0x888   : > { %v2937_v6 = vpop.f32.mrf.mxu0 }
 0x889   : > { %v2957_v39 = vadd.f32 %v2956_v13, %v2937_v6  ;;  %v3010_v62 = vmul.f32 0.01, %v2992_v8 }
 0x88b   : > { %vm3003_vm12 = vcmp.ge.f32.partialorder %v2957_v39, 0.0  ;;  %v3011_v47 = vmul.f32 0.01, %v2957_v39 }
 0x88d   : > { %v9161_v45 = vsel %vm3003_vm12, %v2957_v39, %v3011_v47  ;;  %vm3002_vm12 = vcmp.ge.f32.partialorder %v2992_v8, 0.0  ;;  %v2996_v5 = vpop.f32.mrf.mxu3 }
 0x88e   : > { %3121 = vrot.lane.b32.xlu2 %v9159_v3, %s11946_s21  ;;  %3155 = vrot.lane.b32.xlu1 %v9161_v45, %s11971_s30  ;;  %v9213_v1 = vsel %vm3002_vm12, %v2992_v8, %v3010_v62  ;;  %v2975_v59 = vpop.f32.mrf.mxu2  ;;  %vm12194_vm12 = vcmask 1042432  }
 0x88f   : > { %3087 = vrot.lane.b32.xlu0 %v9145_v43, %s11992_s3  ;;  %v2995_v42 = vadd.f32 %v2994_v63, %v2975_v59  ;;  %v3381_v28 = vrot.slane %v9213_v1, 4 }
 0x890   : > { %v2939_v26 = vpop.f32.mrf.mxu0 }
 0x891   : > { %v2959_v21 = vadd.f32 %v2958_v9, %v2939_v26  ;;  %v3012_v37 = vmul.f32 0.01, %v2995_v42 }
 0x893   : > { %vm3005_vm14 = vcmp.ge.f32.partialorder %v2959_v21, 0.0  ;;  %v3013_v56 = vmul.f32 0.01, %v2959_v21 }
 0x895   : > { %v9169_v36 = vsel %vm3005_vm14, %v2959_v21, %v3013_v56  ;;  %vm3004_vm14 = vcmp.ge.f32.partialorder %v2995_v42, 0.0 }
 0x896   : > { %3249 = vrot.lane.b32.xlu2 %v9159_v3, %s11945_s0  ;;  %3061 = vrot.lane.b32.xlu1 %v9169_v36, %s11948_s24  ;;  %v9235_v30 = vsel %vm3004_vm14, %v2995_v42, %v3012_v37  ;;  %v2977_v2 = vpop.f32.mrf.mxu2  ;;  %v3387_v20 = vrot.slane %v9169_v36, 4  ;;  %vm12195_vm14 = vmmov %vm12194_vm12 }
 0x897   : > { %3089 = vrot.lane.b32.xlu0 %v9159_v3, %s11992_s3  ;;  %v2997_v13 = vadd.f32 %v2996_v5, %v2977_v2 }
 0x899   : > { %v3014_v38 = vmul.f32 0.01, %v2997_v13  ;;  %vm3006_vm10 = vcmp.ge.f32.partialorder %v2997_v13, 0.0 }
 0x89b   : > { %v3022_v47 = vsel %vm3006_vm10, %v2997_v13, %v3014_v38  ;;  %v3383_v13 = vrot.slane %v9161_v45, 4  ;;  %vm12198_vm10 = vmmov %vm12194_vm12 }
 0x89c   : > { %v3389_v17 = vrot.slane %v3022_v47, 4 }
 0x89e   : > { %3057 = vrot.lane.b32.xlu2 %v9159_v3, %s11948_s24  ;;  %3189 = vrot.lane.b32.xlu1 %v9169_v36, %s11970_s27 }
 0x89f   : > { %3217 = vrot.lane.b32.xlu0 %v9159_v3, %s11991_s25 }
 0x8a6   : > { %3185 = vrot.lane.b32.xlu2 %v9159_v3, %s11970_s27  ;;  %3029 = vrot.lane.b32.xlu1 %v9169_v36, %s11947_s23 }
 0x8a7   : > { %3123 = vrot.lane.b32.xlu0 %v9161_v45, %s11946_s21 }
 0x8ae   : > { %3091 = vrot.lane.b32.xlu2 %v9161_v45, %s11992_s3  ;;  %3127 = vrot.lane.b32.xlu1 %v9193_v27, %s11946_s21 }
 0x8af   : > { %3251 = vrot.lane.b32.xlu0 %v9161_v45, %s11945_s0 }
 0x8b6   : > { %3219 = vrot.lane.b32.xlu2 %v9161_v45, %s11991_s25  ;;  %3095 = vrot.lane.b32.xlu1 %v9193_v27, %s11992_s3 }
 0x8b7   : > { %3059 = vrot.lane.b32.xlu0 %v9161_v45, %s11948_s24 }
 0x8be   : > { %3125 = vrot.lane.b32.xlu2 %v9169_v36, %s11946_s21  ;;  %3223 = vrot.lane.b32.xlu1 %v9193_v27, %s11991_s25 }
 0x8bf   : > { %3187 = vrot.lane.b32.xlu0 %v9161_v45, %s11970_s27 }
 0x8c6   : > { %3157 = vrot.lane.b32.xlu2 %v9169_v36, %s11971_s30  ;;  %3257 = vrot.lane.b32.xlu1 %v9213_v1, %s11945_s0 }
 0x8c7   : > { %3027 = vrot.lane.b32.xlu0 %v9161_v45, %s11947_s23  ;;  %v3385_v45 = vrot.slane %v9235_v30, 4 }
 0x8ce   : > { %3159 = vrot.lane.b32.xlu2 %v9193_v27, %s11971_s30  ;;  %3097 = vrot.lane.b32.xlu1 %v9213_v1, %s11992_s3 }
 0x8cf   : > { %3253 = vrot.lane.b32.xlu0 %v9169_v36, %s11945_s0 }
 0x8d6   : > { %3255 = vrot.lane.b32.xlu2 %v9193_v27, %s11945_s0  ;;  %3065 = vrot.lane.b32.xlu1 %v9213_v1, %s11948_s24 }
 0x8d7   : > { %3093 = vrot.lane.b32.xlu0 %v9169_v36, %s11992_s3 }
 0x8d8   : > { %v9233_v61 = vpop.permute.xlu2 %3215 }
 0x8de   : > { %3225 = vrot.lane.b32.xlu2 %v9213_v1, %s11991_s25  ;;  %3227 = vrot.lane.b32.xlu1 %v9235_v30, %s11991_s25 }
 0x8df   : > { %3221 = vrot.lane.b32.xlu0 %v9169_v36, %s11991_s25  ;;  %v3390_v36 = vsel %vm11876_vm3, %v3385_v45, %v3389_v17 }
 0x8e0   : > { %v9243_v19 = vpop.permute.xlu2 %3183 }
 0x8e1   : > { %12174 = vst [vmem:[#allocation53_spill] sm:$0xff] %v9243_v19 }
 0x8e6   : > { %3035 = vrot.lane.b32.xlu1 %v9235_v30, %s11947_s23  ;;  %3099 = vrot.lane.b32.xlu2 %v9235_v30, %s11992_s3 }
 0x8e7   : > { %3063 = vrot.lane.b32.xlu0 %v9193_v27, %s11948_s24 }
 0x8e8   : > { %v9251_v25 = vpop.permute.xlu2 %3121 }
 0x8ee   : > { %3023 = vrot.lane.b32.xlu1 %v9145_v43, %s11947_s23  ;;  %3259 = vrot.lane.b32.xlu2 %v9235_v30, %s11945_s0 }
 0x8ef   : > { %3191 = vrot.lane.b32.xlu0 %v9193_v27, %s11970_s27 }
 0x8f0   : > { %v9259_v6 = vpop.permute.xlu2 %3249  ;;  %v9261_v39 = vpop.permute.xlu1 %3247 }
 0x8f1   : > { %v3152_v52 = vpop.permute.xlu0 %3151 }
 0x8f6   : > { %3067 = vrot.lane.b32.xlu2 %v9235_v30, %s11948_s24  ;;  %3165 = vrot.lane.b32.xlu1 %v3022_v47, %s11971_s30 }
 0x8f7   : > { %3129 = vrot.lane.b32.xlu0 %v9213_v1, %s11946_s21 }
 0x8f8   : > { %v9268_v9 = vpop.permute.xlu2 %3057  ;;  %v9272_v21 = vpop.permute.xlu1 %3055 }
 0x8f9   : > { %v9270_v26 = vpop.permute.xlu0 %3119 }
 0x8fe   : > { %3195 = vrot.lane.b32.xlu2 %v9235_v30, %s11970_s27  ;;  %3033 = vrot.lane.b32.xlu1 %v9213_v1, %s11947_s23 }
 0x8ff   : > { %3193 = vrot.lane.b32.xlu0 %v9213_v1, %s11970_s27 }
 0x900   : > { %v9280_v56 = vpop.permute.xlu2 %3185  ;;  %v9284_v54 = vpop.permute.xlu1 %3155 }
 0x901   : > { %12175 = vst [vmem:[#allocation54_spill] sm:$0xff] %v9280_v56  ;;  %v9282_v29 = vpop.permute.xlu0 %3087 }
 0x902   : > { %12176 = vst [vmem:[#allocation55_spill] sm:$0xff] %v9284_v54 }
 0x906   : > { %3133 = vrot.lane.b32.xlu2 %v3022_v47, %s11946_s21 }
 0x907   : > { %3131 = vrot.lane.b32.xlu0 %v9235_v30, %s11946_s21 }
 0x908   : > { %v9289_v58 = vpop.permute.xlu2 %3091  ;;  %v9296_v23 = vpop.permute.xlu1 %3061 }
 0x909   : > { %v9291_v53 = vpop.permute.xlu0 %3089  ;;  %12177 = vst [vmem:[#allocation56_spill] sm:$0xff] %v9296_v23  ;;  %v12190_v23 = vld [vmem:[#allocation4_spill] sm:$0xff] }
 0x90e   : > { %3261 = vrot.lane.b32.xlu2 %v3022_v47, %s11945_s0 }
 0x90f   : > { %3163 = vrot.lane.b32.xlu0 %v9235_v30, %s11971_s30  ;;  %v3386_v30 = vsel %vm11876_vm3, %v3381_v28, %v3385_v45 }
 0x910   : > { %v9298_v31 = vpop.permute.xlu2 %3219  ;;  %v9308_v59 = vpop.permute.xlu1 %3189 }
 0x911   : > { %v9300_v8 = vpop.permute.xlu0 %3217  ;;  %12178 = vst [vmem:[#allocation57_spill] sm:$0xff] %v9308_v59 }
 0x916   : > { %3229 = vrot.lane.b32.xlu2 %v3022_v47, %s11991_s25 }
 0x917   : > { %3101 = vrot.lane.b32.xlu0 %v3022_v47, %s11992_s3 }
 0x918   : > { %v9304_v62 = vpop.permute.xlu2 %3125  ;;  %v9317_v5 = vpop.permute.xlu1 %3029 }
 0x919   : > { %v9306_v63 = vpop.permute.xlu0 %3123  ;;  %12180 = vst [vmem:[#allocation59_spill] sm:$0xff] %v9317_v5  ;;  %v12188_v5 = vld [vmem:[#allocation9_spill] sm:$0xff] }
 0x91e   : > { %3153 = vrot.lane.b32.xlu2 %v9159_v3, %s11971_s30 }
 0x91f   : > { %3069 = vrot.lane.b32.xlu0 %v3022_v47, %s11948_s24 }
 0x920   : > { %v9313_v42 = vpop.permute.xlu2 %3157 }
 0x921   : > { %12179 = vst [vmem:[#allocation58_spill] sm:$0xff] %v9313_v42  ;;  %v9315_v37 = vpop.permute.xlu0 %3251 }
 0x926   : > { %3037 = vrot.lane.b32.xlu2 %v3022_v47, %s11947_s23 }
 0x927   : > { %3197 = vrot.lane.b32.xlu0 %v3022_v47, %s11970_s27  ;;  %v3128_v47 = vpop.permute.xlu1 %3127 }
 0x928   : > { %v3160_v2 = vpop.permute.xlu2 %3159  ;;  %v3139_v10 = vsel %vm732_vm5, %v3128_v47, %v9270_v26  ;;  %v3135_v12 = vsel %vm732_vm5, %v9270_v26, %v3128_v47  ;;  %v6442_v47 = vld [vmem:[%s11931_s2 + $0x18] ss:$0 sm:$0xff] }
 0x929   : > { %v9322_v38 = vpop.permute.xlu0 %3059  ;;  %v3167_v33 = vsel %vm743_vm4, %v3152_v52, %v3160_v2  ;;  %v3171_v34 = vsel %vm743_vm4, %v3160_v2, %v3152_v52  ;;  %v3388_v52 = vsel %vm11876_vm3, %v3383_v13, %v3387_v20 }
 0x92a   : > { %v9330_v55 = vmul.f32 %v3167_v33, %v6695_v35  ;;  %v9333_v41 = vmul.f32 %v3171_v34, %v12075_v15  ;;  %v3384_v33 = vsel %vm11876_vm3, %v3379_v60, %v3383_v13  ;;  %v9396_v15 = vsel %vm11876_vm3, %v11864_v32, %v3379_v60 }
 0x92b   : > { %v9402_v35 = vmul.f32 %v3139_v10, %v12188_v5  ;;  %v6441_v10 = vld [vmem:[%s11931_s2 + $0x10] ss:$0 sm:$0xff] }
 0x92c   : > { %12182 = vst [vmem:[#allocation2_spill] sm:$0xff] %v9330_v55  ;;  %v11853_v22 = vrot.slane %v9330_v55, 3  ;;  %v11852_v0 = vrot.slane %v9333_v41, 3 }
 0x92d   : > { %12183 = vst [vmem:[#allocation60_spill] sm:$0xff] %v9333_v41 }
 0x92e   : > { %3025 = vrot.lane.b32.xlu2 %v9159_v3, %s11947_s23  ;;  %v3497_v34 = vsel %vm11879_vm11, %v3388_v52, %v11853_v22  ;;  %v3498_v2 = vsel %vm11879_vm11, %v3390_v36, %v11852_v0 }
 0x92f   : > { %3161 = vrot.lane.b32.xlu0 %v9213_v1, %s11971_s30  ;;  %v3517_v20 = vpack.c.bf16 %v3497_v34, %v3384_v33  ;;  %v3518_v17 = vpack.c.bf16 %v3498_v2, %v3386_v30  ;;  %v9360_v13 = vpop.permute.xlu1 %3095 }
 0x930   : > { %v9354_v11 = vpop.permute.xlu2 %3255 }
 0x931   : > { %v9356_v3 = vpop.permute.xlu0 %3187  ;;  %3567 = vmatpush.bf16.msrb.mxu0 %v3517_v20  ;;  %3605 = vmatpush.bf16.msrb.mxu2 %v3518_v17  ;;  %v3263_v42 = vsel %vm776_vm1, %v9261_v39, %v9354_v11 }
 0x932   : > { %12184 = vst [vmem:[#allocation61_spill] sm:$0xff] %v9356_v3 }
 0x937   : > { %3031 = vrot.lane.b32.xlu0 %v9193_v27, %s11947_s23  ;;  %v3224_v1 = vpop.permute.xlu1 %3223 }
 0x938   : > { %v3226_v45 = vpop.permute.xlu2 %3225  ;;  %v3231_v54 = vsel %vm765_vm0, %v9233_v61, %v3224_v1 }
 0x939   : > { %v9362_v52 = vpop.permute.xlu0 %3027  ;;  %v3236_v60 = vsel %vm765_vm0, %v3226_v45, %v9300_v8 }
 0x93a   : > { %12185 = vst [vmem:[#allocation62_spill] sm:$0xff] %v9362_v52  ;;  %v3242_v49 = vmul.f32 %v3236_v60, %v12191_v51 }
 0x93f   : > { %v3258_v30 = vpop.permute.xlu1 %3257 }
 0x940   : > { %v9364_v36 = vpop.permute.xlu2 %3099 }
 0x941   : > { %v3254_v0 = vpop.permute.xlu0 %3253 }
 0x947   : > { %v9370_v17 = vpop.permute.xlu1 %3097 }
 0x948   : > { %v3260_v33 = vpop.permute.xlu2 %3259 }
 0x949   : > { %v9366_v34 = vpop.permute.xlu0 %3093 }
 0x94a   : > { %12186 = vst [vmem:[#allocation63_spill] sm:$0xff] %v9366_v34 }
 0x94f   : > { %v9376_v46 = vpop.permute.xlu1 %3065 }
 0x950   : > { %v9368_v2 = vpop.permute.xlu2 %3067 }
 0x951   : > { %v3222_v20 = vpop.permute.xlu0 %3221 }
 0x957   : > { %v3228_v19 = vpop.permute.xlu1 %3227 }
 0x958   : > { %v9372_v22 = vpop.permute.xlu2 %3195 }
 0x959   : > { %v9374_v24 = vpop.permute.xlu0 %3063 }
 0x960   : > { %v9378_v16 = vpop.permute.xlu2 %3133 }
 0x961   : > { %v9380_v40 = vpop.permute.xlu0 %3191 }
 0x962   : > { %12187 = vst [vmem:[#allocation64_spill] sm:$0xff] %v9380_v40  ;;  %v12189_v40 = vrot.slane %v9193_v27, 4 }
 0x968   : > { %v3262_v57 = vpop.permute.xlu2 %3261 }
 0x969   : > { %v9387_v41 = vpop.permute.xlu0 %3129  ;;  %v3266_v55 = vsel %vm776_vm1, %v3254_v0, %v3262_v57  ;;  %v3270_v59 = vsel %vm776_vm1, %v3262_v57, %v3254_v0  ;;  %v9410_v57 = vsel %vm11876_vm3, %v12189_v40, %v3381_v28  ;;  %v3232_v0 = vsel %vm765_vm0, %v9300_v8, %v3226_v45 }
 0x96a   : > { %v3277_v26 = vmul.f32 %v6441_v10, %v3266_v55  ;;  %v3278_v32 = vmul.f32 %v6442_v47, %v3270_v59  ;;  %v3235_v40 = vsel %vm765_vm0, %v3224_v1, %v9233_v61  ;;  %v3264_v28 = vsel %vm776_vm1, %v9259_v6, %v3258_v30 }
 0x96b   : > { %v3265_v8 = vsel %vm776_vm1, %v9315_v37, %v3260_v33  ;;  %v3269_v55 = vsel %vm776_vm1, %v3260_v33, %v9315_v37  ;;  %v3233_v59 = vsel %vm765_vm0, %v9298_v31, %v3228_v19  ;;  %v3237_v61 = vsel %vm765_vm0, %v3228_v19, %v9298_v31 }
 0x96c   : > { %v3531_v45 = vpack.c.bf16 %v3277_v26, %v3277_v26  ;;  %v3532_v1 = vpack.c.bf16 %v3278_v32, %v3278_v32  ;;  %v3241_v56 = vmul.f32 %v3232_v0, %v12190_v23  ;;  %v3268_v37 = vsel %vm776_vm1, %v3258_v30, %v9259_v6 }
 0x96d   : > { %v3275_v33 = vmul.f32 %v6441_v10, %v3265_v8  ;;  %v3276_v18 = vmul.f32 %v6442_v47, %v3269_v55  ;;  %v9454_v32 = vmul.f32 %v3231_v54, %v12190_v23  ;;  %v3273_v31 = vmul.f32 %v6441_v10, %v3264_v28 }
 0x96e   : > { %v3562_v52 = vand.u32 %v3531_v45, %v12192_v14  ;;  %v3565_v19 = vand.u32 %v3532_v1, %v12192_v14  ;;  %v3243_v26 = vmul.f32 %v3233_v59, %v12190_v23  ;;  %v3244_v0 = vmul.f32 %v3237_v61, %v12191_v51 }
 0x96f   : > { %v3274_v60 = vmul.f32 %v6442_v47, %v3268_v37  ;;  %v9465_v54 = vmul.f32 %v3235_v40, %v12191_v51  ;;  %v3267_v30 = vsel %vm776_vm1, %v9354_v11, %v9261_v39  ;;  %v3471_v55 = vrot.slane %v3242_v49, 1 }
 0x970   : > { %v3230_v34 = vpop.permute.xlu2 %3229  ;;  %3587 = vmatpush.bf16.msrb.mxu1 %v3562_v52  ;;  %3625 = vmatpush.bf16.msrb.mxu3 %v3565_v19  ;;  %v3469_v52 = vrot.slane %v3241_v56, 1  ;;  %v3529_v59 = vpack.c.bf16 %v3275_v33, %v3273_v31  ;;  %v3473_v45 = vrot.slane %v3243_v26, 1  ;;  %v3475_v1 = vrot.slane %v3244_v0, 1 }
 0x971   : > { %v9458_v3 = vpop.permute.xlu0 %3193  ;;  %v3234_v6 = vsel %vm765_vm0, %v3222_v20, %v3230_v34  ;;  %v3238_v14 = vsel %vm765_vm0, %v3230_v34, %v3222_v20  ;;  %v3530_v61 = vpack.c.bf16 %v3276_v18, %v3274_v60  ;;  %v3467_v20 = vrot.slane %v9454_v32, 1 }
 0x972   : > { %v3245_v28 = vmul.f32 %v3234_v6, %v12190_v23  ;;  %v3246_v8 = vmul.f32 %v3238_v14, %v12191_v51  ;;  %v3271_v40 = vmul.f32 %v6441_v10, %v3263_v42  ;;  %v3272_v19 = vmul.f32 %v6442_v47, %v3267_v30  ;;  %v12193_v42 = vld [vmem:[#allocation10_spill] sm:$0xff] }
 0x973   : > { %v3142_v11 = vsel %vm732_vm5, %v9378_v16, %v9304_v62  ;;  %v11877_v39 = vrot.slane %v9465_v54, 1  ;;  %v3138_v18 = vsel %vm732_vm5, %v9304_v62, %v9378_v16  ;;  %v9486_v10 = vmul.f32 %v3135_v12, %v12193_v42 }
 0x974   : > { %v3477_v37 = vrot.slane %v3245_v28, 1  ;;  %v3479_v34 = vrot.slane %v3246_v8, 1  ;;  %3588 = vmatpush.bf16.msrb.mxu1 %v3529_v59  ;;  %3626 = vmatpush.bf16.msrb.mxu3 %v3530_v61  ;;  %v3470_v31 = vsel %vm11878_vm15, %v3467_v20, %v3469_v52  ;;  %v3149_v26 = vmul.f32 %v3142_v11, %v12188_v5 }
 0x975   : > { %v3474_v0 = vsel %vm11878_vm15, %v3469_v52, %v3473_v45  ;;  %v3472_v16 = vsel %vm11878_vm15, %v11877_v39, %v3471_v55  ;;  %v3476_v62 = vsel %vm11878_vm15, %v3471_v55, %v3475_v1  ;;  %v3347_v60 = vrot.slane %v9402_v35, 5  ;;  %v12216_v35 = vld [vmem:[#allocation56_spill] sm:$0xff] }
 0x976   : > { %v3478_v49 = vsel %vm11878_vm15, %v3473_v45, %v3477_v37  ;;  %v3480_v56 = vsel %vm11878_vm15, %v3475_v1, %v3479_v34  ;;  %v3150_v12 = vmul.f32 %v3138_v18, %v12193_v42  ;;  %v3136_v6 = vsel %vm732_vm5, %v9251_v25, %v9387_v41 }
 0x977   : > { %v3527_v47 = vpack.c.bf16 %v3271_v40, %v3478_v49  ;;  %v3528_v33 = vpack.c.bf16 %v3272_v19, %v3480_v56  ;;  %v3140_v14 = vsel %vm732_vm5, %v9387_v41, %v9251_v25  ;;  %v3104_v28 = vsel %vm721_vm6, %v9291_v53, %v9370_v17 }
 0x978   : > { %v3108_v8 = vsel %vm721_vm6, %v9370_v17, %v9291_v53  ;;  %v3525_v59 = vpack.c.bf16 %v3474_v0, %v3470_v31  ;;  %v3526_v61 = vpack.c.bf16 %v3476_v62, %v3472_v16  ;;  %v3105_v45 = vsel %vm721_vm6, %v9289_v58, %v9364_v36  ;;  %v9531_v17 = vpop.permute.xlu1 %3035 }
 0x979   : > { %v3132_v30 = vpop.permute.xlu0 %3131  ;;  %3589 = vmatpush.bf16.msrb.mxu1 %v3527_v47  ;;  %3627 = vmatpush.bf16.msrb.mxu3 %v3528_v33  ;;  %v3109_v53 = vsel %vm721_vm6, %v9364_v36, %v9289_v58  ;;  %v3146_v1 = vmul.f32 %v3136_v6, %v12193_v42  ;;  %v3357_v37 = vrot.slane %v3149_v26, 5  ;;  %v3359_v34 = vrot.slane %v3150_v12, 5 }
 0x97a   : > { %v3137_v52 = vsel %vm732_vm5, %v9306_v63, %v3132_v30  ;;  %v3141_v41 = vsel %vm732_vm5, %v3132_v30, %v9306_v63  ;;  %v3145_v63 = vmul.f32 %v3140_v14, %v12188_v5  ;;  %v3103_v11 = vsel %vm721_vm6, %v9282_v29, %v9360_v13 }
 0x97b   : > { %v3147_v25 = vmul.f32 %v3141_v41, %v12188_v5  ;;  %v3148_v55 = vmul.f32 %v3137_v52, %v12193_v42  ;;  %v3107_v58 = vsel %vm721_vm6, %v9360_v13, %v9282_v29  ;;  %v3113_v36 = vmul.f32 %v3108_v8, %v6711_v48 }
 0x97c   : > { %v9545_v18 = vmul.f32 %v3104_v28, %v6717_v50  ;;  %v9548_v49 = vmul.f32 %v3109_v53, %v6711_v48  ;;  %v9551_v56 = vmul.f32 %v3105_v45, %v6717_v50  ;;  %v3349_v31 = vrot.slane %v3145_v63, 5 }
 0x97d   : > { %v3353_v40 = vrot.slane %v3147_v25, 5  ;;  %v3355_v19 = vrot.slane %v3148_v55, 5  ;;  %3590 = vmatpush.bf16.msrb.mxu1 %v3525_v59  ;;  %3628 = vmatpush.bf16.msrb.mxu3 %v3526_v61  ;;  %v3351_v26 = vrot.slane %v3146_v1, 5  ;;  %v12196_v0 = vrot.slane %v9145_v43, 4 }
 0x97e   : > { %v12197_v13 = vrot.slane %v9193_v27, 4  ;;  %v3348_v62 = vrot.slane %v9486_v10, 5  ;;  %v9563_v12 = vmul.f32 %v3107_v58, %v6711_v48  ;;  %v9570_v28 = vmul.f32 %v3103_v11, %v6717_v50  ;;  %v9620_v58 = vpop.permute.xlu2 %3153 }
 0x97f   : > { %v3358_v47 = vsel %vm12194_vm12, %v3353_v40, %v3357_v37  ;;  %v3360_v33 = vsel %vm12195_vm14, %v3355_v19, %v3359_v34  ;;  %v3077_v43 = vsel %vm710_vm8, %v9368_v2, %v9322_v38  ;;  %v3354_v27 = vsel %vm12198_vm10, %v3349_v31, %v3353_v40  ;;  %vm12199_vm12 = vmmov %vm12198_vm10 }
 0x980   : > { %v3495_v29 = vsel %vm11876_vm3, %v3358_v47, %v12196_v0  ;;  %v3496_v16 = vsel %vm11876_vm3, %v3360_v33, %v12197_v13  ;;  %v3356_v8 = vsel %vm12199_vm12, %v3351_v26, %v3355_v19  ;;  %v3319_v52 = vrot.slane %v3113_v36, 6  ;;  %vm12200_vm14 = vmmov %vm12198_vm10  ;;  %v9602_v37 = vpop.permute.xlu1 %3023  ;;  %v12203_v47 = vld [vmem:[#allocation61_spill] sm:$0xff] }
 0x981   : > { %v9565_v6 = vpop.permute.xlu0 %3163  ;;  %v3515_v14 = vpack.c.bf16 %v9396_v15, %v3495_v29  ;;  %v3516_v30 = vpack.c.bf16 %v9410_v57, %v3496_v16  ;;  %v3321_v41 = vrot.slane %v9545_v18, 6  ;;  %v3323_v25 = vrot.slane %v9548_v49, 6 }
 0x982   : > { %v3325_v15 = vrot.slane %v9551_v56, 6  ;;  %v3072_v57 = vsel %vm710_vm8, %v9268_v9, %v9376_v46  ;;  %v3073_v55 = vsel %vm710_vm8, %v9322_v38, %v9368_v2  ;;  %v3350_v59 = vsel %vm12200_vm14, %v3347_v60, %v3349_v31  ;;  %v12204_v31 = vld [vmem:[#allocation63_spill] sm:$0xff] }
 0x983   : > { %3568 = vmatpush.bf16.msrb.mxu0 %v3515_v14  ;;  %3606 = vmatpush.bf16.msrb.mxu2 %v3516_v30  ;;  %v3352_v61 = vsel %vm12198_vm10, %v3348_v62, %v3351_v26  ;;  %v3076_v45 = vsel %vm710_vm8, %v9376_v46, %v9268_v9  ;;  %v9600_v53 = vmul.f32 %v3077_v43, %v6740_v4  ;;  %v3317_v34 = vrot.slane %v9563_v12, 6 }
 0x984   : > { %v3513_v63 = vpack.c.bf16 %v3354_v27, %v3350_v59  ;;  %v3514_v1 = vpack.c.bf16 %v3356_v8, %v3352_v61  ;;  %v9605_v38 = vmul.f32 %v3073_v55, %v6746_v7  ;;  %v3075_v2 = vsel %vm710_vm8, %v9374_v24, %v9272_v21  ;;  %v12206_v27 = vld [vmem:[#allocation62_spill] sm:$0xff] }
 0x985   : > { %v3318_v46 = vrot.slane %v9570_v28, 6  ;;  %v3081_v9 = vmul.f32 %v3076_v45, %v6740_v4  ;;  %v3082_v40 = vmul.f32 %v3072_v57, %v6746_v7  ;;  %v3293_v19 = vrot.slane %v9600_v53, 7  ;;  %v12207_v57 = vld [vmem:[#allocation3_spill] sm:$0xff] }
 0x986   : > { %v3071_v11 = vsel %vm710_vm8, %v9272_v21, %v9374_v24  ;;  %vm12201_vm12 = vcmask 1041408   ;;  %v9625_v56 = vmul.f32 %v3075_v2, %v6740_v4  ;;  %v3201_v33 = vsel %vm754_vm2, %v12203_v47, %v9372_v22 }
 0x987   : > { %3569 = vmatpush.bf16.msrb.mxu0 %v3513_v63  ;;  %3607 = vmatpush.bf16.msrb.mxu2 %v3514_v1  ;;  %v3324_v18 = vsel %vm12201_vm12, %v3319_v52, %v3323_v25  ;;  %vm12202_vm14 = vmmov %vm12201_vm12  ;;  %v3295_v21 = vrot.slane %v9605_v38, 7  ;;  %v3289_v16 = vrot.slane %v3081_v9, 7  ;;  %v3291_v14 = vrot.slane %v3082_v40, 7  ;;  %v12209_v1 = vld [vmem:[#allocation5_spill] sm:$0xff] }
 0x988   : > { %v3326_v49 = vsel %vm12202_vm14, %v3321_v41, %v3325_v15  ;;  %vm12205_vm10 = vmmov %vm12201_vm12  ;;  %v9646_v30 = vmul.f32 %v3071_v11, %v6746_v7  ;;  %v3205_v43 = vsel %vm754_vm2, %v9372_v22, %v12203_v47  ;;  %v3045_v8 = vsel %vm699_vm7, %v9531_v17, %v12206_v27  ;;  %v12211_v11 = vld [vmem:[#allocation11_spill] sm:$0xff] }
 0x989   : > { %v3102_v36 = vpop.permute.xlu0 %3101  ;;  %v9643_v13 = vsel %vm12205_vm10, %v3317_v34, %v3319_v52  ;;  %v9657_v55 = vmul.f32 %v3201_v33, %v12207_v57  ;;  %v3287_v61 = vrot.slane %v9625_v56, 7  ;;  %v3041_v45 = vsel %vm699_vm7, %v12206_v27, %v9531_v17  ;;  %vm12208_vm12 = vmmov %vm12205_vm10 }
 0x98a   : > { %v3106_v26 = vsel %vm721_vm6, %v12204_v31, %v3102_v36  ;;  %v3110_v24 = vsel %vm721_vm6, %v3102_v36, %v12204_v31  ;;  %v3322_v22 = vsel %vm12208_vm12, %v3318_v46, %v3321_v41  ;;  %v9670_v63 = vsel %vm972_vm13, %v3289_v16, %v3293_v19  ;;  %vm12210_vm14 = vmmov %vm12205_vm10  ;;  %v3166_v41 = vpop.permute.xlu1 %3165 }
 0x98b   : > { %v3117_v0 = vmul.f32 %v3110_v24, %v6711_v48  ;;  %v3118_v29 = vmul.f32 %v3106_v26, %v6717_v50  ;;  %v9673_v38 = vmul.f32 %v3205_v43, %v12209_v1  ;;  %v9678_v40 = vsel %vm972_vm13, %v3291_v14, %v3295_v21 }
 0x98c   : > { %v3288_v17 = vrot.slane %v9646_v30, 7  ;;  %v9682_v36 = vmul.f32 %v3045_v8, %v12211_v11  ;;  %vm12212_vm12 = vcmask 1042432   ;;  %v3038_v8 = vpop.permute.xlu2 %3037  ;;  %v12231_v30 = vrot.slane %v9465_v54, 1 }
 0x98d   : > { %v3327_v52 = vrot.slane %v3117_v0, 6  ;;  %v3329_v59 = vrot.slane %v3118_v29, 6  ;;  %vm12213_vm3 = vmmov %vm12212_vm12  ;;  %v12215_v29 = vld [vmem:[#allocation54_spill] sm:$0xff] }
 0x98e   : > { %v3200_v43 = vsel %vm754_vm2, %v12215_v29, %v9458_v3 }
 0x98f   : > { %v3328_v2 = vsel %vm12210_vm14, %v3323_v25, %v3327_v52  ;;  %v3330_v9 = vsel %vm12205_vm10, %v3325_v15, %v3329_v59  ;;  %v12214_v25 = vld [vmem:[#allocation12_spill] sm:$0xff]  ;;  %v3443_v15 = vrot.slane %v9657_v55, 2 }
 0x990   : > { %v3493_v47 = vsel %vm12212_vm12, %v3328_v2, %v3347_v60  ;;  %v3494_v33 = vsel %vm12213_vm3, %v3330_v9, %v3348_v62  ;;  %v9691_v31 = vmul.f32 %v3041_v45, %v12214_v25  ;;  %v3290_v62 = vsel %vm972_vm13, %v3287_v61, %v3289_v16  ;;  %v12218_v45 = vld [vmem:[#allocation64_spill] sm:$0xff]  ;;  %v12219_v2 = vld [vmem:[#allocation53_spill] sm:$0xff]  ;;  %vm12224_vm3 = vmmov %vm12205_vm10 }
 0x991   : > { %v3070_v26 = vpop.permute.xlu0 %3069  ;;  %v3511_v24 = vpack.c.bf16 %v3493_v47, %v3324_v18  ;;  %v3512_v0 = vpack.c.bf16 %v3494_v33, %v3326_v49  ;;  %v3445_v18 = vrot.slane %v9673_v38, 2  ;;  %v12217_v49 = vld [vmem:[#allocation58_spill] sm:$0xff]  ;;  %v3199_v9 = vsel %vm754_vm2, %v12219_v2, %v12218_v45  ;;  %v12220_v38 = vld [vmem:[#allocation55_spill] sm:$0xff]  ;;  %vm12225_vm14 = vmmov %vm12224_vm3 }
 0x992   : > { %v3074_v60 = vsel %vm710_vm8, %v12216_v35, %v3070_v26  ;;  %v3078_v10 = vsel %vm710_vm8, %v3070_v26, %v12216_v35  ;;  %v3170_v27 = vsel %vm743_vm4, %v12217_v49, %v3166_v41  ;;  %v3204_v16 = vsel %vm754_vm2, %v9458_v3, %v12215_v29 }
 0x993   : > { %v3085_v52 = vmul.f32 %v3078_v10, %v6740_v4  ;;  %v3086_v59 = vmul.f32 %v3074_v60, %v6746_v7  ;;  %3570 = vmatpush.bf16.msrb.mxu0 %v3511_v24  ;;  %3608 = vmatpush.bf16.msrb.mxu2 %v3512_v0  ;;  %v3169_v47 = vsel %vm743_vm4, %v12220_v38, %v9565_v6  ;;  %vm12227_vm10 = vcmask 1045504  }
 0x994   : > { %v3292_v33 = vsel %vm972_vm13, %v3288_v17, %v3291_v14  ;;  %v9729_v26 = vmul.f32 %v3200_v43, %v12207_v57  ;;  %v3173_v24 = vsel %vm743_vm4, %v9565_v6, %v12220_v38  ;;  %v3203_v3 = vsel %vm754_vm2, %v12218_v45, %v12219_v2  ;;  %v12221_v14 = vld [vmem:[#allocation7_spill] sm:$0xff]  ;;  %vm12228_vm12 = vmmov %vm12227_vm10 }
 0x995   : > { %v3297_v0 = vrot.slane %v3085_v52, 7  ;;  %v3299_v35 = vrot.slane %v3086_v59, 7  ;;  %v3174_v29 = vsel %vm743_vm4, %v3166_v41, %v12217_v49  ;;  %v3181_v60 = vmul.f32 %v3170_v27, %v12221_v14  ;;  %v12222_v43 = vld [vmem:[#allocation59_spill] sm:$0xff]  ;;  %v12223_v49 = vld [vmem:[#allocation8_spill] sm:$0xff] }
 0x996   : > { %v3042_v10 = vsel %vm699_vm7, %v12222_v43, %v3038_v8  ;;  %v9747_v39 = vmul.f32 %v3169_v47, %v12221_v14  ;;  %v3046_v6 = vsel %vm699_vm7, %v3038_v8, %v12222_v43  ;;  %v9757_v41 = vmul.f32 %v3204_v16, %v12209_v1 }
 0x997   : > { %v3298_v52 = vsel %vm972_vm13, %v3293_v19, %v3297_v0  ;;  %v3300_v59 = vsel %vm972_vm13, %v3295_v21, %v3299_v35  ;;  %v9760_v27 = vmul.f32 %v3173_v24, %v12223_v49  ;;  %v3182_v53 = vmul.f32 %v3174_v29, %v12223_v49  ;;  %v12226_v24 = vld [vmem:[#allocation57_spill] sm:$0xff] }
 0x998   : > { %v3491_v45 = vsel %vm12224_vm3, %v3298_v52, %v3317_v34  ;;  %v3492_v8 = vsel %vm12225_vm14, %v3300_v59, %v3318_v46  ;;  %v3439_v19 = vrot.slane %v9729_v26, 2  ;;  %v3053_v38 = vmul.f32 %v3046_v6, %v12211_v11  ;;  %vm12229_vm3 = vmmov %vm12227_vm10 }
 0x999   : > { %v3198_v2 = vpop.permute.xlu0 %3197  ;;  %v3509_v21 = vpack.c.bf16 %v9643_v13, %v3491_v45  ;;  %v3510_v16 = vpack.c.bf16 %v3322_v22, %v3492_v8  ;;  %v3054_v47 = vmul.f32 %v3042_v10, %v12214_v25  ;;  %v3207_v34 = vmul.f32 %v3199_v9, %v12207_v57  ;;  %vm12230_vm14 = vmmov %vm12229_vm3 }
 0x99a   : > { %v3202_v12 = vsel %vm754_vm2, %v12226_v24, %v3198_v2  ;;  %v3206_v28 = vsel %vm754_vm2, %v3198_v2, %v12226_v24  ;;  %v3413_v46 = vrot.slane %v9747_v39, 3  ;;  %v3441_v22 = vrot.slane %v9757_v41, 2  ;;  %v3034_v24 = vpop.permute.xlu1 %3033 }
 0x99b   : > { %v3213_v26 = vmul.f32 %v3202_v12, %v12207_v57  ;;  %v3214_v13 = vmul.f32 %v3206_v28, %v12209_v1  ;;  %3571 = vmatpush.bf16.msrb.mxu0 %v3509_v21  ;;  %3609 = vmatpush.bf16.msrb.mxu2 %v3510_v16  ;;  %v3415_v0 = vrot.slane %v9760_v27, 3  ;;  %v3507_v35 = vpack.c.bf16 %v9670_v63, %v3290_v62  ;;  %v3026_v21 = vpop.permute.xlu2 %3025  ;;  %v12235_v12 = vld [vmem:[#allocation2_spill] sm:$0xff] }
 0x99c   : > { %v3508_v29 = vpack.c.bf16 %v9678_v40, %v3292_v33  ;;  %v3208_v43 = vmul.f32 %v3203_v3, %v12209_v1  ;;  %v3417_v10 = vrot.slane %v3181_v60, 3  ;;  %v3419_v39 = vrot.slane %v3182_v53, 3 }
 0x99d   : > { %v3447_v9 = vrot.slane %v3213_v26, 2  ;;  %v3449_v6 = vrot.slane %v3214_v13, 2  ;;  %v3489_v52 = vsel %vm972_vm13, %v3053_v38, %v3287_v61  ;;  %v3444_v59 = vsel %vm12227_vm10, %v3439_v19, %v3443_v15  ;;  %vm12232_vm10 = vmmov %vm12229_vm3  ;;  %v12237_v13 = vld [vmem:[#allocation60_spill] sm:$0xff] }
 0x99e   : > { %v3490_v63 = vsel %vm972_vm13, %v3054_v47, %v3288_v17  ;;  %v3437_v62 = vrot.slane %v3207_v34, 2  ;;  %v3418_v56 = vsel %vm11879_vm11, %v3413_v46, %v3417_v10  ;;  %v3446_v3 = vsel %vm12230_vm14, %v3441_v22, %v3445_v18  ;;  %vm12234_vm14 = vmmov %vm12229_vm3 }
 0x99f   : > { %3572 = vmatpush.bf16.msrb.mxu0 %v3507_v35  ;;  %3610 = vmatpush.bf16.msrb.mxu2 %v3508_v29  ;;  %v3448_v40 = vsel %vm12228_vm12, %v3443_v15, %v3447_v9  ;;  %v3450_v33 = vsel %vm12229_vm3, %v3445_v18, %v3449_v6  ;;  %v3420_v60 = vsel %vm11879_vm11, %v3415_v0, %v3419_v39  ;;  %v3438_v41 = vrot.slane %v3208_v43, 2  ;;  %vm12233_vm12 = vmmov %vm12229_vm3  ;;  %v6325_v43 = vld [vmem:[%s11694_s14 + $0x4] sm:$0xf] }
 0x9a0   : > { %v3501_v61 = vsel %vm11878_vm15, %v3448_v40, %v3467_v20  ;;  %v3502_v17 = vsel %vm11878_vm15, %v3450_v33, %v12231_v30  ;;  %v3505_v15 = vpack.c.bf16 %v3489_v52, %v9682_v36  ;;  %v3506_v54 = vpack.c.bf16 %v3490_v63, %v9691_v31 }
 0x9a1   : > { %v3162_v55 = vpop.permute.xlu0 %3161  ;;  %v3523_v27 = vpack.c.bf16 %v3501_v61, %v3444_v59  ;;  %v3524_v45 = vpack.c.bf16 %v3502_v17, %v3446_v3  ;;  %v3499_v18 = vsel %vm12232_vm10, %v3418_v56, %v3437_v62  ;;  %v3500_v36 = vsel %vm12233_vm12, %v3420_v60, %v3438_v41  ;;  %v5951_v56 = vld [vmem:[%s11694_s14] sm:$0xf]  ;;  %v6326_v61 = vld [vmem:[%s11694_s14 + $0x4] sm:$0xf0]  ;;  %v6327_v17 = vld [vmem:[%s11694_s14 + $0x14] sm:$0xf] }
 0x9a2   : > { %v3168_v32 = vsel %vm743_vm4, %v9620_v58, %v3162_v55  ;;  %v3172_v20 = vsel %vm743_vm4, %v3162_v55, %v9620_v58  ;;  %v3440_v2 = vsel %vm12229_vm3, %v3437_v62, %v3439_v19  ;;  %v3442_v31 = vsel %vm12234_vm14, %v3438_v41, %v3441_v22  ;;  %v5953_v22 = vld [vmem:[%s11694_s14 + $0x8] sm:$0xf0]  ;;  %v5961_v60 = vld [vmem:[%s11694_s14 + $0x18] sm:$0x10]  ;;  %v5959_v55 = vld [vmem:[%s11694_s14 + $0x10] sm:$0xf] }
 0x9a3   : > { %v3177_v8 = vmul.f32 %v3168_v32, %v12221_v14  ;;  %v3178_v53 = vmul.f32 %v3172_v20, %v12223_v49  ;;  %3573 = vmatpush.bf16.msrb.mxu0 %v3505_v15  ;;  %3591 = vmatpush.bf16.msrb.mxu1 %v3523_v27  ;;  %v3521_v58 = vpack.c.bf16 %v3440_v2, %v3499_v18  ;;  %v12236_v28 = vrot.slane %v12235_v12, 3  ;;  %v6328_v15 = vld [vmem:[%s11694_s14 + $0x14] sm:$0x10]  ;;  %v12239_v12 = vld [vmem:[#allocation51_spill] sm:$0xff] }
 0x9a4   : > { %3611 = vmatpush.bf16.msrb.mxu2 %v3506_v54  ;;  %3629 = vmatpush.bf16.msrb.mxu3 %v3524_v45  ;;  %v3522_v47 = vpack.c.bf16 %v3442_v31, %v3500_v36  ;;  %v12238_v35 = vrot.slane %v12237_v13, 3  ;;  %v3040_v10 = vsel %vm699_vm7, %v3026_v21, %v3034_v24  ;;  %v5956_v59 = vor.u32 %v6325_v43, %v5953_v22 }
 0x9a5   : > { %v3409_v16 = vrot.slane %v3177_v8, 3  ;;  %v3411_v38 = vrot.slane %v3178_v53, 3  ;;  %v3050_v62 = vmul.f32 %v3040_v10, %v12214_v25  ;;  %v5952_v30 = vor.u32 %v6326_v61, %v5951_v56 }
 0x9a6   : > { %v5964_v41 = vor.u32 %v6327_v17, %v5961_v60  ;;  %v5960_v27 = vor.u32 %v6328_v15, %v5959_v55  ;;  %v12245_v17 = vld [vmem:[#allocation44_spill] sm:$0xff]  ;;  %v12246_v60 = vld [vmem:[#allocation42_spill] sm:$0xff]  ;;  %v12247_v55 = vld [vmem:[#allocation45_spill] sm:$0xff] }
 0x9a7   : > { %3592 = vmatpush.bf16.msrb.mxu1 %v3521_v58  ;;  %v3410_v34 = vsel %vm11879_vm11, %v12236_v28, %v3409_v16  ;;  %v3414_v26 = vsel %vm11879_vm11, %v3409_v16, %v3413_v46  ;;  %v3412_v29 = vsel %vm11879_vm11, %v12238_v35, %v3411_v38  ;;  %v3416_v19 = vsel %vm11879_vm11, %v3411_v38, %v3415_v0  ;;  %v12240_v28 = vld [vmem:[#allocation33_spill] sm:$0xff]  ;;  %v12241_v35 = vld [vmem:[#allocation39_spill] sm:$0xff] }
 0x9a8   : > { %v3044_v46 = vsel %vm699_vm7, %v3034_v24, %v3026_v21  ;;  %3630 = vmatpush.bf16.msrb.mxu3 %v3522_v47  ;;  %v3519_v9 = vpack.c.bf16 %v3414_v26, %v3410_v34  ;;  %v3520_v6 = vpack.c.bf16 %v3416_v19, %v3412_v29  ;;  %v2476_v34 = vadd.f32 %v12240_v28, %v12239_v12  ;;  %v12242_v29 = vld [vmem:[#allocation34_spill] sm:$0xff]  ;;  %v12248_v15 = vld [vmem:[#allocation47_spill] sm:$0xff] }
 0x9a9   : > { %v3032_v39 = vpop.permute.xlu0 %3031  ;;  %v3049_v63 = vmul.f32 %v3044_v46, %v12211_v11  ;;  %v2481_v19 = vadd.f32 %v12242_v29, %v12241_v35  ;;  %v12251_v35 = vld [vmem:[#allocation32_spill] sm:$0xff] }
 0x9aa   : > { %v3039_v0 = vsel %vm699_vm7, %v9602_v37, %v3032_v39  ;;  %v3043_v52 = vsel %vm699_vm7, %v3032_v39, %v9602_v37  ;;  %v12243_v39 = vld [vmem:[#allocation38_spill] sm:$0xff]  ;;  %v2571_v29 = vmul.f32 0.01, %v12251_v35 }
 0x9ab   : > { %v3047_v40 = vmul.f32 %v3043_v52, %v12211_v11  ;;  %v3048_v33 = vmul.f32 %v3039_v0, %v12214_v25  ;;  %3593 = vmatpush.bf16.msrb.mxu1 %v3519_v9  ;;  %v9879_v0 = vadd.f32 %v12243_v39, %v2476_v34 }
 0x9ac   : > { %3631 = vmatpush.bf16.msrb.mxu3 %v3520_v6 }
 0x9ad   : > { %v3503_v37 = vpack.c.bf16 %v3049_v63, %v3047_v40  ;;  %v3504_v3 = vpack.c.bf16 %v3050_v62, %v3048_v33  ;;  %v12244_v63 = vld [vmem:[#allocation37_spill] sm:$0xff] }
 0x9ae   : > { %5965 = vmatmul.msk.bf16.vlgmr.msrb.gmra.mxu1 %vm2908_vm9, %v5956_v59  ;;  %v2500_v62 = vadd.f32 %v12244_v63, %v2481_v19 }
 0x9af   : > { %3574 = vmatpush.bf16.msrb.mxu0 %v3503_v37  ;;  %3612 = vmatpush.bf16.msrb.mxu2 %v3504_v3 }
 0x9b0   : > { %5967 = vmatmul.msk.bf16.vlgmr.msrb.gmra.mxu3 %vm2908_vm9, %v5956_v59 }
 0x9b2   : > { %3575 = vmatmul.bf16.vlgmr.msrb.gmra.mxu0 %v5952_v30  ;;  %3613 = vmatmul.bf16.vlgmr.msrb.gmra.mxu2 %v5952_v30 }
 0x9be   : > { %5966 = vmatmul.msk.bf16.gmra.mxu1 %vm2908_vm9, %v5964_v41 }
 0x9c0   : > { %5968 = vmatmul.msk.bf16.gmra.mxu3 %vm2908_vm9, %v5964_v41  ;;  %v2533_v41 = vadd.f32 %v12246_v60, %v12245_v17 }
 0x9c2   : > { %3580 = vmatmul.bf16.gmra.mxu0 %v5960_v27  ;;  %3618 = vmatmul.bf16.gmra.mxu2 %v5960_v27  ;;  %v2538_v27 = vadd.f32 %v12248_v15, %v12247_v55 }
 0xa2b   : > { %v3595_v45 = vpop.f32.mrf.mxu1 }
 0xa2f   : > { %v3576_v32 = vpop.f32.mrf.mxu0 }
 0xa30   : > { %v3596_v47 = vadd.f32 %v3595_v45, %v3576_v32 }
 0xa32   : > { %v3651_v46 = vmul.f32 0.01, %v3596_v47  ;;  %vm3643_vm3 = vcmp.ge.f32.partialorder %v3596_v47, 0.0 }
 0xa33   : > { %v3597_v20 = vpop.f32.mrf.mxu1  ;;  %v3633_v54 = vpop.f32.mrf.mxu3 }
 0xa34   : > { %v3659_v45 = vsel %vm3643_vm3, %v3596_v47, %v3651_v46  ;;  %vm2563_vm3 = vcmp.ge.f32.partialorder %v12251_v35, 0.0 }
 0xa35   : > { %v3614_v18 = vpop.f32.mrf.mxu2 }
 0xa36   : > { %v3634_v61 = vadd.f32 %v3633_v54, %v3614_v18 }
 0xa37   : > { %v3578_v8 = vpop.f32.mrf.mxu0 }
 0xa38   : > { %v3598_v58 = vadd.f32 %v3597_v20, %v3578_v8  ;;  %v12249_v20 = vld [vmem:[#allocation35_spill] sm:$0xff]  ;;  %vm3644_vm11 = vcmp.ge.f32.partialorder %v3634_v61, 0.0 }
 0xa3a   : > { %v3653_v43 = vmul.f32 0.01, %v3598_v58  ;;  %vm3645_vm10 = vcmp.ge.f32.partialorder %v3598_v58, 0.0 }
 0xa3b   : > { %v3635_v53 = vpop.f32.mrf.mxu3  ;;  %v3600_v36 = vpop.f32.mrf.mxu1 }
 0xa3c   : > { %v3661_v40 = vsel %vm3645_vm10, %v3598_v58, %v3653_v43 }
 0xa3d   : > { %v3616_v2 = vpop.f32.mrf.mxu2  ;;  %v3677_v8 = vrot.slane %v3661_v40, 7 }
 0xa3e   : > { %v3636_v52 = vadd.f32 %v3635_v53, %v3616_v2 }
 0xa3f   : > { %v3581_v21 = vpop.f32.mrf.mxu0 }
 0xa40   : > { %v3601_v16 = vadd.f32 %v3600_v36, %v3581_v21  ;;  %vm3646_vm15 = vcmp.ge.f32.partialorder %v3636_v52, 0.0  ;;  %v3654_v53 = vmul.f32 0.01, %v3636_v52  ;;  %v2573_v21 = vmul.f32 0.01, %v2500_v62 }
 0xa42   : > { %v3655_v24 = vmul.f32 0.01, %v3601_v16  ;;  %vm3647_vm9 = vcmp.ge.f32.partialorder %v3601_v16, 0.0  ;;  %v3662_v28 = vsel %vm3646_vm15, %v3636_v52, %v3654_v53  ;;  %vm2561_vm15 = vcmp.ge.f32.partialorder %v9879_v0, 0.0 }
 0xa43   : > { %v3638_v38 = vpop.f32.mrf.mxu3  ;;  %v3602_v26 = vpop.f32.mrf.mxu1 }
 0xa44   : > { %v3663_v9 = vsel %vm3647_vm9, %v3601_v16, %v3655_v24  ;;  %vm2559_vm9 = vcmp.ge.f32.partialorder %v12249_v20, 0.0  ;;  %v3675_v16 = vrot.slane %v3659_v45, 7  ;;  %v12250_v24 = vld [vmem:[#allocation40_spill] sm:$0xff] }
 0xa45   : > { %v3619_v31 = vpop.f32.mrf.mxu2  ;;  %v3681_v37 = vrot.slane %v3663_v9, 7  ;;  %v2557_v12 = vadd.f32 %v12250_v24, %v2538_v27  ;;  %v2569_v9 = vmul.f32 0.01, %v9879_v0  ;;  %v12254_v27 = vld [vmem:[#allocation36_spill] sm:$0xff] }
 0xa46   : > { %v3639_v22 = vadd.f32 %v3638_v38, %v3619_v31  ;;  %v3652_v38 = vmul.f32 0.01, %v3634_v61  ;;  %v3678_v19 = vsel %vm972_vm13, %v3675_v16, %v3677_v8  ;;  %v2568_v45 = vmul.f32 0.01, %v12254_v27 }
 0xa47   : > { %v3583_v13 = vpop.f32.mrf.mxu0  ;;  %v3682_v47 = vsel %vm972_vm13, %v3677_v8, %v3681_v37  ;;  %v2574_v40 = vmul.f32 0.01, %v2557_v12 }
 0xa48   : > { %v3603_v10 = vadd.f32 %v3602_v26, %v3583_v13  ;;  %v3656_v33 = vmul.f32 0.01, %v3639_v22  ;;  %vm3648_vm14 = vcmp.ge.f32.partialorder %v3639_v22, 0.0  ;;  %v2567_v13 = vmul.f32 0.01, %v12249_v20 }
 0xa4a   : > { %vm3649_vm12 = vcmp.ge.f32.partialorder %v3603_v10, 0.0  ;;  %v3657_v6 = vmul.f32 0.01, %v3603_v10  ;;  %v3664_v54 = vsel %vm3648_vm14, %v3639_v22, %v3656_v33  ;;  %v3660_v22 = vsel %vm3644_vm11, %v3634_v61, %v3652_v38 }
 0xa4b   : > { %v3640_v59 = vpop.f32.mrf.mxu3  ;;  %v3683_v34 = vrot.slane %v3664_v54, 7  ;;  %vm2566_vm14 = vcmp.ge.f32.partialorder %v2557_v12, 0.0  ;;  %v3676_v33 = vrot.slane %v3660_v22, 7  ;;  %v2575_v60 = vsel %vm2559_vm9, %v12249_v20, %v2567_v13 }
 0xa4c   : > { %v3665_v56 = vsel %vm3649_vm12, %v3603_v10, %v3657_v6  ;;  %vm2565_vm12 = vcmp.ge.f32.partialorder %v2500_v62, 0.0  ;;  %v3703_v10 = vpack.c.bf16 %v3682_v47, %v3678_v19  ;;  %v3679_v6 = vrot.slane %v3662_v28, 7 }
 0xa4d   : > { %v3685_v3 = vrot.slane %v3665_v56, 7  ;;  %v3621_v30 = vpop.f32.mrf.mxu2  ;;  %v2581_v43 = vsel %vm2565_vm12, %v2500_v62, %v2573_v21  ;;  %v2579_v56 = vsel %vm2563_vm3, %v12251_v35, %v2571_v29  ;;  %v2582_v55 = vsel %vm2566_vm14, %v2557_v12, %v2574_v40  ;;  %v6330_v21 = vld [vmem:[%s11695_s15 + $0x8] sm:$0xff] }
 0xa4e   : > { %v3641_v32 = vadd.f32 %v3640_v59, %v3621_v30  ;;  %v3697_v52 = vsel %vm972_vm13, %v2581_v43, %v3675_v16  ;;  %v12252_v59 = vld [vmem:[#allocation52_spill] sm:$0xff]  ;;  %v3684_v61 = vsel %vm972_vm13, %v3679_v6, %v3683_v34  ;;  %v3680_v17 = vsel %vm972_vm13, %v3676_v33, %v3679_v6 }
 0xa4f   : > { %v3686_v36 = vsel %vm972_vm13, %v3681_v37, %v3685_v3  ;;  %v2552_v63 = vadd.f32 %v12252_v59, %v2533_v41  ;;  %v3701_v37 = vpack.c.bf16 %v3697_v52, %v2579_v56  ;;  %v12253_v3 = vld [vmem:[#allocation41_spill] sm:$0xff]  ;;  %v2577_v41 = vsel %vm2561_vm15, %v9879_v0, %v2569_v9  ;;  %v6329_v0 = vld [vmem:[%s11695_s15] sm:$0xff] }
 0xa50   : > { %vm3650_vm10 = vcmp.ge.f32.partialorder %v3641_v32, 0.0  ;;  %v3658_v18 = vmul.f32 0.01, %v3641_v32  ;;  %v3705_v2 = vpack.c.bf16 %v3686_v36, %v3686_v36  ;;  %v2572_v30 = vmul.f32 0.01, %v12253_v3 }
 0xa51   : > { %vm2564_vm11 = vcmp.ge.f32.partialorder %v12253_v3, 0.0  ;;  %v3704_v15 = vpack.c.bf16 %v3684_v61, %v3680_v17  ;;  %v3698_v8 = vsel %vm972_vm13, %v2582_v55, %v3676_v33  ;;  %vm2562_vm12 = vcmp.ge.f32.partialorder %v2552_v63, 0.0 }
 0xa52   : > { %v3666_v58 = vsel %vm3650_vm10, %v3641_v32, %v3658_v18  ;;  %v3729_v31 = vsel %vm972_vm13, %v3705_v2, 0  ;;  %v2570_v32 = vmul.f32 0.01, %v2552_v63  ;;  %vm2560_vm10 = vcmp.ge.f32.partialorder %v12254_v27, 0.0 }
 0xa53   : > { %v3687_v26 = vrot.slane %v3666_v58, 7  ;;  %3738 = vmatpush.bf16.msra.mxu0 %v3729_v31  ;;  %v3699_v53 = vpack.c.bf16 %v2577_v41, %v2575_v60  ;;  %v2580_v36 = vsel %vm2564_vm11, %v12253_v3, %v2572_v30  ;;  %vm3721_vm9 = vcmask 408576  }
 0xa54   : > { %v3702_v20 = vpack.c.bf16 %v3698_v8, %v2580_v36  ;;  %v2576_v54 = vsel %vm2560_vm10, %v12254_v27, %v2568_v45  ;;  %v2578_v18 = vsel %vm2562_vm12, %v2552_v63, %v2570_v32 }
 0xa55   : > { %v3688_v46 = vsel %vm972_vm13, %v3683_v34, %v3687_v26  ;;  %v3700_v2 = vpack.c.bf16 %v2578_v18, %v2576_v54 }
 0xa56   : > { %v3706_v39 = vpack.c.bf16 %v3688_v46, %v3688_v46 }
 0xa57   : > { %3739 = vmatpush.bf16.msra.mxu0 %v3703_v10 }
 0xa58   : > { %v3732_v62 = vsel %vm972_vm13, %v3706_v39, 0 }
 0xa59   : > { %3757 = vmatpush.bf16.msra.mxu1 %v3732_v62 }
 0xa5b   : > { %3740 = vmatpush.bf16.msra.mxu0 %v3701_v37 }
 0xa5d   : > { %3758 = vmatpush.bf16.msra.mxu1 %v3704_v15 }
 0xa5f   : > { %3741 = vmatpush.bf16.msra.mxu0 %v3699_v53 }
 0xa61   : > { %3759 = vmatpush.bf16.msra.mxu1 %v3702_v20 }
 0xa62   : > { %5977 = vmatmul.msk.bf16.vlgmr.msra.gmra.mxu0 %vm3721_vm9, %v6329_v0 }
 0xa65   : > { %3760 = vmatpush.bf16.msra.mxu1 %v3700_v2 }
 0xa68   : > { %5979 = vmatmul.msk.bf16.vlgmr.msra.gmra.mxu1 %vm3721_vm9, %v6329_v0 }
 0xa72   : > { %5978 = vmatmul.msk.bf16.gmra.mxu0 %vm3721_vm9, %v6330_v21 }
 0xa78   : > { %5980 = vmatmul.msk.bf16.gmra.mxu1 %vm3721_vm9, %v6330_v21 }
 0xadf   : > { %v3743_v16 = vpop.f32.mrf.mxu0 }
 0xae0   : > { %vm3772_vm3 = vcmp.ge.f32.partialorder %v3743_v16, 0.0  ;;  %v3780_v38 = vmul.f32 0.01, %v3743_v16 }
 0xae2   : > { %v9925_v58 = vsel %vm3772_vm3, %v3743_v16, %v3780_v38 }
 0xae3   : > { %12255 = vst [vmem:[#allocation9_spill] sm:$0xff] %v9925_v58  ;;  %3956 = vrot.lane.b32.xlu0 %v9925_v58, %s11970_s27  ;;  %3988 = vrot.lane.b32.xlu2 %v9925_v58, %s11991_s25 }
 0xae4   : > { %3892 = vrot.lane.b32.xlu1 %v9925_v58, %s11946_s21 }
 0xae5   : > { %v3762_v31 = vpop.f32.mrf.mxu1 }
 0xae6   : > { %v3781_v47 = vmul.f32 0.01, %v3762_v31  ;;  %vm3773_vm15 = vcmp.ge.f32.partialorder %v3762_v31, 0.0 }
 0xae7   : > { %v3745_v12 = vpop.f32.mrf.mxu0 }
 0xae8   : > { %v9939_v24 = vsel %vm3773_vm15, %v3762_v31, %v3781_v47  ;;  %v3782_v28 = vmul.f32 0.01, %v3745_v12  ;;  %vm3774_vm14 = vcmp.ge.f32.partialorder %v3745_v12, 0.0  ;;  %vm12281_vm15 = vcmask 261120  }
 0xae9   : > { %12256 = vst [vmem:[#allocation4_spill] sm:$0xff] %v9939_v24 }
 0xaea   : > { %v9953_v34 = vsel %vm3774_vm14, %v3745_v12, %v3782_v28  ;;  %vm12286_vm14 = vmmov %vm12281_vm15 }
 0xaeb   : > { %3828 = vrot.lane.b32.xlu0 %v9925_v58, %s11948_s24  ;;  %3860 = vrot.lane.b32.xlu2 %v9925_v58, %s11992_s3  ;;  %12257 = vst [vmem:[#allocation50_spill] sm:$0xff] %v9953_v34 }
 0xaec   : > { %3924 = vrot.lane.b32.xlu1 %v9925_v58, %s11971_s30 }
 0xaed   : > { %v3764_v26 = vpop.f32.mrf.mxu1 }
 0xaee   : > { %v3783_v13 = vmul.f32 0.01, %v3764_v26  ;;  %vm3775_vm11 = vcmp.ge.f32.partialorder %v3764_v26, 0.0 }
 0xaef   : > { %v3748_v29 = vpop.f32.mrf.mxu0 }
 0xaf0   : > { %v9967_v35 = vsel %vm3775_vm11, %v3764_v26, %v3783_v13  ;;  %v3784_v19 = vmul.f32 0.01, %v3748_v29  ;;  %vm3776_vm10 = vcmp.ge.f32.partialorder %v3748_v29, 0.0  ;;  %vm12287_vm11 = vmmov %vm12286_vm14 }
 0xaf1   : > { %12258 = vst [vmem:[#allocation10_spill] sm:$0xff] %v9967_v35 }
 0xaf2   : > { %v9981_v43 = vsel %vm3776_vm10, %v3748_v29, %v3784_v19  ;;  %vm12288_vm10 = vmmov %vm12287_vm11 }
 0xaf3   : > { %3964 = vrot.lane.b32.xlu2 %v9939_v24, %s11970_s27  ;;  %3900 = vrot.lane.b32.xlu0 %v9939_v24, %s11946_s21  ;;  %12259 = vst [vmem:[#allocation61_spill] sm:$0xff] %v9981_v43 }
 0xaf4   : > { %3996 = vrot.lane.b32.xlu1 %v9939_v24, %s11991_s25 }
 0xaf5   : > { %v3767_v22 = vpop.f32.mrf.mxu1 }
 0xaf6   : > { %v3785_v10 = vmul.f32 0.01, %v3767_v22  ;;  %vm3777_vm12 = vcmp.ge.f32.partialorder %v3767_v22, 0.0 }
 0xaf7   : > { %v3750_v9 = vpop.f32.mrf.mxu0 }
 0xaf8   : > { %v9995_v46 = vsel %vm3777_vm12, %v3767_v22, %v3785_v10  ;;  %v3786_v39 = vmul.f32 0.01, %v3750_v9  ;;  %vm3778_vm9 = vcmp.ge.f32.partialorder %v3750_v9, 0.0 }
 0xaf9   : > { %12260 = vst [vmem:[#allocation63_spill] sm:$0xff] %v9995_v46 }
 0xafa   : > { %v10011_v52 = vsel %vm3778_vm9, %v3750_v9, %v3786_v39 }
 0xafb   : > { %3836 = vrot.lane.b32.xlu2 %v9939_v24, %s11948_s24  ;;  %3932 = vrot.lane.b32.xlu0 %v9939_v24, %s11971_s30  ;;  %12261 = vst [vmem:[#allocation62_spill] sm:$0xff] %v10011_v52 }
 0xafc   : > { %3868 = vrot.lane.b32.xlu1 %v9939_v24, %s11992_s3 }
 0xafd   : > { %v3769_v63 = vpop.f32.mrf.mxu1 }
 0xafe   : > { %v3787_v33 = vmul.f32 0.01, %v3769_v63  ;;  %vm3779_vm3 = vcmp.ge.f32.partialorder %v3769_v63, 0.0 }
 0xb00   : > { %v10029_v62 = vsel %vm3779_vm3, %v3769_v63, %v3787_v33 }
 0xb01   : > { %12262 = vst [vmem:[#allocation3_spill] sm:$0xff] %v10029_v62 }
 0xb03   : > { %3894 = vrot.lane.b32.xlu2 %v9953_v34, %s11946_s21  ;;  %3990 = vrot.lane.b32.xlu0 %v9953_v34, %s11991_s25 }
 0xb04   : > { %3958 = vrot.lane.b32.xlu1 %v9953_v34, %s11970_s27 }
 0xb0b   : > { %3926 = vrot.lane.b32.xlu2 %v9953_v34, %s11971_s30  ;;  %3862 = vrot.lane.b32.xlu0 %v9953_v34, %s11992_s3 }
 0xb0c   : > { %3830 = vrot.lane.b32.xlu1 %v9953_v34, %s11948_s24 }
 0xb13   : > { %3966 = vrot.lane.b32.xlu0 %v9967_v35, %s11970_s27  ;;  %3998 = vrot.lane.b32.xlu2 %v9967_v35, %s11991_s25 }
 0xb14   : > { %3902 = vrot.lane.b32.xlu1 %v9967_v35, %s11946_s21 }
 0xb1b   : > { %3838 = vrot.lane.b32.xlu0 %v9967_v35, %s11948_s24  ;;  %3870 = vrot.lane.b32.xlu2 %v9967_v35, %s11992_s3 }
 0xb1c   : > { %3934 = vrot.lane.b32.xlu1 %v9967_v35, %s11971_s30 }
 0xb23   : > { %3992 = vrot.lane.b32.xlu0 %v9981_v43, %s11991_s25  ;;  %3896 = vrot.lane.b32.xlu2 %v9981_v43, %s11946_s21 }
 0xb24   : > { %3960 = vrot.lane.b32.xlu1 %v9981_v43, %s11970_s27 }
 0xb2b   : > { %3864 = vrot.lane.b32.xlu0 %v9981_v43, %s11992_s3  ;;  %3928 = vrot.lane.b32.xlu2 %v9981_v43, %s11971_s30 }
 0xb2c   : > { %3832 = vrot.lane.b32.xlu1 %v9981_v43, %s11948_s24 }
 0xb33   : > { %3968 = vrot.lane.b32.xlu0 %v9995_v46, %s11970_s27  ;;  %4000 = vrot.lane.b32.xlu2 %v9995_v46, %s11991_s25 }
 0xb34   : > { %3904 = vrot.lane.b32.xlu1 %v9995_v46, %s11946_s21 }
 0xb3b   : > { %3840 = vrot.lane.b32.xlu0 %v9995_v46, %s11948_s24  ;;  %3872 = vrot.lane.b32.xlu2 %v9995_v46, %s11992_s3 }
 0xb3c   : > { %3936 = vrot.lane.b32.xlu1 %v9995_v46, %s11971_s30 }
 0xb3d   : > { %v10009_v6 = vpop.permute.xlu2 %3988 }
 0xb43   : > { %3898 = vrot.lane.b32.xlu0 %v10011_v52, %s11946_s21  ;;  %3962 = vrot.lane.b32.xlu2 %v10011_v52, %s11970_s27 }
 0xb44   : > { %3994 = vrot.lane.b32.xlu1 %v10011_v52, %s11991_s25 }
 0xb45   : > { %v10019_v59 = vpop.permute.xlu2 %3860 }
 0xb4b   : > { %3930 = vrot.lane.b32.xlu0 %v10011_v52, %s11971_s30  ;;  %3834 = vrot.lane.b32.xlu2 %v10011_v52, %s11948_s24 }
 0xb4c   : > { %3866 = vrot.lane.b32.xlu1 %v10011_v52, %s11992_s3 }
 0xb4d   : > { %v10027_v40 = vpop.permute.xlu2 %3964 }
 0xb53   : > { %4002 = vrot.lane.b32.xlu0 %v10029_v62, %s11991_s25  ;;  %3906 = vrot.lane.b32.xlu2 %v10029_v62, %s11946_s21 }
 0xb54   : > { %3970 = vrot.lane.b32.xlu1 %v10029_v62, %s11970_s27 }
 0xb55   : > { %v10037_v56 = vpop.permute.xlu0 %3956  ;;  %v10039_v61 = vpop.permute.xlu2 %3836 }
 0xb56   : > { %v10041_v37 = vpop.permute.xlu1 %3892 }
 0xb5b   : > { %3874 = vrot.lane.b32.xlu0 %v10029_v62, %s11992_s3  ;;  %3800 = vrot.lane.b32.xlu2 %v9981_v43, %s11947_s23 }
 0xb5c   : > { %3842 = vrot.lane.b32.xlu1 %v10029_v62, %s11948_s24 }
 0xb5d   : > { %v10049_v3 = vpop.permute.xlu0 %3828  ;;  %v3895_v30 = vpop.permute.xlu2 %3894 }
 0xb5e   : > { %v10051_v17 = vpop.permute.xlu1 %3924 }
 0xb63   : > { %3802 = vrot.lane.b32.xlu0 %v10011_v52, %s11947_s23  ;;  %3938 = vrot.lane.b32.xlu2 %v10029_v62, %s11971_s30 }
 0xb64   : > { %3808 = vrot.lane.b32.xlu1 %v9995_v46, %s11947_s23 }
 0xb65   : > { %v10059_v60 = vpop.permute.xlu2 %3926  ;;  %v3901_v41 = vpop.permute.xlu0 %3900 }
 0xb66   : > { %v10061_v55 = vpop.permute.xlu1 %3996 }
 0xb6b   : > { %3796 = vrot.lane.b32.xlu0 %v9925_v58, %s11947_s23  ;;  %3810 = vrot.lane.b32.xlu2 %v10029_v62, %s11947_s23 }
 0xb6c   : > { %3798 = vrot.lane.b32.xlu1 %v9953_v34, %s11947_s23 }
 0xb6d   : > { %v10069_v15 = vpop.permute.xlu0 %3932  ;;  %v10071_v27 = vpop.permute.xlu2 %3998 }
 0xb6e   : > { %v10073_v45 = vpop.permute.xlu1 %3868 }
 0xb73   : > { %3806 = vrot.lane.b32.xlu0 %v9967_v35, %s11947_s23  ;;  %3804 = vrot.lane.b32.xlu2 %v9939_v24, %s11947_s23 }
 0xb74   : > { %4024 = vrot.lane.b32.xlu1 %v9981_v43, %s11945_s0 }
 0xb75   : > { %v10081_v32 = vpop.permute.xlu0 %3990  ;;  %v10083_v8 = vpop.permute.xlu2 %3870 }
 0xb76   : > { %v10085_v53 = vpop.permute.xlu1 %3958 }
 0xb7b   : > { %4032 = vrot.lane.b32.xlu0 %v9995_v46, %s11945_s0  ;;  %4026 = vrot.lane.b32.xlu2 %v10011_v52, %s11945_s0 }
 0xb7c   : > { %4034 = vrot.lane.b32.xlu1 %v10029_v62, %s11945_s0 }
 0xb7d   : > { %v10093_v36 = vpop.permute.xlu0 %3862  ;;  %v3897_v0 = vpop.permute.xlu2 %3896 }
 0xb7e   : > { %v3831_v20 = vpop.permute.xlu1 %3830 }
 0xb83   : > { %4022 = vrot.lane.b32.xlu0 %v9953_v34, %s11945_s0  ;;  %4020 = vrot.lane.b32.xlu2 %v9925_v58, %s11945_s0 }
 0xb84   : > { %4028 = vrot.lane.b32.xlu1 %v9939_v24, %s11945_s0 }
 0xb85   : > { %v10101_v54 = vpop.permute.xlu0 %3966  ;;  %v10103_v18 = vpop.permute.xlu2 %3928 }
 0xb86   : > { %v3903_v2 = vpop.permute.xlu1 %3902 }
 0xb87   : > { %v3909_v49 = vsel %vm732_vm5, %v3895_v30, %v3903_v2 }
 0xb8b   : > { %4030 = vrot.lane.b32.xlu2 %v9967_v35, %s11945_s0 }
 0xb8d   : > { %v3839_v21 = vpop.permute.xlu0 %3838  ;;  %v4001_v16 = vpop.permute.xlu2 %4000 }
 0xb8e   : > { %v10109_v38 = vsel %vm710_vm8, %v3831_v20, %v3839_v21  ;;  %v10113_v31 = vsel %vm710_vm8, %v3839_v21, %v3831_v20  ;;  %v10115_v47 = vpop.permute.xlu1 %3934 }
 0xb8f   : > { %12263 = vst [vmem:[#allocation54_spill] sm:$0xff] %v10109_v38 }
 0xb90   : > { %12264 = vst [vmem:[#allocation56_spill] sm:$0xff] %v10113_v31 }
 0xb95   : > { %v3993_v12 = vpop.permute.xlu0 %3992  ;;  %v10117_v28 = vpop.permute.xlu2 %3872 }
 0xb96   : > { %v10121_v26 = vsel %vm765_vm0, %v4001_v16, %v3993_v12  ;;  %v10123_v13 = vpop.permute.xlu1 %3960 }
 0xb97   : > { %12265 = vst [vmem:[#allocation58_spill] sm:$0xff] %v10121_v26  ;;  %v3913_v26 = vsel %vm732_vm5, %v3903_v2, %v3895_v30  ;;  %v3908_v30 = vsel %vm732_vm5, %v10041_v37, %v3901_v41  ;;  %v3912_v2 = vsel %vm732_vm5, %v3901_v41, %v10041_v37 }
 0xb9d   : > { %v3865_v29 = vpop.permute.xlu0 %3864  ;;  %v3963_v19 = vpop.permute.xlu2 %3962 }
 0xb9e   : > { %v10125_v22 = vpop.permute.xlu1 %3832 }
 0xba5   : > { %v3969_v10 = vpop.permute.xlu0 %3968  ;;  %v10127_v9 = vpop.permute.xlu2 %3834 }
 0xba6   : > { %v3978_v39 = vsel %vm754_vm2, %v3969_v10, %v10123_v13  ;;  %v3905_v63 = vpop.permute.xlu1 %3904 }
 0xba7   : > { %v3910_v24 = vsel %vm732_vm5, %v3897_v0, %v3905_v63  ;;  %v3914_v62 = vsel %vm732_vm5, %v3905_v63, %v3897_v0 }
 0xba8   : > { %v3920_v58 = vmul.f32 %v3914_v62, %v12188_v5  ;;  %v3921_v52 = vmul.f32 %v3910_v24, %v12193_v42  ;;  %v3916_v24 = vmul.f32 %v3912_v2, %v12188_v5 }
 0xbad   : > { %v10132_v33 = vpop.permute.xlu0 %3840  ;;  %v3907_v35 = vpop.permute.xlu2 %3906 }
 0xbae   : > { %v10134_v20 = vpop.permute.xlu1 %3936 }
 0xbaf   : > { %v10140_v21 = vsel %vm743_vm4, %v10134_v20, %v10103_v18 }
 0xbb0   : > { %12266 = vst [vmem:[#allocation64_spill] sm:$0xff] %v10140_v21 }
 0xbb5   : > { %v3899_v46 = vpop.permute.xlu0 %3898  ;;  %v10168_v25 = vpop.permute.xlu2 %3800 }
 0xbb6   : > { %v3911_v51 = vsel %vm732_vm5, %v3899_v46, %v3907_v35  ;;  %v3915_v21 = vsel %vm732_vm5, %v3907_v35, %v3899_v46  ;;  %v10154_v34 = vpop.permute.xlu1 %3994  ;;  %v3918_v35 = vmul.f32 %v3913_v26, %v12188_v5  ;;  %v3919_v46 = vmul.f32 %v3909_v49, %v12193_v42 }
 0xbb7   : > { %v3922_v0 = vmul.f32 %v3915_v21, %v12188_v5  ;;  %v3923_v63 = vmul.f32 %v3911_v51, %v12193_v42  ;;  %v3917_v51 = vmul.f32 %v3908_v30, %v12193_v42  ;;  %v4006_v49 = vsel %vm765_vm0, %v3993_v12, %v4001_v16 }
 0xbb8   : > { %v4064_v11 = vpack.c.bf16 %v3918_v35, %v3916_v24  ;;  %v4004_v12 = vsel %vm765_vm0, %v10009_v6, %v10061_v55  ;;  %v10197_v26 = vmul.f32 %v3978_v39, %v12209_v1  ;;  %v3880_v39 = vsel %vm721_vm6, %v10073_v45, %v10019_v59 }
 0xbb9   : > { %v4066_v43 = vpack.c.bf16 %v3922_v0, %v3920_v58  ;;  %v4067_v62 = vpack.c.bf16 %v3923_v63, %v3921_v52  ;;  %v4065_v38 = vpack.c.bf16 %v3919_v46, %v3917_v51  ;;  %v4012_v46 = vmul.f32 %v4004_v12, %v12190_v23 }
 0xbba   : > { %v3878_v24 = vsel %vm721_vm6, %v3865_v29, %v10117_v28  ;;  %v3877_v51 = vsel %vm721_vm6, %v10093_v36, %v10083_v8 }
 0xbbb   : > { %4132 = vmatpush.bf16.msra.mxu2 %v4066_v43  ;;  %4189 = vmatpush.bf16.msrb.mxu1 %v4067_v62  ;;  %v4005_v43 = vsel %vm765_vm0, %v10081_v32, %v10071_v27  ;;  %v3882_v62 = vsel %vm721_vm6, %v10117_v28, %v3865_v29 }
 0xbbc   : > { %v4014_v63 = vmul.f32 %v4005_v43, %v12190_v23  ;;  %v3888_v29 = vmul.f32 %v3882_v62, %v6711_v48 }
 0xbbd   : > { %v10172_v21 = vpop.permute.xlu0 %3930  ;;  %v10174_v37 = vpop.permute.xlu2 %3938 }
 0xbbe   : > { %v3867_v31 = vpop.permute.xlu1 %3866  ;;  %v4080_v28 = vpack.c.bf16 %v4014_v63, %v4012_v46  ;;  %v3972_v63 = vsel %vm754_vm2, %v10037_v56, %v10027_v40 }
 0xbbf   : > { %4133 = vmatpush.bf16.msra.mxu2 %v4064_v11  ;;  %4190 = vmatpush.bf16.msrb.mxu1 %v4065_v38  ;;  %v4016_v11 = vmul.f32 %v4006_v49, %v12190_v23  ;;  %v3881_v49 = vsel %vm721_vm6, %v10083_v8, %v10093_v36  ;;  %v3889_v36 = vmul.f32 %v3878_v24, %v6717_v50 }
 0xbc5   : > { %v10178_v58 = vpop.permute.xlu0 %4002 }
 0xbc6   : > { %v3971_v52 = vpop.permute.xlu1 %3970  ;;  %v4007_v41 = vsel %vm765_vm0, %v10154_v34, %v10178_v58 }
 0xbc7   : > { %v3979_v38 = vsel %vm754_vm2, %v3971_v52, %v3963_v19  ;;  %v4018_v16 = vmul.f32 %v4007_v41, %v12190_v23  ;;  %v3975_v2 = vsel %vm754_vm2, %v3963_v19, %v3971_v52  ;;  %v3974_v19 = vsel %vm754_vm2, %v10123_v13, %v3969_v10  ;;  %v10230_v52 = vpop.permute.xlu2 %3810 }
 0xbc8   : > { %v10200_v0 = vmul.f32 %v3979_v38, %v12209_v1  ;;  %v3986_v43 = vmul.f32 %v3975_v2, %v12207_v57  ;;  %v3973_v13 = vsel %vm754_vm2, %v10085_v53, %v10101_v54  ;;  %v3984_v38 = vmul.f32 %v3974_v19, %v12207_v57 }
 0xbc9   : > { %v4082_v30 = vpack.c.bf16 %v4018_v16, %v4016_v11  ;;  %v3887_v2 = vmul.f32 %v3877_v51, %v6717_v50  ;;  %v3884_v19 = vmul.f32 %v3880_v39, %v6711_v48  ;;  %v3980_v39 = vmul.f32 %v3972_v63, %v12207_v57 }
 0xbca   : > { %v4079_v35 = vpack.c.bf16 %v10200_v0, %v10197_v26  ;;  %v4078_v62 = vpack.c.bf16 %v3986_v43, %v3984_v38  ;;  %v3850_v51 = vsel %vm710_vm8, %v10132_v33, %v10125_v22  ;;  %v3846_v43 = vsel %vm710_vm8, %v10125_v22, %v10132_v33  ;;  %v5997_v26 = vld [vmem:[%s11696_s16 + $0x24] sm:$0xf0] }
 0xbcb   : > { %4151 = vmatpush.bf16.msra.mxu3 %v4082_v30  ;;  %v3876_v30 = vsel %vm721_vm6, %v10019_v59, %v10073_v45  ;;  %v3943_v59 = vsel %vm743_vm4, %v10172_v21, %v10174_v37  ;;  %v3848_v33 = vsel %vm710_vm8, %v10039_v61, %v10049_v3  ;;  %v3940_v63 = vsel %vm743_vm4, %v10051_v17, %v10069_v15 }
 0xbcd   : > { %v3875_v41 = vpop.permute.xlu0 %3874 }
 0xbce   : > { %v3843_v10 = vpop.permute.xlu1 %3842  ;;  %v3879_v11 = vsel %vm721_vm6, %v3867_v31, %v3875_v41  ;;  %v3883_v8 = vsel %vm721_vm6, %v3875_v41, %v3867_v31  ;;  %v3886_v31 = vmul.f32 %v3881_v49, %v6711_v48  ;;  %v3982_v41 = vmul.f32 %v3973_v13, %v12207_v57 }
 0xbcf   : > { %v3890_v16 = vmul.f32 %v3883_v8, %v6711_v48  ;;  %v3891_v12 = vmul.f32 %v3879_v11, %v6717_v50  ;;  %4152 = vmatpush.bf16.msra.mxu3 %v4080_v28  ;;  %v3851_v28 = vsel %vm710_vm8, %v3843_v10, %v10127_v9  ;;  %v3885_v11 = vmul.f32 %v3876_v30, %v6717_v50 }
 0xbd0   : > { %v3847_v45 = vsel %vm710_vm8, %v10127_v9, %v3843_v10  ;;  %v4060_v49 = vpack.c.bf16 %v3886_v31, %v3884_v19  ;;  %v3942_v9 = vsel %vm743_vm4, %v10103_v18, %v10134_v20  ;;  %v3858_v13 = vmul.f32 %v3851_v28, %v6740_v4 }
 0xbd1   : > { %v4062_v46 = vpack.c.bf16 %v3890_v16, %v3888_v29  ;;  %v4063_v24 = vpack.c.bf16 %v3891_v12, %v3889_v36  ;;  %v4061_v10 = vpack.c.bf16 %v3887_v2, %v3885_v11  ;;  %v3941_v8 = vsel %vm743_vm4, %v10059_v60, %v10115_v47  ;;  %v3805_v12 = vpop.permute.xlu2 %3804  ;;  %v12267_v2 = vld [vmem:[#allocation56_spill] sm:$0xff] }
 0xbd2   : > { %v3954_v36 = vmul.f32 %v3943_v59, %v12221_v14  ;;  %v3859_v38 = vmul.f32 %v3847_v45, %v6746_v7  ;;  %v4076_v22 = vpack.c.bf16 %v3982_v41, %v3980_v39  ;;  %v3844_v18 = vsel %vm710_vm8, %v10049_v3, %v10039_v61  ;;  %v12268_v61 = vld [vmem:[#allocation54_spill] sm:$0xff] }
 0xbd3   : > { %4134 = vmatpush.bf16.msra.mxu2 %v4062_v46  ;;  %4153 = vmatpush.bf16.msra.mxu3 %v4078_v62  ;;  %v3856_v20 = vmul.f32 %v3850_v51, %v6740_v4  ;;  %v3857_v30 = vmul.f32 %v3846_v43, %v6746_v7  ;;  %v3952_v31 = vmul.f32 %v3942_v9, %v12221_v14  ;;  %v12269_v43 = vld [vmem:[#allocation11_spill] sm:$0xff] }
 0xbd4   : > { %4191 = vmatpush.bf16.msrb.mxu1 %v4063_v24  ;;  %v3854_v46 = vmul.f32 %v12267_v2, %v6740_v4  ;;  %v3855_v3 = vmul.f32 %v12268_v61, %v6746_v7  ;;  %v3950_v62 = vmul.f32 %v3941_v8, %v12221_v14  ;;  %v3852_v59 = vmul.f32 %v3848_v33, %v6740_v4  ;;  %v12271_v33 = vld [vmem:[#allocation61_spill] sm:$0xff] }
 0xbd5   : > { %v3803_v29 = vpop.permute.xlu0 %3802  ;;  %v4058_v24 = vpack.c.bf16 %v3858_v13, %v3856_v20  ;;  %v4074_v28 = vpack.c.bf16 %v3954_v36, %v3952_v31  ;;  %v4059_v11 = vpack.c.bf16 %v3859_v38, %v3857_v30  ;;  %v3853_v51 = vmul.f32 %v3844_v18, %v6746_v7  ;;  %v12270_v36 = vld [vmem:[#allocation12_spill] sm:$0xff]  ;;  %v12272_v20 = vld [vmem:[#allocation62_spill] sm:$0xff] }
 0xbd6   : > { %v3809_v16 = vpop.permute.xlu1 %3808  ;;  %v3819_v41 = vsel %vm699_vm7, %v10230_v52, %v3803_v29  ;;  %v3815_v39 = vsel %vm699_vm7, %v3803_v29, %v10230_v52  ;;  %v4056_v8 = vpack.c.bf16 %v3854_v46, %v3852_v59  ;;  %v4011_v31 = vsel %vm765_vm0, %v10178_v58, %v10154_v34  ;;  %v5985_v34 = vld [vmem:[%s11696_s16 + $0xc] sm:$0xf0] }
 0xbd7   : > { %4135 = vmatpush.bf16.msra.mxu2 %v4060_v49  ;;  %4154 = vmatpush.bf16.msra.mxu3 %v4076_v22  ;;  %v3818_v19 = vsel %vm699_vm7, %v3809_v16, %v10168_v25  ;;  %v3814_v45 = vsel %vm699_vm7, %v10168_v25, %v3809_v16  ;;  %v3948_v49 = vmul.f32 %v3940_v63, %v12221_v14 }
 0xbd8   : > { %4192 = vmatpush.bf16.msrb.mxu1 %v4061_v10  ;;  %v3824_v9 = vmul.f32 %v3818_v19, %v12269_v43  ;;  %v3826_v13 = vmul.f32 %v3819_v41, %v12269_v43  ;;  %v3825_v38 = vmul.f32 %v3814_v45, %v12270_v36  ;;  %v3827_v25 = vmul.f32 %v3815_v39, %v12270_v36  ;;  %v6331_v19 = vld [vmem:[%s11696_s16 + $0x4] sm:$0xf] }
 0xbd9   : > { %v4072_v22 = vpack.c.bf16 %v3950_v62, %v3948_v49  ;;  %v4057_v52 = vpack.c.bf16 %v3855_v3, %v3853_v51  ;;  %v4027_v29 = vpop.permute.xlu2 %4026  ;;  %v4070_v63 = vpack.c.bf16 %v12272_v20, %v12271_v33  ;;  %v12273_v3 = vld [vmem:[#allocation9_spill] sm:$0xff]  ;;  %v12274_v62 = vld [vmem:[#allocation50_spill] sm:$0xff]  ;;  %v4009_v58 = vsel %vm765_vm0, %v10071_v27, %v10081_v32  ;;  %v6332_v32 = vld [vmem:[%s11696_s16 + $0x8] sm:$0xf0] }
 0xbda   : > { %v4054_v18 = vpack.c.bf16 %v3826_v13, %v3824_v9  ;;  %v4055_v30 = vpack.c.bf16 %v3827_v25, %v3825_v38  ;;  %v5983_v27 = vld [vmem:[%s11696_s16] sm:$0xf]  ;;  %v4008_v9 = vsel %vm765_vm0, %v10061_v55, %v10009_v6  ;;  %v3977_v20 = vsel %vm754_vm2, %v10101_v54, %v10085_v53  ;;  %v10396_v54 = vld [vmem:[%s11931_s2 + $0x18] ss:$0 sm:$0xff] }
 0xbdb   : > { %4136 = vmatpush.bf16.msra.mxu2 %v4058_v24  ;;  %4155 = vmatpush.bf16.msra.mxu3 %v4074_v28  ;;  %v4068_v24 = vpack.c.bf16 %v12274_v62, %v12273_v3  ;;  %v12276_v13 = vld [vmem:[#allocation58_spill] sm:$0xff]  ;;  %12278 = vst [vmem:[#allocation55_spill] sm:$0xff] %v10396_v54 }
 0xbdc   : > { %4193 = vmatpush.bf16.msrb.mxu1 %v4059_v11 }
 0xbdd   : > { %v3797_v10 = vpop.permute.xlu0 %3796 }
 0xbde   : > { %v3799_v16 = vpop.permute.xlu1 %3798  ;;  %v3812_v2 = vsel %vm699_vm7, %v3797_v10, %v3805_v12  ;;  %v3816_v46 = vsel %vm699_vm7, %v3805_v12, %v3797_v10  ;;  %v12275_v12 = vld [vmem:[#allocation6_spill] sm:$0xff] }
 0xbdf   : > { %4137 = vmatpush.bf16.msra.mxu2 %v4056_v8  ;;  %4156 = vmatpush.bf16.msra.mxu3 %v4072_v22  ;;  %v4019_v41 = vmul.f32 %v4011_v31, %v12275_v12  ;;  %v3820_v45 = vmul.f32 %v3816_v46, %v12269_v43  ;;  %v3821_v39 = vmul.f32 %v3812_v2, %v12270_v36 }
 0xbe0   : > { %4194 = vmatpush.bf16.msrb.mxu1 %v4057_v52  ;;  %v4017_v10 = vmul.f32 %v12276_v13, %v12275_v12  ;;  %v10370_v8 = vor.u32 %v6331_v19, %v5985_v34  ;;  %v4015_v38 = vmul.f32 %v4009_v58, %v12275_v12  ;;  %v5984_v52 = vor.u32 %v6332_v32, %v5983_v27  ;;  %v5995_v32 = vld [vmem:[%s11696_s16 + $0x18] sm:$0xf] }
 0xbe1   : > { %v4021_v33 = vpop.permute.xlu2 %4020  ;;  %v3983_v19 = vmul.f32 %v3977_v20, %v12209_v1  ;;  %v3945_v13 = vsel %vm743_vm4, %v10115_v47, %v10059_v60  ;;  %v3944_v60 = vsel %vm743_vm4, %v10069_v15, %v10051_v17  ;;  %v12282_v17 = vld [vmem:[#allocation63_spill] sm:$0xff] }
 0xbe2   : > { %v4083_v22 = vpack.c.bf16 %v4019_v41, %v4017_v10  ;;  %v3947_v41 = vsel %vm743_vm4, %v10174_v37, %v10172_v21  ;;  %v6334_v37 = vld [vmem:[%s11696_s16 + $0x1c] sm:$0xf]  ;;  %v12283_v15 = vld [vmem:[#allocation3_spill] sm:$0xff] }
 0xbe3   : > { %4138 = vmatpush.bf16.msra.mxu2 %v4054_v18  ;;  %4157 = vmatpush.bf16.msra.mxu3 %v4070_v63  ;;  %v4013_v18 = vmul.f32 %v4008_v9, %v12275_v12  ;;  %v6335_v9 = vld [vmem:[%s11696_s16 + $0x20] sm:$0xf0] }
 0xbe4   : > { %4195 = vmatpush.bf16.msrb.mxu1 %v4055_v30 }
 0xbe5   : > { %v3807_v61 = vpop.permute.xlu0 %3806  ;;  %v4081_v55 = vpack.c.bf16 %v4015_v38, %v4013_v18  ;;  %v6000_v18 = vor.u32 %v6334_v37, %v5997_v26 }
 0xbe6   : > { %v4025_v28 = vpop.permute.xlu1 %4024  ;;  %v3813_v11 = vsel %vm699_vm7, %v3799_v16, %v3807_v61  ;;  %v3817_v59 = vsel %vm699_vm7, %v3807_v61, %v3799_v16  ;;  %v10390_v61 = vld [vmem:[%s11931_s2 + $0x10] ss:$0 sm:$0xff] }
 0xbe7   : > { %v3822_v51 = vmul.f32 %v3817_v59, %v12269_v43  ;;  %v3823_v49 = vmul.f32 %v3813_v11, %v12270_v36  ;;  %4158 = vmatpush.bf16.msra.mxu3 %v4068_v24  ;;  %12277 = vst [vmem:[#allocation53_spill] sm:$0xff] %v10390_v61 }
 0xbe9   : > { %v4052_v25 = vpack.c.bf16 %v3822_v51, %v3820_v45  ;;  %v4053_v16 = vpack.c.bf16 %v3823_v49, %v3821_v39  ;;  %v4031_v11 = vpop.permute.xlu2 %4030 }
 0xbea   : > { %4159 = vmatmul.bf16.vlgmr.msra.gmra.mxu3 %v10370_v8 }
 0xbeb   : > { %4139 = vmatpush.bf16.msra.mxu2 %v4052_v25  ;;  %4196 = vmatpush.bf16.msrb.mxu1 %v4053_v16  ;;  %v5991_v25 = vld [vmem:[%s11696_s16 + $0x8] sm:$0xf]  ;;  %v6333_v16 = vld [vmem:[%s11696_s16 + $0x10] sm:$0xf0] }
 0xbed   : > { %v4033_v6 = vpop.permute.xlu0 %4032 }
 0xbee   : > { %v4035_v63 = vpop.permute.xlu1 %4034  ;;  %v4038_v30 = vsel %vm776_vm1, %v4025_v28, %v4033_v6  ;;  %v4042_v31 = vsel %vm776_vm1, %v4033_v6, %v4025_v28  ;;  %4140 = vmatmul.bf16.vlgmr.msra.gmra.mxu2 %v5984_v52  ;;  %4197 = vmatmul.bf16.vlgmr.msrb.gmra.mxu1 %v5984_v52  ;;  %v5996_v6 = vor.u32 %v6335_v9, %v5995_v32 }
 0xbef   : > { %4208 = vmatpush.bf16.msrb.mxu2 %v4083_v22  ;;  %v4039_v2 = vsel %vm776_vm1, %v4027_v29, %v4035_v63  ;;  %v4043_v46 = vsel %vm776_vm1, %v4035_v63, %v4027_v29  ;;  %v4048_v53 = vmul.f32 %v10390_v61, %v4038_v30  ;;  %v4049_v3 = vmul.f32 %v10396_v54, %v4042_v31  ;;  %v12280_v22 = vld [vmem:[#allocation64_spill] sm:$0xff] }
 0xbf0   : > { %v4050_v62 = vmul.f32 %v10390_v61, %v4039_v2  ;;  %v4051_v24 = vmul.f32 %v10396_v54, %v4043_v46  ;;  %v3976_v29 = vsel %vm754_vm2, %v10027_v40, %v10037_v56  ;;  %v12279_v40 = vld [vmem:[#allocation8_spill] sm:$0xff]  ;;  %v5992_v63 = vor.u32 %v6333_v16, %v5991_v25 }
 0xbf1   : > { %v3981_v28 = vmul.f32 %v3976_v29, %v12209_v1  ;;  %v3955_v56 = vmul.f32 %v3947_v41, %v12279_v40  ;;  %v3953_v52 = vmul.f32 %v12280_v22, %v12279_v40  ;;  %v3949_v30 = vmul.f32 %v3944_v60, %v12279_v40  ;;  %v12284_v46 = vld [vmem:[#allocation4_spill] sm:$0xff] }
 0xbf2   : > { %v4086_v34 = vpack.c.bf16 %v4050_v62, %v4048_v53  ;;  %v4087_v58 = vpack.c.bf16 %v4051_v24, %v4049_v3  ;;  %v4071_v2 = vpack.c.bf16 %v12283_v15, %v12282_v17  ;;  %v12285_v53 = vld [vmem:[#allocation10_spill] sm:$0xff]  ;;  %v6336_v24 = vld [vmem:[%s11696_s16 + $0x28] sm:$0xf0] }
 0xbf3   : > { %4209 = vmatpush.bf16.msrb.mxu2 %v4081_v55  ;;  %v4077_v21 = vpack.c.bf16 %v3983_v19, %v3981_v28  ;;  %v3951_v55 = vmul.f32 %v3945_v13, %v12279_v40  ;;  %v4075_v20 = vpack.c.bf16 %v3955_v56, %v3953_v52  ;;  %v4069_v3 = vpack.c.bf16 %v12285_v53, %v12284_v46  ;;  %v6003_v62 = vld [vmem:[%s11696_s16 + $0x20] sm:$0xf] }
 0xbf4   : > { %4176 = vmatpush.bf16.msrb.mxu0 %v4086_v34  ;;  %4233 = vmatpush.bf16.msrb.mxu3 %v4087_v58  ;;  %v6004_v29 = vor.u32 %v6336_v24, %v6003_v62 }
 0xbf5   : > { %v4023_v59 = vpop.permute.xlu0 %4022  ;;  %v4073_v31 = vpack.c.bf16 %v3951_v55, %v3949_v30 }
 0xbf6   : > { %v4029_v45 = vpop.permute.xlu1 %4028  ;;  %v4037_v39 = vsel %vm776_vm1, %v4023_v59, %v4031_v11  ;;  %v4041_v51 = vsel %vm776_vm1, %v4031_v11, %v4023_v59 }
 0xbf7   : > { %4210 = vmatpush.bf16.msrb.mxu2 %v4079_v35  ;;  %v4036_v0 = vsel %vm776_vm1, %v4021_v33, %v4029_v45  ;;  %v4040_v35 = vsel %vm776_vm1, %v4029_v45, %v4021_v33  ;;  %v4046_v49 = vmul.f32 %v10390_v61, %v4037_v39  ;;  %v4047_v27 = vmul.f32 %v10396_v54, %v4041_v51 }
 0xbf8   : > { %v4044_v10 = vmul.f32 %v10390_v61, %v4036_v0  ;;  %v4045_v38 = vmul.f32 %v10396_v54, %v4040_v35 }
 0xbfa   : > { %v4084_v47 = vpack.c.bf16 %v4046_v49, %v4044_v10  ;;  %v4085_v33 = vpack.c.bf16 %v4047_v27, %v4045_v38  ;;  %4164 = vmatmul.bf16.gmra.mxu3 %v6000_v18 }
 0xbfb   : > { %4211 = vmatpush.bf16.msrb.mxu2 %v4077_v21 }
 0xbfc   : > { %4177 = vmatpush.bf16.msrb.mxu0 %v4084_v47  ;;  %4234 = vmatpush.bf16.msrb.mxu3 %v4085_v33 }
 0xbfe   : > { %4145 = vmatmul.bf16.gmra.mxu2 %v5996_v6  ;;  %4202 = vmatmul.bf16.gmra.mxu1 %v5996_v6 }
 0xbff   : > { %4212 = vmatpush.bf16.msrb.mxu2 %v4075_v20  ;;  %6005 = vmatmul.msk.bf16.vlgmr.msrb.gmra.mxu0 %vm12281_vm15, %v5992_v63 }
 0xc03   : > { %4213 = vmatpush.bf16.msrb.mxu2 %v4073_v31 }
 0xc07   : > { %4214 = vmatpush.bf16.msrb.mxu2 %v4071_v2 }
 0xc0a   : > { %6007 = vmatmul.msk.bf16.vlgmr.msrb.gmra.mxu3 %vm12286_vm14, %v5992_v63 }
 0xc0b   : > { %4215 = vmatpush.bf16.msrb.mxu2 %v4069_v3 }
 0xc0e   : > { %4216 = vmatmul.bf16.vlgmr.msrb.gmra.mxu2 %v10370_v8 }
 0xc0f   : > { %6006 = vmatmul.msk.bf16.gmra.mxu0 %vm12287_vm11, %v6004_v29 }
 0xc1a   : > { %6008 = vmatmul.msk.bf16.gmra.mxu3 %vm12288_vm10, %v6004_v29 }
 0xc1e   : > { %4221 = vmatmul.bf16.gmra.mxu2 %v6000_v18 }
 0xc6b   : > { %v4198_v18 = vpop.f32.mrf.mxu1 }
 0xc6d   : > { %v4160_v34 = vpop.f32.mrf.mxu3 }
 0xc71   : > { %v4141_v19 = vpop.f32.mrf.mxu2 }
 0xc72   : > { %v4161_v58 = vadd.f32 %v4160_v34, %v4141_v19 }
 0xc73   : > { %v4200_v63 = vpop.f32.mrf.mxu1 }
 0xc75   : > { %v4162_v56 = vpop.f32.mrf.mxu3 }
 0xc79   : > { %v4143_v8 = vpop.f32.mrf.mxu2 }
 0xc7a   : > { %v4163_v39 = vadd.f32 %v4162_v56, %v4143_v8 }
 0xc7b   : > { %v4203_v53 = vpop.f32.mrf.mxu1 }
 0xc7c   : > { %v4179_v41 = vpop.f32.mrf.mxu0 }
 0xc7d   : > { %v4180_v28 = vadd.f32 %v4179_v41, %v4161_v58  ;;  %v4165_v0 = vpop.f32.mrf.mxu3 }
 0xc7f   : > { %vm4246_vm12 = vcmp.ge.f32.partialorder %v4180_v28, 0.0  ;;  %v4254_v11 = vmul.f32 0.01, %v4180_v28 }
 0xc81   : > { %v10472_v59 = vsel %vm4246_vm12, %v4180_v28, %v4254_v11  ;;  %v4146_v26 = vpop.f32.mrf.mxu2 }
 0xc82   : > { %12289 = vst [vmem:[#allocation7_spill] sm:$0xff] %v10472_v59  ;;  %4430 = vrot.lane.b32.xlu1 %v10472_v59, %s11970_s27  ;;  %4462 = vrot.lane.b32.xlu0 %v10472_v59, %s11991_s25  ;;  %v4166_v35 = vadd.f32 %v4165_v0, %v4146_v26 }
 0xc83   : > { %4366 = vrot.lane.b32.xlu2 %v10472_v59, %s11946_s21  ;;  %v4205_v41 = vpop.f32.mrf.mxu1 }
 0xc84   : > { %v4181_v45 = vpop.f32.mrf.mxu0 }
 0xc85   : > { %v4182_v51 = vadd.f32 %v4181_v45, %v4163_v39  ;;  %v4167_v10 = vpop.f32.mrf.mxu3 }
 0xc87   : > { %v4256_v21 = vmul.f32 0.01, %v4182_v51  ;;  %vm4248_vm9 = vcmp.ge.f32.partialorder %v4182_v51, 0.0 }
 0xc89   : > { %v10486_v37 = vsel %vm4248_vm9, %v4182_v51, %v4256_v21  ;;  %v4148_v13 = vpop.f32.mrf.mxu2  ;;  %vm4851_vm9 = vcmp.lt.s32.totalorder %v12181_v44, 30 }
 0xc8a   : > { %4302 = vrot.lane.b32.xlu1 %v10472_v59, %s11948_s24  ;;  %4334 = vrot.lane.b32.xlu0 %v10472_v59, %s11992_s3  ;;  %12290 = vst [vmem:[#allocation59_spill] sm:$0xff] %v10486_v37  ;;  %v4168_v38 = vadd.f32 %v4167_v10, %v4148_v13 }
 0xc8b   : > { %4398 = vrot.lane.b32.xlu2 %v10472_v59, %s11971_s30 }
 0xc8c   : > { %v4184_v49 = vpop.f32.mrf.mxu0 }
 0xc8d   : > { %v4185_v27 = vadd.f32 %v4184_v49, %v4166_v35  ;;  %v4236_v33 = vpop.f32.mrf.mxu3 }
 0xc8f   : > { %v4258_v32 = vmul.f32 0.01, %v4185_v27  ;;  %vm4250_vm3 = vcmp.ge.f32.partialorder %v4185_v27, 0.0 }
 0xc91   : > { %v10500_v9 = vsel %vm4250_vm3, %v4185_v27, %v4258_v32  ;;  %v4217_v60 = vpop.f32.mrf.mxu2  ;;  %vm4835_vm3 = vcmp.lt.s32.totalorder %v12181_v44, 31 }
 0xc92   : > { %4464 = vrot.lane.b32.xlu1 %v10486_v37, %s11991_s25  ;;  %4368 = vrot.lane.b32.xlu0 %v10486_v37, %s11946_s21  ;;  %12291 = vst [vmem:[#allocation57_spill] sm:$0xff] %v10500_v9  ;;  %v4218_v47 = vadd.f32 %v4217_v60, %v4198_v18 }
 0xc93   : > { %4432 = vrot.lane.b32.xlu2 %v10486_v37, %s11970_s27 }
 0xc94   : > { %v4186_v25 = vpop.f32.mrf.mxu0  ;;  %v4237_v6 = vadd.f32 %v4236_v33, %v4218_v47 }
 0xc95   : > { %v4187_v16 = vadd.f32 %v4186_v25, %v4168_v38  ;;  %v4238_v17 = vpop.f32.mrf.mxu3 }
 0xc96   : > { %v4255_v55 = vmul.f32 0.01, %v4237_v6  ;;  %vm4247_vm14 = vcmp.ge.f32.partialorder %v4237_v6, 0.0 }
 0xc97   : > { %v4260_v22 = vmul.f32 0.01, %v4187_v16  ;;  %vm4252_vm15 = vcmp.ge.f32.partialorder %v4187_v16, 0.0 }
 0xc98   : > { %v10528_v20 = vsel %vm4247_vm14, %v4237_v6, %v4255_v55 }
 0xc99   : > { %v10514_v52 = vsel %vm4252_vm15, %v4187_v16, %v4260_v22  ;;  %12293 = vst [vmem:[#allocation60_spill] sm:$0xff] %v10528_v20  ;;  %v4219_v30 = vpop.f32.mrf.mxu2  ;;  %vm4867_vm15 = vcmp.lt.s32.totalorder %v12181_v44, 18 }
 0xc9a   : > { %4336 = vrot.lane.b32.xlu1 %v10486_v37, %s11992_s3  ;;  %4400 = vrot.lane.b32.xlu0 %v10486_v37, %s11971_s30  ;;  %12292 = vst [vmem:[#allocation2_spill] sm:$0xff] %v10514_v52  ;;  %v4220_v31 = vadd.f32 %v4219_v30, %v4200_v63 }
 0xc9b   : > { %4304 = vrot.lane.b32.xlu2 %v10486_v37, %s11948_s24 }
 0xc9c   : > { %v4239_v15 = vadd.f32 %v4238_v17, %v4220_v31 }
 0xc9d   : > { %v4241_v24 = vpop.f32.mrf.mxu3 }
 0xc9e   : > { %v4257_v2 = vmul.f32 0.01, %v4239_v15  ;;  %vm4249_vm11 = vcmp.ge.f32.partialorder %v4239_v15, 0.0 }
 0xca0   : > { %v10542_v46 = vsel %vm4249_vm11, %v4239_v15, %v4257_v2  ;;  %v12299_v15 = vld [vmem:[#allocation13_spill] sm:$0xff] }
 0xca1   : > { %12294 = vst [vmem:[#allocation51_spill] sm:$0xff] %v10542_v46  ;;  %v4222_v3 = vpop.f32.mrf.mxu2 }
 0xca2   : > { %4466 = vrot.lane.b32.xlu1 %v10500_v9, %s11991_s25  ;;  %4370 = vrot.lane.b32.xlu0 %v10500_v9, %s11946_s21  ;;  %v4223_v62 = vadd.f32 %v4222_v3, %v4203_v53 }
 0xca3   : > { %4434 = vrot.lane.b32.xlu2 %v10500_v9, %s11970_s27 }
 0xca4   : > { %v4242_v29 = vadd.f32 %v4241_v24, %v4223_v62  ;;  %v12300_v62 = vld [vmem:[#allocation14_spill] sm:$0xff] }
 0xca5   : > { %v4243_v56 = vpop.f32.mrf.mxu3 }
 0xca6   : > { %v4259_v19 = vmul.f32 0.01, %v4242_v29  ;;  %vm4251_vm10 = vcmp.ge.f32.partialorder %v4242_v29, 0.0 }
 0xca8   : > { %v10558_v58 = vsel %vm4251_vm10, %v4242_v29, %v4259_v19 }
 0xca9   : > { %12295 = vst [vmem:[#allocation33_spill] sm:$0xff] %v10558_v58  ;;  %v4224_v28 = vpop.f32.mrf.mxu2 }
 0xcaa   : > { %4338 = vrot.lane.b32.xlu1 %v10500_v9, %s11992_s3  ;;  %4402 = vrot.lane.b32.xlu0 %v10500_v9, %s11971_s30  ;;  %v4225_v8 = vadd.f32 %v4224_v28, %v4205_v41 }
 0xcab   : > { %4306 = vrot.lane.b32.xlu2 %v10500_v9, %s11948_s24 }
 0xcac   : > { %v4244_v45 = vadd.f32 %v4243_v56, %v4225_v8 }
 0xcae   : > { %v4261_v39 = vmul.f32 0.01, %v4244_v45  ;;  %vm4253_vm12 = vcmp.ge.f32.partialorder %v4244_v45, 0.0 }
 0xcb0   : > { %v10576_v21 = vsel %vm4253_vm12, %v4244_v45, %v4261_v39 }
 0xcb1   : > { %12296 = vst [vmem:[#allocation39_spill] sm:$0xff] %v10576_v21 }
 0xcb2   : > { %4372 = vrot.lane.b32.xlu1 %v10514_v52, %s11946_s21  ;;  %4436 = vrot.lane.b32.xlu0 %v10514_v52, %s11970_s27 }
 0xcb3   : > { %4468 = vrot.lane.b32.xlu2 %v10514_v52, %s11991_s25 }
 0xcba   : > { %4404 = vrot.lane.b32.xlu1 %v10514_v52, %s11971_s30  ;;  %4308 = vrot.lane.b32.xlu0 %v10514_v52, %s11948_s24 }
 0xcbb   : > { %4340 = vrot.lane.b32.xlu2 %v10514_v52, %s11992_s3 }
 0xcc2   : > { %4438 = vrot.lane.b32.xlu0 %v10528_v20, %s11970_s27  ;;  %4374 = vrot.lane.b32.xlu1 %v10528_v20, %s11946_s21 }
 0xcc3   : > { %4470 = vrot.lane.b32.xlu2 %v10528_v20, %s11991_s25 }
 0xcca   : > { %4310 = vrot.lane.b32.xlu0 %v10528_v20, %s11948_s24  ;;  %4406 = vrot.lane.b32.xlu1 %v10528_v20, %s11971_s30 }
 0xccb   : > { %4342 = vrot.lane.b32.xlu2 %v10528_v20, %s11992_s3 }
 0xcd2   : > { %4472 = vrot.lane.b32.xlu0 %v10542_v46, %s11991_s25  ;;  %4440 = vrot.lane.b32.xlu1 %v10542_v46, %s11970_s27 }
 0xcd3   : > { %4376 = vrot.lane.b32.xlu2 %v10542_v46, %s11946_s21 }
 0xcda   : > { %4344 = vrot.lane.b32.xlu0 %v10542_v46, %s11992_s3  ;;  %4312 = vrot.lane.b32.xlu1 %v10542_v46, %s11948_s24 }
 0xcdb   : > { %4408 = vrot.lane.b32.xlu2 %v10542_v46, %s11971_s30 }
 0xcdd   : > { %v10556_v34 = vpop.permute.xlu2 %4366 }
 0xce2   : > { %4474 = vrot.lane.b32.xlu0 %v10558_v58, %s11991_s25  ;;  %4442 = vrot.lane.b32.xlu1 %v10558_v58, %s11970_s27 }
 0xce3   : > { %4378 = vrot.lane.b32.xlu2 %v10558_v58, %s11946_s21 }
 0xce5   : > { %v10566_v11 = vpop.permute.xlu2 %4398 }
 0xcea   : > { %4346 = vrot.lane.b32.xlu0 %v10558_v58, %s11992_s3  ;;  %4314 = vrot.lane.b32.xlu1 %v10558_v58, %s11948_s24 }
 0xceb   : > { %4410 = vrot.lane.b32.xlu2 %v10558_v58, %s11971_s30 }
 0xced   : > { %v10574_v51 = vpop.permute.xlu2 %4432 }
 0xcf2   : > { %4380 = vrot.lane.b32.xlu0 %v10576_v21, %s11946_s21  ;;  %4476 = vrot.lane.b32.xlu1 %v10576_v21, %s11991_s25  ;;  %s6464_s21 = smov 33   ;;  %s6478_s25 = smov 95  }
 0xcf3   : > { %4444 = vrot.lane.b32.xlu2 %v10576_v21, %s11970_s27  ;;  %s6468_s27 = smov 31  }
 0xcf4   : > { %v10584_v26 = vpop.permute.xlu1 %4430  ;;  %v10586_v0 = vpop.permute.xlu0 %4462 }
 0xcf5   : > { %v10588_v35 = vpop.permute.xlu2 %4304 }
 0xcfa   : > { %4274 = vrot.lane.b32.xlu0 %v10500_v9, %s11947_s23  ;;  %4348 = vrot.lane.b32.xlu1 %v10576_v21, %s11992_s3  ;;  %s6479_s3 = smov 94  }
 0xcfb   : > { %4316 = vrot.lane.b32.xlu2 %v10576_v21, %s11948_s24  ;;  %s6466_s24 = smov 32  }
 0xcfc   : > { %v10596_v49 = vpop.permute.xlu1 %4302  ;;  %v10598_v27 = vpop.permute.xlu0 %4334 }
 0xcfd   : > { %v10600_v32 = vpop.permute.xlu2 %4434 }
 0xd02   : > { %4412 = vrot.lane.b32.xlu0 %v10576_v21, %s11971_s30  ;;  %4276 = vrot.lane.b32.xlu1 %v10514_v52, %s11947_s23  ;;  %s6469_s30 = smov 18  }
 0xd03   : > { %4282 = vrot.lane.b32.xlu2 %v10558_v58, %s11947_s23 }
 0xd04   : > { %v10608_v13 = vpop.permute.xlu1 %4464  ;;  %v10610_v10 = vpop.permute.xlu0 %4368 }
 0xd05   : > { %v10612_v38 = vpop.permute.xlu2 %4306 }
 0xd0a   : > { %4284 = vrot.lane.b32.xlu0 %v10576_v21, %s11947_s23  ;;  %4270 = vrot.lane.b32.xlu1 %v10472_v59, %s11947_s23 }
 0xd0b   : > { %4272 = vrot.lane.b32.xlu2 %v10486_v37, %s11947_s23 }
 0xd0c   : > { %v10620_v25 = vpop.permute.xlu1 %4336  ;;  %v10622_v16 = vpop.permute.xlu0 %4400 }
 0xd0d   : > { %v10624_v22 = vpop.permute.xlu2 %4468 }
 0xd0e   : > { %12297 = vst [vmem:[#allocation34_spill] sm:$0xff] %v10624_v22 }
 0xd12   : > { %4278 = vrot.lane.b32.xlu0 %v10528_v20, %s11947_s23  ;;  %4280 = vrot.lane.b32.xlu1 %v10542_v46, %s11947_s23  ;;  %s6465_s23 = smov 34  }
 0xd13   : > { %4498 = vrot.lane.b32.xlu2 %v10500_v9, %s11945_s0 }
 0xd14   : > { %v10632_v18 = vpop.permute.xlu1 %4466  ;;  %v10634_v60 = vpop.permute.xlu0 %4370 }
 0xd15   : > { %12298 = vst [vmem:[#allocation38_spill] sm:$0xff] %v10632_v18  ;;  %v10636_v47 = vpop.permute.xlu2 %4340 }
 0xd1a   : > { %4500 = vrot.lane.b32.xlu0 %v10514_v52, %s11945_s0  ;;  %4506 = vrot.lane.b32.xlu1 %v10558_v58, %s11945_s0 }
 0xd1b   : > { %4508 = vrot.lane.b32.xlu2 %v10576_v21, %s11945_s0 }
 0xd1c   : > { %v10644_v33 = vpop.permute.xlu1 %4338  ;;  %v10646_v6 = vpop.permute.xlu0 %4402 }
 0xd1d   : > { %v4471_v55 = vpop.permute.xlu2 %4470 }
 0xd1e   : > { %v4482_v63 = vsel %vm765_vm0, %v4471_v55, %v10586_v0  ;;  %v4478_v58 = vsel %vm765_vm0, %v10586_v0, %v4471_v55 }
 0xd1f   : > { %v10726_v55 = vmul.f32 %v4478_v58, %v12190_v23 }
 0xd22   : > { %4494 = vrot.lane.b32.xlu0 %v10472_v59, %s11945_s0  ;;  %4496 = vrot.lane.b32.xlu1 %v10486_v37, %s11945_s0 }
 0xd23   : > { %4502 = vrot.lane.b32.xlu2 %v10528_v20, %s11945_s0 }
 0xd24   : > { %v10657_v30 = vpop.permute.xlu1 %4372  ;;  %v10659_v31 = vpop.permute.xlu0 %4436 }
 0xd25   : > { %v4343_v17 = vpop.permute.xlu2 %4342 }
 0xd2a   : > { %4504 = vrot.lane.b32.xlu0 %v10542_v46, %s11945_s0  ;;  %4799 = vrot.lane.b32.xlu1 %v12299_v15, %s6464_s21  ;;  %s6467_s0 = smov 30  }
 0xd2b   : > { %4783 = vrot.lane.b32.xlu2 %v12299_v15, %s6465_s23 }
 0xd2c   : > { %v10665_v2 = vpop.permute.xlu1 %4404  ;;  %v10667_v53 = vpop.permute.xlu0 %4308 }
 0xd2d   : > { %v10669_v3 = vpop.permute.xlu2 %4376 }
 0xd2e   : > { %v4383_v9 = vsel %vm732_vm5, %v10610_v10, %v10669_v3 }
 0xd32   : > { %4785 = vrot.lane.b32.xlu0 %v12300_v62, %s6465_s23  ;;  %4817 = vrot.lane.b32.xlu1 %v12300_v62, %s6466_s24  ;;  %s6473_s23 = smov 114  }
 0xd33   : > { %4801 = vrot.lane.b32.xlu2 %v12300_v62, %s6464_s21  ;;  %s6472_s21 = smov 126  }
 0xd34   : > { %v10674_v24 = vpop.permute.xlu0 %4438  ;;  %v4375_v29 = vpop.permute.xlu1 %4374 }
 0xd35   : > { %v4450_v19 = vsel %vm754_vm2, %v10674_v24, %v10584_v26  ;;  %v10680_v41 = vpop.permute.xlu2 %4408  ;;  %v4386_v37 = vsel %vm732_vm5, %v4375_v29, %v10556_v34 }
 0xd36   : > { %v4419_v28 = vsel %vm743_vm4, %v10680_v41, %v10622_v16 }
 0xd37   : > { %v10698_v46 = vmul.f32 %v4419_v28, %v12279_v40 }
 0xd39   : > { %12301 = vst [vmem:[#allocation37_spill] sm:$0xff] %v10698_v46 }
 0xd3a   : > { %4815 = vrot.lane.b32.xlu0 %v12299_v15, %s6466_s24  ;;  %4847 = vrot.lane.b32.xlu1 %v12299_v15, %s6467_s0  ;;  %s6474_s24 = smov 110  }
 0xd3b   : > { %4831 = vrot.lane.b32.xlu2 %v12299_v15, %s6468_s27 }
 0xd3c   : > { %v10689_v8 = vpop.permute.xlu0 %4310  ;;  %v10691_v56 = vpop.permute.xlu1 %4406 }
 0xd3d   : > { %v4379_v45 = vpop.permute.xlu2 %4378  ;;  %v4418_v39 = vsel %vm743_vm4, %v10691_v56, %v10566_v11 }
 0xd3e   : > { %v10701_v20 = vmul.f32 %v4418_v39, %v12279_v40 }
 0xd40   : > { %12302 = vst [vmem:[#allocation44_spill] sm:$0xff] %v10701_v20 }
 0xd42   : > { %4833 = vrot.lane.b32.xlu0 %v12300_v62, %s6468_s27  ;;  %4865 = vrot.lane.b32.xlu1 %v12300_v62, %s6469_s30  ;;  %s6476_s27 = smov 97  }
 0xd43   : > { %4849 = vrot.lane.b32.xlu2 %v12300_v62, %s6467_s0  ;;  %v10729_v62 = vmul.f32 %v4482_v63, %v12275_v12  ;;  %s6475_s0 = smov 98  }
 0xd44   : > { %v4473_v54 = vpop.permute.xlu0 %4472  ;;  %v10711_v28 = vpop.permute.xlu1 %4440 }
 0xd45   : > { %v4479_v39 = vsel %vm765_vm0, %v10608_v13, %v4473_v54  ;;  %v4483_v21 = vsel %vm765_vm0, %v4473_v54, %v10608_v13  ;;  %v10719_v20 = vpop.permute.xlu2 %4410  ;;  %v4451_v0 = vsel %vm754_vm2, %v10711_v28, %v10574_v51  ;;  %12303 = vst [vmem:[#allocation42_spill] sm:$0xff] %v10729_v62  ;;  %v10738_v54 = vmul.f32 %v4450_v19, %v12209_v1 }
 0xd46   : > { %v10732_v46 = vmul.f32 %v4479_v39, %v12190_v23  ;;  %v10735_v40 = vmul.f32 %v4483_v21, %v12275_v12  ;;  %v10741_v13 = vmul.f32 %v4451_v0, %v12209_v1  ;;  %v4350_v21 = vsel %vm721_vm6, %v10598_v27, %v4343_v17 }
 0xd47   : > { %12305 = vst [vmem:[#allocation47_spill] sm:$0xff] %v10738_v54  ;;  %v4354_v19 = vsel %vm721_vm6, %v4343_v17, %v10598_v27  ;;  %v10770_v54 = vmul.f32 %v4350_v21, %v6717_v50 }
 0xd48   : > { %12304 = vst [vmem:[#allocation45_spill] sm:$0xff] %v10735_v40 }
 0xd49   : > { %12306 = vst [vmem:[#allocation35_spill] sm:$0xff] %v10741_v13  ;;  %v4382_v13 = vsel %vm732_vm5, %v10556_v34, %v4375_v29 }
 0xd4a   : > { %4863 = vrot.lane.b32.xlu0 %v12299_v15, %s6469_s30  ;;  %v10767_v15 = vmul.f32 %v4354_v19, %v6711_v48  ;;  %s6477_s30 = smov 96  }
 0xd4c   : > { %v4345_v39 = vpop.permute.xlu0 %4344  ;;  %v10756_v0 = vpop.permute.xlu1 %4312 }
 0xd4d   : > { %v4351_v58 = vsel %vm721_vm6, %v10620_v25, %v4345_v39  ;;  %v4355_v63 = vsel %vm721_vm6, %v4345_v39, %v10620_v25  ;;  %v10764_v61 = vpop.permute.xlu2 %4444 }
 0xd4e   : > { %v10773_v27 = vmul.f32 %v4355_v63, %v6711_v48  ;;  %v10776_v17 = vmul.f32 %v4351_v58, %v6717_v50  ;;  %v4388_v58 = vsel %vm732_vm5, %v4379_v45, %v10634_v60  ;;  %v4384_v63 = vsel %vm732_vm5, %v10634_v60, %v4379_v45 }
 0xd4f   : > { %v4394_v59 = vmul.f32 %v4388_v58, %v12188_v5  ;;  %v4395_v60 = vmul.f32 %v4384_v63, %v12193_v42 }
 0xd54   : > { %v10782_v39 = vpop.permute.xlu0 %4474  ;;  %v10784_v62 = vpop.permute.xlu1 %4442 }
 0xd55   : > { %12307 = vst [vmem:[#allocation40_spill] sm:$0xff] %v10782_v39  ;;  %v10786_v19 = vpop.permute.xlu2 %4316  ;;  %v4480_v25 = vsel %vm765_vm0, %v10632_v18, %v10782_v39  ;;  %v4448_v36 = vsel %vm754_vm2, %v10600_v32, %v10784_v62 }
 0xd56   : > { %v4490_v29 = vmul.f32 %v4480_v25, %v12190_v23  ;;  %v4391_v25 = vmul.f32 %v4382_v13, %v12193_v42 }
 0xd5c   : > { %v4347_v21 = vpop.permute.xlu0 %4346  ;;  %v4315_v40 = vpop.permute.xlu1 %4314 }
 0xd5d   : > { %v10788_v1 = vpop.permute.xlu2 %4282 }
 0xd64   : > { %v4381_v12 = vpop.permute.xlu0 %4380  ;;  %v10807_v52 = vpop.permute.xlu1 %4476 }
 0xd65   : > { %12308 = vst [vmem:[#allocation32_spill] sm:$0xff] %v10807_v52  ;;  %v4385_v45 = vsel %vm732_vm5, %v10657_v30, %v4381_v12  ;;  %v4389_v39 = vsel %vm732_vm5, %v4381_v12, %v10657_v30  ;;  %v4481_v34 = vsel %vm765_vm0, %v10624_v22, %v10807_v52  ;;  %v4387_v12 = vsel %vm732_vm5, %v10669_v3, %v10610_v10 }
 0xd66   : > { %v4396_v58 = vmul.f32 %v4389_v39, %v12188_v5  ;;  %v4397_v18 = vmul.f32 %v4385_v45, %v12193_v42  ;;  %v4492_v63 = vmul.f32 %v4481_v34, %v12190_v23  ;;  %v4390_v30 = vmul.f32 %v4386_v37, %v12188_v5  ;;  %v10834_v45 = vpop.permute.xlu2 %4272 }
 0xd67   : > { %v4392_v23 = vmul.f32 %v4387_v12, %v12188_v5  ;;  %v4393_v34 = vmul.f32 %v4383_v9, %v12193_v42  ;;  %v4352_v37 = vsel %vm721_vm6, %v10644_v33, %v4347_v21  ;;  %v4449_v5 = vsel %vm754_vm2, %v10659_v31, %v10764_v61 }
 0xd68   : > { %v4540_v52 = vpack.c.bf16 %v4396_v58, %v4394_v59  ;;  %v4541_v39 = vpack.c.bf16 %v4397_v18, %v4395_v60  ;;  %v4556_v22 = vpack.c.bf16 %v4492_v63, %v4490_v29  ;;  %v4356_v59 = vsel %vm721_vm6, %v4347_v21, %v10644_v33 }
 0xd69   : > { %v4538_v10 = vpack.c.bf16 %v4392_v23, %v4390_v30  ;;  %v4539_v18 = vpack.c.bf16 %v4393_v34, %v4391_v25  ;;  %v4362_v13 = vmul.f32 %v4356_v59, %v6711_v48  ;;  %v4363_v21 = vmul.f32 %v4352_v37, %v6717_v50 }
 0xd6a   : > { %4606 = vmatpush.bf16.msra.mxu0 %v4540_v52  ;;  %4625 = vmatpush.bf16.msra.mxu1 %v4556_v22  ;;  %v4447_v52 = vsel %vm754_vm2, %v10574_v51, %v10711_v28  ;;  %v4458_v22 = vmul.f32 %v4448_v36, %v12207_v57  ;;  %v4460_v51 = vmul.f32 %v4449_v5, %v12207_v57 }
 0xd6b   : > { %4663 = vmatpush.bf16.msra.mxu3 %v4541_v39  ;;  %v12309_v36 = vpack.c.bf16 %v10732_v46, %v10726_v55  ;;  %v4456_v63 = vmul.f32 %v4447_v52, %v12207_v57  ;;  %v4320_v46 = vsel %vm710_vm8, %v10612_v38, %v4315_v40  ;;  %v4323_v39 = vsel %vm710_vm8, %v10756_v0, %v10588_v35 }
 0xd6c   : > { %v4275_v42 = vpop.permute.xlu0 %4274  ;;  %v4349_v9 = vpop.permute.xlu1 %4348  ;;  %v4331_v23 = vmul.f32 %v4320_v46, %v6746_v7  ;;  %v12310_v59 = vpack.c.bf16 %v10773_v27, %v10767_v15  ;;  %v4415_v5 = vsel %vm743_vm4, %v10622_v16, %v10680_v41  ;;  %v4318_v15 = vsel %vm710_vm8, %v10596_v49, %v10689_v8  ;;  %v12316_v46 = vld [vmem:[#allocation2_spill] sm:$0xff] }
 0xd6d   : > { %v4353_v33 = vsel %vm721_vm6, %v10636_v47, %v4349_v9  ;;  %v4357_v3 = vsel %vm721_vm6, %v4349_v9, %v10636_v47  ;;  %v4446_v47 = vsel %vm754_vm2, %v10584_v26, %v10674_v24  ;;  %v4416_v26 = vsel %vm743_vm4, %v10646_v6, %v10719_v20 }
 0xd6e   : > { %v4364_v60 = vmul.f32 %v4357_v3, %v6711_v48  ;;  %v4365_v29 = vmul.f32 %v4353_v33, %v6717_v50  ;;  %4607 = vmatpush.bf16.msra.mxu0 %v4538_v10  ;;  %4626 = vmatpush.bf16.msra.mxu1 %v12309_v36  ;;  %v4324_v48 = vsel %vm710_vm8, %v4315_v40, %v10612_v38  ;;  %v10891_v12 = vpop.permute.xlu2 %4498 }
 0xd6f   : > { %4664 = vmatpush.bf16.msra.mxu3 %v4539_v18  ;;  %v4552_v50 = vpack.c.bf16 %v4460_v51, %v4458_v22  ;;  %v4454_v55 = vmul.f32 %v4446_v47, %v12207_v57  ;;  %v4325_v24 = vsel %vm710_vm8, %v10786_v19, %v10667_v53  ;;  %v4414_v40 = vsel %vm743_vm4, %v10566_v11, %v10691_v56  ;;  %v12312_v51 = vld [vmem:[#allocation12_spill] sm:$0xff] }
 0xd70   : > { %v4536_v28 = vpack.c.bf16 %v4364_v60, %v4362_v13  ;;  %v4537_v58 = vpack.c.bf16 %v4365_v29, %v4363_v21  ;;  %v4321_v57 = vsel %vm710_vm8, %v10667_v53, %v10786_v19  ;;  %v4330_v38 = vmul.f32 %v4324_v48, %v6740_v4 }
 0xd71   : > { %v4550_v56 = vpack.c.bf16 %v4456_v63, %v4454_v55  ;;  %v4426_v53 = vmul.f32 %v4416_v26, %v12221_v14  ;;  %v4319_v19 = vsel %vm710_vm8, %v10588_v35, %v10756_v0  ;;  %v4332_v34 = vmul.f32 %v4325_v24, %v6740_v4  ;;  %v12314_v63 = vld [vmem:[#allocation32_spill] sm:$0xff]  ;;  %v12317_v26 = vld [vmem:[#allocation38_spill] sm:$0xff] }
 0xd72   : > { %4608 = vmatpush.bf16.msra.mxu0 %v4536_v28  ;;  %4627 = vmatpush.bf16.msra.mxu1 %v4552_v50  ;;  %v4322_v9 = vsel %vm710_vm8, %v10689_v8, %v10596_v49  ;;  %v4333_v35 = vmul.f32 %v4321_v57, %v6746_v7  ;;  %v12311_v0 = vpack.c.bf16 %v10776_v17, %v10770_v54  ;;  %v12315_v50 = vld [vmem:[#allocation57_spill] sm:$0xff]  ;;  %v12318_v24 = vld [vmem:[#allocation40_spill] sm:$0xff]  ;;  %v12319_v57 = vld [vmem:[#allocation6_spill] sm:$0xff] }
 0xd73   : > { %4665 = vmatpush.bf16.msra.mxu3 %v4537_v58  ;;  %v4328_v27 = vmul.f32 %v4323_v39, %v6740_v4  ;;  %v4532_v16 = vpack.c.bf16 %v4332_v34, %v4330_v38  ;;  %v4422_v10 = vmul.f32 %v4414_v40, %v12221_v14  ;;  %v4329_v18 = vmul.f32 %v4319_v19, %v6746_v7  ;;  %v12313_v58 = vld [vmem:[#allocation34_spill] sm:$0xff]  ;;  %v6013_v19 = vld [vmem:[%s11697_s17 + $0xc] sm:$0xf0] }
 0xd74   : > { %v10902_v30 = vpop.permute.xlu0 %4412  ;;  %v4277_v25 = vpop.permute.xlu1 %4276  ;;  %v4533_v52 = vpack.c.bf16 %v4333_v35, %v4331_v23  ;;  %v4424_v22 = vmul.f32 %v4415_v5, %v12221_v14  ;;  %v4326_v33 = vmul.f32 %v4322_v9, %v6740_v4  ;;  %v4327_v54 = vmul.f32 %v4318_v15, %v6746_v7  ;;  %v12320_v23 = vld [vmem:[#allocation7_spill] sm:$0xff] }
 0xd75   : > { %v4417_v11 = vsel %vm743_vm4, %v10665_v2, %v10902_v30  ;;  %v4288_v49 = vsel %vm699_vm7, %v4275_v42, %v10788_v1  ;;  %v4292_v8 = vsel %vm699_vm7, %v10788_v1, %v4275_v42  ;;  %v4485_v48 = vsel %vm765_vm0, %v12314_v63, %v12313_v58 }
 0xd76   : > { %v4428_v37 = vmul.f32 %v4417_v11, %v12221_v14  ;;  %4609 = vmatpush.bf16.msra.mxu0 %v12310_v59  ;;  %4628 = vmatpush.bf16.msra.mxu1 %v4550_v56  ;;  %v4530_v13 = vpack.c.bf16 %v4328_v27, %v4326_v33  ;;  %v4509_v21 = vpop.permute.xlu2 %4508  ;;  %v4546_v14 = vpack.c.bf16 %v4424_v22, %v4422_v10  ;;  %v12321_v11 = vld [vmem:[#allocation59_spill] sm:$0xff]  ;;  %v6011_v27 = vld [vmem:[%s11697_s17] sm:$0xf] }
 0xd77   : > { %4666 = vmatpush.bf16.msra.mxu3 %v12311_v0  ;;  %v4531_v60 = vpack.c.bf16 %v4329_v18, %v4327_v54  ;;  %v4298_v29 = vmul.f32 %v4292_v8, %v12269_v43  ;;  %v4299_v36 = vmul.f32 %v4288_v49, %v12312_v51  ;;  %v4544_v55 = vpack.c.bf16 %v12316_v46, %v12315_v50  ;;  %v12322_v49 = vld [vmem:[#allocation5_spill] sm:$0xff] }
 0xd78   : > { %v4548_v41 = vpack.c.bf16 %v4428_v37, %v4426_v53  ;;  %v4484_v40 = vsel %vm765_vm0, %v12318_v24, %v12317_v26  ;;  %v4493_v38 = vmul.f32 %v4485_v48, %v12319_v57  ;;  %v4542_v56 = vpack.c.bf16 %v12321_v11, %v12320_v23  ;;  %v6337_v53 = vld [vmem:[%s11697_s17 + $0x4] sm:$0xf]  ;;  %v6340_v46 = vld [vmem:[%s11697_s17 + $0x1c] sm:$0xf]  ;;  %v12328_v26 = vld [vmem:[#allocation8_spill] sm:$0xff] }
 0xd79   : > { %v4453_v54 = vsel %vm754_vm2, %v10764_v61, %v10659_v31  ;;  %v12323_v61 = vld [vmem:[#allocation53_spill] sm:$0xff]  ;;  %v4421_v58 = vsel %vm743_vm4, %v10902_v30, %v10665_v2  ;;  %v4420_v63 = vsel %vm743_vm4, %v10719_v20, %v10646_v6  ;;  %v6341_v20 = vld [vmem:[%s11697_s17 + $0x20] sm:$0x10]  ;;  %v12329_v24 = vld [vmem:[#allocation35_spill] sm:$0xff]  ;;  %vm4803_vm0 = vcmp.lt.s32.totalorder %v12181_v44, 33 }
 0xd7a   : > { %4610 = vmatpush.bf16.msra.mxu0 %v4532_v16  ;;  %4629 = vmatpush.bf16.msra.mxu1 %v4548_v41  ;;  %v6338_v16 = vld [vmem:[%s11697_s17 + $0x8] sm:$0xf0]  ;;  %v4491_v41 = vmul.f32 %v4484_v40, %v12319_v57  ;;  %v4429_v2 = vmul.f32 %v4421_v58, %v12328_v26  ;;  %v6023_v30 = vld [vmem:[%s11697_s17 + $0x18] sm:$0xf]  ;;  %v4427_v6 = vmul.f32 %v4420_v63, %v12328_v26  ;;  %vm4819_vm4 = vcmp.lt.s32.totalorder %v12181_v44, 32 }
 0xd7b   : > { %4667 = vmatpush.bf16.msra.mxu3 %v4533_v52  ;;  %v6012_v33 = vor.u32 %v6338_v16, %v6011_v27  ;;  %v12330_v40 = vld [vmem:[#allocation47_spill] sm:$0xff]  ;;  %v6339_v16 = vld [vmem:[%s11697_s17 + $0x10] sm:$0xf0] }
 0xd7c   : > { %v4285_v17 = vpop.permute.xlu0 %4284  ;;  %v4271_v3 = vpop.permute.xlu1 %4270  ;;  %v4557_v22 = vpack.c.bf16 %v4493_v38, %v4491_v41  ;;  %v12331_v57 = vpack.c.bf16 %v12329_v24, %v12330_v40  ;;  %v6019_v27 = vld [vmem:[%s11697_s17 + $0x8] sm:$0xf]  ;;  %v12332_v41 = vld [vmem:[#allocation37_spill] sm:$0xff] }
 0xd7d   : > { %v4289_v4 = vsel %vm699_vm7, %v4277_v25, %v4285_v17  ;;  %v4293_v7 = vsel %vm699_vm7, %v4285_v17, %v4277_v25 }
 0xd7e   : > { %v4300_v1 = vmul.f32 %v4293_v7, %v12269_v43  ;;  %v4301_v42 = vmul.f32 %v4289_v4, %v12312_v51  ;;  %4611 = vmatpush.bf16.msra.mxu0 %v4530_v13  ;;  %4630 = vmatpush.bf16.msra.mxu1 %v4546_v14  ;;  %v4503_v10 = vpop.permute.xlu2 %4502  ;;  %v12324_v7 = vld [vmem:[#allocation55_spill] sm:$0xff] }
 0xd7f   : > { %4668 = vmatpush.bf16.msra.mxu3 %v4531_v60 }
 0xd80   : > { %v4528_v47 = vpack.c.bf16 %v4300_v1, %v4298_v29  ;;  %v4529_v28 = vpack.c.bf16 %v4301_v42, %v4299_v36  ;;  %v12326_v36 = vld [vmem:[#allocation42_spill] sm:$0xff] }
 0xd82   : > { %4612 = vmatpush.bf16.msra.mxu0 %v4528_v47  ;;  %4631 = vmatpush.bf16.msra.mxu1 %v4544_v55  ;;  %v6025_v55 = vld [vmem:[%s11697_s17 + $0x24] sm:$0x10] }
 0xd83   : > { %4669 = vmatpush.bf16.msra.mxu3 %v4529_v28  ;;  %v6028_v38 = vor.u32 %v6340_v46, %v6025_v55 }
 0xd84   : > { %v4279_v25 = vpop.permute.xlu0 %4278  ;;  %v4281_v39 = vpop.permute.xlu1 %4280 }
 0xd85   : > { %v4286_v34 = vsel %vm699_vm7, %v4271_v3, %v4279_v25  ;;  %v4290_v37 = vsel %vm699_vm7, %v4279_v25, %v4271_v3  ;;  %v4287_v59 = vsel %vm699_vm7, %v10834_v45, %v4281_v39  ;;  %v4291_v5 = vsel %vm699_vm7, %v4281_v39, %v10834_v45 }
 0xd86   : > { %v4294_v9 = vmul.f32 %v4290_v37, %v12269_v43  ;;  %v4295_v35 = vmul.f32 %v4286_v34, %v12312_v51  ;;  %v4296_v0 = vmul.f32 %v4291_v5, %v12269_v43  ;;  %v4297_v15 = vmul.f32 %v4287_v59, %v12312_v51  ;;  %4632 = vmatpush.bf16.msra.mxu1 %v4542_v56  ;;  %v12325_v51 = vld [vmem:[#allocation45_spill] sm:$0xff]  ;;  %v4784_v28 = vpop.permute.xlu2 %4783 }
 0xd87   : > { %v10999_v45 = vor.u32 %v6337_v53, %v6013_v19  ;;  %v4452_v43 = vsel %vm754_vm2, %v10784_v62, %v10600_v32  ;;  %v12327_v1 = vpack.c.bf16 %v12325_v51, %v12326_v36  ;;  %v4549_v25 = vpack.c.bf16 %v4429_v2, %v4427_v6 }
 0xd88   : > { %v4526_v18 = vpack.c.bf16 %v4296_v0, %v4294_v9  ;;  %v4527_v52 = vpack.c.bf16 %v4297_v15, %v4295_v35  ;;  %v4459_v8 = vmul.f32 %v4452_v43, %v12322_v49  ;;  %v6024_v39 = vor.u32 %v6341_v20, %v6023_v30 }
 0xd89   : > { %4633 = vmatmul.bf16.vlgmr.msra.gmra.mxu1 %v10999_v45  ;;  %vm12337_vm2 = vcmask 261120  }
 0xd8a   : > { %4613 = vmatpush.bf16.msra.mxu0 %v4526_v18  ;;  %4670 = vmatpush.bf16.msra.mxu3 %v4527_v52  ;;  %vm12340_vm5 = vmmov %vm12337_vm2 }
 0xd8b   : > { %vm12341_vm6 = vmmov %vm12337_vm2 }
 0xd8c   : > { %v4501_v17 = vpop.permute.xlu0 %4500  ;;  %v4507_v3 = vpop.permute.xlu1 %4506  ;;  %vm12342_vm7 = vmmov %vm12337_vm2 }
 0xd8d   : > { %v4513_v13 = vsel %vm776_vm1, %v4501_v17, %v4509_v21  ;;  %v4517_v32 = vsel %vm776_vm1, %v4509_v21, %v4501_v17  ;;  %v4512_v62 = vsel %vm776_vm1, %v10891_v12, %v4507_v3  ;;  %v4516_v4 = vsel %vm776_vm1, %v4507_v3, %v10891_v12  ;;  %4614 = vmatmul.bf16.vlgmr.msra.gmra.mxu0 %v6012_v33 }
 0xd8e   : > { %4682 = vmatpush.bf16.msrb.mxu0 %v4557_v22  ;;  %v4524_v31 = vmul.f32 %v12323_v61, %v4513_v13  ;;  %v4525_v14 = vmul.f32 %v12324_v7, %v4517_v32  ;;  %v4522_v60 = vmul.f32 %v12323_v61, %v4512_v62  ;;  %v4523_v29 = vmul.f32 %v12324_v7, %v4516_v4  ;;  %v4802_v23 = vpop.permute.xlu2 %4801  ;;  %v12335_v22 = vld [vmem:[#allocation33_spill] sm:$0xff]  ;;  %v12338_v13 = vld [vmem:[#allocation60_spill] sm:$0xff]  ;;  %v12339_v32 = vld [vmem:[#allocation51_spill] sm:$0xff] }
 0xd8f   : > { %4671 = vmatmul.bf16.vlgmr.msra.gmra.mxu3 %v6012_v33  ;;  %v4461_v21 = vmul.f32 %v4453_v54, %v12322_v49  ;;  %v12336_v33 = vld [vmem:[#allocation39_spill] sm:$0xff]  ;;  %v6020_v49 = vor.u32 %v6339_v16, %v6019_v27  ;;  %v4543_v62 = vpack.c.bf16 %v12339_v32, %v12338_v13 }
 0xd90   : > { %v4560_v42 = vpack.c.bf16 %v4524_v31, %v4522_v60  ;;  %v4561_v47 = vpack.c.bf16 %v4525_v14, %v4523_v29  ;;  %v4545_v54 = vpack.c.bf16 %v12336_v33, %v12335_v22  ;;  %v6031_v14 = vld [vmem:[%s11697_s17 + $0x20] sm:$0xf]  ;;  %v6342_v60 = vld [vmem:[%s11697_s17 + $0x28] sm:$0x10] }
 0xd91   : > { %v4553_v12 = vpack.c.bf16 %v4461_v21, %v4459_v8  ;;  %v6032_v29 = vor.u32 %v6342_v60, %v6031_v14 }
 0xd92   : > { %4683 = vmatpush.bf16.msrb.mxu0 %v12327_v1  ;;  %4650 = vmatpush.bf16.msra.mxu2 %v4560_v42 }
 0xd93   : > { %4707 = vmatpush.bf16.msrb.mxu1 %v4561_v47 }
 0xd94   : > { %v4495_v48 = vpop.permute.xlu0 %4494  ;;  %v4497_v50 = vpop.permute.xlu1 %4496 }
 0xd95   : > { %v4510_v11 = vsel %vm776_vm1, %v4495_v48, %v4503_v10  ;;  %v4514_v56 = vsel %vm776_vm1, %v4503_v10, %v4495_v48  ;;  %v12333_v10 = vld [vmem:[#allocation44_spill] sm:$0xff] }
 0xd96   : > { %4684 = vmatpush.bf16.msrb.mxu0 %v4553_v12  ;;  %v4518_v9 = vmul.f32 %v12323_v61, %v4510_v11  ;;  %v4519_v35 = vmul.f32 %v12324_v7, %v4514_v56  ;;  %v12334_v18 = vpack.c.bf16 %v12332_v41, %v12333_v10  ;;  %v11127_v13 = vpop.permute.xlu2 %4831 }
 0xd99   : > { %4638 = vmatmul.bf16.gmra.mxu1 %v6028_v38 }
 0xd9a   : > { %4685 = vmatpush.bf16.msrb.mxu0 %v12331_v57 }
 0xd9c   : > { %v4505_v53 = vpop.permute.xlu0 %4504  ;;  %v4800_v19 = vpop.permute.xlu1 %4799 }
 0xd9d   : > { %v4511_v34 = vsel %vm776_vm1, %v4497_v50, %v4505_v53  ;;  %v4515_v37 = vsel %vm776_vm1, %v4505_v53, %v4497_v50  ;;  %v11063_v59 = vsel %vm4803_vm0, %v4800_v19, %v4802_v23  ;;  %v11065_v5 = vsel %vm4803_vm0, %v4802_v23, %v4800_v19  ;;  %4619 = vmatmul.bf16.gmra.mxu0 %v6024_v39 }
 0xd9e   : > { %4686 = vmatpush.bf16.msrb.mxu0 %v4549_v25  ;;  %v4520_v0 = vmul.f32 %v12323_v61, %v4511_v34  ;;  %v4521_v15 = vmul.f32 %v12324_v7, %v4515_v37  ;;  %vm4787_vm1 = vcmp.lt.s32.totalorder %v12181_v44, 34  ;;  %v11133_v60 = vpop.permute.xlu2 %4849  ;;  %vm4910_vm0 = vcmp.lt.s32.totalorder %v12181_v44, 14 }
 0xd9f   : > { %4676 = vmatmul.bf16.gmra.mxu3 %v6024_v39 }
 0xda0   : > { %v4558_v52 = vpack.c.bf16 %v4520_v0, %v4518_v9  ;;  %v4559_v43 = vpack.c.bf16 %v4521_v15, %v4519_v35 }
 0xda2   : > { %4687 = vmatpush.bf16.msrb.mxu0 %v12334_v18  ;;  %4651 = vmatpush.bf16.msra.mxu2 %v4558_v52 }
 0xda3   : > { %4708 = vmatpush.bf16.msrb.mxu1 %v4559_v43 }
 0xda4   : > { %v4786_v8 = vpop.permute.xlu0 %4785  ;;  %v4818_v4 = vpop.permute.xlu1 %4817 }
 0xda5   : > { %v11083_v17 = vsel %vm4787_vm1, %v4784_v28, %v4786_v8  ;;  %v11085_v3 = vsel %vm4787_vm1, %v4786_v8, %v4784_v28  ;;  %6033 = vmatmul.msk.bf16.vlgmr.msra.gmra.mxu2 %vm12337_vm2, %v6020_v49  ;;  %v6480_v8 = vmov 256.0   ;;  %vm4777_vm1 = vcmask 7168  }
 0xda6   : > { %4688 = vmatpush.bf16.msrb.mxu0 %v4545_v54  ;;  %v12343_v54 = vld [vmem:[#allocation13_spill] sm:$0xff]  ;;  %6433 = vrcp.f32 %v6480_v8  ;;  %vm4781_vm2 = vcmask 0  }
 0xda9   : > { %6035 = vmatmul.msk.bf16.vlgmr.msrb.gmra.mxu1 %vm12340_vm5, %v6020_v49  ;;  %v12344_v49 = vld [vmem:[#allocation14_spill] sm:$0xff]  ;;  %vm4981_vm5 = vcmp.lt.s32.totalorder %v12181_v44, 114 }
 0xdaa   : > { %4689 = vmatpush.bf16.msrb.mxu0 %v4543_v62 }
 0xdac   : > { %v4816_v61 = vpop.permute.xlu0 %4815  ;;  %v6434_v32 = vpop.eup %6433 }
 0xdad   : > { %v11092_v31 = vsel %vm4819_vm4, %v4816_v61, %v4818_v4  ;;  %v11094_v7 = vsel %vm4819_vm4, %v4818_v4, %v4816_v61  ;;  %4690 = vmatmul.bf16.vlgmr.msrb.gmra.mxu0 %v10999_v45  ;;  %v11129_v62 = vpop.permute.xlu1 %4847  ;;  %v4735_v61 = vmul.f32 256.0, %v6434_v32  ;;  %vm4739_vm8 = vweird.f32 %v6434_v32 }
 0xdae   : > { %vm4926_vm4 = vcmp.lt.s32.totalorder %v12181_v44, 2 }
 0xdaf   : > { %v4736_v14 = vsub.f32 1.0, %v4735_v61 }
 0xdb4   : > { %v11131_v4 = vpop.permute.xlu0 %4833 }
 0xdb5   : > { %6034 = vmatmul.msk.bf16.gmra.mxu2 %vm12341_vm6, %v6032_v29  ;;  %vm4965_vm6 = vcmp.lt.s32.totalorder %v12181_v44, 126 }
 0xdb9   : > { %6036 = vmatmul.msk.bf16.gmra.mxu1 %vm12342_vm7, %v6032_v29  ;;  %v11135_v29 = vpop.permute.xlu1 %4865  ;;  %vm5024_vm7 = vcmp.lt.s32.totalorder %v12181_v44, 110 }
 0xdbd   : > { %4695 = vmatmul.bf16.gmra.mxu0 %v6028_v38 }
 0xe06   : > { %v4634_v21 = vpop.f32.mrf.mxu1 }
 0xe0a   : > { %v4615_v51 = vpop.f32.mrf.mxu0 }
 0xe0b   : > { %v4635_v50 = vadd.f32 %v4634_v21, %v4615_v51  ;;  %v11137_v21 = vpop.permute.xlu0 %4863  ;;  %v4737_v51 = vmul.f32 %v6434_v32, %v4736_v14 }
 0xe0e   : > { %v4636_v36 = vpop.f32.mrf.mxu1 }
 0xe12   : > { %v4617_v1 = vpop.f32.mrf.mxu0  ;;  %v4672_v12 = vpop.f32.mrf.mxu3 }
 0xe13   : > { %v4637_v40 = vadd.f32 %v4636_v36, %v4617_v1  ;;  %v4738_v36 = vadd.f32 %v6434_v32, %v4737_v51 }
 0xe16   : > { %v4639_v42 = vpop.f32.mrf.mxu1 }
 0xe1a   : > { %v4620_v45 = vpop.f32.mrf.mxu0  ;;  %v4674_v2 = vpop.f32.mrf.mxu3 }
 0xe1b   : > { %v4640_v19 = vadd.f32 %v4639_v42, %v4620_v45  ;;  %v4740_v45 = vsel %vm4739_vm8, %v6434_v32, %v4738_v36  ;;  %vm5056_vm8 = vcmp.lt.s32.totalorder %v12181_v44, 97 }
 0xe1e   : > { %v4641_v47 = vpop.f32.mrf.mxu1 }
 0xe22   : > { %v4622_v28 = vpop.f32.mrf.mxu0  ;;  %v4677_v11 = vpop.f32.mrf.mxu3 }
 0xe23   : > { %v4642_v15 = vadd.f32 %v4641_v47, %v4622_v28 }
 0xe26   : > { %v4710_v63 = vpop.f32.mrf.mxu1 }
 0xe28   : > { %v4653_v58 = vpop.f32.mrf.mxu2 }
 0xe29   : > { %v4654_v55 = vadd.f32 %v4653_v58, %v4635_v50  ;;  %v12346_v50 = vld [vmem:[#allocation48_spill] sm:$0xff] }
 0xe2a   : > { %v4691_v48 = vpop.f32.mrf.mxu0  ;;  %v4679_v27 = vpop.f32.mrf.mxu3 }
 0xe2b   : > { %v4692_v46 = vadd.f32 %v4691_v48, %v4672_v12 }
 0xe2d   : > { %v4711_v26 = vadd.f32 %v4710_v63, %v4692_v46  ;;  %v12345_v63 = vld [vmem:[#allocation49_spill] sm:$0xff] }
 0xe2e   : > { %v4712_v6 = vpop.f32.mrf.mxu1 }
 0xe2f   : > { %v4720_v30 = vadd.f32 %v4711_v26, %v4654_v55  ;;  %v12347_v55 = vld [vmem:[#allocation43_spill] sm:$0xff] }
 0xe30   : > { %v4655_v20 = vpop.f32.mrf.mxu2 }
 0xe31   : > { %4721 = vadd.xlane.f32.xlu1 %v4720_v30  ;;  %v4656_v38 = vadd.f32 %v4655_v20, %v4637_v40 }
 0xe32   : > { %v4693_v24 = vpop.f32.mrf.mxu0 }
 0xe33   : > { %v4694_v57 = vadd.f32 %v4693_v24, %v4674_v2 }
 0xe35   : > { %v4713_v25 = vadd.f32 %v4712_v6, %v4694_v57  ;;  %v12348_v6 = vld [vmem:[#allocation46_spill] sm:$0xff] }
 0xe36   : > { %v4715_v53 = vpop.f32.mrf.mxu1 }
 0xe37   : > { %v4723_v39 = vadd.f32 %v4713_v25, %v4656_v38 }
 0xe38   : > { %v4658_v23 = vpop.f32.mrf.mxu2 }
 0xe39   : > { %4724 = vadd.xlane.f32.xlu2 %v4723_v39  ;;  %v4659_v37 = vadd.f32 %v4658_v23, %v4640_v19  ;;  %v11169_v19 = vld [vmem:[%s12349_s8 + $0x20] sm:$0xff] }
 0xe3a   : > { %v4696_v56 = vpop.f32.mrf.mxu0 }
 0xe3b   : > { %v4697_v34 = vadd.f32 %v4696_v56, %v4677_v11  ;;  %v11159_v11 = vld [vmem:[%s12349_s8 + $0x10] sm:$0xff]  ;;  %v11164_v56 = vld [vmem:[%s12349_s8 + $0x18] sm:$0xff] }
 0xe3c   : > { %v4939_v32 = vperm.slane %v11164_v56, 3  ;;  %v4897_v61 = vperm.slane %v11159_v11, 0  ;;  %v4898_v14 = vperm.slane %v11164_v56, 0 }
 0xe3d   : > { %v4716_v9 = vadd.f32 %v4715_v53, %v4697_v34  ;;  %v11174_v34 = vld [vmem:[%s12349_s8 + $0x28] sm:$0xff] }
 0xe3e   : > { %v4717_v18 = vpop.f32.mrf.mxu1 }
 0xe3f   : > { %v4726_v35 = vadd.f32 %v4716_v9, %v4659_v37  ;;  %v4952_v9 = vperm.slane %v11159_v11, 5 }
 0xe40   : > { %v4660_v0 = vpop.f32.mrf.mxu2 }
 0xe41   : > { %4727 = vadd.xlane.f32.xlu0 %v4726_v35  ;;  %v4661_v41 = vadd.f32 %v4660_v0, %v4642_v15  ;;  %v4953_v35 = vperm.slane %v11164_v56, 5  ;;  %v5002_v15 = vperm.slane %v11169_v19, 1 }
 0xe42   : > { %v4698_v16 = vpop.f32.mrf.mxu0 }
 0xe43   : > { %v4699_v10 = vadd.f32 %v4698_v16, %v4679_v27  ;;  %v4729_v43 = vsel %vm972_vm13, %v4661_v41, 0.0  ;;  %v5003_v27 = vperm.slane %v11174_v34, 1  ;;  %v4993_v16 = vperm.slane %v11169_v19, 0  ;;  %v11186_v41 = vld [vmem:[%s12349_s8] sm:$0xff] }
 0xe44   : > { %v4888_v51 = vperm.slane %v11186_v41, 7 }
 0xe45   : > { %v4718_v52 = vadd.f32 %v4717_v18, %v4699_v10  ;;  %v11191_v10 = vld [vmem:[%s12349_s8 + $0x8] sm:$0xff] }
 0xe46   : > { %v4889_v36 = vperm.slane %v11191_v10, 7 }
 0xe47   : > { %v4730_v22 = vsel %vm972_vm13, %v4718_v52, 0.0  ;;  %v4994_v52 = vperm.slane %v11174_v34, 0 }
 0xe48   : > { %v4731_v33 = vadd.f32 %v4730_v22, %v4729_v43  ;;  %v5011_v43 = vperm.slane %v11169_v19, 2  ;;  %v5012_v22 = vperm.slane %v11174_v34, 2 }
 0xe4a   : > { %4732 = vadd.xlane.f32.xlu1 %v4731_v33  ;;  %v4938_v33 = vperm.slane %v11159_v11, 3 }
 0xe51   : > { %4906 = vrot.lane.b32.xlu2 %v12343_v54, %s6470_s29 }
 0xe55   : > { %4908 = vrot.lane.b32.xlu0 %v12344_v49, %s6470_s29 }
 0xe59   : > { %4924 = vrot.lane.b32.xlu2 %v12344_v49, %s6471_s4 }
 0xe5d   : > { %4961 = vrot.lane.b32.xlu0 %v12343_v54, %s6472_s21 }
 0xe61   : > { %4977 = vrot.lane.b32.xlu2 %v12343_v54, %s6473_s23 }
 0xe63   : > { %4922 = vrot.lane.b32.xlu1 %v12343_v54, %s6471_s4  ;;  %s672_s4 = scalar_lea.vmem %s11699_s19, %s5816_s9 }
 0xe65   : > { %4979 = vrot.lane.b32.xlu0 %v12344_v49, %s6473_s23 }
 0xe69   : > { %5022 = vrot.lane.b32.xlu2 %v12344_v49, %s6474_s24 }
 0xe6b   : > { %4963 = vrot.lane.b32.xlu1 %v12344_v49, %s6472_s21 }
 0xe6d   : > { %5036 = vrot.lane.b32.xlu0 %v12343_v54, %s6475_s0 }
 0xe71   : > { %5052 = vrot.lane.b32.xlu2 %v12343_v54, %s6476_s27 }
 0xe73   : > { %5020 = vrot.lane.b32.xlu1 %v12343_v54, %s6474_s24 }
 0xe75   : > { %5054 = vrot.lane.b32.xlu0 %v12344_v49, %s6476_s27  ;;  %s5815_s27 = sshll.u32 %s12394_s22, 2 }
 0xe79   : > { %5070 = vrot.lane.b32.xlu2 %v12344_v49, %s6477_s30 }
 0xe7b   : > { %5038 = vrot.lane.b32.xlu1 %v12344_v49, %s6475_s0 }
 0xe7d   : > { %5084 = vrot.lane.b32.xlu0 %v12343_v54, %s6478_s25 }
 0xe81   : > { %5100 = vrot.lane.b32.xlu2 %v12343_v54, %s6479_s3 }
 0xe83   : > { %5068 = vrot.lane.b32.xlu1 %v12343_v54, %s6477_s30  ;;  %s12370_s30 = sshll.u32 %s12394_s22, 5 }
 0xe84   : > { %s677_s26 = scalar_lea.vmem %s11700_s20, %s12370_s30 }
 0xe85   : > { %5102 = vrot.lane.b32.xlu0 %v12344_v49, %s6479_s3  ;;  %s12375_s3 = sld [smem:[#allocation67_spill]] }
 0xe8b   : > { %5086 = vrot.lane.b32.xlu1 %v12344_v49, %s6478_s25 }
 0xea4   : > { %v4722_v42 = vpop.xlane.xlu1 %4721 }
 0xea5   : > { %v4741_v12 = vmul.f32 %v4740_v45, %v4722_v42  ;;  %v4880_v42 = vperm.slane %v11191_v10, 6 }
 0xea7   : > { %v11143_v46 = vadd.f32 %v4741_v12, %v12346_v50  ;;  %v12354_v50 = vld [vmem:[#allocation18_spill] sm:$0xff] }
 0xeac   : > { %v4725_v1 = vpop.xlane.xlu2 %4724 }
 0xead   : > { %v4742_v28 = vmul.f32 %v4740_v45, %v4725_v1  ;;  %v4879_v1 = vperm.slane %v11186_v41, 6 }
 0xeaf   : > { %v11140_v48 = vadd.f32 %v4742_v28, %v12345_v63  ;;  %v12351_v28 = vld [vmem:[#allocation16_spill] sm:$0xff] }
 0xeb0   : > { %v11213_v12 = vmul.f32 %v4953_v35, %v12351_v28 }
 0xeb1   : > { %v4749_v20 = vadd.f32 %v11140_v48, %v11143_v46 }
 0xeb4   : > { %v4728_v47 = vpop.xlane.xlu0 %4727  ;;  %v11199_v8 = vpop.permute.xlu2 %4906 }
 0xeb5   : > { %v4743_v58 = vmul.f32 %v4740_v45, %v4728_v47 }
 0xeb7   : > { %v11146_v26 = vadd.f32 %v4743_v58, %v12347_v55  ;;  %v12352_v58 = vld [vmem:[#allocation17_spill] sm:$0xff]  ;;  %v11219_v55 = vmul.f32 %v5003_v27, %v12354_v50 }
 0xeb8   : > { %v11216_v63 = vmul.f32 %v5002_v15, %v12352_v58  ;;  %v12365_v15 = vld [vmem:[#allocation26_spill] sm:$0xff] }
 0xeb9   : > { %v4750_v40 = vadd.f32 %v4749_v20, %v11146_v26  ;;  %12355 = vst [vmem:[#allocation41_spill] sm:$0xff] %v11219_v55  ;;  %v12357_v20 = vld [vmem:[#allocation20_spill] sm:$0xff]  ;;  %v11243_v27 = vmul.f32 %v4898_v14, %v12365_v15  ;;  %v4807_v14 = vperm.slane %v11191_v10, 1 }
 0xeba   : > { %12353 = vst [vmem:[#allocation52_spill] sm:$0xff] %v11216_v63 }
 0xebc   : > { %v11276_v15 = vpop.permute.xlu2 %4924 }
 0xebd   : > { %v4733_v2 = vpop.xlane.xlu1 %4732 }
 0xebe   : > { %v4744_v30 = vmul.f32 %v4740_v45, %v4733_v2  ;;  %v12350_v45 = vld [vmem:[#allocation15_spill] sm:$0xff] }
 0xebf   : > { %v11210_v47 = vmul.f32 %v4952_v9, %v12350_v45  ;;  %v12356_v2 = vld [vmem:[#allocation19_spill] sm:$0xff] }
 0xec0   : > { %v11151_v24 = vadd.f32 %v4744_v30, %v12348_v6  ;;  %v11222_v30 = vmul.f32 %v4993_v16, %v12356_v2  ;;  %v11225_v6 = vmul.f32 %v4994_v52, %v12357_v20  ;;  %v12364_v9 = vld [vmem:[#allocation27_spill] sm:$0xff]  ;;  %v12366_v16 = vld [vmem:[#allocation29_spill] sm:$0xff]  ;;  %v4790_v2 = vperm.slane %v11186_v41, 0 }
 0xec1   : > { %v11240_v35 = vmul.f32 %v4897_v61, %v12364_v9  ;;  %v11246_v52 = vmul.f32 %v4888_v51, %v12366_v16  ;;  %v4806_v61 = vperm.slane %v11186_v41, 1  ;;  %v4791_v51 = vperm.slane %v11191_v10, 0 }
 0xec2   : > { %v4751_v57 = vsel %vm972_vm13, %v11151_v24, 0.0  ;;  %v4823_v20 = vperm.slane %v11191_v10, 2  ;;  %v4870_v9 = vperm.slane %v11186_v41, 5 }
 0xec3   : > { %v4752_v38 = vadd.f32 %v4751_v57, %v4750_v40  ;;  %v12358_v40 = vld [vmem:[#allocation21_spill] sm:$0xff]  ;;  %v4793_v55 = vmul.f32 %v4791_v51, %v11083_v17  ;;  %v4836_v17 = vsel %vm4835_vm3, %v11127_v13, %v11131_v4 }
 0xec4   : > { %v11228_v57 = vmul.f32 %v5011_v43, %v12358_v40  ;;  %v12367_v43 = vld [vmem:[#allocation28_spill] sm:$0xff]  ;;  %v4854_v40 = vperm.slane %v11186_v41, 4 }
 0xec5   : > { %v4753_v25 = vrot.slane %v4752_v38, 4  ;;  %v11249_v45 = vmul.f32 %v4889_v36, %v12367_v43  ;;  %v4822_v36 = vperm.slane %v11186_v41, 2  ;;  %v4808_v43 = vmul.f32 %v4806_v61, %v11065_v5 }
 0xec6   : > { %12359 = vst [vmem:[#allocation36_spill] sm:$0xff] %v11228_v57  ;;  %v4853_v57 = vsel %vm4851_vm9, %v11133_v60, %v11129_v62  ;;  %v4809_v5 = vmul.f32 %v4807_v14, %v11063_v59  ;;  %v4792_v61 = vmul.f32 %v4790_v2, %v11085_v3 }
 0xec7   : > { %v4754_v39 = vadd.f32 %v4753_v25, %v4752_v38  ;;  %v11178_v0 = vpop.permute.xlu0 %4908  ;;  %v12360_v38 = vld [vmem:[#allocation22_spill] sm:$0xff]  ;;  %v4824_v63 = vmul.f32 %v4822_v36, %v11094_v7  ;;  %v4868_v7 = vsel %vm4867_vm15, %v11137_v21, %v11135_v29  ;;  %v4913_v36 = vperm.slane %v11159_v11, 1 }
 0xec8   : > { %v11231_v25 = vmul.f32 %v5012_v22, %v12360_v38  ;;  %v12368_v22 = vld [vmem:[#allocation31_spill] sm:$0xff]  ;;  %v4855_v38 = vperm.slane %v11191_v10, 4 }
 0xec9   : > { %v4755_v23 = vrot.slane %v4754_v39, 2  ;;  %v11252_v28 = vmul.f32 %v4879_v1, %v12368_v22  ;;  %v4852_v22 = vsel %vm4851_vm9, %v11129_v62, %v11133_v60  ;;  %v4825_v62 = vmul.f32 %v4823_v20, %v11092_v31 }
 0xeca   : > { %12361 = vst [vmem:[#allocation56_spill] sm:$0xff] %v11231_v25  ;;  %v11302_v59 = vmul.f32 %v4855_v38, %v4852_v22  ;;  %v4912_v20 = vsel %vm4910_vm0, %v11178_v0, %v11199_v8  ;;  %vm5040_vm9 = vcmp.lt.s32.totalorder %v12181_v44, 98 }
 0xecb   : > { %v4756_v53 = vadd.f32 %v4755_v23, %v4754_v39  ;;  %v12362_v39 = vld [vmem:[#allocation25_spill] sm:$0xff] }
 0xecc   : > { %v11234_v23 = vmul.f32 %v4938_v33, %v12362_v39  ;;  %v12369_v33 = vld [vmem:[#allocation30_spill] sm:$0xff]  ;;  %v4838_v39 = vperm.slane %v11186_v41, 3 }
 0xecd   : > { %v4757_v37 = vrot.slane %v4756_v53, 1  ;;  %v11255_v58 = vmul.f32 %v4880_v42, %v12369_v33  ;;  %v4871_v33 = vperm.slane %v11191_v10, 5 }
 0xecf   : > { %v11193_v18 = vadd.f32 %v4757_v37, %v4756_v53  ;;  %v12363_v53 = vld [vmem:[#allocation24_spill] sm:$0xff]  ;;  %v11267_v42 = vpop.permute.xlu0 %4961 }
 0xed0   : > { %v11237_v37 = vmul.f32 %v4939_v32, %v12363_v53  ;;  %v4839_v53 = vperm.slane %v11191_v10, 3  ;;  %v4837_v10 = vsel %vm4835_vm3, %v11131_v4, %v11127_v13  ;;  %v4869_v13 = vsel %vm4867_vm15, %v11135_v29, %v11137_v21 }
 0xed1   : > { %6435 = vrcp.f32 %v11193_v18  ;;  %v4770_v25 = vand.u32 2147483648, %v11193_v18  ;;  %vm4764_vm11 = vweird.f32 %v11193_v18  ;;  %v4840_v14 = vmul.f32 %v4838_v39, %v4837_v10 }
 0xed2   : > { %v4914_v29 = vperm.slane %v11164_v56, 1  ;;  %v4911_v21 = vsel %vm4910_vm0, %v11199_v8, %v11178_v0  ;;  %v4872_v38 = vmul.f32 %v4870_v9, %v4869_v13  ;;  %v4873_v39 = vmul.f32 %v4871_v33, %v4868_v7 }
 0xed3   : > { %v4771_v3 = vor.u32 1.1754944e-38, %v4770_v25  ;;  %v11359_v8 = vmul.f32 %v4913_v36, %v4912_v20  ;;  %vm5072_vm3 = vcmp.lt.s32.totalorder %v12181_v44, 96  ;;  %vm5088_vm15 = vcmp.lt.s32.totalorder %v12181_v44, 95 }
 0xed5   : > { %v11257_v32 = vpop.permute.xlu1 %4922 }
 0xed7   : > { %v6436_v50 = vpop.eup %6435 }
 0xed8   : > { %v4760_v1 = vmul.f32 %v6436_v50, %v11193_v18  ;;  %vm4765_vm14 = vweird.f32 %v6436_v50 }
 0xed9   : > { %vm4766_vm10 = vmor %vm4764_vm11, %vm4765_vm14  ;;  %vm5104_vm14 = vcmp.lt.s32.totalorder %v12181_v44, 94  ;;  %v6362_v44 = vld [vmem:[%s11686_s6 + $0x18] sm:$0xff]  ;;  %vm12376_vm11 = vcmask 523264  }
 0xeda   : > { %v4761_v16 = vsub.f32 1.0, %v4760_v1  ;;  %v4768_v1 = vand.u32 2147483647, %v11193_v18 }
 0xedc   : > { %v4762_v41 = vmul.f32 %v6436_v50, %v4761_v16  ;;  %v11300_v16 = vmul.f32 %v4854_v40, %v4853_v57  ;;  %vm4769_vm12 = vcmp.eq.f32.partialorder %v4768_v1, 8.507059e+37  ;;  %v4841_v40 = vmul.f32 %v4839_v53, %v4836_v17 }
 0xedd   : > { %v11309_v31 = vpop.permute.xlu1 %4963  ;;  %v11361_v53 = vmul.f32 %v4914_v29, %v4911_v21  ;;  %v4985_v29 = vperm.slane %v11164_v56, 7 }
 0xede   : > { %v4763_v60 = vadd.f32 %v6436_v50, %v4762_v41 }
 0xee0   : > { %v4767_v2 = vsel %vm4766_vm10, %v6436_v50, %v4763_v60  ;;  %v4980_v50 = vpop.permute.xlu0 %4979  ;;  %vm12377_vm10 = vmmov %vm12376_vm11 }
 0xee1   : > { %v4772_v4 = vsel %vm4769_vm12, %v4771_v3, %v4767_v2  ;;  %vm12378_vm12 = vmmov %vm12377_vm10 }
 0xee2   : > { %v11325_v18 = vmul.f32 %v4772_v4, %v11143_v46  ;;  %v11328_v57 = vmul.f32 %v4772_v4, %v11140_v48  ;;  %v11331_v25 = vmul.f32 %v4772_v4, %v11146_v26  ;;  %v11334_v51 = vmul.f32 %v4772_v4, %v11151_v24  ;;  %v4978_v48 = vpop.permute.xlu2 %4977  ;;  %vm12379_vm0 = vmmov %vm12377_vm10 }
 0xee4   : > { %4778 = vst.msk [vmem:[%s677_s26] sm:$0xff] %vm4777_vm1, %v11325_v18  ;;  %v4794_v46 = vperm.slane %v11325_v18, 0  ;;  %v4810_v26 = vperm.slane %v11325_v18, 1  ;;  %v4826_v24 = vperm.slane %v11325_v18, 2  ;;  %v4842_v22 = vperm.slane %v11325_v18, 3 }
 0xee5   : > { %4779 = vst.msk [vmem:[%s677_s26 + $0x8] sm:$0xff] %vm4777_vm1, %v11328_v57  ;;  %v4858_v0 = vperm.slane %v11325_v18, 4  ;;  %v11368_v4 = vpop.permute.xlu1 %5020  ;;  %v4883_v36 = vperm.slane %v11325_v18, 6 }
 0xee6   : > { %4780 = vst.msk [vmem:[%s677_s26 + $0x10] sm:$0xff] %vm4777_vm1, %v11331_v25  ;;  %v4795_v41 = vmul.f32 %v4794_v46, %v4792_v61  ;;  %v4796_v1 = vmul.f32 %v4794_v46, %v4793_v55  ;;  %v4811_v10 = vmul.f32 %v4810_v26, %v4808_v43  ;;  %v4812_v60 = vmul.f32 %v4810_v26, %v4809_v5  ;;  %vm12380_vm1 = vmmov %vm12379_vm0 }
 0xee7   : > { %4782 = vst.msk [vmem:[%s677_s26 + $0x18] sm:$0x1] %vm4781_vm2, %v11334_v51  ;;  %v4827_v17 = vmul.f32 %v4826_v24, %v4824_v63  ;;  %v4828_v3 = vmul.f32 %v4826_v24, %v4825_v62  ;;  %v4874_v61 = vperm.slane %v11325_v18, 5  ;;  %v4929_v55 = vperm.slane %v11159_v11, 2  ;;  %s668_s26 = scalar_lea.vmem %s12375_s3, %s5815_s27  ;;  %vm12381_vm2 = vmmov %vm12379_vm0 }
 0xee8   : > { %v4813_v9 = vadd.f32 %v4811_v10, %v4795_v41  ;;  %v4814_v33 = vadd.f32 %v4812_v60, %v4796_v1  ;;  %v4930_v43 = vperm.slane %v11164_v56, 2  ;;  %v4843_v7 = vmul.f32 %v4842_v22, %v4840_v14  ;;  %v11379_v24 = vpop.permute.xlu0 %5036 }
 0xee9   : > { %v4844_v13 = vmul.f32 %v4842_v22, %v4841_v40  ;;  %v4928_v63 = vsel %vm4926_vm4, %v11276_v15, %v11257_v32  ;;  %v4984_v62 = vperm.slane %v11159_v11, 7  ;;  %v4859_v26 = vmul.f32 %v4858_v0, %v11300_v16 }
 0xeea   : > { %v4829_v5 = vadd.f32 %v4827_v17, %v4813_v9  ;;  %v4830_v2 = vadd.f32 %v4828_v3, %v4814_v33  ;;  %v4860_v14 = vmul.f32 %v4858_v0, %v11302_v59  ;;  %v4875_v20 = vmul.f32 %v4874_v61, %v4872_v38  ;;  %v11388_v16 = vpop.permute.xlu2 %5022 }
 0xeeb   : > { %v4927_v40 = vsel %vm4926_vm4, %v11257_v32, %v11276_v15  ;;  %v4968_v22 = vperm.slane %v11159_v11, 6  ;;  %v4876_v10 = vmul.f32 %v4874_v61, %v4873_v39  ;;  %v4892_v60 = vperm.slane %v11325_v18, 7  ;;  %v6358_v61 = vld [vmem:[%s11685_s5 + $0x78] sm:$0xff]  ;;  %vm12382_vm4 = vmmov %vm12379_vm0 }
 0xeec   : > { %v4845_v21 = vadd.f32 %v4843_v7, %v4829_v5  ;;  %v4846_v46 = vadd.f32 %v4844_v13, %v4830_v2  ;;  %v4884_v59 = vmul.f32 %v4883_v36, %v11252_v28  ;;  %v4931_v0 = vmul.f32 %v4929_v55, %v4928_v63  ;;  %5259 = vmatpush.bf16.msrb.mxu3 %v6358_v61 }
 0xeed   : > { %v4982_v38 = vsel %vm4981_vm5, %v4978_v48, %v4980_v50  ;;  %v4983_v32 = vsel %vm4981_vm5, %v4980_v50, %v4978_v48  ;;  %v4885_v11 = vmul.f32 %v4883_v36, %v11255_v58  ;;  %v4901_v33 = vperm.slane %v11328_v57, 0  ;;  %vm12383_vm5 = vmmov %vm12379_vm0 }
 0xeee   : > { %v4861_v41 = vadd.f32 %v4859_v26, %v4845_v21  ;;  %v4862_v1 = vadd.f32 %v4860_v14, %v4846_v46  ;;  %v4917_v39 = vperm.slane %v11328_v57, 1  ;;  %v4969_v18 = vperm.slane %v11164_v56, 6  ;;  %v6350_v56 = vld [vmem:[%s11685_s5 + $0x38] sm:$0xff] }
 0xeef   : > { %v4966_v28 = vsel %vm4965_vm6, %v11267_v42, %v11309_v31  ;;  %v4967_v50 = vsel %vm4965_vm6, %v11309_v31, %v11267_v42  ;;  %v4893_v58 = vmul.f32 %v4892_v60, %v11246_v52  ;;  %v4894_v3 = vmul.f32 %v4892_v60, %v11249_v45  ;;  %v11418_v45 = vpop.permute.xlu1 %5038  ;;  %5246 = vmatpush.bf16.msrb.mxu2 %v6350_v56 }
 0xef0   : > { %v4877_v15 = vadd.f32 %v4875_v20, %v4861_v41  ;;  %v4878_v9 = vadd.f32 %v4876_v10, %v4862_v1  ;;  %v4933_v55 = vperm.slane %v11328_v57, 2  ;;  %v4932_v5 = vmul.f32 %v4930_v43, %v4927_v40  ;;  %v11424_v26 = vpop.permute.xlu0 %5054 }
 0xef1   : > { %v4986_v2 = vmul.f32 %v4984_v62, %v4982_v38  ;;  %v4987_v7 = vmul.f32 %v4985_v29, %v4983_v32  ;;  %v4902_v13 = vmul.f32 %v4901_v33, %v11240_v35  ;;  %v4903_v52 = vmul.f32 %v4901_v33, %v11243_v27 }
 0xef2   : > { %v4886_v48 = vadd.f32 %v4884_v59, %v4877_v15  ;;  %v4887_v17 = vadd.f32 %v4885_v11, %v4878_v9  ;;  %v4942_v36 = vperm.slane %v11328_v57, 3  ;;  %v4970_v63 = vmul.f32 %v4968_v22, %v4966_v28  ;;  %v5053_v41 = vpop.permute.xlu2 %5052  ;;  %v6348_v11 = vld [vmem:[%s11685_s5 + $0x28] sm:$0xff] }
 0xef3   : > { %v4971_v21 = vmul.f32 %v4969_v18, %v4967_v50  ;;  %v4918_v62 = vmul.f32 %v4917_v39, %v11359_v8  ;;  %v4919_v29 = vmul.f32 %v4917_v39, %v11361_v53  ;;  %v4934_v35 = vmul.f32 %v4933_v55, %v4931_v0  ;;  %v6349_v8 = vld [vmem:[%s11685_s5 + $0x30] sm:$0xff] }
 0xef4   : > { %v4895_v42 = vadd.f32 %v4893_v58, %v4886_v48  ;;  %v4896_v31 = vadd.f32 %v4894_v3, %v4887_v17  ;;  %v4988_v27 = vperm.slane %v11328_v57, 7  ;;  %v5027_v14 = vperm.slane %v11169_v19, 3  ;;  %v6357_v53 = vld [vmem:[%s11685_s5 + $0x70] sm:$0xff]  ;;  %5247 = vmatpush.bf16.msrb.mxu2 %v6349_v8 }
 0xef5   : > { %v5028_v20 = vperm.slane %v11174_v34, 3  ;;  %v4935_v1 = vmul.f32 %v4933_v55, %v4932_v5  ;;  %v4947_v10 = vperm.slane %v11328_v57, 4  ;;  %v4943_v60 = vmul.f32 %v4942_v36, %v11234_v23  ;;  %5260 = vmatpush.bf16.msrb.mxu3 %v6357_v53  ;;  %v6356_v23 = vld [vmem:[%s11685_s5 + $0x68] sm:$0xff]  ;;  %v6374_v55 = vld [vmem:[%s11686_s6 + $0x78] sm:$0xff] }
 0xef6   : > { %v4904_v46 = vadd.f32 %v4902_v13, %v4895_v42  ;;  %v4905_v43 = vadd.f32 %v4903_v52, %v4896_v31  ;;  %v4956_v59 = vperm.slane %v11328_v57, 5  ;;  %v4997_v0 = vperm.slane %v11331_v25, 0  ;;  %v12371_v31 = vld [vmem:[#allocation52_spill] sm:$0xff]  ;;  %v6355_v52 = vld [vmem:[%s11685_s5 + $0x60] sm:$0xff]  ;;  %5452 = vmatpush.bf16.msra.mxu1 %v6374_v55 }
 0xef7   : > { %v4944_v38 = vmul.f32 %v4942_v36, %v11237_v37  ;;  %v5059_v9 = vperm.slane %v11169_v19, 5  ;;  %v4989_v33 = vmul.f32 %v4988_v27, %v4986_v2  ;;  %v4990_v39 = vmul.f32 %v4988_v27, %v4987_v7  ;;  %v6369_v36 = vld [vmem:[%s11686_s6 + $0x50] sm:$0xff] }
 0xef8   : > { %v4920_v40 = vadd.f32 %v4918_v62, %v4904_v46  ;;  %v4921_v22 = vadd.f32 %v4919_v29, %v4905_v43  ;;  %v4972_v18 = vperm.slane %v11328_v57, 6  ;;  %v5006_v37 = vperm.slane %v11331_v25, 1  ;;  %v6370_v57 = vld [vmem:[%s11686_s6 + $0x58] sm:$0xff]  ;;  %5248 = vmatpush.bf16.msrb.mxu2 %v6348_v11 }
 0xef9   : > { %v4948_v48 = vmul.f32 %v4947_v10, %v12343_v54  ;;  %v4949_v17 = vmul.f32 %v4947_v10, %v12344_v49  ;;  %v4957_v58 = vmul.f32 %v4956_v59, %v11210_v47  ;;  %v4958_v3 = vmul.f32 %v4956_v59, %v11213_v12  ;;  %v5069_v12 = vpop.permute.xlu1 %5068  ;;  %5261 = vmatpush.bf16.msrb.mxu3 %v6356_v23  ;;  %v12372_v62 = vld [vmem:[#allocation41_spill] sm:$0xff] }
 0xefa   : > { %v4936_v32 = vadd.f32 %v4934_v35, %v4920_v40  ;;  %v4937_v15 = vadd.f32 %v4935_v1, %v4921_v22  ;;  %v4998_v56 = vmul.f32 %v4997_v0, %v11222_v30  ;;  %v5015_v61 = vperm.slane %v11331_v25, 2  ;;  %v6347_v30 = vld [vmem:[%s11685_s5 + $0x20] sm:$0xff]  ;;  %5406 = vmatpush.bf16.msra.mxu0 %v6370_v57  ;;  %v5071_v1 = vpop.permute.xlu2 %5070  ;;  %v6346_v59 = vld [vmem:[%s11685_s5 + $0x18] sm:$0xff] }
 0xefb   : > { %v5025_v49 = vsel %vm5024_vm7, %v11368_v4, %v11388_v16  ;;  %v5060_v47 = vperm.slane %v11174_v34, 5  ;;  %v4999_v2 = vmul.f32 %v4997_v0, %v11225_v6  ;;  %v4973_v7 = vmul.f32 %v4972_v18, %v4970_v63  ;;  %v5085_v6 = vpop.permute.xlu0 %5084  ;;  %v6373_v63 = vld [vmem:[%s11686_s6 + $0x70] sm:$0xff] }
 0xefc   : > { %v4945_v28 = vadd.f32 %v4943_v60, %v4936_v32  ;;  %v4946_v50 = vadd.f32 %v4944_v38, %v4937_v15  ;;  %v4974_v42 = vmul.f32 %v4972_v18, %v4971_v21  ;;  %v5007_v13 = vmul.f32 %v5006_v37, %v12371_v31  ;;  %v12373_v21 = vld [vmem:[#allocation36_spill] sm:$0xff]  ;;  %5249 = vmatpush.bf16.msrb.mxu2 %v6347_v30 }
 0xefd   : > { %v5008_v29 = vmul.f32 %v5006_v37, %v12372_v62  ;;  %v5016_v35 = vmul.f32 %v5015_v61, %v12373_v21  ;;  %v5026_v27 = vsel %vm5024_vm7, %v11388_v16, %v11368_v4  ;;  %v5029_v40 = vmul.f32 %v5027_v14, %v5025_v49  ;;  %v12374_v4 = vld [vmem:[#allocation56_spill] sm:$0xff]  ;;  %5262 = vmatpush.bf16.msrb.mxu3 %v6355_v52 }
 0xefe   : > { %v4950_v5 = vadd.f32 %v4948_v48, %v4945_v28  ;;  %v4951_v54 = vadd.f32 %v4949_v17, %v4946_v50  ;;  %v5057_v22 = vsel %vm5056_vm8, %v5053_v41, %v11424_v26  ;;  %v5058_v53 = vsel %vm5056_vm8, %v11424_v26, %v5053_v41  ;;  %v6354_v26 = vld [vmem:[%s11685_s5 + $0x58] sm:$0xff]  ;;  %5407 = vmatpush.bf16.msra.mxu0 %v6369_v36  ;;  %v6429_v62 = vld [vmem:[%s12349_s8 + $0x30] ss:$0 sm:$0xff] }
 0xeff   : > { %v5043_v60 = vperm.slane %v11169_v19, 4  ;;  %v5017_v16 = vmul.f32 %v5015_v61, %v12374_v4  ;;  %v5031_v14 = vperm.slane %v11331_v25, 3  ;;  %v5044_v0 = vperm.slane %v11174_v34, 4  ;;  %5453 = vmatpush.bf16.msra.mxu1 %v6373_v63 }
 0xf00   : > { %v4959_v46 = vadd.f32 %v4957_v58, %v4950_v5  ;;  %v4960_v43 = vadd.f32 %v4958_v3, %v4951_v54  ;;  %v5041_v38 = vsel %vm5040_vm9, %v11379_v24, %v11418_v45  ;;  %v5042_v15 = vsel %vm5040_vm9, %v11418_v45, %v11379_v24  ;;  %5250 = vmatpush.bf16.msrb.mxu2 %v6346_v59  ;;  %v6345_v24 = vld [vmem:[%s11685_s5 + $0x10] sm:$0xff]  ;;  %v6351_v59 = vld [vmem:[%s11685_s5 + $0x40] sm:$0xff] }
 0xf01   : > { %v5030_v11 = vmul.f32 %v5028_v20, %v5026_v27  ;;  %v5032_v23 = vmul.f32 %v5031_v14, %v5029_v40  ;;  %v5061_v18 = vmul.f32 %v5059_v9, %v5057_v22  ;;  %v5062_v37 = vmul.f32 %v5060_v47, %v5058_v53  ;;  %5263 = vmatpush.bf16.msrb.mxu3 %v6354_v26  ;;  %v6353_v9 = vld [vmem:[%s11685_s5 + $0x50] sm:$0xff]  ;;  %v5087_v61 = vpop.permute.xlu1 %5086 }
 0xf02   : > { %v4975_v10 = vadd.f32 %v4973_v7, %v4959_v46  ;;  %v4976_v8 = vadd.f32 %v4974_v42, %v4960_v43  ;;  %v5046_v45 = vmul.f32 %v5044_v0, %v5042_v15  ;;  %v5075_v48 = vperm.slane %v11169_v19, 6  ;;  %v5101_v52 = vpop.permute.xlu2 %5100 }
 0xf03   : > { %v5076_v20 = vperm.slane %v11174_v34, 6  ;;  %v5073_v17 = vsel %vm5072_vm3, %v5069_v12, %v5071_v1  ;;  %v5033_v57 = vmul.f32 %v5031_v14, %v5030_v11  ;;  %v5047_v5 = vperm.slane %v11331_v25, 4  ;;  %v5103_v47 = vpop.permute.xlu0 %5102  ;;  %v6361_v11 = vld [vmem:[%s11686_s6 + $0x10] sm:$0xff] }
 0xf04   : > { %v4991_v41 = vadd.f32 %v4989_v33, %v4975_v10  ;;  %v4992_v32 = vadd.f32 %v4990_v39, %v4976_v8  ;;  %v5063_v33 = vperm.slane %v11331_v25, 5  ;;  %v5045_v39 = vmul.f32 %v5043_v60, %v5041_v38  ;;  %5251 = vmatpush.bf16.msrb.mxu2 %v6345_v24  ;;  %v6343_v10 = vld [vmem:[%s11685_s5] sm:$0xff]  ;;  %v6366_v38 = vld [vmem:[%s11686_s6 + $0x38] sm:$0xff] }
 0xf05   : > { %v5091_v30 = vperm.slane %v11169_v19, 7  ;;  %v5077_v7 = vmul.f32 %v5075_v48, %v5073_v17  ;;  %v5089_v31 = vsel %vm5088_vm15, %v5085_v6, %v5087_v61  ;;  %5264 = vmatpush.bf16.msrb.mxu3 %v6353_v9  ;;  %v6352_v19 = vld [vmem:[%s11685_s5 + $0x48] sm:$0xff]  ;;  %v5049_v43 = vmul.f32 %v5047_v5, %v5046_v45  ;;  %v6359_v9 = vld [vmem:[%s11686_s6] sm:$0xff] }
 0xf06   : > { %v5000_v28 = vadd.f32 %v4998_v56, %v4991_v41  ;;  %v5001_v50 = vadd.f32 %v4999_v2, %v4992_v32  ;;  %v5074_v56 = vsel %vm5072_vm3, %v5071_v1, %v5069_v12  ;;  %v5064_v55 = vmul.f32 %v5063_v33, %v5061_v18  ;;  %v6344_v12 = vld [vmem:[%s11685_s5 + $0x8] sm:$0xff] }
 0xf07   : > { %v5092_v2 = vperm.slane %v11174_v34, 7  ;;  %v5078_v42 = vmul.f32 %v5076_v20, %v5074_v56  ;;  %v5048_v46 = vmul.f32 %v5047_v5, %v5045_v39  ;;  %v5065_v63 = vmul.f32 %v5063_v33, %v5062_v37  ;;  %v6360_v45 = vld [vmem:[%s11686_s6 + $0x8] sm:$0xff]  ;;  %v6371_v56 = vld [vmem:[%s11686_s6 + $0x60] sm:$0xff]  ;;  %v6390_v5 = vld [vmem:[%s11686_s6 + $0x118] sm:$0xff] }
 0xf08   : > { %v5009_v58 = vadd.f32 %v5007_v13, %v5000_v28  ;;  %v5010_v3 = vadd.f32 %v5008_v29, %v5001_v50  ;;  %v5090_v13 = vsel %vm5088_vm15, %v5087_v61, %v5085_v6  ;;  %v6430_v29 = vld [vmem:[%s12349_s8 + $0x38] ss:$0 sm:$0xff]  ;;  %v5079_v6 = vperm.slane %v11331_v25, 6  ;;  %5252 = vmatpush.bf16.msrb.mxu2 %v6344_v12  ;;  %v6364_v48 = vld [vmem:[%s11686_s6 + $0x28] sm:$0xff] }
 0xf09   : > { %v5105_v21 = vsel %vm5104_vm14, %v5101_v52, %v5103_v47  ;;  %v5093_v22 = vmul.f32 %v5091_v30, %v5089_v31  ;;  %v5094_v1 = vmul.f32 %v5092_v2, %v5090_v13  ;;  %v5095_v60 = vperm.slane %v11331_v25, 7  ;;  %5265 = vmatpush.bf16.msrb.mxu3 %v6352_v19  ;;  %v6368_v20 = vld [vmem:[%s11686_s6 + $0x48] sm:$0xff]  ;;  %v6378_v61 = vld [vmem:[%s11686_s6 + $0xb8] sm:$0xff]  ;;  %v6389_v30 = vld [vmem:[%s11686_s6 + $0x110] sm:$0xff] }
 0xf0a   : > { %v5018_v54 = vadd.f32 %v5016_v35, %v5009_v58  ;;  %v5019_v49 = vadd.f32 %v5017_v16, %v5010_v3  ;;  %v5106_v35 = vsel %vm5104_vm14, %v5103_v47, %v5101_v52  ;;  %v5080_v8 = vmul.f32 %v5079_v6, %v5077_v7  ;;  %v6372_v17 = vld [vmem:[%s11686_s6 + $0x68] sm:$0xff]  ;;  %v6363_v58 = vld [vmem:[%s11686_s6 + $0x20] sm:$0xff]  ;;  %5408 = vmatpush.bf16.msra.mxu0 %v6368_v20  ;;  %v6385_v47 = vld [vmem:[%s11686_s6 + $0xf0] sm:$0xff] }
 0xf0b   : > { %v5081_v53 = vmul.f32 %v5079_v6, %v5078_v42  ;;  %v5109_v14 = vmul.f32 %v6429_v62, %v5105_v21  ;;  %v5110_v0 = vmul.f32 %v6430_v29, %v5106_v35  ;;  %v5111_v26 = vperm.slane %v11334_v51, 0  ;;  %v6365_v51 = vld [vmem:[%s11686_s6 + $0x30] sm:$0xff]  ;;  %5454 = vmatpush.bf16.msra.mxu1 %v6372_v17  ;;  %v6367_v3 = vld [vmem:[%s11686_s6 + $0x40] sm:$0xff]  ;;  %v6376_v2 = vld [vmem:[%s11686_s6 + $0xa8] sm:$0xff] }
 0xf0c   : > { %v5034_v34 = vadd.f32 %v5032_v23, %v5018_v54  ;;  %v5035_v36 = vadd.f32 %v5033_v57, %v5019_v49  ;;  %v5096_v32 = vmul.f32 %v5095_v60, %v5093_v22  ;;  %v5097_v15 = vmul.f32 %v5095_v60, %v5094_v1  ;;  %5253 = vmatpush.bf16.msrb.mxu2 %v6343_v10  ;;  %v6382_v57 = vld [vmem:[%s11686_s6 + $0xd8] sm:$0xff]  ;;  %v6377_v54 = vld [vmem:[%s11686_s6 + $0xb0] sm:$0xff]  ;;  %v6380_v12 = vld [vmem:[%s11686_s6 + $0xc8] sm:$0xff] }
 0xf0d   : > { %5266 = vmatpush.bf16.msrb.mxu3 %v6351_v59  ;;  %v5112_v23 = vmul.f32 %v5111_v26, %v5109_v14  ;;  %v5113_v18 = vmul.f32 %v5111_v26, %v5110_v0  ;;  %v6381_v49 = vld [vmem:[%s11686_s6 + $0xd0] sm:$0xff]  ;;  %v6384_v7 = vld [vmem:[%s11686_s6 + $0xe8] sm:$0xff]  ;;  %v6375_v31 = vld [vmem:[%s11686_s6 + $0xa0] sm:$0xff]  ;;  %vm12384_vm6 = vcmask 1041408   ;;  %vm12385_vm7 = vcmask 1044480  }
 0xf0e   : > { %v5050_v27 = vadd.f32 %v5048_v46, %v5034_v34  ;;  %v5051_v40 = vadd.f32 %v5049_v43, %v5035_v36  ;;  %5409 = vmatpush.bf16.msra.mxu0 %v6367_v3  ;;  %v6388_v42 = vld [vmem:[%s11686_s6 + $0x108] sm:$0xff]  ;;  %v6379_v13 = vld [vmem:[%s11686_s6 + $0xc0] sm:$0xff]  ;;  %vm12386_vm8 = vcmask 1042432   ;;  %vm12388_vm9 = vcmask 1043456   ;;  %vm12392_vm14 = vmmov %vm12379_vm0 }
 0xf0f   : > { %5455 = vmatpush.bf16.msra.mxu1 %v6371_v56  ;;  %v6383_v19 = vld [vmem:[%s11686_s6 + $0xe0] sm:$0xff]  ;;  %vm12389_vm3 = vcmask 1046528   ;;  %vm12390_vm15 = vcmask 1045504  }
 0xf10   : > { %v5066_v4 = vadd.f32 %v5064_v55, %v5050_v27  ;;  %v5067_v16 = vadd.f32 %v5065_v63, %v5051_v40  ;;  %5314 = vmatpush.bf16.msra.mxu2 %v6362_v44  ;;  %v6386_v55 = vld [vmem:[%s11686_s6 + $0xf8] sm:$0xff]  ;;  %v6387_v52 = vld [vmem:[%s11686_s6 + $0x100] sm:$0xff] }
 0xf11   : > { %5360 = vmatpush.bf16.msra.mxu3 %v6366_v38  ;;  %v5272_v46 = vld [vmem:[%s668_s26] sm:$0x7] }
 0xf12   : > { %v5082_v25 = vadd.f32 %v5080_v8, %v5066_v4  ;;  %v5083_v41 = vadd.f32 %v5081_v53, %v5067_v16  ;;  %5590 = vmatpush.bf16.msrb.mxu0 %v6386_v55  ;;  %v5675_v20 = vld [vmem:[%s11698_s18] sm:$0xf] }
 0xf13   : > { %5636 = vmatpush.bf16.msrb.mxu1 %v6390_v5 }
 0xf14   : > { %v5098_v37 = vadd.f32 %v5096_v32, %v5082_v25  ;;  %v5099_v28 = vadd.f32 %v5097_v15, %v5083_v41  ;;  %5315 = vmatpush.bf16.msra.mxu2 %v6361_v11 }
 0xf15   : > { %5361 = vmatpush.bf16.msra.mxu3 %v6365_v51 }
 0xf16   : > { %v5114_v50 = vadd.f32 %v5112_v23, %v5098_v37  ;;  %v5115_v33 = vadd.f32 %v5113_v18, %v5099_v28  ;;  %5591 = vmatpush.bf16.msrb.mxu0 %v6385_v47  ;;  %v12387_v28 = vld [vmem:[#allocation23_spill] sm:$0xff] }
 0xf17   : > { %5637 = vmatpush.bf16.msrb.mxu1 %v6389_v30 }
 0xf18   : > { %v5116_v39 = vpack.c.bf16 %v5114_v50, %v5114_v50  ;;  %v5117_v24 = vpack.c.bf16 %v5115_v33, %v5115_v33  ;;  %5316 = vmatpush.bf16.msra.mxu2 %v6360_v45 }
 0xf19   : > { %5362 = vmatpush.bf16.msra.mxu3 %v6364_v48 }
 0xf1a   : > { %5254 = vmatmul.bf16.vlgmr.msrb.gmra.mxu2 %v5116_v39  ;;  %5267 = vmatmul.bf16.vlgmr.msrb.gmra.mxu3 %v5117_v24 }
 0xf1b   : > { %5592 = vmatpush.bf16.msrb.mxu0 %v6384_v7  ;;  %5638 = vmatpush.bf16.msrb.mxu1 %v6388_v42 }
 0xf1c   : > { %5317 = vmatpush.bf16.msra.mxu2 %v6359_v9 }
 0xf1d   : > { %5363 = vmatpush.bf16.msra.mxu3 %v6363_v58 }
 0xf1f   : > { %5593 = vmatpush.bf16.msrb.mxu0 %v6383_v19  ;;  %5639 = vmatpush.bf16.msrb.mxu1 %v6387_v52 }
 0xf20   : > { %5498 = vmatpush.bf16.msrb.mxu2 %v6378_v61 }
 0xf21   : > { %5544 = vmatpush.bf16.msrb.mxu3 %v6382_v57 }
 0xf24   : > { %5499 = vmatpush.bf16.msrb.mxu2 %v6377_v54 }
 0xf25   : > { %5545 = vmatpush.bf16.msrb.mxu3 %v6381_v49 }
 0xf28   : > { %5500 = vmatpush.bf16.msrb.mxu2 %v6376_v2 }
 0xf29   : > { %5546 = vmatpush.bf16.msrb.mxu3 %v6380_v12 }
 0xf2c   : > { %5501 = vmatpush.bf16.msrb.mxu2 %v6375_v31 }
 0xf2d   : > { %5547 = vmatpush.bf16.msrb.mxu3 %v6379_v13 }
 0xf9d   : > { %v5255_v34 = vpop.f32.mrf.mxu2  ;;  %v5268_v36 = vpop.f32.mrf.mxu3 }
 0xf9e   : > { %v5269_v43 = vadd.f32 %v5268_v36, %v5255_v34 }
 0xfa0   : > { %v5273_v62 = vsub.f32 %v5269_v43, %v5272_v46 }
 0xfa2   : > { %v5274_v29 = vpack.c.bf16 %v5273_v62, %v5273_v62  ;;  %v5655_v23 = vrot.slane %v5273_v62, 4 }
 0xfa4   : > { %6117 = vmatmul.msk.bf16.vlgmr.msra.gmra.mxu2 %vm12376_vm11, %v5274_v29  ;;  %6142 = vmatmul.msk.bf16.vlgmr.msra.gmra.mxu3 %vm12377_vm10, %v5274_v29 }
 0xfa5   : > { %6167 = vmatmul.msk.bf16.vlgmr.msra.gmra.mxu0 %vm12378_vm12, %v5274_v29  ;;  %6192 = vmatmul.msk.bf16.vlgmr.msra.gmra.mxu1 %vm12379_vm0, %v5274_v29  ;;  %v5257_v63 = vpop.f32.mrf.mxu2  ;;  %v5270_v6 = vpop.f32.mrf.mxu3 }
 0xfb4   : > { %6217 = vmatmul.msk.bf16.vlgmr.msrb.gmra.mxu2 %vm12380_vm1, %v5274_v29  ;;  %6242 = vmatmul.msk.bf16.vlgmr.msrb.gmra.mxu3 %vm12381_vm2, %v5274_v29 }
 0xfb5   : > { %6267 = vmatmul.msk.bf16.vlgmr.msrb.gmra.mxu0 %vm12382_vm4, %v5274_v29  ;;  %6292 = vmatmul.msk.bf16.vlgmr.msrb.gmra.mxu1 %vm12383_vm5, %v5274_v29 }
0x1022   : > { %v5411_v21 = vpop.f32.mrf.mxu0  ;;  %v5457_v35 = vpop.f32.mrf.mxu1 }
0x1023   : > { %v5649_v59 = vrot.slane %v5411_v21, 2  ;;  %v5652_v44 = vrot.slane %v5457_v35, 7 }
0x1025   : > { %v5668_v15 = vsel %vm972_vm13, %v5649_v59, %v5652_v44  ;;  %vm12391_vm13 = vcmask 220160  }
0x1026   : > { %v5669_v50 = vsel %vm12388_vm9, %v5668_v15, %v5655_v23 }
0x1027   : > { %v5319_v27 = vpop.f32.mrf.mxu2  ;;  %v5365_v40 = vpop.f32.mrf.mxu3 }
0x1028   : > { %v5646_v26 = vrot.slane %v5365_v40, 5 }
0x102a   : > { %v5413_v22 = vpop.f32.mrf.mxu0  ;;  %v5459_v1 = vpop.f32.mrf.mxu1  ;;  %v5666_v37 = vsel %vm12386_vm8, %v5319_v27, %v5646_v26 }
0x102b   : > { %v5667_v45 = vsel %vm12390_vm15, %v5666_v37, %v5649_v59 }
0x102f   : > { %v5321_v10 = vpop.f32.mrf.mxu2  ;;  %v5367_v8 = vpop.f32.mrf.mxu3 }
0x1032   : > { %v5595_v53 = vpop.f32.mrf.mxu0  ;;  %v5641_v60 = vpop.f32.mrf.mxu1 }
0x1033   : > { %v5664_v38 = vrot.slane %v5595_v53, 3 }
0x1037   : > { %v5503_v4 = vpop.f32.mrf.mxu2  ;;  %v5549_v16 = vpop.f32.mrf.mxu3 }
0x1038   : > { %v5658_v14 = vrot.slane %v5503_v4, 1  ;;  %v5661_v0 = vrot.slane %v5549_v16, 6 }
0x103a   : > { %v5671_v25 = vsel %vm12384_vm6, %v5658_v14, %v5661_v0  ;;  %v5597_v41 = vpop.f32.mrf.mxu0  ;;  %v5643_v32 = vpop.f32.mrf.mxu1  ;;  %v5670_v24 = vsel %vm12389_vm3, %v5669_v50, %v5658_v14 }
0x103b   : > { %v5672_v11 = vsel %vm12385_vm7, %v5671_v25, %v5664_v38  ;;  %v5673_v48 = vpack.c.bf16 %v5670_v24, %v5667_v45 }
0x103c   : > { %v5674_v18 = vpack.c.bf16 %v5641_v60, %v5672_v11 }
0x103e   : > { %v5680_v51 = vand.u32 %v5674_v18, %v12387_v28 }
0x103f   : > { %v5505_v33 = vpop.f32.mrf.mxu2  ;;  %v5551_v39 = vpop.f32.mrf.mxu3 }
0x1040   : > { %5688 = vmatpush.bf16.msra.mxu2 %v5680_v51 }
0x1044   : > { %5689 = vmatpush.bf16.msra.mxu2 %v5673_v48 }
0x1047   : > { %6293 = vmatmul.msk.bf16.vlgmr.msra.gmra.mxu2 %vm12391_vm13, %v5675_v20 }
0x10ca   : > { %v5691_v17 = vpop.f32.mrf.mxu2 }
0x10cb   : > { %5695 = vst.msk [vmem:[%s672_s4] sm:$0xff] %vm12392_vm14, %v5691_v17 }
0x10d2   : > { %v5693_v9 = vpop.f32.mrf.mxu2 }
0x10d3 PF: > { %s31_s1 = sadd.s32 1, %s6451_s1  }
0x10d4   : > { %p28_p4 = scmp.ge.s32.totalorder %s31_s1, 4  }
0x10d6   :  { %30 = sbr.rel (!%p28_p4) target bundleno = 10 (0xa), region = 151 }

</bundles_post_ra>
